<compile_context>
chip_gen: v6e
topology: v6e:2x2x1
jax: 0.10.0
libtpu: 0.0.40
codegen_flags: <defaults>
</compile_context>

<pallas_src>
import functools

import jax
import jax.numpy as jnp
from jax.experimental import pallas as pl
from jax.experimental.pallas import tpu as pltpu


LANE = 128  # vreg lane width: channel padding target for lane-dense MXU / store tiles


def _round_up(x: int, m: int) -> int:
    return (x + m - 1) // m * m


def _conv_block_kernel(x_ref, w1_ref, b1_ref, w2_ref, b2_ref, o_ref,
                       pad2_ref, acc_ref, *, H, W, K, Cinp, Cp):
    """Fused ConvBlock forward for one batch element.

    x_ref   : (H+2p, W+2p, Cinp)  bf16  input, pre-padded (halo + channel lanes) in wrapper
    w1_ref  : (K*K*Cinp, Cp)      bf16  packed conv1 weight, tap-major / channel-minor rows
    b1_ref  : (1, Cp)             f32
    w2_ref  : (K*K*Cp, Cp)        bf16  packed conv2 weight
    b2_ref  : (1, Cp)             f32
    o_ref   : (H*W, Cp)           bf16  lane-dense output
    pad2_ref: VMEM (H+2p, W+2p, Cp) bf16  halo slab for the conv1 output (never leaves VMEM)
    acc_ref : VMEM (H*W, Cp)        f32   shared per-conv accumulator
    """
    p = (K - 1) // 2
    HW = H * W
    Hp, Wp = H + 2 * p, W + 2 * p

    # Zero ONLY the p-wide halo ring of the intermediate slab; its interior is fully
    # overwritten below on every grid step.  O(p*(H+W)*C) stores instead of O(H*W*C).
    if p > 0:
        pad2_ref[0:p] = jnp.zeros((p, Wp, Cp), pad2_ref.dtype)
        pad2_ref[p + H:Hp] = jnp.zeros((p, Wp, Cp), pad2_ref.dtype)
        pad2_ref[p:p + H, 0:p] = jnp.zeros((H, p, Cp), pad2_ref.dtype)
        pad2_ref[p:p + H, p + W:Wp] = jnp.zeros((H, p, Cp), pad2_ref.dtype)

    def accumulate(read_tap, w_ref, C):
        """acc_ref <- sum_t read_tap(t) @ w_ref[t*C:(t+1)*C].

        Taps are fused in pairs (concat along the contraction/lane dim) so each matmul is
        2*C deep — fills v6e/v7x's 256-deep MXU and halves the f32 accumulator read-modify-
        writes.  First contribution overwrites acc_ref (no separate zero-init pass).
        """
        nt = K * K
        t, first = 0, True
        while t < nt:                                   # static (unrolled at trace time)
            span = 2 if t + 1 < nt else 1
            if span == 2:
                a = jnp.concatenate([read_tap(t), read_tap(t + 1)], axis=-1)
            else:
                a = read_tap(t)
            contrib = jnp.dot(a, w_ref[t * C:(t + span) * C, :],
                              preferred_element_type=jnp.float32)
            if first:
                acc_ref[...] = contrib
            else:
                acc_ref[...] += contrib
            first = False
            t += span

    # ---------------- conv1 + ReLU: per-tap accumulation straight from the input block ----
    # NOTE: kx-offset slices of the Wp-wide slab are sublane-unaligned; the resulting shifts
    # ride the otherwise-idle XLU/load path (acceptable; see review opt on pltpu.roll).
    def tap1(t):
        ky, kx = divmod(t, K)
        return x_ref[ky:ky + H, kx:kx + W, :].reshape(HW, Cinp)

    accumulate(tap1, w1_ref, Cinp)
    h = jnp.maximum(acc_ref[...] + b1_ref[...], 0.0)            # (HW, Cp) f32

    # Intermediate stays VMEM-resident, stored as bf16 (the MXU operands are bf16 anyway).
    pad2_ref[p:p + H, p:p + W, :] = h.reshape(H, W, Cp).astype(pad2_ref.dtype)

    # ---------------- conv2 + ReLU ---------------------------------------------------------
    def tap2(t):
        ky, kx = divmod(t, K)
        return pad2_ref[ky:ky + H, kx:kx + W, :].reshape(HW, Cp)

    accumulate(tap2, w2_ref, Cp)
    o_ref[...] = jnp.maximum(acc_ref[...] + b2_ref[...], 0.0).astype(o_ref.dtype)


def conv_block_forward(x_nchw, params):
    """ConvBlock forward (conv+ReLU+conv+ReLU), NCHW in / NCHW out."""
    (w1, b1), (w2, b2) = params
    N, Cin, H, W = x_nchw.shape
    K, _, _, Cout = w1.shape
    p = (K - 1) // 2
    Hp, Wp = H + 2 * p, W + 2 * p
    Cinp = _round_up(Cin, LANE)    # padded conv1 input channels (lane-dense tap reads)
    Cp = _round_up(Cout, LANE)     # padded output channels -> lane-dense matmuls / stores

    # NCHW -> NHWC, bf16; pad channels to the lane width and add conv1's 'same' halo here
    # (layout plumbing): every in-kernel read/store is then dense, and the kernel needs no
    # input-side halo scratch or memset at all.
    x = jnp.transpose(x_nchw, (0, 2, 3, 1)).astype(jnp.bfloat16)
    x = jnp.pad(x, ((0, 0), (p, p), (p, p), (0, Cinp - Cin)))

    # Pack weights once: (K,K,Ci,Co) -> (K*K*Ci_pad, Co_pad) bf16, tap-major row order
    # matching the kernel's per-tap (and tap-pair) weight-row slices.
    w1p = jnp.pad(w1, ((0, 0), (0, 0), (0, Cinp - Cin), (0, Cp - Cout)))
    w1p = w1p.reshape(K * K * Cinp, Cp).astype(jnp.bfloat16)
    b1p = jnp.pad(b1, (0, Cp - Cout)).reshape(1, Cp).astype(jnp.float32)
    w2p = jnp.pad(w2, ((0, 0), (0, 0), (0, Cp - Cout), (0, Cp - Cout)))
    w2p = w2p.reshape(K * K * Cp, Cp).astype(jnp.bfloat16)
    b2p = jnp.pad(b2, (0, Cp - Cout)).reshape(1, Cp).astype(jnp.float32)

    kernel = functools.partial(_conv_block_kernel, H=H, W=W, K=K, Cinp=Cinp, Cp=Cp)

    out = pl.pallas_call(
        kernel,
        out_shape=jax.ShapeDtypeStruct((N, H * W, Cp), jnp.bfloat16),
        grid=(N,),
        in_specs=[
            pl.BlockSpec((None, Hp, Wp, Cinp), lambda n: (n, 0, 0, 0)),
            pl.BlockSpec((K * K * Cinp, Cp), lambda n: (0, 0)),
            pl.BlockSpec((1, Cp), lambda n: (0, 0)),
            pl.BlockSpec((K * K * Cp, Cp), lambda n: (0, 0)),
            pl.BlockSpec((1, Cp), lambda n: (0, 0)),
        ],
        out_specs=pl.BlockSpec((None, H * W, Cp), lambda n: (n, 0, 0)),
        scratch_shapes=[
            pltpu.VMEM((Hp, Wp, Cp), jnp.bfloat16),   # conv1->conv2 halo slab (bf16)
            pltpu.VMEM((H * W, Cp), jnp.float32),     # shared f32 tap accumulator
        ],
        compiler_params=pltpu.CompilerParams(
            dimension_semantics=("parallel",),
            vmem_limit_bytes=48 * 1024 * 1024,        # <= v7x physical 64 MiB with headroom
        ),
    )(x, w1p, b1p, w2p, b2p)

    out = out.reshape(N, H, W, Cp)[..., :Cout].astype(jnp.float32)  # drop padded lanes
    return jnp.transpose(out, (0, 3, 1, 2))                          # NHWC -> NCHW


# -----------------------------------------------------------------------------
# Parameter construction (mirrors the PyTorch module's init)
# -----------------------------------------------------------------------------
def init_conv_block_params(key, in_channels, out_channels, kernel_size):
    def one_conv(k, cin, cout):
        wk, bk = jax.random.split(k)
        fan_in = cin * kernel_size * kernel_size
        w = (2.0 / fan_in) ** 0.5 * jax.random.normal(            # kaiming_normal_, relu
            wk, (kernel_size, kernel_size, cin, cout), jnp.float32)  # HWIO
        bound = 1.0 / fan_in ** 0.5                                # PyTorch default bias init
        b = jax.random.uniform(bk, (cout,), jnp.float32, -bound, bound)
        return w, b

    k1, k2 = jax.random.split(key)
    return (one_conv(k1, in_channels, out_channels),
            one_conv(k2, out_channels, out_channels))


def _reference_forward(x_nchw, params):
    """Pure-JAX reference with the same bf16 operand rounding as the kernel."""
    (w1, b1), (w2, b2) = params

    def conv_relu(h, w, b):
        w = w.astype(jnp.bfloat16).astype(jnp.float32)
        y = jax.lax.conv_general_dilated(
            h, w, window_strides=(1, 1), padding="SAME",
            dimension_numbers=("NHWC", "HWIO", "NHWC"))
        return jnp.maximum(y + b, 0.0)

    h = jnp.transpose(x_nchw, (0, 2, 3, 1)).astype(jnp.bfloat16).astype(jnp.float32)
    h = conv_relu(h, w1, b1).astype(jnp.bfloat16).astype(jnp.float32)
    h = conv_relu(h, w2, b2)
    return jnp.transpose(h, (0, 3, 1, 2))


# -----------------------------------------------------------------------------
if __name__ == "__main__":
    # Small shapes consistent with ConvBlock(in_channels=4, out_channels=8, kernel_size=3,
    # padding='same', ndim=2)
    N, IN_CH, OUT_CH, KSIZE, H, W = 2, 4, 8, 3, 16, 16

    key = jax.random.PRNGKey(0)
    pkey, xkey = jax.random.split(key)
    params = init_conv_block_params(pkey, IN_CH, OUT_CH, KSIZE)
    x = jax.random.normal(xkey, (N, IN_CH, H, W), jnp.float32)   # NCHW, like PyTorch

    out = jax.block_until_ready(conv_block_forward(x, params))
    assert out.shape == (N, OUT_CH, H, W), out.shape

    ref = _reference_forward(x, params)
    max_err = float(jnp.max(jnp.abs(out - ref)))
    assert max_err < 5e-2, f"max abs error vs reference: {max_err}"

    print("KERNEL_OK")
</pallas_src>

<mosaic_0001>
module attributes {stable_mosaic.version = 11 : i64} {
  func.func @_conv_block_kernel(%arg0: i32, %arg1: memref<1x18x18x128xbf16, #tpu.memory_space<vmem>>, %arg2: memref<1152x128xbf16, #tpu.memory_space<vmem>>, %arg3: memref<1x128xf32, #tpu.memory_space<vmem>>, %arg4: memref<1152x128xbf16, #tpu.memory_space<vmem>>, %arg5: memref<1x128xf32, #tpu.memory_space<vmem>>, %arg6: memref<1x256x128xbf16, #tpu.memory_space<vmem>>, %arg7: memref<18x18x128xbf16, #tpu.memory_space<vmem>>, %arg8: memref<256x128xf32, #tpu.memory_space<vmem>>) attributes {dimension_semantics = [#tpu.dimension_semantics<parallel>], iteration_bounds = array<i64: 2>, scalar_prefetch = 0 : i64, scratch_operands = 2 : i64, tpu.core_type = #tpu.core_type<tc>, window_params = [{transform_indices = @transform_0, window_bounds = array<i64: 1, 18, 18, 128>}, {pipeline_mode = #tpu.pipeline_mode<synchronous>, transform_indices = @transform_1, window_bounds = array<i64: 1152, 128>}, {pipeline_mode = #tpu.pipeline_mode<synchronous>, transform_indices = @transform_2, window_bounds = array<i64: 1, 128>}, {pipeline_mode = #tpu.pipeline_mode<synchronous>, transform_indices = @transform_3, window_bounds = array<i64: 1152, 128>}, {pipeline_mode = #tpu.pipeline_mode<synchronous>, transform_indices = @transform_4, window_bounds = array<i64: 1, 128>}, {transform_indices = @transform_5, window_bounds = array<i64: 1, 256, 128>}]} {
    %cst = arith.constant 0.000000e+00 : bf16
    %0 = vector.broadcast %cst : bf16 to vector<1x18x128xbf16>
    %c0 = arith.constant 0 : index
    %c0_0 = arith.constant 0 : index
    %c0_1 = arith.constant 0 : index
    %1 = vector.load %arg7[%c0, %c0_0, %c0_1] : memref<18x18x128xbf16, #tpu.memory_space<vmem>>, vector<1x18x128xbf16>
    tpu.vector_store %arg7[%c0, %c0_0, %c0_1], %0 {strides = array<i32>} : memref<18x18x128xbf16, #tpu.memory_space<vmem>>, vector<1x18x128xbf16>,
    %cst_2 = arith.constant 0.000000e+00 : bf16
    %2 = vector.broadcast %cst_2 : bf16 to vector<1x18x128xbf16>
    %c17 = arith.constant 17 : index
    %c0_3 = arith.constant 0 : index
    %c0_4 = arith.constant 0 : index
    %3 = vector.load %arg7[%c17, %c0_3, %c0_4] : memref<18x18x128xbf16, #tpu.memory_space<vmem>>, vector<1x18x128xbf16>
    tpu.vector_store %arg7[%c17, %c0_3, %c0_4], %2 {strides = array<i32>} : memref<18x18x128xbf16, #tpu.memory_space<vmem>>, vector<1x18x128xbf16>,
    %cst_5 = arith.constant 0.000000e+00 : bf16
    %4 = vector.broadcast %cst_5 : bf16 to vector<16x1x128xbf16>
    %c1 = arith.constant 1 : index
    %c0_6 = arith.constant 0 : index
    %c0_7 = arith.constant 0 : index
    %5 = vector.load %arg7[%c1, %c0_6, %c0_7] : memref<18x18x128xbf16, #tpu.memory_space<vmem>>, vector<16x1x128xbf16>
    tpu.vector_store %arg7[%c1, %c0_6, %c0_7], %4 {strides = array<i32>} : memref<18x18x128xbf16, #tpu.memory_space<vmem>>, vector<16x1x128xbf16>,
    %cst_8 = arith.constant 0.000000e+00 : bf16
    %6 = vector.broadcast %cst_8 : bf16 to vector<16x1x128xbf16>
    %c1_9 = arith.constant 1 : index
    %c17_10 = arith.constant 17 : index
    %c0_11 = arith.constant 0 : index
    %7 = vector.load %arg7[%c1_9, %c17_10, %c0_11] : memref<18x18x128xbf16, #tpu.memory_space<vmem>>, vector<16x1x128xbf16>
    tpu.vector_store %arg7[%c1_9, %c17_10, %c0_11], %6 {strides = array<i32>} : memref<18x18x128xbf16, #tpu.memory_space<vmem>>, vector<16x1x128xbf16>,
    %c0_12 = arith.constant 0 : index
    %c0_13 = arith.constant 0 : index
    %c0_14 = arith.constant 0 : index
    %c0_15 = arith.constant 0 : index
    %8 = vector.load %arg1[%c0_12, %c0_13, %c0_14, %c0_15] : memref<1x18x18x128xbf16, #tpu.memory_space<vmem>>, vector<1x16x16x128xbf16>
    %9 = vector.shape_cast %8 : vector<1x16x16x128xbf16> to vector<16x16x128xbf16>
    %10 = vector.shape_cast %9 : vector<16x16x128xbf16> to vector<256x128xbf16>
    %c0_16 = arith.constant 0 : index
    %c0_17 = arith.constant 0 : index
    %c1_18 = arith.constant 1 : index
    %c0_19 = arith.constant 0 : index
    %11 = vector.load %arg1[%c0_16, %c0_17, %c1_18, %c0_19] : memref<1x18x18x128xbf16, #tpu.memory_space<vmem>>, vector<1x16x16x128xbf16>
    %12 = vector.shape_cast %11 : vector<1x16x16x128xbf16> to vector<16x16x128xbf16>
    %13 = vector.shape_cast %12 : vector<16x16x128xbf16> to vector<256x128xbf16>
    %14 = tpu.concatenate %10, %13 in 1 : vector<256x128xbf16>, vector<256x128xbf16> -> vector<256x256xbf16>
    %c0_20 = arith.constant 0 : index
    %c0_21 = arith.constant 0 : index
    %15 = vector.load %arg2[%c0_20, %c0_21] : memref<1152x128xbf16, #tpu.memory_space<vmem>>, vector<256x128xbf16>
    %cst_22 = arith.constant dense<0.000000e+00> : vector<256x128xf32>
    %16 = tpu.matmul %14, %15, %cst_22 {dimension_numbers = #tpu.dot_dimension_numbers<[1], [0], [0], [1], [0, 0, 1, 1], [], []>} : vector<256x256xbf16>, vector<256x128xbf16>, vector<256x128xf32> -> vector<256x128xf32>
    %c0_23 = arith.constant 0 : index
    %c0_24 = arith.constant 0 : index
    %17 = vector.load %arg8[%c0_23, %c0_24] : memref<256x128xf32, #tpu.memory_space<vmem>>, vector<256x128xf32>
    tpu.vector_store %arg8[%c0_23, %c0_24], %16 {strides = array<i32>} : memref<256x128xf32, #tpu.memory_space<vmem>>, vector<256x128xf32>,
    %c0_25 = arith.constant 0 : index
    %c0_26 = arith.constant 0 : index
    %c2 = arith.constant 2 : index
    %c0_27 = arith.constant 0 : index
    %18 = vector.load %arg1[%c0_25, %c0_26, %c2, %c0_27] : memref<1x18x18x128xbf16, #tpu.memory_space<vmem>>, vector<1x16x16x128xbf16>
    %19 = vector.shape_cast %18 : vector<1x16x16x128xbf16> to vector<16x16x128xbf16>
    %20 = vector.shape_cast %19 : vector<16x16x128xbf16> to vector<256x128xbf16>
    %c0_28 = arith.constant 0 : index
    %c1_29 = arith.constant 1 : index
    %c0_30 = arith.constant 0 : index
    %c0_31 = arith.constant 0 : index
    %21 = vector.load %arg1[%c0_28, %c1_29, %c0_30, %c0_31] : memref<1x18x18x128xbf16, #tpu.memory_space<vmem>>, vector<1x16x16x128xbf16>
    %22 = vector.shape_cast %21 : vector<1x16x16x128xbf16> to vector<16x16x128xbf16>
    %23 = vector.shape_cast %22 : vector<16x16x128xbf16> to vector<256x128xbf16>
    %24 = tpu.concatenate %20, %23 in 1 : vector<256x128xbf16>, vector<256x128xbf16> -> vector<256x256xbf16>
    %c256 = arith.constant 256 : index
    %c0_32 = arith.constant 0 : index
    %25 = vector.load %arg2[%c256, %c0_32] : memref<1152x128xbf16, #tpu.memory_space<vmem>>, vector<256x128xbf16>
    %cst_33 = arith.constant dense<0.000000e+00> : vector<256x128xf32>
    %26 = tpu.matmul %24, %25, %cst_33 {dimension_numbers = #tpu.dot_dimension_numbers<[1], [0], [0], [1], [0, 0, 1, 1], [], []>} : vector<256x256xbf16>, vector<256x128xbf16>, vector<256x128xf32> -> vector<256x128xf32>
    %c0_34 = arith.constant 0 : index
    %c0_35 = arith.constant 0 : index
    %27 = vector.load %arg8[%c0_34, %c0_35] : memref<256x128xf32, #tpu.memory_space<vmem>>, vector<256x128xf32>
    %28 = arith.addf %27, %26 : vector<256x128xf32>
    %c0_36 = arith.constant 0 : index
    %c0_37 = arith.constant 0 : index
    %29 = vector.load %arg8[%c0_36, %c0_37] : memref<256x128xf32, #tpu.memory_space<vmem>>, vector<256x128xf32>
    tpu.vector_store %arg8[%c0_36, %c0_37], %28 {strides = array<i32>} : memref<256x128xf32, #tpu.memory_space<vmem>>, vector<256x128xf32>,
    %c0_38 = arith.constant 0 : index
    %c1_39 = arith.constant 1 : index
    %c1_40 = arith.constant 1 : index
    %c0_41 = arith.constant 0 : index
    %30 = vector.load %arg1[%c0_38, %c1_39, %c1_40, %c0_41] : memref<1x18x18x128xbf16, #tpu.memory_space<vmem>>, vector<1x16x16x128xbf16>
    %31 = vector.shape_cast %30 : vector<1x16x16x128xbf16> to vector<16x16x128xbf16>
    %32 = vector.shape_cast %31 : vector<16x16x128xbf16> to vector<256x128xbf16>
    %c0_42 = arith.constant 0 : index
    %c1_43 = arith.constant 1 : index
    %c2_44 = arith.constant 2 : index
    %c0_45 = arith.constant 0 : index
    %33 = vector.load %arg1[%c0_42, %c1_43, %c2_44, %c0_45] : memref<1x18x18x128xbf16, #tpu.memory_space<vmem>>, vector<1x16x16x128xbf16>
    %34 = vector.shape_cast %33 : vector<1x16x16x128xbf16> to vector<16x16x128xbf16>
    %35 = vector.shape_cast %34 : vector<16x16x128xbf16> to vector<256x128xbf16>
    %36 = tpu.concatenate %32, %35 in 1 : vector<256x128xbf16>, vector<256x128xbf16> -> vector<256x256xbf16>
    %c512 = arith.constant 512 : index
    %c0_46 = arith.constant 0 : index
    %37 = vector.load %arg2[%c512, %c0_46] : memref<1152x128xbf16, #tpu.memory_space<vmem>>, vector<256x128xbf16>
    %cst_47 = arith.constant dense<0.000000e+00> : vector<256x128xf32>
    %38 = tpu.matmul %36, %37, %cst_47 {dimension_numbers = #tpu.dot_dimension_numbers<[1], [0], [0], [1], [0, 0, 1, 1], [], []>} : vector<256x256xbf16>, vector<256x128xbf16>, vector<256x128xf32> -> vector<256x128xf32>
    %c0_48 = arith.constant 0 : index
    %c0_49 = arith.constant 0 : index
    %39 = vector.load %arg8[%c0_48, %c0_49] : memref<256x128xf32, #tpu.memory_space<vmem>>, vector<256x128xf32>
    %40 = arith.addf %39, %38 : vector<256x128xf32>
    %c0_50 = arith.constant 0 : index
    %c0_51 = arith.constant 0 : index
    %41 = vector.load %arg8[%c0_50, %c0_51] : memref<256x128xf32, #tpu.memory_space<vmem>>, vector<256x128xf32>
    tpu.vector_store %arg8[%c0_50, %c0_51], %40 {strides = array<i32>} : memref<256x128xf32, #tpu.memory_space<vmem>>, vector<256x128xf32>,
    %c0_52 = arith.constant 0 : index
    %c2_53 = arith.constant 2 : index
    %c0_54 = arith.constant 0 : index
    %c0_55 = arith.constant 0 : index
    %42 = vector.load %arg1[%c0_52, %c2_53, %c0_54, %c0_55] : memref<1x18x18x128xbf16, #tpu.memory_space<vmem>>, vector<1x16x16x128xbf16>
    %43 = vector.shape_cast %42 : vector<1x16x16x128xbf16> to vector<16x16x128xbf16>
    %44 = vector.shape_cast %43 : vector<16x16x128xbf16> to vector<256x128xbf16>
    %c0_56 = arith.constant 0 : index
    %c2_57 = arith.constant 2 : index
    %c1_58 = arith.constant 1 : index
    %c0_59 = arith.constant 0 : index
    %45 = vector.load %arg1[%c0_56, %c2_57, %c1_58, %c0_59] : memref<1x18x18x128xbf16, #tpu.memory_space<vmem>>, vector<1x16x16x128xbf16>
    %46 = vector.shape_cast %45 : vector<1x16x16x128xbf16> to vector<16x16x128xbf16>
    %47 = vector.shape_cast %46 : vector<16x16x128xbf16> to vector<256x128xbf16>
    %48 = tpu.concatenate %44, %47 in 1 : vector<256x128xbf16>, vector<256x128xbf16> -> vector<256x256xbf16>
    %c768 = arith.constant 768 : index
    %c0_60 = arith.constant 0 : index
    %49 = vector.load %arg2[%c768, %c0_60] : memref<1152x128xbf16, #tpu.memory_space<vmem>>, vector<256x128xbf16>
    %cst_61 = arith.constant dense<0.000000e+00> : vector<256x128xf32>
    %50 = tpu.matmul %48, %49, %cst_61 {dimension_numbers = #tpu.dot_dimension_numbers<[1], [0], [0], [1], [0, 0, 1, 1], [], []>} : vector<256x256xbf16>, vector<256x128xbf16>, vector<256x128xf32> -> vector<256x128xf32>
    %c0_62 = arith.constant 0 : index
    %c0_63 = arith.constant 0 : index
    %51 = vector.load %arg8[%c0_62, %c0_63] : memref<256x128xf32, #tpu.memory_space<vmem>>, vector<256x128xf32>
    %52 = arith.addf %51, %50 : vector<256x128xf32>
    %c0_64 = arith.constant 0 : index
    %c0_65 = arith.constant 0 : index
    %53 = vector.load %arg8[%c0_64, %c0_65] : memref<256x128xf32, #tpu.memory_space<vmem>>, vector<256x128xf32>
    tpu.vector_store %arg8[%c0_64, %c0_65], %52 {strides = array<i32>} : memref<256x128xf32, #tpu.memory_space<vmem>>, vector<256x128xf32>,
    %c0_66 = arith.constant 0 : index
    %c2_67 = arith.constant 2 : index
    %c2_68 = arith.constant 2 : index
    %c0_69 = arith.constant 0 : index
    %54 = vector.load %arg1[%c0_66, %c2_67, %c2_68, %c0_69] : memref<1x18x18x128xbf16, #tpu.memory_space<vmem>>, vector<1x16x16x128xbf16>
    %55 = vector.shape_cast %54 : vector<1x16x16x128xbf16> to vector<16x16x128xbf16>
    %56 = vector.shape_cast %55 : vector<16x16x128xbf16> to vector<256x128xbf16>
    %c1024 = arith.constant 1024 : index
    %c0_70 = arith.constant 0 : index
    %57 = vector.load %arg2[%c1024, %c0_70] : memref<1152x128xbf16, #tpu.memory_space<vmem>>, vector<128x128xbf16>
    %cst_71 = arith.constant dense<0.000000e+00> : vector<256x128xf32>
    %58 = tpu.matmul %56, %57, %cst_71 {dimension_numbers = #tpu.dot_dimension_numbers<[1], [0], [0], [1], [0, 0, 1, 1], [], []>} : vector<256x128xbf16>, vector<128x128xbf16>, vector<256x128xf32> -> vector<256x128xf32>
    %c0_72 = arith.constant 0 : index
    %c0_73 = arith.constant 0 : index
    %59 = vector.load %arg8[%c0_72, %c0_73] : memref<256x128xf32, #tpu.memory_space<vmem>>, vector<256x128xf32>
    %60 = arith.addf %59, %58 : vector<256x128xf32>
    %c0_74 = arith.constant 0 : index
    %c0_75 = arith.constant 0 : index
    %61 = vector.load %arg8[%c0_74, %c0_75] : memref<256x128xf32, #tpu.memory_space<vmem>>, vector<256x128xf32>
    tpu.vector_store %arg8[%c0_74, %c0_75], %60 {strides = array<i32>} : memref<256x128xf32, #tpu.memory_space<vmem>>, vector<256x128xf32>,
    %c0_76 = arith.constant 0 : index
    %c0_77 = arith.constant 0 : index
    %62 = vector.load %arg8[%c0_76, %c0_77] : memref<256x128xf32, #tpu.memory_space<vmem>>, vector<256x128xf32>
    %c0_78 = arith.constant 0 : index
    %c0_79 = arith.constant 0 : index
    %63 = vector.load %arg3[%c0_78, %c0_79] : memref<1x128xf32, #tpu.memory_space<vmem>>, vector<1x128xf32>
    %64 = vector.broadcast %63 : vector<1x128xf32> to vector<256x128xf32>
    %65 = arith.addf %62, %64 : vector<256x128xf32>
    %cst_80 = arith.constant 0.000000e+00 : f32
    %66 = vector.broadcast %cst_80 : f32 to vector<256x128xf32>
    %67 = arith.maximumf %65, %66 : vector<256x128xf32>
    %68 = vector.shape_cast %67 : vector<256x128xf32> to vector<16x16x128xf32>
    %69 = arith.truncf %68 : vector<16x16x128xf32> to vector<16x16x128xbf16>
    %c1_81 = arith.constant 1 : index
    %c1_82 = arith.constant 1 : index
    %c0_83 = arith.constant 0 : index
    %70 = vector.load %arg7[%c1_81, %c1_82, %c0_83] : memref<18x18x128xbf16, #tpu.memory_space<vmem>>, vector<16x16x128xbf16>
    tpu.vector_store %arg7[%c1_81, %c1_82, %c0_83], %69 {strides = array<i32>} : memref<18x18x128xbf16, #tpu.memory_space<vmem>>, vector<16x16x128xbf16>,
    %c0_84 = arith.constant 0 : index
    %c0_85 = arith.constant 0 : index
    %c0_86 = arith.constant 0 : index
    %71 = vector.load %arg7[%c0_84, %c0_85, %c0_86] : memref<18x18x128xbf16, #tpu.memory_space<vmem>>, vector<16x16x128xbf16>
    %72 = vector.shape_cast %71 : vector<16x16x128xbf16> to vector<256x128xbf16>
    %c0_87 = arith.constant 0 : index
    %c1_88 = arith.constant 1 : index
    %c0_89 = arith.constant 0 : index
    %73 = vector.load %arg7[%c0_87, %c1_88, %c0_89] : memref<18x18x128xbf16, #tpu.memory_space<vmem>>, vector<16x16x128xbf16>
    %74 = vector.shape_cast %73 : vector<16x16x128xbf16> to vector<256x128xbf16>
    %75 = tpu.concatenate %72, %74 in 1 : vector<256x128xbf16>, vector<256x128xbf16> -> vector<256x256xbf16>
    %c0_90 = arith.constant 0 : index
    %c0_91 = arith.constant 0 : index
    %76 = vector.load %arg4[%c0_90, %c0_91] : memref<1152x128xbf16, #tpu.memory_space<vmem>>, vector<256x128xbf16>
    %cst_92 = arith.constant dense<0.000000e+00> : vector<256x128xf32>
    %77 = tpu.matmul %75, %76, %cst_92 {dimension_numbers = #tpu.dot_dimension_numbers<[1], [0], [0], [1], [0, 0, 1, 1], [], []>} : vector<256x256xbf16>, vector<256x128xbf16>, vector<256x128xf32> -> vector<256x128xf32>
    %c0_93 = arith.constant 0 : index
    %c0_94 = arith.constant 0 : index
    %78 = vector.load %arg8[%c0_93, %c0_94] : memref<256x128xf32, #tpu.memory_space<vmem>>, vector<256x128xf32>
    tpu.vector_store %arg8[%c0_93, %c0_94], %77 {strides = array<i32>} : memref<256x128xf32, #tpu.memory_space<vmem>>, vector<256x128xf32>,
    %c0_95 = arith.constant 0 : index
    %c2_96 = arith.constant 2 : index
    %c0_97 = arith.constant 0 : index
    %79 = vector.load %arg7[%c0_95, %c2_96, %c0_97] : memref<18x18x128xbf16, #tpu.memory_space<vmem>>, vector<16x16x128xbf16>
    %80 = vector.shape_cast %79 : vector<16x16x128xbf16> to vector<256x128xbf16>
    %c1_98 = arith.constant 1 : index
    %c0_99 = arith.constant 0 : index
    %c0_100 = arith.constant 0 : index
    %81 = vector.load %arg7[%c1_98, %c0_99, %c0_100] : memref<18x18x128xbf16, #tpu.memory_space<vmem>>, vector<16x16x128xbf16>
    %82 = vector.shape_cast %81 : vector<16x16x128xbf16> to vector<256x128xbf16>
    %83 = tpu.concatenate %80, %82 in 1 : vector<256x128xbf16>, vector<256x128xbf16> -> vector<256x256xbf16>
    %c256_101 = arith.constant 256 : index
    %c0_102 = arith.constant 0 : index
    %84 = vector.load %arg4[%c256_101, %c0_102] : memref<1152x128xbf16, #tpu.memory_space<vmem>>, vector<256x128xbf16>
    %cst_103 = arith.constant dense<0.000000e+00> : vector<256x128xf32>
    %85 = tpu.matmul %83, %84, %cst_103 {dimension_numbers = #tpu.dot_dimension_numbers<[1], [0], [0], [1], [0, 0, 1, 1], [], []>} : vector<256x256xbf16>, vector<256x128xbf16>, vector<256x128xf32> -> vector<256x128xf32>
    %c0_104 = arith.constant 0 : index
    %c0_105 = arith.constant 0 : index
    %86 = vector.load %arg8[%c0_104, %c0_105] : memref<256x128xf32, #tpu.memory_space<vmem>>, vector<256x128xf32>
    %87 = arith.addf %86, %85 : vector<256x128xf32>
    %c0_106 = arith.constant 0 : index
    %c0_107 = arith.constant 0 : index
    %88 = vector.load %arg8[%c0_106, %c0_107] : memref<256x128xf32, #tpu.memory_space<vmem>>, vector<256x128xf32>
    tpu.vector_store %arg8[%c0_106, %c0_107], %87 {strides = array<i32>} : memref<256x128xf32, #tpu.memory_space<vmem>>, vector<256x128xf32>,
    %c1_108 = arith.constant 1 : index
    %c1_109 = arith.constant 1 : index
    %c0_110 = arith.constant 0 : index
    %89 = vector.load %arg7[%c1_108, %c1_109, %c0_110] : memref<18x18x128xbf16, #tpu.memory_space<vmem>>, vector<16x16x128xbf16>
    %90 = vector.shape_cast %89 : vector<16x16x128xbf16> to vector<256x128xbf16>
    %c1_111 = arith.constant 1 : index
    %c2_112 = arith.constant 2 : index
    %c0_113 = arith.constant 0 : index
    %91 = vector.load %arg7[%c1_111, %c2_112, %c0_113] : memref<18x18x128xbf16, #tpu.memory_space<vmem>>, vector<16x16x128xbf16>
    %92 = vector.shape_cast %91 : vector<16x16x128xbf16> to vector<256x128xbf16>
    %93 = tpu.concatenate %90, %92 in 1 : vector<256x128xbf16>, vector<256x128xbf16> -> vector<256x256xbf16>
    %c512_114 = arith.constant 512 : index
    %c0_115 = arith.constant 0 : index
    %94 = vector.load %arg4[%c512_114, %c0_115] : memref<1152x128xbf16, #tpu.memory_space<vmem>>, vector<256x128xbf16>
    %cst_116 = arith.constant dense<0.000000e+00> : vector<256x128xf32>
    %95 = tpu.matmul %93, %94, %cst_116 {dimension_numbers = #tpu.dot_dimension_numbers<[1], [0], [0], [1], [0, 0, 1, 1], [], []>} : vector<256x256xbf16>, vector<256x128xbf16>, vector<256x128xf32> -> vector<256x128xf32>
    %c0_117 = arith.constant 0 : index
    %c0_118 = arith.constant 0 : index
    %96 = vector.load %arg8[%c0_117, %c0_118] : memref<256x128xf32, #tpu.memory_space<vmem>>, vector<256x128xf32>
    %97 = arith.addf %96, %95 : vector<256x128xf32>
    %c0_119 = arith.constant 0 : index
    %c0_120 = arith.constant 0 : index
    %98 = vector.load %arg8[%c0_119, %c0_120] : memref<256x128xf32, #tpu.memory_space<vmem>>, vector<256x128xf32>
    tpu.vector_store %arg8[%c0_119, %c0_120], %97 {strides = array<i32>} : memref<256x128xf32, #tpu.memory_space<vmem>>, vector<256x128xf32>,
    %c2_121 = arith.constant 2 : index
    %c0_122 = arith.constant 0 : index
    %c0_123 = arith.constant 0 : index
    %99 = vector.load %arg7[%c2_121, %c0_122, %c0_123] : memref<18x18x128xbf16, #tpu.memory_space<vmem>>, vector<16x16x128xbf16>
    %100 = vector.shape_cast %99 : vector<16x16x128xbf16> to vector<256x128xbf16>
    %c2_124 = arith.constant 2 : index
    %c1_125 = arith.constant 1 : index
    %c0_126 = arith.constant 0 : index
    %101 = vector.load %arg7[%c2_124, %c1_125, %c0_126] : memref<18x18x128xbf16, #tpu.memory_space<vmem>>, vector<16x16x128xbf16>
    %102 = vector.shape_cast %101 : vector<16x16x128xbf16> to vector<256x128xbf16>
    %103 = tpu.concatenate %100, %102 in 1 : vector<256x128xbf16>, vector<256x128xbf16> -> vector<256x256xbf16>
    %c768_127 = arith.constant 768 : index
    %c0_128 = arith.constant 0 : index
    %104 = vector.load %arg4[%c768_127, %c0_128] : memref<1152x128xbf16, #tpu.memory_space<vmem>>, vector<256x128xbf16>
    %cst_129 = arith.constant dense<0.000000e+00> : vector<256x128xf32>
    %105 = tpu.matmul %103, %104, %cst_129 {dimension_numbers = #tpu.dot_dimension_numbers<[1], [0], [0], [1], [0, 0, 1, 1], [], []>} : vector<256x256xbf16>, vector<256x128xbf16>, vector<256x128xf32> -> vector<256x128xf32>
    %c0_130 = arith.constant 0 : index
    %c0_131 = arith.constant 0 : index
    %106 = vector.load %arg8[%c0_130, %c0_131] : memref<256x128xf32, #tpu.memory_space<vmem>>, vector<256x128xf32>
    %107 = arith.addf %106, %105 : vector<256x128xf32>
    %c0_132 = arith.constant 0 : index
    %c0_133 = arith.constant 0 : index
    %108 = vector.load %arg8[%c0_132, %c0_133] : memref<256x128xf32, #tpu.memory_space<vmem>>, vector<256x128xf32>
    tpu.vector_store %arg8[%c0_132, %c0_133], %107 {strides = array<i32>} : memref<256x128xf32, #tpu.memory_space<vmem>>, vector<256x128xf32>,
    %c2_134 = arith.constant 2 : index
    %c2_135 = arith.constant 2 : index
    %c0_136 = arith.constant 0 : index
    %109 = vector.load %arg7[%c2_134, %c2_135, %c0_136] : memref<18x18x128xbf16, #tpu.memory_space<vmem>>, vector<16x16x128xbf16>
    %110 = vector.shape_cast %109 : vector<16x16x128xbf16> to vector<256x128xbf16>
    %c1024_137 = arith.constant 1024 : index
    %c0_138 = arith.constant 0 : index
    %111 = vector.load %arg4[%c1024_137, %c0_138] : memref<1152x128xbf16, #tpu.memory_space<vmem>>, vector<128x128xbf16>
    %cst_139 = arith.constant dense<0.000000e+00> : vector<256x128xf32>
    %112 = tpu.matmul %110, %111, %cst_139 {dimension_numbers = #tpu.dot_dimension_numbers<[1], [0], [0], [1], [0, 0, 1, 1], [], []>} : vector<256x128xbf16>, vector<128x128xbf16>, vector<256x128xf32> -> vector<256x128xf32>
    %c0_140 = arith.constant 0 : index
    %c0_141 = arith.constant 0 : index
    %113 = vector.load %arg8[%c0_140, %c0_141] : memref<256x128xf32, #tpu.memory_space<vmem>>, vector<256x128xf32>
    %114 = arith.addf %113, %112 : vector<256x128xf32>
    %c0_142 = arith.constant 0 : index
    %c0_143 = arith.constant 0 : index
    %115 = vector.load %arg8[%c0_142, %c0_143] : memref<256x128xf32, #tpu.memory_space<vmem>>, vector<256x128xf32>
    tpu.vector_store %arg8[%c0_142, %c0_143], %114 {strides = array<i32>} : memref<256x128xf32, #tpu.memory_space<vmem>>, vector<256x128xf32>,
    %c0_144 = arith.constant 0 : index
    %c0_145 = arith.constant 0 : index
    %116 = vector.load %arg8[%c0_144, %c0_145] : memref<256x128xf32, #tpu.memory_space<vmem>>, vector<256x128xf32>
    %c0_146 = arith.constant 0 : index
    %c0_147 = arith.constant 0 : index
    %117 = vector.load %arg5[%c0_146, %c0_147] : memref<1x128xf32, #tpu.memory_space<vmem>>, vector<1x128xf32>
    %118 = vector.broadcast %117 : vector<1x128xf32> to vector<256x128xf32>
    %119 = arith.addf %116, %118 : vector<256x128xf32>
    %cst_148 = arith.constant 0.000000e+00 : f32
    %120 = vector.broadcast %cst_148 : f32 to vector<256x128xf32>
    %121 = arith.maximumf %119, %120 : vector<256x128xf32>
    %122 = arith.truncf %121 : vector<256x128xf32> to vector<256x128xbf16>
    %c0_149 = arith.constant 0 : index
    %c0_150 = arith.constant 0 : index
    %c0_151 = arith.constant 0 : index
    %123 = vector.load %arg6[%c0_149, %c0_150, %c0_151] : memref<1x256x128xbf16, #tpu.memory_space<vmem>>, vector<1x256x128xbf16>
    %124 = vector.shape_cast %123 : vector<1x256x128xbf16> to vector<256x128xbf16>
    %125 = vector.shape_cast %122 : vector<256x128xbf16> to vector<1x256x128xbf16>
    tpu.vector_store %arg6[%c0_149, %c0_150, %c0_151], %125 {strides = array<i32>} : memref<1x256x128xbf16, #tpu.memory_space<vmem>>, vector<1x256x128xbf16>,
    return
  }
  func.func @transform_0(%arg0: i32) -> (i32, i32, i32, i32) {
    %c0_i32 = arith.constant 0 : i32
    %c0_i32_0 = arith.constant 0 : i32
    %c0_i32_1 = arith.constant 0 : i32
    %c0_i32_2 = arith.constant 0 : i32
    return %arg0, %c0_i32, %c0_i32_0, %c0_i32_1 : i32, i32, i32, i32
  }
  func.func @transform_1(%arg0: i32) -> (i32, i32) {
    %c0_i32 = arith.constant 0 : i32
    %c0_i32_0 = arith.constant 0 : i32
    %c0_i32_1 = arith.constant 0 : i32
    return %c0_i32, %c0_i32_0 : i32, i32
  }
  func.func @transform_2(%arg0: i32) -> (i32, i32) {
    %c0_i32 = arith.constant 0 : i32
    %c0_i32_0 = arith.constant 0 : i32
    %c0_i32_1 = arith.constant 0 : i32
    return %c0_i32, %c0_i32_0 : i32, i32
  }
  func.func @transform_3(%arg0: i32) -> (i32, i32) {
    %c0_i32 = arith.constant 0 : i32
    %c0_i32_0 = arith.constant 0 : i32
    %c0_i32_1 = arith.constant 0 : i32
    return %c0_i32, %c0_i32_0 : i32, i32
  }
  func.func @transform_4(%arg0: i32) -> (i32, i32) {
    %c0_i32 = arith.constant 0 : i32
    %c0_i32_0 = arith.constant 0 : i32
    %c0_i32_1 = arith.constant 0 : i32
    return %c0_i32, %c0_i32_0 : i32, i32
  }
  func.func @transform_5(%arg0: i32) -> (i32, i32, i32) {
    %c0_i32 = arith.constant 0 : i32
    %c0_i32_0 = arith.constant 0 : i32
    %c0_i32_1 = arith.constant 0 : i32
    return %arg0, %c0_i32, %c0_i32_0 : i32, i32, i32
  }
}

</mosaic_0001>

<bundles_post_ra>
// kernel: tpu_custom_call.1
= control target key start
LH: loop header
LB: loop body
LE: loop exit
PB: predicated region body
PF: predicated region fallthrough
CT: control target
= control target key end

     0   :  { %10 = vsyncpa [#allocation5], 0  ;;  %s16698_s0 = inlined_call_operand.vmem [shape: bf16[2,18,18,128], index: 0, kind: input, shape index: {}]   ;;  %s16699_s1 = inlined_call_operand.vmem [shape: bf16[1152,128], index: 1, kind: input, shape index: {}]   ;;  %s16700_s2 = inlined_call_operand.vmem [shape: f32[1,128], index: 2, kind: input, shape index: {}]   ;;  %s16701_s3 = inlined_call_operand.hbm [shape: bf16[1152,128], index: 3, kind: input, shape index: {}]   ;;  %s16702_s4 = inlined_call_operand.vmem [shape: f32[1,128], index: 4, kind: input, shape index: {}]   ;;  %s16703_s5 = inlined_call_operand.hbm [shape: bf16[2,256,128], index: 5, kind: output, shape index: {}]  }
   0x1   :  { %11 = vsyncpa [#allocation6], 0 }
   0x2   :  { %13 = vsyncpa [#allocation6 + $0x1], 0  ;;  %s12547_s18 = smov 0   ;;  %s12549_s19 = smov 0  }
   0x3   :  { %s12551_s20 = smov 0   ;;  %s12553_s21 = smov 0  }
   0x4 LB: > { %s12568_s22 = sadd.s32 4294967295, %s12508_s21   ;;  %s10121_s23 = sadd.s32 4294967294, %s12508_s21   ;;  %s12508_s21 = sphi %s12553_s21, %s16921_s21   ;;  %s12504_s20 = sphi %s12551_s20, %s16920_s20   ;;  %s12500_s19 = sphi %s12549_s19, %s16919_s19   ;;  %s12496_s18 = sphi %s12547_s18, %s16918_s18  }
   0x5   : > { %s12572_s24 = sadd.s32 1, %s12508_s21   ;;  %s136_s25 = sadd.s32 1, %s12504_s20 }
   0x6   : > { %s133_s26 = ssub.s32 %s12508_s21, %s12572_s24  ;;  %p146_p0 = scmp.ne.s32.totalorder %s12504_s20, %s12500_s19 }
   0x7   : > { %p134_p1 = scmp.eq.s32.totalorder %s133_s26, 0  ;;  %p147_p2 = scmp.eq.s32.totalorder %s12568_s22, 1 }
   0x8   : > { %p152_p3 = scmp.ne.s32.totalorder %s12500_s19, %s12496_s18  ;;  %p153_p4 = scmp.eq.s32.totalorder %s10121_s23, 1 }
   0x9   : > { %s12583_s27 = scalar_select %p134_p1, %s12504_s20, %s136_s25  }
   0xa   : > { %p12585_p5 = por %p147_p2, %p146_p0  ;;  %p12589_p6 = por %p153_p4, %p152_p3 }
   0xb   : > { %p10122_p7 = scmp.ge.s32.totalorder %s12508_s21, 1  ;;  %p160_p8 = scmp.lt.s32.totalorder %s12508_s21, 3 }
   0xc   : > { %s16711_s29 = scalar_select %p12589_p6, 1, 0 }
   0xd   : > { %p12135_p9 = scmp.eq.s32.totalorder %s12568_s22, 0  ;;  %p12596_p10 = pnand %p10122_p7, %p160_p8 }
   0xe   : > { %s12510_s6 = smov [#allocation4]  }
   0xf   : > { %s178_s7 = sshll.u32 %s12510_s6, 4  ;;  %p12127_p11 = pneg %p12596_p10  ;;  %s179_s7 = int_to_ptr.vmem [resolvable:$true] %s178_s7 }
  0x10   : > { %s12429_s8 = scalar_lea.vmem %s179_s7, 9216  ;;  %p12437_p3 = scmp.lt.s32.totalorder %s179_s7, %s179_s7 }
  0x11   : > { %p12128_p12 = pnand %p12135_p9, %p12127_p11  ;;  %p12430_p0 = scmp.ne.s32.totalorder %s179_s7, %s12429_s8 }
  0x12   : > { %p12438_p4 = scmp.lt.s32.totalorder %s12429_s8, %s12429_s8 }
  0x13   : > { %p12420_p13 = pneg %p12128_p12 }
  0x14   : > { %p12439_p6 = por %p12438_p4, %p12437_p3 }
  0x15   : > { %p12432_p1 = pnand %p12430_p0, %p12420_p13 }
  0x17   : > { %p12433_p2 = pneg %p12432_p1 }
  0x19   : > { %p12440_p7 = pnand %p12439_p6, %p12433_p2 }
  0x1b   : > { %12443 = shalt.err (!%p12440_p7)
}
  0x1c   : > { %s12511_s9 = smov 64   ;;  %s12512_s10 = smov 4  }
  0x1d   : > { %12130 = dma.hbm_to_vmem [thread:$0]  (!%p12128_p12), %s16701_s3, 9216, %s179_s7, [#allocation5], %s12511_s9, %s12511_s9, %s12512_s10  }
  0x1e   : > { %205 = sbr.rel (%p12596_p10) target bundleno = 1198 (0x4ae), region = 40 }
  0x23   : > { %12487 = dma.done.wait (%p12135_p9), [#allocation5], 9216  }
  0x24   : > { %12489 = vsyncadd (%p12135_p9), [#allocation5], 4294958080  ;;  %v12176_v0 = vld [vmem:[%s16699_s1 + $0x78] sm:$0xff]   ;;  %v12180_v4 = vld [vmem:[%s16699_s1 + $0x70] sm:$0xff]   ;;  %p233_p6 = scmp.lt.s32.totalorder %s12568_s22, 1  ;;  %vm1360_vm2 = vcmask 1042432  }
  0x25   : > { %v12177_v1 = vld [vmem:[%s16699_s1 + $0xf8] sm:$0xff]   ;;  %11080 = vmatprep.subr.bf16.mxu0 %v12176_v0  ;;  %v12181_v5 = vld [vmem:[%s16699_s1 + $0xf0] sm:$0xff]   ;;  %v12184_v8 = vld [vmem:[%s16699_s1 + $0x68] sm:$0xff]   ;;  %vm396_vm0 = vsmask.f32 3328  ;;  %vm1361_vm3 = vcmask 1046532  }
  0x26   : > { %v12178_v2 = vld [vmem:[%s16699_s1 + $0x38] sm:$0xff]   ;;  %11192 = vmatprep.subr.bf16.mxu1 %v12177_v1  ;;  %v12182_v6 = vld [vmem:[%s16699_s1 + $0x30] sm:$0xff]   ;;  %v12185_v9 = vld [vmem:[%s16699_s1 + $0xe8] sm:$0xff]   ;;  %s234_s9 = scalar_select %p233_p6, %s12568_s22, 1  ;;  %vm397_vm1 = vsmask.f32 7440 }
  0x27   : > { %v12179_v3 = vld [vmem:[%s16699_s1 + $0xb8] sm:$0xff]   ;;  %11081 = vmatpush3.bf16.msra.mxu0 %v12178_v2  ;;  %v12183_v7 = vld [vmem:[%s16699_s1 + $0xb0] sm:$0xff]   ;;  %v12186_v10 = vld [vmem:[%s16699_s1 + $0x28] sm:$0xff]   ;;  %v16713_v47 = vmov 0  ;;  %v16716_v56 = vmov 0  ;;  %vm247_vm6 = vcmask 1040384  }
  0x28   : > { %11193 = vmatpush3.bf16.msra.mxu1 %v12179_v3  ;;  %11082 = vmatprep.subr.bf16.mxu0 %v12180_v4  ;;  %v12187_v11 = vld [vmem:[%s16699_s1 + $0xa8] sm:$0xff]   ;;  %v12188_v12 = vld [vmem:[%s16699_s1 + $0x60] sm:$0xff]   ;;  %v12192_v16 = vld [vmem:[%s16699_s1 + $0x58] sm:$0xff]   ;;  %s12120_s23 = smul.u32 216, %s234_s9  ;;  %vm248_vm7 = vsmask.f32 256 }
  0x29   : > { %11194 = vmatprep.subr.bf16.mxu1 %v12181_v5  ;;  %v12189_v13 = vld [vmem:[%s16699_s1 + $0xe0] sm:$0xff]   ;;  %v12193_v17 = vld [vmem:[%s16699_s1 + $0xd8] sm:$0xff]   ;;  %v12196_v20 = vld [vmem:[%s16699_s1 + $0x50] sm:$0xff]   ;;  %vm298_vm9 = vsmask.f32 7938  ;;  %vm5266_vm11 = vcmask 1043456  }
  0x2a   : > { %v12190_v14 = vld [vmem:[%s16699_s1 + $0x20] sm:$0xff]   ;;  %v12194_v18 = vld [vmem:[%s16699_s1 + $0x18] sm:$0xff]   ;;  %v12197_v21 = vld [vmem:[%s16699_s1 + $0xd0] sm:$0xff]   ;;  %s12708_s13 = scalar_lea.vmem %s16698_s0, %s12120_s23  ;;  %vm4944_vm12 = vsmask.f32 4368  ;;  %s230_s12 = sand.u32 1, %s12500_s19  }
  0x2b   : > { %11083 = vmatpush3.bf16.msra.mxu0 %v12182_v6  ;;  %v12191_v15 = vld [vmem:[%s16699_s1 + $0xa0] sm:$0xff]   ;;  %v12195_v19 = vld [vmem:[%s16699_s1 + $0x98] sm:$0xff]   ;;  %v12198_v22 = vld [vmem:[%s16699_s1 + $0x10] sm:$0xff]   ;;  %s10127_s14 = sshll.u32 %s230_s12, 7  ;;  %s10984_s16 = sshll.u32 %s12568_s22, 11 }
  0x2c   : > { %11195 = vmatpush3.bf16.msra.mxu1 %v12183_v7  ;;  %11084 = vmatprep.subr.bf16.mxu0 %v12184_v8  ;;  %v12199_v23 = vld [vmem:[%s16699_s1 + $0x90] sm:$0xff]   ;;  %v12200_v24 = vld [vmem:[%s16699_s1 + $0x48] sm:$0xff]   ;;  %v12204_v28 = vld [vmem:[%s16699_s1 + $0x40] sm:$0xff]   ;;  %s16518_s15 = scalar_lea.vmem [#allocation7], %s10127_s14  ;;  %s16650_s26 = scalar_lea.hbm %s16703_s5, %s10984_s16 }
  0x2d   : > { %11196 = vmatprep.subr.bf16.mxu1 %v12185_v9  ;;  %v12201_v25 = vld [vmem:[%s16699_s1 + $0xc8] sm:$0xff]   ;;  %v12205_v29 = vld [vmem:[%s16699_s1 + $0xc0] sm:$0xff]   ;;  %vm12732_vm4 = vmor %vm1360_vm2, %vm1361_vm3  ;;  %s10047_s17 = sshll.u32 %s16518_s15, 4  ;;  %s16658_s30 = scalar_lea.sflag [#allocation6], %s230_s12  ;;  %s16652_s17 = int_to_ptr.vmem [resolvable:$true] %s10047_s17 }
  0x2e   : > { %v12202_v26 = vld [vmem:[%s16699_s1 + $0x8] sm:$0xff]   ;;  %v12206_v30 = vld [vmem:[%s16699_s1] sm:$0xff]   ;;  %v16714_v47 = vsel %vm12732_vm4, 4294967295, %v16713_v47  ;;  %v12210_v51 = vld [vmem:[%s16699_s1 + $0x178] sm:$0xff]   ;;  %s12444_s22 = scalar_lea.vmem %s16652_s17, 2048  ;;  %s12514_s6 = smov [#allocation7]  }
  0x2f   : > { %11085 = vmatpush3.bf16.msra.mxu0 %v12186_v10  ;;  %v12203_v27 = vld [vmem:[%s16699_s1 + $0x88] sm:$0xff]   ;;  %v12207_v31 = vld [vmem:[%s16699_s1 + $0x80] sm:$0xff]   ;;  %16715 = vst [vmem:[#allocation10_spill] sm:$0xff] %v16714_v47  ;;  %vm12742_vm5 = vmor %vm396_vm0, %vm397_vm1  ;;  %p12445_p8 = scmp.ne.s32.totalorder %s16652_s17, %s12444_s22 }
  0x30   : > { %11197 = vmatpush3.bf16.msra.mxu1 %v12187_v11  ;;  %11086 = vmatprep.subr.bf16.mxu0 %v12188_v12  ;;  %v12717_v32 = vld [vmem:[%s12708_s13] sm:$0xf]  ;;  %v12720_v33 = vld [vmem:[%s12708_s13 + $0x4] sm:$0xf]  ;;  %v380_v34 = vld [vmem:[%s12708_s13 + $0x8] sm:$0x1] }
  0x31   : > { %11198 = vmatprep.subr.bf16.mxu1 %v12189_v13  ;;  %v400_v35 = vshrl.u32 %v12717_v32, 16  ;;  %v403_v36 = vshll.u32 %v12717_v32, 16  ;;  %v409_v37 = vshll.u32 %v12720_v33, 16  ;;  %v413_v38 = vshrl.u32 %v12720_v33, 16  ;;  %v12208_v40 = vld [vmem:[%s12708_s13 + $0xc] sm:$0xff]   ;;  %v12212_v5 = vld [vmem:[%s12708_s13 + $0x18] sm:$0xff]   ;;  %vm14358_vm8 = vmand %vm247_vm6, %vm248_vm7  ;;  %p12446_p9 = pnand %p12445_p8, %p12585_p5 }
  0x32   : > { %v419_v39 = vshll.u32 %v380_v34, 16  ;;  %v1264_v41 = vld [vmem:[%s12708_s13] sm:$0xe]  ;;  %v1265_v46 = vld [vmem:[%s12708_s13 + $0x4] sm:$0xf]  ;;  %1828 = vmatprep.mubr.bf16.mxu1 %v12208_v40  ;;  %v16717_v56 = vsel %vm12742_vm5, 4294967295, %v16716_v56  ;;  %v10129_v61 = vcombine.low %v12717_v32, %v12720_v33  ;;  %vm14373_vm10 = vmand %vm247_vm6, %vm298_vm9 }
  0x33   : > { %11087 = vmatpush3.bf16.msra.mxu0 %v12190_v14  ;;  %v402_v42 = vrot.slane %v400_v35, 4  ;;  %v405_v43 = vrot.slane %v403_v36, 5  ;;  %v411_v44 = vrot.slane %v409_v37, 5  ;;  %v415_v45 = vrot.slane %v413_v38, 4  ;;  %v1266_v48 = vld [vmem:[%s12708_s13 + $0x8] sm:$0x1]  ;;  %vm14770_vm13 = vmand %vm5266_vm11, %vm298_vm9  ;;  %p12447_p10 = pneg %p12446_p9 }
  0x34   : > { %11199 = vmatpush3.bf16.msra.mxu1 %v12191_v15  ;;  %11088 = vmatprep.subr.bf16.mxu0 %v12192_v16  ;;  %v10177_v49 = vrot.slane %v1264_v41, 9  ;;  %v1365_v50 = vrot.slane %v1265_v46, 5  ;;  %v421_v54 = vrot.slane %v419_v39, 5  ;;  %v1368_v55 = vrot.slane %v1266_v48, 5  ;;  %16718 = vst [vmem:[#allocation11_spill] sm:$0xff] %v16717_v56  ;;  %v12211_v9 = vld [vmem:[%s16699_s1 + $0x138] sm:$0xff]   ;;  %vm14781_vm14 = vmor %vm248_vm7, %vm4944_vm12 }
  0x35   : > { %11200 = vmatprep.subr.bf16.mxu1 %v12193_v17  ;;  %v406_v52 = vor.u32 %v405_v43, %v402_v42  ;;  %v416_v53 = vor.u32 %v415_v45, %v411_v44  ;;  %v12751_v62 = vld [vmem:[%s12708_s13 + $0xc] sm:$0xf]  ;;  %v12754_v63 = vld [vmem:[%s12708_s13 + $0x10] sm:$0xf]  ;;  %v381_v1 = vld [vmem:[%s12708_s13 + $0x14] sm:$0x1] }
  0x36   : > { %v1366_v57 = vsel %vm12732_vm4, %v10177_v49, %v1365_v50  ;;  %v1367_v58 = vrot.slane %v1365_v50, 4  ;;  %v424_v2 = vshrl.u32 %v12751_v62, 16  ;;  %v427_v3 = vshll.u32 %v12751_v62, 16  ;;  %v1267_v15 = vld [vmem:[%s12708_s13 + $0xc] sm:$0xe]  ;;  %v12216_v16 = vld [vmem:[%s16699_s1 + $0x170] sm:$0xff]  }
  0x37   : > { %11089 = vmatpush3.bf16.msra.mxu0 %v12194_v18  ;;  %v407_v59 = vrot.slane %v406_v52, 4  ;;  %v417_v60 = vrot.slane %v416_v53, 4  ;;  %v433_v4 = vshll.u32 %v12754_v63, 16  ;;  %v437_v10 = vshrl.u32 %v12754_v63, 16  ;;  %v12214_v36 = vld [vmem:[%s12708_s13 + $0x24] sm:$0xff]   ;;  %v12217_v37 = vld [vmem:[%s16699_s1 + $0x130] sm:$0xff]  }
  0x38   : > { %11201 = vmatpush3.bf16.msra.mxu1 %v12195_v19  ;;  %11090 = vmatprep.subr.bf16.mxu0 %v12196_v20  ;;  %v1369_v0 = vsel %vm12732_vm4, %v1367_v58, %v1368_v55  ;;  %v426_v12 = vrot.slane %v424_v2, 4  ;;  %v429_v13 = vrot.slane %v427_v3, 5  ;;  %v443_v18 = vshll.u32 %v381_v1, 16  ;;  %v1268_v19 = vld [vmem:[%s12708_s13 + $0x10] sm:$0xf]  ;;  %v12222_v58 = vld [vmem:[%s16699_s1 + $0x168] sm:$0xff]  }
  0x39   : > { %11202 = vmatprep.subr.bf16.mxu1 %v12197_v21  ;;  %v412_v6 = vsel %vm12742_vm5, %v407_v59, %v411_v44  ;;  %v422_v7 = vsel %vm12742_vm5, %v417_v60, %v421_v54  ;;  %v10225_v8 = vcombine.low %v1366_v57, %v1369_v0  ;;  %v435_v14 = vrot.slane %v433_v4, 5  ;;  %v1269_v20 = vld [vmem:[%s12708_s13 + $0x14] sm:$0x1]  ;;  %v1270_v46 = vld [vmem:[%s12708_s13 + $0x18] sm:$0xe] }
  0x3a   : > { %v10145_v11 = vcombine.low %v412_v6, %v422_v7  ;;  %v439_v17 = vrot.slane %v437_v10, 4  ;;  %v430_v21 = vor.u32 %v429_v13, %v426_v12  ;;  %v1271_v48 = vld [vmem:[%s12708_s13 + $0x1c] sm:$0xf]  ;;  %v1272_v53 = vld [vmem:[%s12708_s13 + $0x20] sm:$0x1]  ;;  %v10179_v60 = vrot.slane %v1270_v46, 9 }
  0x3b   : > { %11091 = vmatpush3.bf16.msra.mxu0 %v12198_v22  ;;  %v10178_v22 = vrot.slane %v1267_v15, 9  ;;  %v12812_v1 = vld [vmem:[%s12708_s13 + $0x24] sm:$0xf]  ;;  %v12815_v2 = vld [vmem:[%s12708_s13 + $0x28] sm:$0xf]  ;;  %v12218_v12 = vld [vmem:[%s12708_s13 + $0x30] sm:$0xff]  }
  0x3c   : > { %11203 = vmatpush3.bf16.msra.mxu1 %v12199_v23  ;;  %11092 = vmatprep.subr.bf16.mxu0 %v12200_v24  ;;  %v1372_v23 = vrot.slane %v1268_v19, 5  ;;  %v1375_v24 = vrot.slane %v1269_v20, 5  ;;  %v431_v32 = vrot.slane %v430_v21, 4  ;;  %v383_v6 = vld [vmem:[%s12708_s13 + $0x2c] sm:$0x1]  ;;  %v472_v7 = vshrl.u32 %v12812_v1, 16 }
  0x3d   : > { %11204 = vmatprep.subr.bf16.mxu1 %v12201_v25  ;;  %1103 = vmatprep.mubr.bf16.mxu0 %v10145_v11  ;;  %v12778_v25 = vld [vmem:[%s12708_s13 + $0x18] sm:$0xf]  ;;  %v481_v10 = vshll.u32 %v12815_v2, 16  ;;  %v485_v11 = vshrl.u32 %v12815_v2, 16  ;;  %v12228_v13 = vld [vmem:[%s16699_s1 + $0x160] sm:$0xff]  }
  0x3e   : > { %v1373_v33 = vsel %vm12732_vm4, %v10178_v22, %v1372_v23  ;;  %v1374_v34 = vrot.slane %v1372_v23, 4  ;;  %v451_v35 = vshll.u32 %v12778_v25, 16  ;;  %v436_v42 = vsel %vm12742_vm5, %v431_v32, %v435_v14  ;;  %v1274_v23 = vld [vmem:[%s12708_s13 + $0x28] sm:$0xf]  ;;  %v12229_v32 = vld [vmem:[%s16699_s1 + $0x120] sm:$0xff]  }
  0x3f   : > { %11093 = vmatpush3.bf16.msra.mxu0 %v12202_v26  ;;  %v440_v26 = vor.u32 %v439_v17, %v435_v14  ;;  %v491_v17 = vshll.u32 %v383_v6, 16  ;;  %v483_v22 = vrot.slane %v481_v10, 5  ;;  %v280_v56 = vld [vmem:[#allocation2 + $0x84] sm:$0x1] }
  0x40   : > { %11205 = vmatpush3.bf16.msra.mxu1 %v12203_v27  ;;  %11094 = vmatprep.subr.bf16.mxu0 %v12204_v28  ;;  %v445_v27 = vrot.slane %v443_v18, 5  ;;  %v10130_v28 = vcombine.low %v12751_v62, %v12754_v63  ;;  %v1376_v43 = vsel %vm12732_vm4, %v1374_v34, %v1375_v24  ;;  %v453_v44 = vrot.slane %v451_v35, 5  ;;  %v12223_v63 = vld [vmem:[%s16699_s1 + $0x128] sm:$0xff]   ;;  %v1273_v18 = vld [vmem:[%s12708_s13 + $0x24] sm:$0xe] }
  0x41   : > { %11206 = vmatprep.subr.bf16.mxu1 %v12205_v29  ;;  %v12783_v29 = vld [vmem:[%s12708_s13 + $0x1c] sm:$0xf]  ;;  %v441_v38 = vrot.slane %v440_v26, 4  ;;  %v10226_v50 = vcombine.low %v1373_v33, %v1376_v43  ;;  %v1382_v62 = vrot.slane %v1272_v53, 5  ;;  %v1275_v24 = vld [vmem:[%s12708_s13 + $0x2c] sm:$0x1] }
  0x42   : > { %v457_v40 = vshll.u32 %v12783_v29, 16  ;;  %v461_v41 = vshrl.u32 %v12783_v29, 16  ;;  %v10131_v26 = vcombine.low %v12778_v25, %v12783_v29  ;;  %v1386_v34 = vrot.slane %v1274_v23, 5 }
  0x43   : > { %11095 = vmatpush3.bf16.msra.mxu0 %v12206_v30  ;;  %v382_v30 = vld [vmem:[%s12708_s13 + $0x20] sm:$0x1]  ;;  %v446_v49 = vsel %vm12742_vm5, %v441_v38, %v445_v27  ;;  %v487_v27 = vrot.slane %v485_v11, 4  ;;  %v1389_v35 = vrot.slane %v1275_v24, 5  ;;  %v385_v11 = vld [vmem:[%s12708_s13 + $0x44] sm:$0x1] }
  0x44   : > { %11207 = vmatpush3.bf16.msra.mxu1 %v12207_v31  ;;  %11304 = vmatprep.subr.bf16.mxu0 %v12210_v51  ;;  %v448_v31 = vshrl.u32 %v12778_v25, 16  ;;  %v467_v45 = vshll.u32 %v382_v30, 16  ;;  %v459_v51 = vrot.slane %v457_v40, 5  ;;  %v463_v52 = vrot.slane %v461_v41, 4 }
  0x45   : > { %v10146_v54 = vcombine.low %v436_v42, %v446_v49  ;;  %v10180_v30 = vrot.slane %v1273_v18, 9  ;;  %v488_v38 = vor.u32 %v487_v27, %v483_v22  ;;  %v1388_v42 = vrot.slane %v1386_v34, 4  ;;  %v1276_v49 = vld [vmem:[%s12708_s13 + $0x30] sm:$0xe] }
  0x46   : > { %1104 = vmatmul.mubr.bf16.vlgmr.msra.gmra.mxu0 %v10129_v61  ;;  %v450_v39 = vrot.slane %v448_v31, 4  ;;  %v469_v57 = vrot.slane %v467_v45, 5  ;;  %v464_v59 = vor.u32 %v463_v52, %v459_v51  ;;  %v1379_v61 = vrot.slane %v1271_v48, 5  ;;  %v12840_v31 = vld [vmem:[%s12708_s13 + $0x30] sm:$0xf] }
  0x47   : > { %1829 = vmatmul.mubr.bf16.vlgmr.msra.gmra.mxu1 %v10225_v8  ;;  %11305 = vmatpush3.bf16.msra.mxu0 %v12211_v9  ;;  %v475_v9 = vshll.u32 %v12812_v1, 16  ;;  %v496_v25 = vshrl.u32 %v12840_v31, 16  ;;  %v499_v29 = vshll.u32 %v12840_v31, 16  ;;  %v1387_v41 = vsel %vm12732_vm4, %v10180_v30, %v1386_v34  ;;  %v1281_v30 = vld [vmem:[%s12708_s13 + $0x44] sm:$0x1] }
  0x48   : > { %1836 = vmatprep.mubr.bf16.mxu1 %v12212_v5  ;;  %11306 = vmatprep.subr.bf16.mxu0 %v12216_v16  ;;  %v454_v55 = vor.u32 %v453_v44, %v450_v39  ;;  %v465_v3 = vrot.slane %v464_v59, 4  ;;  %v1380_v4 = vsel %vm12732_vm4, %v10179_v60, %v1379_v61  ;;  %v1381_v5 = vrot.slane %v1379_v61, 4 }
  0x49   : > { %1111 = vmatprep.mubr.bf16.mxu0 %v10146_v54  ;;  %v474_v16 = vrot.slane %v472_v7, 4  ;;  %v477_v21 = vrot.slane %v475_v9, 5  ;;  %v489_v44 = vrot.slane %v488_v38, 4  ;;  %v498_v45 = vrot.slane %v496_v25, 4  ;;  %v12220_v54 = vld [vmem:[%s12708_s13 + $0x3c] sm:$0xff]  }
  0x4a   : > { %v455_v0 = vrot.slane %v454_v55, 4  ;;  %v470_v14 = vsel %vm12742_vm5, %v465_v3, %v469_v57  ;;  %v1383_v15 = vsel %vm12732_vm4, %v1381_v5, %v1382_v62  ;;  %v501_v46 = vrot.slane %v499_v29, 5  ;;  %v1277_v55 = vld [vmem:[%s12708_s13 + $0x34] sm:$0xf]  ;;  %v1278_v57 = vld [vmem:[%s12708_s13 + $0x38] sm:$0x1] }
  0x4b   : > { %11307 = vmatpush3.bf16.msra.mxu0 %v12217_v37  ;;  %v10227_v20 = vcombine.low %v1380_v4, %v1383_v15  ;;  %v478_v33 = vor.u32 %v477_v21, %v474_v16  ;;  %v384_v37 = vld [vmem:[%s12708_s13 + $0x38] sm:$0x1]  ;;  %v10132_v59 = vcombine.low %v12812_v1, %v12815_v2  ;;  %v10181_v3 = vrot.slane %v1276_v49, 9  ;;  %v12868_v4 = vld [vmem:[%s12708_s13 + $0x3c] sm:$0xf] }
  0x4c   : > { %11308 = vmatprep.subr.bf16.mxu0 %v12222_v58  ;;  %v460_v8 = vsel %vm12742_vm5, %v455_v0, %v459_v51  ;;  %v1390_v51 = vsel %vm12732_vm4, %v1388_v42, %v1389_v35  ;;  %v515_v53 = vshll.u32 %v384_v37, 16  ;;  %v502_v61 = vor.u32 %v501_v46, %v498_v45  ;;  %v1279_v21 = vld [vmem:[%s12708_s13 + $0x3c] sm:$0xe]  ;;  %v12224_v37 = vld [vmem:[%s12708_s13 + $0x48] sm:$0xff]  }
  0x4d   : > { %v10147_v19 = vcombine.low %v460_v8, %v470_v14  ;;  %v479_v40 = vrot.slane %v478_v33, 4  ;;  %v10228_v60 = vcombine.low %v1387_v41, %v1390_v51  ;;  %v1393_v6 = vrot.slane %v1277_v55, 5  ;;  %v12871_v8 = vld [vmem:[%s12708_s13 + $0x40] sm:$0xf]  ;;  %v12899_v25 = vld [vmem:[%s12708_s13 + $0x48] sm:$0xf] }
  0x4e   : > { %1112 = vmatmul.mubr.bf16.gmra.mxu0 %v10130_v28  ;;  %v493_v28 = vrot.slane %v491_v17, 5  ;;  %v517_v0 = vrot.slane %v515_v53, 5  ;;  %v503_v5 = vrot.slane %v502_v61, 4  ;;  %v1396_v7 = vrot.slane %v1278_v57, 5  ;;  %v12902_v29 = vld [vmem:[%s12708_s13 + $0x4c] sm:$0xf] }
  0x4f   : > { %1837 = vmatmul.mubr.bf16.gmra.mxu1 %v10226_v50  ;;  %11309 = vmatpush3.bf16.msra.mxu0 %v12223_v63  ;;  %v484_v50 = vsel %vm12742_vm5, %v479_v40, %v483_v22  ;;  %v520_v9 = vshrl.u32 %v12868_v4, 16  ;;  %v523_v1 = vshll.u32 %v12868_v4, 16  ;;  %v529_v2 = vshll.u32 %v12871_v8, 16  ;;  %v12234_v22 = vld [vmem:[%s16699_s1 + $0x158] sm:$0xff]   ;;  %v386_v40 = vld [vmem:[%s12708_s13 + $0x50] sm:$0x1] }
  0x50   : > { %1844 = vmatprep.mubr.bf16.mxu1 %v12214_v36  ;;  %11310 = vmatprep.subr.bf16.mxu0 %v12228_v13  ;;  %v12846_v36 = vld [vmem:[%s12708_s13 + $0x34] sm:$0xf]  ;;  %v494_v58 = vsel %vm12742_vm5, %v489_v44, %v493_v28  ;;  %v1394_v14 = vsel %vm12732_vm4, %v10181_v3, %v1393_v6  ;;  %v1395_v15 = vrot.slane %v1393_v6, 4  ;;  %v539_v27 = vshll.u32 %v385_v11, 16  ;;  %v1280_v28 = vld [vmem:[%s12708_s13 + $0x40] sm:$0xf] }
  0x51   : > { %1119 = vmatprep.mubr.bf16.mxu0 %v10147_v19  ;;  %v505_v39 = vshll.u32 %v12846_v36, 16  ;;  %v509_v43 = vshrl.u32 %v12846_v36, 16  ;;  %v10148_v62 = vcombine.low %v484_v50, %v494_v58  ;;  %v522_v16 = vrot.slane %v520_v9, 4  ;;  %v1282_v55 = vld [vmem:[%s12708_s13 + $0x48] sm:$0xe]  ;;  %v12226_v11 = vld [vmem:[%s12708_s13 + $0x54] sm:$0xff]  }
  0x52   : > { %v525_v18 = vrot.slane %v523_v1, 5  ;;  %v531_v19 = vrot.slane %v529_v2, 5  ;;  %v10133_v24 = vcombine.low %v12840_v31, %v12846_v36  ;;  %v10182_v38 = vrot.slane %v1279_v21, 9  ;;  %v1283_v57 = vld [vmem:[%s12708_s13 + $0x4c] sm:$0xf] }
  0x53   : > { %11311 = vmatpush3.bf16.msra.mxu0 %v12229_v32  ;;  %v507_v48 = vrot.slane %v505_v39, 5  ;;  %v511_v52 = vrot.slane %v509_v43, 4  ;;  %v12235_v32 = vld [vmem:[%s16699_s1 + $0x118] sm:$0xff]   ;;  %v541_v31 = vrot.slane %v539_v27, 5  ;;  %v1400_v36 = vrot.slane %v1280_v28, 5 }
  0x54   : > { %v526_v34 = vor.u32 %v525_v18, %v522_v16  ;;  %11312 = vmatprep.subr.bf16.mxu0 %v12234_v22  ;;  %v1403_v39 = vrot.slane %v1281_v30, 5  ;;  %v544_v41 = vshrl.u32 %v12899_v25, 16  ;;  %v547_v44 = vshll.u32 %v12899_v25, 16  ;;  %v12928_v2 = vld [vmem:[%s12708_s13 + $0x54] sm:$0xf]  ;;  %v12246_v22 = vld [vmem:[%s16699_s1 + $0x148] sm:$0xff]  }
  0x55   : > { %v512_v63 = vor.u32 %v511_v52, %v507_v48  ;;  %v508_v13 = vsel %vm12742_vm5, %v503_v5, %v507_v48  ;;  %v553_v45 = vshll.u32 %v12902_v29, 16  ;;  %v1401_v46 = vsel %vm12732_vm4, %v10182_v38, %v1400_v36  ;;  %v387_v16 = vld [vmem:[%s12708_s13 + $0x5c] sm:$0x1]  ;;  %v1285_v28 = vld [vmem:[%s12708_s13 + $0x54] sm:$0xe] }
  0x56   : > { %1120 = vmatmul.mubr.bf16.gmra.mxu0 %v10131_v26  ;;  %v1397_v26 = vsel %vm12732_vm4, %v1395_v15, %v1396_v7  ;;  %v527_v42 = vrot.slane %v526_v34, 4  ;;  %v1402_v48 = vrot.slane %v1400_v36, 4  ;;  %v546_v49 = vrot.slane %v544_v41, 4  ;;  %v12241_v7 = vld [vmem:[%s16699_s1 + $0x110] sm:$0xff]   ;;  %v12955_v36 = vld [vmem:[%s12708_s13 + $0x60] sm:$0xf] }
  0x57   : > { %1845 = vmatmul.mubr.bf16.gmra.mxu1 %v10227_v20  ;;  %1127 = vmatprep.mubr.bf16.mxu0 %v10148_v62  ;;  %v513_v10 = vrot.slane %v512_v63, 4  ;;  %v10229_v33 = vcombine.low %v1394_v14, %v1397_v26  ;;  %v557_v50 = vshrl.u32 %v12902_v29, 16  ;;  %v549_v53 = vrot.slane %v547_v44, 5  ;;  %v1284_v62 = vld [vmem:[%s12708_s13 + $0x50] sm:$0x1] }
  0x58   : > { %1852 = vmatprep.mubr.bf16.mxu1 %v12218_v12  ;;  %v533_v12 = vshrl.u32 %v12871_v8, 16  ;;  %11313 = vmatpush3.bf16.msra.mxu0 %v12235_v32  ;;  %v532_v51 = vsel %vm12742_vm5, %v527_v42, %v531_v19  ;;  %v563_v61 = vshll.u32 %v386_v40, 16  ;;  %v1407_v6 = vrot.slane %v1283_v57, 5  ;;  %v388_v44 = vld [vmem:[%s12708_s13 + $0x68] sm:$0x1] }
  0x59   : > { %v518_v17 = vsel %vm12742_vm5, %v513_v10, %v517_v0  ;;  %v550_v63 = vor.u32 %v549_v53, %v546_v49  ;;  %v12240_v0 = vld [vmem:[%s16699_s1 + $0x150] sm:$0xff]   ;;  %v10183_v1 = vrot.slane %v1282_v55, 9  ;;  %v1410_v15 = vrot.slane %v1284_v62, 5  ;;  %v12249_v55 = vld [vmem:[%s16699_s1 + $0x1b8] sm:$0xff]  }
  0x5a   : > { %v535_v20 = vrot.slane %v533_v12, 4  ;;  %v10149_v23 = vcombine.low %v508_v13, %v518_v17  ;;  %v565_v5 = vrot.slane %v563_v61, 5  ;;  %v12931_v12 = vld [vmem:[%s12708_s13 + $0x58] sm:$0xf]  ;;  %11314 = vmatprep.subr.bf16.mxu0 %v12240_v0  ;;  %v1409_v14 = vrot.slane %v1407_v6, 4 }
  0x5b   : > { %v551_v10 = vrot.slane %v550_v63, 4  ;;  %v568_v17 = vshrl.u32 %v12928_v2, 16  ;;  %v581_v21 = vshrl.u32 %v12931_v12, 16  ;;  %v587_v27 = vshll.u32 %v387_v16, 16 }
  0x5c   : > { %v536_v35 = vor.u32 %v535_v20, %v531_v19  ;;  %11315 = vmatpush3.bf16.msra.mxu0 %v12241_v7  ;;  %v571_v19 = vshll.u32 %v12928_v2, 16  ;;  %v577_v20 = vshll.u32 %v12931_v12, 16  ;;  %v1408_v32 = vsel %vm12732_vm4, %v10183_v1, %v1407_v6 }
  0x5d   : > { %v570_v26 = vrot.slane %v568_v17, 4  ;;  %11316 = vmatprep.subr.bf16.mxu0 %v12246_v22  ;;  %v589_v38 = vrot.slane %v587_v27, 5  ;;  %v611_v0 = vshll.u32 %v388_v44, 16  ;;  %v10135_v6 = vcombine.low %v12899_v25, %v12902_v29  ;;  %v12992_v29 = vld [vmem:[%s12708_s13 + $0x70] sm:$0xf] }
  0x5e   : > { %1128 = vmatmul.mubr.bf16.gmra.mxu0 %v10132_v59  ;;  %v537_v43 = vrot.slane %v536_v35, 4  ;;  %v1404_v59 = vsel %vm12732_vm4, %v1402_v48, %v1403_v39  ;;  %v579_v34 = vrot.slane %v577_v20, 5  ;;  %v1286_v35 = vld [vmem:[%s12708_s13 + $0x58] sm:$0xf]  ;;  %v12247_v39 = vld [vmem:[%s16699_s1 + $0x108] sm:$0xff]   ;;  %v595_v48 = vshll.u32 %v12955_v36, 16 }
  0x5f   : > { %1853 = vmatmul.mubr.bf16.gmra.mxu1 %v10228_v60  ;;  %1135 = vmatprep.mubr.bf16.mxu0 %v10149_v23  ;;  %v559_v60 = vrot.slane %v557_v50, 4  ;;  %v10230_v9 = vcombine.low %v1401_v46, %v1404_v59  ;;  %v10134_v23 = vcombine.low %v12868_v4, %v12871_v8  ;;  %v1411_v4 = vsel %vm12732_vm4, %v1409_v14, %v1410_v15  ;;  %v12248_v50 = vld [vmem:[%s16699_s1 + $0x1f8] sm:$0xff]   ;;  %v1290_v14 = vld [vmem:[%s12708_s13 + $0x68] sm:$0x1]  ;;  %v12987_v15 = vld [vmem:[%s12708_s13 + $0x6c] sm:$0xf] }
  0x60   : > { %1860 = vmatprep.mubr.bf16.mxu1 %v12220_v54  ;;  %v542_v52 = vsel %vm12742_vm5, %v537_v43, %v541_v31  ;;  %v555_v54 = vrot.slane %v553_v45, 5  ;;  %v583_v8 = vrot.slane %v581_v21, 4  ;;  %v10184_v31 = vrot.slane %v1285_v28, 9  ;;  %v12961_v43 = vld [vmem:[%s12708_s13 + $0x64] sm:$0xf]  ;;  %11317 = vmatpush3.bf16.msra.mxu0 %v12247_v39 }
  0x61   : > { %v10150_v58 = vcombine.low %v532_v51, %v542_v52  ;;  %v1414_v41 = vrot.slane %v1286_v35, 5  ;;  %v592_v46 = vshrl.u32 %v12955_v36, 16  ;;  %v601_v49 = vshll.u32 %v12961_v43, 16  ;;  %11416 = vmatprep.subr.bf16.mxu1 %v12248_v50  ;;  %v389_v20 = vld [vmem:[%s12708_s13 + $0x74] sm:$0x1] }
  0x62   : > { %v560_v3 = vor.u32 %v559_v60, %v555_v54  ;;  %v556_v18 = vsel %vm12742_vm5, %v551_v10, %v555_v54  ;;  %v584_v45 = vor.u32 %v583_v8, %v579_v34  ;;  %v10231_v51 = vcombine.low %v1408_v32, %v1411_v4  ;;  %11417 = vmatpush3.bf16.msra.mxu1 %v12249_v55  ;;  %v13019_v44 = vld [vmem:[%s12708_s13 + $0x78] sm:$0xf] }
  0x63   : > { %v1416_v53 = vrot.slane %v1414_v41, 4  ;;  %v605_v54 = vshrl.u32 %v12961_v43, 16  ;;  %v594_v59 = vrot.slane %v592_v46, 4  ;;  %v597_v60 = vrot.slane %v595_v48, 5  ;;  %v12252_v46 = vld [vmem:[%s16699_s1 + $0x1b0] sm:$0xff]  }
  0x64   : > { %v561_v13 = vrot.slane %v560_v3, 4  ;;  %v585_v57 = vrot.slane %v584_v45, 4  ;;  %v603_v61 = vrot.slane %v601_v49, 5  ;;  %v1288_v3 = vld [vmem:[%s12708_s13 + $0x60] sm:$0xe]  ;;  %v619_v21 = vshll.u32 %v12987_v15, 16 }
  0x65   : > { %v607_v63 = vrot.slane %v605_v54, 4  ;;  %v625_v22 = vshll.u32 %v12992_v29, 16  ;;  %v1424_v8 = vrot.slane %v1290_v14, 5  ;;  %v10136_v39 = vcombine.low %v12928_v2, %v12931_v12  ;;  %v13022_v45 = vld [vmem:[%s12708_s13 + $0x7c] sm:$0xf] }
  0x66   : > { %1136 = vmatmul.mubr.bf16.gmra.mxu0 %v10133_v24  ;;  %v566_v24 = vsel %vm12742_vm5, %v561_v13, %v565_v5  ;;  %v1289_v5 = vld [vmem:[%s12708_s13 + $0x64] sm:$0xf]  ;;  %v590_v7 = vsel %vm12742_vm5, %v585_v57, %v589_v38  ;;  %v613_v13 = vrot.slane %v611_v0, 5  ;;  %v635_v38 = vshll.u32 %v389_v20, 16  ;;  %v1293_v2 = vld [vmem:[%s12708_s13 + $0x74] sm:$0x1] }
  0x67   : > { %1861 = vmatmul.mubr.bf16.gmra.mxu1 %v10229_v33  ;;  %1143 = vmatprep.mubr.bf16.mxu0 %v10150_v58  ;;  %v10151_v30 = vcombine.low %v556_v18, %v566_v24  ;;  %v573_v33 = vrot.slane %v571_v19, 5  ;;  %v12230_v58 = vld [vmem:[%s12708_s13 + $0x60] sm:$0xff]   ;;  %v608_v1 = vor.u32 %v607_v63, %v603_v61  ;;  %v1421_v25 = vrot.slane %v1289_v5, 5 }
  0x68   : > { %1868 = vmatprep.mubr.bf16.mxu1 %v12224_v37  ;;  %v1287_v37 = vld [vmem:[%s12708_s13 + $0x5c] sm:$0x1]  ;;  %v616_v18 = vshrl.u32 %v12987_v15, 16  ;;  %v13003_v32 = vrot.slane %v625_v22, 5  ;;  %v637_v50 = vrot.slane %v635_v38, 5  ;;  %v643_v54 = vshll.u32 %v13019_v44, 16 }
  0x69   : > { %v574_v40 = vor.u32 %v573_v33, %v570_v26  ;;  %v1417_v42 = vrot.slane %v1287_v37, 5  ;;  %v609_v19 = vrot.slane %v608_v1, 4  ;;  %v10185_v26 = vrot.slane %v1288_v3, 9  ;;  %v12232_v37 = vld [vmem:[%s12708_s13 + $0x6c] sm:$0xff]   ;;  %v390_v12 = vld [vmem:[%s12708_s13 + $0x80] sm:$0x1] }
  0x6a   : > { %v618_v27 = vrot.slane %v616_v18, 4  ;;  %v1423_v4 = vrot.slane %v1421_v25, 4  ;;  %v649_v55 = vshll.u32 %v13022_v45, 16  ;;  %v659_v5 = vshll.u32 %v390_v12, 16  ;;  %v12236_v18 = vld [vmem:[%s12708_s13 + $0x78] sm:$0xff]  }
  0x6b   : > { %v575_v52 = vrot.slane %v574_v40, 4  ;;  %v1418_v16 = vsel %vm12732_vm4, %v1416_v53, %v1417_v42  ;;  %v614_v28 = vsel %vm12742_vm5, %v609_v19, %v613_v13  ;;  %v13016_v42 = vld [vmem:[%s12708_s13 + $0x6c] sm:$0xe]  ;;  %v1422_v49 = vsel %vm12732_vm4, %v10185_v26, %v1421_v25  ;;  %v12256_v25 = vld [vmem:[%s16699_s1 + $0x1e0] sm:$0xff]   ;;  %v13070_v22 = vld [vmem:[%s12708_s13 + $0x88] sm:$0xf] }
  0x6c   : > { %v1425_v57 = vsel %vm12732_vm4, %v1423_v4, %v1424_v8  ;;  %v13041_v63 = vrot.slane %v649_v55, 5  ;;  %v10186_v0 = vrot.slane %v13016_v42, 9  ;;  %v661_v19 = vrot.slane %v659_v5, 5  ;;  %v13064_v20 = vld [vmem:[%s12708_s13 + $0x80] sm:$0x1] }
  0x6d   : > { %v580_v62 = vsel %vm12742_vm5, %v575_v52, %v579_v34  ;;  %v12250_v34 = vld [vmem:[%s16699_s1 + $0x1f0] sm:$0xff]   ;;  %v392_v55 = vld [vmem:[%s12708_s13 + $0x98] sm:$0x1]  ;;  %v1299_v5 = vld [vmem:[%s12708_s13 + $0x8c] sm:$0x1] }
  0x6e   : > { %1144 = vmatmul.mubr.bf16.gmra.mxu0 %v10134_v23  ;;  %v10152_v10 = vcombine.low %v580_v62, %v590_v7  ;;  %v629_v23 = vshrl.u32 %v12992_v29, 16  ;;  %11418 = vmatprep.subr.bf16.mxu1 %v12250_v34  ;;  %v645_v62 = vrot.slane %v643_v54, 5  ;;  %v1431_v7 = vrot.slane %v1293_v2, 5  ;;  %v13112_v54 = vld [vmem:[%s12708_s13 + $0x94] sm:$0xf] }
  0x6f   : > { %1869 = vmatmul.mubr.bf16.gmra.mxu1 %v10230_v9  ;;  %1151 = vmatprep.mubr.bf16.mxu0 %v10151_v30  ;;  %v598_v9 = vor.u32 %v597_v60, %v594_v59  ;;  %v621_v30 = vrot.slane %v619_v21, 5  ;;  %v653_v60 = vshrl.u32 %v13022_v45, 16  ;;  %v13067_v21 = vld [vmem:[%s12708_s13 + $0x84] sm:$0xf]  ;;  %v673_v34 = vshll.u32 %v13070_v22, 16 }
  0x70   : > { %1876 = vmatprep.mubr.bf16.mxu1 %v12226_v11  ;;  %v1415_v11 = vsel %vm12732_vm4, %v10184_v31, %v1414_v41  ;;  %v631_v33 = vrot.slane %v629_v23, 4  ;;  %v13010_v31 = vld [vmem:[%s12708_s13 + $0x70] sm:$0xf]  ;;  %11419 = vmatpush3.bf16.msra.mxu1 %v12252_v46  ;;  %v10137_v23 = vcombine.low %v12955_v36, %v12961_v43  ;;  %v12260_v36 = vld [vmem:[%s16699_s1 + $0x140] sm:$0xff]   ;;  %v1438_v46 = vrot.slane %v13064_v20, 5 }
  0x71   : > { %v599_v17 = vrot.slane %v598_v9, 4  ;;  %v10232_v35 = vcombine.low %v1415_v11, %v1418_v16  ;;  %v622_v40 = vor.u32 %v621_v30, %v618_v27  ;;  %v1428_v53 = vrot.slane %v13010_v31, 5  ;;  %v12255_v11 = vld [vmem:[%s16699_s1 + $0x1a8] sm:$0xff]   ;;  %v12258_v30 = vld [vmem:[%s16699_s1 + $0x1a0] sm:$0xff]   ;;  %11318 = vmatprep.subr.bf16.mxu0 %v12260_v36 }
  0x72   : > { %v632_v41 = vor.u32 %v631_v33, %v13003_v32  ;;  %v655_v3 = vrot.slane %v653_v60, 4  ;;  %v391_v27 = vld [vmem:[%s12708_s13 + $0x8c] sm:$0x1]  ;;  %v667_v33 = vshll.u32 %v13067_v21, 16  ;;  %v10138_v2 = vcombine.low %v12987_v15, %v12992_v29  ;;  %v12262_v15 = vld [vmem:[%s16699_s1 + $0x1d8] sm:$0xff]  }
  0x73   : > { %v604_v24 = vsel %vm12742_vm5, %v599_v17, %v603_v61  ;;  %v623_v52 = vrot.slane %v622_v40, 4  ;;  %v12254_v61 = vld [vmem:[%s16699_s1 + $0x1e8] sm:$0xff]   ;;  %v1430_v14 = vrot.slane %v1428_v53, 4  ;;  %v13057_v17 = vld [vmem:[%s12708_s13 + $0x7c] sm:$0xf]  ;;  %v1429_v43 = vsel %vm12732_vm4, %v10186_v0, %v1428_v53 }
  0x74   : > { %v10153_v48 = vcombine.low %v604_v24, %v614_v28  ;;  %11420 = vmatprep.subr.bf16.mxu1 %v12254_v61  ;;  %v656_v16 = vor.u32 %v655_v3, %v13041_v63  ;;  %v664_v28 = vshrl.u32 %v13067_v21, 16  ;;  %v1435_v38 = vrot.slane %v13057_v17, 5  ;;  %v13109_v53 = vld [vmem:[%s12708_s13 + $0x88] sm:$0xf]  ;;  %v12263_v3 = vld [vmem:[%s16699_s1 + $0x198] sm:$0xff]  }
  0x75   : > { %v628_v1 = vsel %vm12742_vm5, %v623_v52, %v13003_v32  ;;  %11421 = vmatpush3.bf16.msra.mxu1 %v12255_v11  ;;  %v669_v31 = vrot.slane %v667_v33, 5  ;;  %v683_v40 = vshll.u32 %v391_v27, 16  ;;  %v697_v61 = vshll.u32 %v13112_v54, 16  ;;  %v12264_v27 = vld [vmem:[%s16699_s1 + $0x1d0] sm:$0xff]  }
  0x76   : > { %1152 = vmatmul.mubr.bf16.gmra.mxu0 %v10135_v6  ;;  %v10233_v6 = vcombine.low %v1422_v49, %v1425_v57  ;;  %v657_v26 = vrot.slane %v656_v16, 4  ;;  %11422 = vmatprep.subr.bf16.mxu1 %v12256_v25  ;;  %v666_v8 = vrot.slane %v664_v28, 4  ;;  %v13100_v49 = vld [vmem:[%s12708_s13 + $0x90] sm:$0xf]  ;;  %v701_v0 = vshrl.u32 %v13112_v54, 16 }
  0x77   : > { %1877 = vmatmul.mubr.bf16.gmra.mxu1 %v10231_v51  ;;  %1159 = vmatprep.mubr.bf16.mxu0 %v10152_v10  ;;  %v640_v51 = vshrl.u32 %v13019_v44, 16  ;;  %v13045_v10 = vld [vmem:[%s12708_s13 + $0x78] sm:$0xe]  ;;  %v691_v60 = vshll.u32 %v13100_v49, 16  ;;  %v13132_v16 = vld [vmem:[%s12708_s13 + $0x94] sm:$0xf] }
  0x78   : > { %1884 = vmatprep.mubr.bf16.mxu1 %v12230_v58  ;;  %v633_v58 = vrot.slane %v632_v41, 4  ;;  %v10187_v4 = vrot.slane %v13045_v10, 9  ;;  %v662_v42 = vsel %vm12742_vm5, %v657_v26, %v661_v19  ;;  %v670_v52 = vor.u32 %v669_v31, %v666_v8  ;;  %v12242_v28 = vld [vmem:[%s12708_s13 + $0x90] sm:$0xff]   ;;  %v13157_v8 = vld [vmem:[%s12708_s13 + $0x9c] sm:$0xf] }
  0x79   : > { %v642_v59 = vrot.slane %v640_v51, 4  ;;  %11423 = vmatpush3.bf16.msra.mxu1 %v12258_v30  ;;  %v12238_v51 = vld [vmem:[%s12708_s13 + $0x84] sm:$0xff]   ;;  %v13129_v10 = vrot.slane %v697_v61, 5 }
  0x7a   : > { %v638_v13 = vsel %vm12742_vm5, %v633_v58, %v637_v50  ;;  %v12261_v50 = vld [vmem:[%s16699_s1 + $0x100] sm:$0xff]   ;;  %11424 = vmatprep.subr.bf16.mxu1 %v12262_v15  ;;  %v671_v11 = vrot.slane %v670_v52, 4  ;;  %v1436_v25 = vsel %vm12732_vm4, %v10187_v4, %v1435_v38  ;;  %v1302_v4 = vld [vmem:[%s12708_s13 + $0x98] sm:$0x1]  ;;  %v13177_v52 = vld [vmem:[%s12708_s13 + $0x9c] sm:$0xe] }
  0x7b   : > { %v646_v9 = vor.u32 %v645_v62, %v642_v59  ;;  %v10154_v32 = vcombine.low %v628_v1, %v638_v13  ;;  %v1297_v58 = vld [vmem:[%s12708_s13 + $0x84] sm:$0xe]  ;;  %v688_v59 = vshrl.u32 %v13100_v49, 16  ;;  %11319 = vmatpush3.bf16.msra.mxu0 %v12261_v50  ;;  %v1437_v62 = vrot.slane %v1435_v38, 4  ;;  %v13160_v38 = vld [vmem:[%s12708_s13 + $0xa0] sm:$0xf] }
  0x7c   : > { %v703_v13 = vrot.slane %v701_v0, 4  ;;  %v10188_v19 = vrot.slane %v1297_v58, 9  ;;  %v393_v31 = vld [vmem:[%s12708_s13 + $0xa4] sm:$0x1]  ;;  %v13182_v58 = vld [vmem:[%s12708_s13 + $0xa0] sm:$0xf] }
  0x7d   : > { %v647_v24 = vrot.slane %v646_v9, 4  ;;  %v693_v9 = vrot.slane %v691_v60, 5  ;;  %11425 = vmatpush3.bf16.msra.mxu1 %v12263_v3  ;;  %v731_v50 = vshll.u32 %v393_v31, 16  ;;  %v1452_v60 = vrot.slane %v1302_v4, 5  ;;  %v1308_v4 = vld [vmem:[%s12708_s13 + $0xb0] sm:$0x1] }
  0x7e   : > { %1160 = vmatmul.mubr.bf16.gmra.mxu0 %v10136_v39  ;;  %v13091_v39 = vrot.slane %v673_v34, 5  ;;  %v704_v20 = vor.u32 %v703_v13, %v13129_v10  ;;  %11426 = vmatprep.subr.bf16.mxu1 %v12264_v27  ;;  %v10190_v3 = vrot.slane %v13177_v52, 9  ;;  %v1305_v13 = vld [vmem:[%s12708_s13 + $0xa4] sm:$0x1] }
  0x7f   : > { %1885 = vmatmul.mubr.bf16.gmra.mxu1 %v10232_v35  ;;  %1167 = vmatprep.mubr.bf16.mxu0 %v10153_v48  ;;  %v677_v35 = vshrl.u32 %v13070_v22, 16  ;;  %v652_v41 = vsel %vm12742_vm5, %v647_v24, %v13041_v63  ;;  %v685_v63 = vrot.slane %v683_v40, 5  ;;  %v1445_v24 = vrot.slane %v1299_v5, 5  ;;  %v12270_v5 = vld [vmem:[%s16699_s1 + $0x1c0] sm:$0xff]  }
  0x80   : > { %1892 = vmatprep.mubr.bf16.mxu1 %v12232_v37  ;;  %v1432_v37 = vsel %vm12732_vm4, %v1430_v14, %v1431_v7  ;;  %v10155_v29 = vcombine.low %v652_v41, %v662_v42  ;;  %v690_v7 = vrot.slane %v688_v59, 4  ;;  %v707_v14 = vshll.u32 %v392_v55, 16 }
  0x81   : > { %v679_v48 = vrot.slane %v677_v35, 4  ;;  %v10234_v12 = vcombine.low %v1429_v43, %v1432_v37  ;;  %v676_v34 = vsel %vm12742_vm5, %v671_v11, %v13091_v39  ;;  %v705_v36 = vrot.slane %v704_v20, 4  ;;  %v1300_v43 = vld [vmem:[%s12708_s13 + $0x90] sm:$0xe] }
  0x82   : > { %v694_v17 = vor.u32 %v693_v9, %v690_v7  ;;  %v13139_v26 = vrot.slane %v707_v14, 5  ;;  %v12266_v37 = vld [vmem:[%s16699_s1 + $0x190] sm:$0xff]   ;;  %v712_v40 = vshrl.u32 %v13157_v8, 16  ;;  %v715_v41 = vshll.u32 %v13157_v8, 16  ;;  %v13202_v14 = vld [vmem:[%s12708_s13 + $0xa8] sm:$0xf] }
  0x83   : > { %v680_v57 = vor.u32 %v679_v48, %v13091_v39  ;;  %v10139_v39 = vcombine.low %v13019_v44, %v13022_v45  ;;  %11427 = vmatpush3.bf16.msra.mxu1 %v12266_v37  ;;  %v725_v48 = vshrl.u32 %v13160_v38, 16  ;;  %v733_v15 = vrot.slane %v731_v50, 5  ;;  %v1307_v37 = vld [vmem:[%s12708_s13 + $0xac] sm:$0xf] }
  0x84   : > { %v695_v30 = vrot.slane %v694_v17, 4  ;;  %v710_v7 = vsel %vm12742_vm5, %v705_v36, %v13139_v26  ;;  %v1456_v11 = vrot.slane %v13182_v58, 5  ;;  %v13210_v17 = vld [vmem:[%s12708_s13 + $0xac] sm:$0xf]  ;;  %v1459_v36 = vrot.slane %v1305_v13, 5 }
  0x85   : > { %v681_v1 = vrot.slane %v680_v57, 4  ;;  %v727_v57 = vrot.slane %v725_v48, 4  ;;  %v749_v26 = vshrl.u32 %v13210_v17, 16  ;;  %v1463_v50 = vrot.slane %v1307_v37, 5  ;;  %v395_v58 = vld [vmem:[%s12708_s13 + $0xbc] sm:$0x1] }
  0x86   : > { %1168 = vmatmul.mubr.bf16.gmra.mxu0 %v10137_v23  ;;  %v1457_v52 = vsel %vm12732_vm4, %v10190_v3, %v1456_v11  ;;  %v12257_v3 = vld [vmem:[%s12708_s13 + $0xb4] sm:$0xff]  }
  0x87   : > { %1893 = vmatmul.mubr.bf16.gmra.mxu1 %v10233_v6  ;;  %1175 = vmatprep.mubr.bf16.mxu0 %v10154_v32  ;;  %v1442_v6 = vrot.slane %v13109_v53, 5  ;;  %v1449_v32 = vrot.slane %v13132_v16, 5  ;;  %v686_v35 = vsel %vm12742_vm5, %v681_v1, %v685_v63  ;;  %v10189_v53 = vrot.slane %v1300_v43, 9  ;;  %v12244_v63 = vld [vmem:[%s12708_s13 + $0x9c] sm:$0xff]  }
  0x88   : > { %1900 = vmatprep.mubr.bf16.mxu1 %v12236_v18  ;;  %v1439_v18 = vsel %vm12732_vm4, %v1437_v62, %v1438_v46  ;;  %v10156_v42 = vcombine.low %v676_v34, %v686_v35  ;;  %v721_v46 = vshll.u32 %v13160_v38, 16  ;;  %v12271_v16 = vld [vmem:[%s16699_s1 + $0x180] sm:$0xff]   ;;  %v1306_v34 = vld [vmem:[%s12708_s13 + $0xa8] sm:$0xe]  ;;  %v1458_v35 = vrot.slane %v1456_v11, 4 }
  0x89   : > { %v1444_v23 = vrot.slane %v1442_v6, 4  ;;  %v10235_v33 = vcombine.low %v1436_v25, %v1439_v18  ;;  %v1443_v44 = vsel %vm12732_vm4, %v10188_v19, %v1442_v6  ;;  %v1451_v59 = vrot.slane %v1449_v32, 4  ;;  %v394_v25 = vld [vmem:[%s12708_s13 + $0xb0] sm:$0x1] }
  0x8a   : > { %v13179_v55 = vrot.slane %v721_v46, 5  ;;  %v700_v6 = vsel %vm12742_vm5, %v695_v30, %v13129_v10  ;;  %v10140_v10 = vcombine.low %v13067_v21, %v13070_v22  ;;  %v736_v18 = vshrl.u32 %v13202_v14, 16  ;;  %v13224_v30 = vld [vmem:[%s16699_s1 + $0x238] sm:$0xff]  }
  0x8b   : > { %v1446_v45 = vsel %vm12732_vm4, %v1444_v23, %v1445_v24  ;;  %v739_v19 = vshll.u32 %v13202_v14, 16  ;;  %v10157_v20 = vcombine.low %v700_v6, %v710_v7  ;;  %v1450_v23 = vsel %vm12732_vm4, %v10189_v53, %v1449_v32  ;;  %12024 = vmatprep.subr.bf16.mxu0 %v13224_v30 }
  0x8c   : > { %v10236_v62 = vcombine.low %v1443_v44, %v1446_v45  ;;  %v728_v0 = vor.u32 %v727_v57, %v13179_v55  ;;  %v745_v24 = vshll.u32 %v13210_v17, 16  ;;  %v1453_v21 = vsel %vm12732_vm4, %v1451_v59, %v1452_v60  ;;  %v13243_v57 = vld [vmem:[%s12708_s13 + $0xb4] sm:$0xf] }
  0x8d   : > { %v738_v22 = vrot.slane %v736_v18, 4  ;;  %v741_v27 = vrot.slane %v739_v19, 5  ;;  %v10237_v31 = vcombine.low %v1450_v23, %v1453_v21  ;;  %v1460_v53 = vsel %vm12732_vm4, %v1458_v35, %v1459_v36  ;;  %v10274_v35 = vld [vmem:[%s12708_s13 + $0x10] sm:$0xf] }
  0x8e   : > { %1176 = vmatmul.mubr.bf16.gmra.mxu0 %v10138_v2  ;;  %v12268_v2 = vld [vmem:[%s16699_s1 + $0x1c8] sm:$0xff]   ;;  %v729_v1 = vrot.slane %v728_v0, 4  ;;  %v747_v32 = vrot.slane %v745_v24, 5  ;;  %v760_v59 = vshrl.u32 %v13243_v57, 16  ;;  %v763_v60 = vshll.u32 %v13243_v57, 16 }
  0x8f   : > { %1901 = vmatmul.mubr.bf16.gmra.mxu1 %v10234_v12  ;;  %1183 = vmatprep.mubr.bf16.mxu0 %v10155_v29  ;;  %v714_v12 = vrot.slane %v712_v40, 4  ;;  %v12269_v29 = vld [vmem:[%s16699_s1 + $0x188] sm:$0xff]   ;;  %v742_v43 = vor.u32 %v741_v27, %v738_v22  ;;  %v10142_v24 = vcombine.low %v13157_v8, %v13160_v38  ;;  %v10275_v8 = vld [vmem:[%s12708_s13 + $0x14] sm:$0x1] }
  0x90   : > { %1908 = vmatprep.mubr.bf16.mxu1 %v12238_v51  ;;  %v717_v51 = vrot.slane %v715_v41, 5  ;;  %11428 = vmatprep.subr.bf16.mxu1 %v12268_v2  ;;  %v734_v48 = vsel %vm12742_vm5, %v729_v1, %v733_v15  ;;  %v1466_v2 = vrot.slane %v1308_v4, 5  ;;  %v779_v15 = vshll.u32 %v395_v58, 16  ;;  %v10321_v38 = vld [vmem:[%s12708_s13 + $0xc] sm:$0xe] }
  0x91   : > { %11429 = vmatpush3.bf16.msra.mxu1 %v12269_v29  ;;  %v743_v44 = vrot.slane %v742_v43, 4  ;;  %v10238_v29 = vcombine.low %v1457_v52, %v1460_v53  ;;  %v2115_v43 = vshrl.u32 %v10274_v35, 16 }
  0x92   : > { %v718_v61 = vor.u32 %v717_v51, %v714_v12  ;;  %11430 = vmatprep.subr.bf16.mxu1 %v12270_v5  ;;  %v10141_v12 = vcombine.low %v13100_v49, %v13112_v54  ;;  %v1465_v49 = vrot.slane %v1463_v50, 4  ;;  %v781_v13 = vrot.slane %v779_v15, 5 }
  0x93   : > { %v748_v0 = vsel %vm12742_vm5, %v743_v44, %v747_v32 }
  0x94   : > { %v719_v9 = vrot.slane %v718_v61, 4  ;;  %v1467_v18 = vsel %vm12732_vm4, %v1465_v49, %v1466_v2 }
  0x95   : > { %11431 = vmatpush3.bf16.msra.mxu1 %v12271_v16  ;;  %v1310_v16 = vld [vmem:[%s12708_s13 + $0xb8] sm:$0xf] }
  0x96   : > { %1184 = vmatmul.mubr.bf16.gmra.mxu0 %v10139_v39  ;;  %v12251_v39 = vld [vmem:[%s12708_s13 + $0xa8] sm:$0xff]   ;;  %v724_v46 = vsel %vm12742_vm5, %v719_v9, %v13179_v55  ;;  %v13246_v55 = vld [vmem:[%s12708_s13 + $0xb8] sm:$0xf]  ;;  %v1309_v9 = vld [vmem:[%s12708_s13 + $0xb4] sm:$0xe] }
  0x97   : > { %1909 = vmatmul.mubr.bf16.gmra.mxu1 %v10235_v33  ;;  %1191 = vmatprep.mubr.bf16.mxu0 %v10156_v42  ;;  %v751_v33 = vrot.slane %v749_v26, 4  ;;  %v10191_v42 = vrot.slane %v1306_v34, 9  ;;  %v10158_v51 = vcombine.low %v724_v46, %v734_v48  ;;  %v769_v54 = vshll.u32 %v13246_v55, 16 }
  0x98   : > { %1916 = vmatprep.mubr.bf16.mxu1 %v12242_v28  ;;  %v755_v28 = vshll.u32 %v394_v25, 16  ;;  %v773_v61 = vshrl.u32 %v13246_v55, 16  ;;  %v10192_v25 = vrot.slane %v1309_v9, 9  ;;  %v10144_v4 = vcombine.low %v13243_v57, %v13246_v55  ;;  %v10280_v55 = vld [vmem:[%s12708_s13 + $0x28] sm:$0xf] }
  0x99   : > { %v752_v40 = vor.u32 %v751_v33, %v747_v32  ;;  %v13258_v5 = vsel %vm12732_vm4, %v10191_v42, %v1463_v50  ;;  %v771_v6 = vrot.slane %v769_v54, 5  ;;  %v2117_v42 = vrot.slane %v2115_v43, 4  ;;  %v13334_v43 = vld [vmem:[%s12708_s13 + $0x28] sm:$0xf] }
  0x9a   : > { %v757_v41 = vrot.slane %v755_v28, 5  ;;  %v775_v7 = vrot.slane %v773_v61, 4  ;;  %v10143_v28 = vcombine.low %v13202_v14, %v13210_v17  ;;  %v10239_v32 = vcombine.low %v13258_v5, %v1467_v18  ;;  %v10433_v61 = vld [vmem:[%s12708_s13 + $0x20] sm:$0x1] }
  0x9b   : > { %v753_v45 = vrot.slane %v752_v40, 4  ;;  %v2111_v17 = vshll.u32 %v10274_v35, 16  ;;  %v10273_v40 = vld [vmem:[%s12708_s13 + $0xc] sm:$0xf]  ;;  %v2551_v46 = vrot.slane %v10274_v35, 5  ;;  %v2554_v48 = vrot.slane %v10275_v8, 5 }
  0x9c   : > { %v776_v19 = vor.u32 %v775_v7, %v771_v6  ;;  %v2102_v44 = vshrl.u32 %v10273_v40, 16  ;;  %v10278_v5 = vld [vmem:[%s12708_s13 + $0x20] sm:$0x1] }
  0x9d   : > { %v758_v11 = vsel %vm12742_vm5, %v753_v45, %v757_v41  ;;  %v2113_v41 = vrot.slane %v2111_v17, 5  ;;  %v2105_v45 = vshll.u32 %v10273_v40, 16  ;;  %v2553_v58 = vrot.slane %v2551_v46, 4 }
  0x9e   : > { %1192 = vmatmul.mubr.bf16.gmra.mxu0 %v10140_v10  ;;  %v1311_v10 = vld [vmem:[%s12708_s13 + $0xbc] sm:$0x1]  ;;  %v10159_v21 = vcombine.low %v748_v0, %v758_v11  ;;  %v777_v22 = vrot.slane %v776_v19, 4  ;;  %v2104_v49 = vrot.slane %v2102_v44, 4 }
  0x9f   : > { %1917 = vmatmul.mubr.bf16.gmra.mxu1 %v10236_v62  ;;  %1199 = vmatprep.mubr.bf16.mxu0 %v10157_v20  ;;  %v762_v62 = vrot.slane %v760_v59, 4  ;;  %v1470_v20 = vrot.slane %v1310_v16, 5  ;;  %v1473_v23 = vrot.slane %v1311_v10, 5  ;;  %v2118_v52 = vor.u32 %v2117_v42, %v2113_v41  ;;  %v13301_v59 = vld [vmem:[%s12708_s13 + $0x1c] sm:$0xf] }
  0xa0   : > { %1924 = vmatprep.mubr.bf16.mxu1 %v12244_v63  ;;  %v765_v63 = vrot.slane %v763_v60, 5  ;;  %v782_v36 = vsel %vm12742_vm5, %v777_v22, %v781_v13  ;;  %v2107_v54 = vrot.slane %v2105_v45, 5  ;;  %v10276_v13 = vld [vmem:[%s12708_s13 + $0x18] sm:$0xf]  ;;  %v10277_v19 = vld [vmem:[%s12708_s13 + $0x1c] sm:$0xf] }
  0xa1   : > { %v1472_v27 = vrot.slane %v1470_v20, 4  ;;  %v13276_v34 = vsel %vm12732_vm4, %v10192_v25, %v1470_v20  ;;  %v3243_v25 = vshll.u32 %v10433_v61, 16  ;;  %v2129_v17 = vshll.u32 %v10276_v13, 16 }
  0xa2   : > { %v766_v1 = vor.u32 %v765_v63, %v762_v62  ;;  %v2119_v62 = vrot.slane %v2118_v52, 4  ;;  %v13309_v63 = vsel %vm12732_vm4, %v2553_v58, %v2554_v48  ;;  %v2108_v7 = vor.u32 %v2107_v54, %v2104_v49  ;;  %v10323_v54 = vld [vmem:[%s12708_s13 + $0x24] sm:$0xe] }
  0xa3   : > { %v13285_v14 = vsel %vm12732_vm4, %v1472_v27, %v1473_v23  ;;  %v3245_v22 = vrot.slane %v3243_v25, 5  ;;  %v2561_v27 = vrot.slane %v10278_v5, 5  ;;  %v2139_v40 = vshrl.u32 %v10277_v19, 16 }
  0xa4   : > { %v767_v26 = vrot.slane %v766_v1, 4  ;;  %v10240_v50 = vcombine.low %v13276_v34, %v13285_v14  ;;  %v10322_v1 = vld [vmem:[%s12708_s13 + $0x18] sm:$0xe]  ;;  %v2109_v20 = vrot.slane %v2108_v7, 4  ;;  %v2145_v48 = vshll.u32 %v10278_v5, 16 }
  0xa5   : > { %v3257_v49 = vshll.u32 %v13334_v43, 16  ;;  %v10279_v7 = vld [vmem:[%s12708_s13 + $0x24] sm:$0xf] }
  0xa6   : > { %1200 = vmatmul.mubr.bf16.gmra.mxu0 %v10141_v12  ;;  %v772_v33 = vsel %vm12742_vm5, %v767_v26, %v771_v6  ;;  %v13293_v12 = vld [vmem:[%s12708_s13 + $0x18] sm:$0xf]  ;;  %v2558_v26 = vrot.slane %v10277_v19, 5  ;;  %v2147_v58 = vrot.slane %v2145_v48, 5 }
  0xa7   : > { %1925 = vmatmul.mubr.bf16.gmra.mxu1 %v10237_v31  ;;  %1207 = vmatprep.mubr.bf16.mxu0 %v10158_v51  ;;  %v10160_v37 = vcombine.low %v772_v33, %v782_v36  ;;  %v2121_v31 = vshll.u32 %v10275_v8, 16  ;;  %v12265_v51 = vld [vmem:[%s12708_s13 + $0xc0] sm:$0xff]   ;;  %v3224_v60 = vshrl.u32 %v13293_v12, 16  ;;  %v3227_v15 = vshll.u32 %v13293_v12, 16 }
  0xa8   : > { %1932 = vmatprep.mubr.bf16.mxu1 %v12251_v39  ;;  %v10337_v39 = vrot.slane %v10321_v38, 9  ;;  %v10449_v18 = vcombine.low %v13293_v12, %v13301_v59  ;;  %v2114_v33 = vsel %vm12742_vm5, %v2109_v20, %v2113_v41  ;;  %v13329_v8 = vld [vmem:[%s12708_s13 + $0x24] sm:$0xf]  ;;  %v2153_v20 = vshll.u32 %v10279_v7, 16 }
  0xa9   : > { %v2123_v2 = vrot.slane %v2121_v31, 5  ;;  %v3226_v0 = vrot.slane %v3224_v60, 4  ;;  %v3229_v9 = vrot.slane %v3227_v15, 5  ;;  %v3248_v52 = vshrl.u32 %v13329_v8, 16 }
  0xaa   : > { %v13298_v53 = vsel %vm12732_vm4, %v10337_v39, %v2551_v46  ;;  %v2135_v39 = vshll.u32 %v10277_v19, 16  ;;  %v2131_v46 = vrot.slane %v2129_v17, 5  ;;  %v3251_v60 = vshll.u32 %v13329_v8, 16 }
  0xab   : > { %v10369_v6 = vcombine.low %v13298_v53, %v13309_v63  ;;  %v2124_v16 = vsel %vm12742_vm5, %v2119_v62, %v2123_v2  ;;  %v3230_v23 = vor.u32 %v3229_v9, %v3226_v0  ;;  %v10434_v2 = vld [vmem:[%s12708_s13 + $0x2c] sm:$0x1]  ;;  %v3250_v61 = vrot.slane %v3248_v52, 4 }
  0xac   : > { %v13331_v38 = vcombine.low %v2114_v33, %v2124_v16  ;;  %v2137_v45 = vrot.slane %v2135_v39, 5  ;;  %v3261_v15 = vshrl.u32 %v13334_v43, 16  ;;  %v10281_v62 = vld [vmem:[%s12708_s13 + $0x2c] sm:$0x1]  ;;  %v3253_v0 = vrot.slane %v3251_v60, 5 }
  0xad   : > { %v3231_v34 = vrot.slane %v3230_v23, 4  ;;  %v10450_v5 = vcombine.low %v13329_v8, %v13334_v43  ;;  %v2565_v16 = vrot.slane %v10280_v55, 5  ;;  %v2150_v19 = vshrl.u32 %v10279_v7, 16  ;;  %v10435_v39 = vld [vmem:[%s12708_s13 + $0x38] sm:$0x1] }
  0xae   : > { %1208 = vmatmul.mubr.bf16.gmra.mxu0 %v10142_v24  ;;  %v10338_v24 = vrot.slane %v10322_v1, 9  ;;  %v2163_v17 = vshrl.u32 %v10280_v55, 16  ;;  %v10284_v60 = vld [vmem:[%s12708_s13 + $0x38] sm:$0x1]  ;;  %v13418_v43 = vld [vmem:[%s12708_s13 + $0x3c] sm:$0xf] }
  0xaf   : > { %1933 = vmatmul.mubr.bf16.gmra.mxu1 %v10238_v29  ;;  %1215 = vmatprep.mubr.bf16.mxu0 %v10159_v21  ;;  %v3233_v29 = vshll.u32 %v13301_v59, 16  ;;  %v2152_v33 = vrot.slane %v2150_v19, 4 }
  0xb0   : > { %1940 = vmatprep.mubr.bf16.mxu1 %v12257_v3  ;;  %v3237_v3 = vshrl.u32 %v13301_v59, 16  ;;  %v13326_v35 = vsel %vm12732_vm4, %v10338_v24, %v2558_v26 }
  0xb1   : > { %v3235_v11 = vrot.slane %v3233_v29, 5  ;;  %v3267_v29 = vshll.u32 %v10434_v2, 16 }
  0xb2   : > { %v3239_v10 = vrot.slane %v3237_v3, 4  ;;  %v3259_v3 = vrot.slane %v3257_v49, 5  ;;  %v10282_v49 = vld [vmem:[%s12708_s13 + $0x30] sm:$0xf] }
  0xb3   : > { %v3269_v57 = vrot.slane %v3267_v29, 5  ;;  %v10283_v29 = vld [vmem:[%s12708_s13 + $0x34] sm:$0xf]  ;;  %v2177_v8 = vshll.u32 %v10282_v49, 16 }
  0xb4   : > { %v3240_v21 = vor.u32 %v3239_v10, %v3235_v11  ;;  %v2568_v10 = vrot.slane %v10281_v62, 5 }
  0xb6   : > { %1216 = vmatmul.mubr.bf16.gmra.mxu0 %v10143_v28  ;;  %v2560_v28 = vrot.slane %v2558_v26, 4  ;;  %v3241_v36 = vrot.slane %v3240_v21, 4  ;;  %v2567_v21 = vrot.slane %v2565_v16, 4 }
  0xb7   : > { %1941 = vmatmul.mubr.bf16.gmra.mxu1 %v10239_v32  ;;  %1223 = vmatprep.mubr.bf16.mxu0 %v10160_v37  ;;  %v2126_v32 = vshrl.u32 %v10276_v13, 16  ;;  %v3236_v37 = vsel %vm12742_vm5, %v3231_v34, %v3235_v11  ;;  %v3263_v11 = vrot.slane %v3261_v15, 4  ;;  %v3254_v13 = vor.u32 %v3253_v0, %v3250_v61 }
  0xb8   : > { %1948 = vmatprep.mubr.bf16.mxu1 %v12265_v51  ;;  %v13340_v31 = vsel %vm12732_vm4, %v2560_v28, %v2561_v27  ;;  %v3246_v41 = vsel %vm12742_vm5, %v3241_v36, %v3245_v22  ;;  %v2141_v51 = vrot.slane %v2139_v40, 4  ;;  %v12275_v22 = vld [vmem:[%s16699_s1 + $0x230] sm:$0xff]   ;;  %v2155_v34 = vrot.slane %v2153_v20, 5 }
  0xb9   : > { %v2128_v14 = vrot.slane %v2126_v32, 4  ;;  %v10370_v42 = vcombine.low %v13326_v35, %v13340_v31  ;;  %v10465_v44 = vcombine.low %v3236_v37, %v3246_v41  ;;  %v3264_v25 = vor.u32 %v3263_v11, %v3259_v3  ;;  %v13374_v27 = vld [vmem:[%s12708_s13 + $0x30] sm:$0xf]  ;;  %v13380_v28 = vld [vmem:[%s12708_s13 + $0x34] sm:$0xf] }
  0xba   : > { %v3255_v24 = vrot.slane %v3254_v13, 4  ;;  %v2159_v35 = vshll.u32 %v10280_v55, 16  ;;  %v2169_v37 = vshll.u32 %v10281_v62, 16  ;;  %v2165_v41 = vrot.slane %v2163_v17, 4  ;;  %v12281_v55 = vld [vmem:[%s16699_s1 + $0x220] sm:$0xff]  }
  0xbb   : > { %v2132_v53 = vor.u32 %v2131_v46, %v2128_v14  ;;  %v3265_v32 = vrot.slane %v3264_v25, 4  ;;  %v2569_v14 = vsel %vm12732_vm4, %v2567_v21, %v2568_v10  ;;  %v3272_v48 = vshrl.u32 %v13374_v27, 16  ;;  %v13422_v25 = vld [vmem:[%s12708_s13 + $0x40] sm:$0xf]  ;;  %v10436_v21 = vld [vmem:[%s12708_s13 + $0x44] sm:$0x1] }
  0xbc   : > { %v3260_v36 = vsel %vm12742_vm5, %v3255_v24, %v3259_v3  ;;  %v2161_v31 = vrot.slane %v2159_v35, 5  ;;  %v2171_v46 = vrot.slane %v2169_v37, 5  ;;  %v2572_v3 = vrot.slane %v10283_v29, 5 }
  0xbd   : > { %v2133_v63 = vrot.slane %v2132_v53, 4  ;;  %v3270_v12 = vsel %vm12742_vm5, %v3265_v32, %v3269_v57  ;;  %v3274_v52 = vrot.slane %v3272_v48, 4  ;;  %v3291_v53 = vshll.u32 %v10435_v39, 16 }
  0xbe   : > { %1224 = vmatmul.mubr.bf16.gmra.mxu0 %v10144_v4  ;;  %v10339_v4 = vrot.slane %v10323_v54, 9  ;;  %v10466_v40 = vcombine.low %v3260_v36, %v3270_v12  ;;  %v2575_v11 = vrot.slane %v10284_v60, 5  ;;  %v2174_v57 = vshrl.u32 %v10282_v49, 16 }
  0xbf   : > { %1949 = vmatmul.mubr.bf16.gmra.mxu1 %v10240_v50  ;;  %v2142_v50 = vor.u32 %v2141_v51, %v2137_v45  ;;  %2949 = vmatprep.mubr.bf16.mxu0 %v10369_v6  ;;  %v2138_v1 = vsel %vm12742_vm5, %v2133_v63, %v2137_v45  ;;  %v3281_v45 = vshll.u32 %v13380_v28, 16  ;;  %v2166_v51 = vor.u32 %v2165_v41, %v2161_v31  ;;  %v10325_v41 = vld [vmem:[%s12708_s13 + $0x3c] sm:$0xe] }
  0xc0   : > { %3927 = vmatprep.mubr.bf16.mxu1 %v10465_v44  ;;  %v13368_v26 = vsel %vm12732_vm4, %v10339_v4, %v2565_v16  ;;  %v3275_v44 = vshll.u32 %v13374_v27, 16  ;;  %v3293_v63 = vrot.slane %v3291_v53, 5  ;;  %v2574_v13 = vrot.slane %v2572_v3, 4  ;;  %v10286_v53 = vld [vmem:[%s12708_s13 + $0x40] sm:$0xf] }
  0xc1   : > { %v2143_v9 = vrot.slane %v2142_v50, 4  ;;  %v10371_v59 = vcombine.low %v13368_v26, %v2569_v14  ;;  %v3283_v61 = vrot.slane %v3281_v45, 5  ;;  %v2167_v62 = vrot.slane %v2166_v51, 4  ;;  %v12287_v45 = vld [vmem:[%s16699_s1 + $0x210] sm:$0xff]  }
  0xc2   : > { %v3277_v50 = vrot.slane %v3275_v44, 5  ;;  %v2576_v19 = vsel %vm12732_vm4, %v2574_v13, %v2575_v11  ;;  %v2179_v20 = vrot.slane %v2177_v8, 5  ;;  %v2183_v24 = vshll.u32 %v10283_v29, 16  ;;  %v10285_v44 = vld [vmem:[%s12708_s13 + $0x3c] sm:$0xf] }
  0xc3   : > { %v2148_v6 = vsel %vm12742_vm5, %v2143_v9, %v2147_v58  ;;  %v10451_v58 = vcombine.low %v13374_v27, %v13380_v28  ;;  %v2172_v4 = vsel %vm12742_vm5, %v2167_v62, %v2171_v46  ;;  %v2187_v26 = vshrl.u32 %v10283_v29, 16 }
  0xc4   : > { %v13364_v23 = vcombine.low %v2138_v1, %v2148_v6  ;;  %v3278_v7 = vor.u32 %v3277_v50, %v3274_v52  ;;  %v2176_v6 = vrot.slane %v2174_v57, 4  ;;  %v2193_v32 = vshll.u32 %v10284_v60, 16 }
  0xc5   : > { %v2189_v36 = vrot.slane %v2187_v26, 4  ;;  %v3296_v17 = vshrl.u32 %v13418_v43, 16  ;;  %v3299_v37 = vshll.u32 %v13418_v43, 16  ;;  %v3305_v12 = vshll.u32 %v13422_v25, 16 }
  0xc6   : > { %2950 = vmatmul.mubr.bf16.vlgmr.msra.gmra.mxu0 %v13331_v38  ;;  %v12278_v38 = vld [vmem:[%s16699_s1 + $0x228] sm:$0xff]   ;;  %v3279_v16 = vrot.slane %v3278_v7, 4  ;;  %v2180_v35 = vor.u32 %v2179_v20, %v2176_v6  ;;  %v2195_v14 = vrot.slane %v2193_v32, 5  ;;  %v3309_v39 = vshrl.u32 %v13422_v25, 16 }
  0xc7   : > { %3928 = vmatmul.mubr.bf16.vlgmr.msra.gmra.mxu1 %v10449_v18  ;;  %v2156_v18 = vor.u32 %v2155_v34, %v2152_v33  ;;  %12025 = vmatpush3.bf16.msra.mxu0 %v13224_v30  ;;  %v3285_v30 = vshrl.u32 %v13380_v28, 16  ;;  %v12284_v33 = vld [vmem:[%s16699_s1 + $0x218] sm:$0xff]   ;;  %v2185_v28 = vrot.slane %v2183_v24, 5  ;;  %v3298_v46 = vrot.slane %v3296_v17, 4  ;;  %v12290_v7 = vld [vmem:[%s16699_s1 + $0x208] sm:$0xff]  }
  0xc8   : > { %2957 = vmatprep.mubr.bf16.mxu0 %v10370_v42  ;;  %12026 = vmatprep.subr.bf16.mxu0 %v12275_v22  ;;  %v10324_v42 = vld [vmem:[%s12708_s13 + $0x30] sm:$0xe]  ;;  %v3301_v48 = vrot.slane %v3299_v37, 5  ;;  %v3311_v51 = vrot.slane %v3309_v39, 4  ;;  %v10341_v60 = vrot.slane %v10325_v41, 9  ;;  %v2579_v49 = vrot.slane %v10286_v53, 5 }
  0xc9   : > { %v2157_v2 = vrot.slane %v2156_v18, 4  ;;  %3935 = vmatprep.mubr.bf16.mxu1 %v10466_v40  ;;  %v3287_v15 = vrot.slane %v3285_v30, 4  ;;  %v10340_v0 = vrot.slane %v10324_v42, 9  ;;  %v2181_v18 = vrot.slane %v2180_v35, 4  ;;  %v10290_v17 = vld [vmem:[%s12708_s13 + $0x50] sm:$0x1] }
  0xca   : > { %v3315_v40 = vshll.u32 %v10436_v21, 16  ;;  %v2201_v29 = vshll.u32 %v10285_v44, 16  ;;  %v2211_v8 = vshrl.u32 %v10286_v53, 16  ;;  %v10288_v37 = vld [vmem:[%s12708_s13 + $0x48] sm:$0xf] }
  0xcb   : > { %v2162_v54 = vsel %vm12742_vm5, %v2157_v2, %v2161_v31  ;;  %12027 = vmatpush3.bf16.msra.mxu0 %v12275_v22  ;;  %v3288_v9 = vor.u32 %v3287_v15, %v3283_v61  ;;  %v2573_v1 = vsel %vm12732_vm4, %v10340_v0, %v2572_v3  ;;  %v3284_v22 = vsel %vm12742_vm5, %v3279_v16, %v3283_v61  ;;  %v10437_v16 = vld [vmem:[%s12708_s13 + $0x50] sm:$0x1]  ;;  %v10289_v39 = vld [vmem:[%s12708_s13 + $0x4c] sm:$0xf] }
  0xcc   : > { %12028 = vmatprep.subr.bf16.mxu0 %v12278_v38  ;;  %v10372_v27 = vcombine.low %v2573_v1, %v2576_v19  ;;  %v2190_v31 = vor.u32 %v2189_v36, %v2185_v28  ;;  %v10452_v2 = vcombine.low %v13418_v43, %v13422_v25  ;;  %v2186_v30 = vsel %vm12742_vm5, %v2181_v18, %v2185_v28 }
  0xcd   : > { %v3289_v10 = vrot.slane %v3288_v9, 4  ;;  %v3317_v52 = vrot.slane %v3315_v40, 5  ;;  %v2198_v15 = vshrl.u32 %v10285_v44, 16  ;;  %v2580_v0 = vsel %vm12732_vm4, %v10341_v60, %v2579_v49 }
  0xce   : > { %2958 = vmatmul.mubr.bf16.gmra.mxu0 %v13364_v23  ;;  %v2191_v42 = vrot.slane %v2190_v31, 4  ;;  %v2581_v3 = vrot.slane %v2579_v49, 4  ;;  %v2203_v57 = vrot.slane %v2201_v29, 5  ;;  %v2213_v24 = vrot.slane %v2211_v8, 4 }
  0xcf   : > { %3936 = vmatmul.mubr.bf16.gmra.mxu1 %v10450_v5  ;;  %v10355_v5 = vcombine.low %v2162_v54, %v2172_v4  ;;  %2965 = vmatprep.mubr.bf16.mxu0 %v10371_v59  ;;  %v3294_v23 = vsel %vm12742_vm5, %v3289_v10, %v3293_v63  ;;  %v10287_v59 = vld [vmem:[%s12708_s13 + $0x44] sm:$0x1]  ;;  %v2200_v11 = vrot.slane %v2198_v15, 4  ;;  %v13457_v4 = vld [vmem:[%s12708_s13 + $0x48] sm:$0xf]  ;;  %v3339_v36 = vshll.u32 %v10437_v16, 16 }
  0xd0   : > { %12029 = vmatpush3.bf16.msra.mxu0 %v12278_v38  ;;  %v10467_v34 = vcombine.low %v3284_v22, %v3294_v23  ;;  %v3307_v38 = vrot.slane %v3305_v12, 5  ;;  %v2582_v54 = vrot.slane %v10287_v59, 5  ;;  %v2196_v50 = vsel %vm12742_vm5, %v2191_v42, %v2195_v14  ;;  %v10326_v22 = vld [vmem:[%s12708_s13 + $0x48] sm:$0xe] }
  0xd1   : > { %12030 = vmatprep.subr.bf16.mxu0 %v12281_v55  ;;  %v10356_v62 = vcombine.low %v2186_v30, %v2196_v50  ;;  %v2217_v43 = vshll.u32 %v10287_v59, 16  ;;  %v2204_v25 = vor.u32 %v2203_v57, %v2200_v11  ;;  %v3320_v21 = vshrl.u32 %v13457_v4, 16 }
  0xd2   : > { %3943 = vmatprep.mubr.bf16.mxu1 %v10467_v34  ;;  %v3312_v61 = vor.u32 %v3311_v51, %v3307_v38  ;;  %v2583_v13 = vsel %vm12732_vm4, %v2581_v3, %v2582_v54  ;;  %v12293_v34 = vld [vmem:[%s16699_s1 + $0x200] sm:$0xff]   ;;  %v3341_v41 = vrot.slane %v3339_v36, 5  ;;  %v2222_v30 = vshrl.u32 %v10288_v37, 16  ;;  %v13489_v54 = vld [vmem:[%s12708_s13 + $0x54] sm:$0xf] }
  0xd3   : > { %v10373_v6 = vcombine.low %v2580_v0, %v2583_v13  ;;  %v2219_v26 = vrot.slane %v2217_v43, 5  ;;  %v2205_v23 = vrot.slane %v2204_v25, 4  ;;  %v3322_v28 = vrot.slane %v3320_v21, 4 }
  0xd4   : > { %12031 = vmatpush3.bf16.msra.mxu0 %v12281_v55  ;;  %v3313_v9 = vrot.slane %v3312_v61, 4  ;;  %v2207_v55 = vshll.u32 %v10286_v53, 16  ;;  %v2224_v49 = vrot.slane %v2222_v30, 4  ;;  %v2231_v15 = vshll.u32 %v10289_v39, 16 }
  0xd5   : > { %12032 = vmatprep.subr.bf16.mxu0 %v12284_v33  ;;  %v2235_v29 = vshrl.u32 %v10289_v39, 16  ;;  %v3344_v13 = vshrl.u32 %v13489_v54, 16  ;;  %v3347_v8 = vshll.u32 %v13489_v54, 16 }
  0xd6   : > { %2966 = vmatmul.mubr.bf16.gmra.mxu0 %v10355_v5  ;;  %v13464_v5 = vld [vmem:[%s12708_s13 + $0x4c] sm:$0xf]  ;;  %v3318_v10 = vsel %vm12742_vm5, %v3313_v9, %v3317_v52  ;;  %v2209_v19 = vrot.slane %v2207_v55, 5  ;;  %v2225_v52 = vshll.u32 %v10288_v37, 16  ;;  %v10438_v9 = vld [vmem:[%s12708_s13 + $0x5c] sm:$0x1] }
  0xd7   : > { %3944 = vmatmul.mubr.bf16.gmra.mxu1 %v10451_v58  ;;  %v3302_v58 = vor.u32 %v3301_v48, %v3298_v46  ;;  %2973 = vmatprep.mubr.bf16.mxu0 %v10372_v27  ;;  %v3323_v27 = vshll.u32 %v13457_v4, 16  ;;  %v3329_v32 = vshll.u32 %v13464_v5, 16  ;;  %v10453_v14 = vcombine.low %v13457_v4, %v13464_v5 }
  0xd8   : > { %12033 = vmatpush3.bf16.msra.mxu0 %v12284_v33  ;;  %v3333_v33 = vshrl.u32 %v13464_v5, 16  ;;  %v2214_v35 = vor.u32 %v2213_v24, %v2209_v19  ;;  %v2210_v12 = vsel %vm12742_vm5, %v2205_v23, %v2209_v19  ;;  %v10342_v46 = vrot.slane %v10326_v22, 9  ;;  %v10293_v5 = vld [vmem:[%s12708_s13 + $0x5c] sm:$0x1]  ;;  %v10327_v19 = vld [vmem:[%s12708_s13 + $0x54] sm:$0xe] }
  0xd9   : > { %v3303_v63 = vrot.slane %v3302_v58, 4  ;;  %12034 = vmatprep.subr.bf16.mxu0 %v12287_v45  ;;  %v3325_v59 = vrot.slane %v3323_v27, 5  ;;  %v3331_v18 = vrot.slane %v3329_v32, 5  ;;  %v2586_v48 = vrot.slane %v10289_v39, 5  ;;  %v10291_v22 = vld [vmem:[%s12708_s13 + $0x54] sm:$0xf] }
  0xda   : > { %v3335_v31 = vrot.slane %v3333_v33, 4  ;;  %v2215_v40 = vrot.slane %v2214_v35, 4  ;;  %v2227_v61 = vrot.slane %v2225_v52, 5  ;;  %v2233_v55 = vrot.slane %v2231_v15, 5 }
  0xdb   : > { %v3308_v1 = vsel %vm12742_vm5, %v3303_v63, %v3307_v38  ;;  %v3326_v38 = vor.u32 %v3325_v59, %v3322_v28  ;;  %v2587_v42 = vsel %vm12732_vm4, %v10342_v46, %v2586_v48  ;;  %v2588_v51 = vrot.slane %v2586_v48, 4 }
  0xdc   : > { %12035 = vmatpush3.bf16.msra.mxu0 %v12287_v45  ;;  %v10468_v20 = vcombine.low %v3308_v1, %v3318_v10  ;;  %v3336_v44 = vor.u32 %v3335_v31, %v3331_v18  ;;  %v2589_v45 = vrot.slane %v10290_v17, 5  ;;  %v2228_v57 = vor.u32 %v2227_v61, %v2224_v49  ;;  %v10439_v49 = vld [vmem:[%s12708_s13 + $0x68] sm:$0x1] }
  0xdd   : > { %12036 = vmatprep.subr.bf16.mxu0 %v12290_v7  ;;  %v3327_v58 = vrot.slane %v3326_v38, 4  ;;  %v2237_v4 = vrot.slane %v2235_v29, 4  ;;  %v3363_v25 = vshll.u32 %v10438_v9, 16  ;;  %v3349_v24 = vrot.slane %v3347_v8, 5 }
  0xde   : > { %2974 = vmatmul.mubr.bf16.gmra.mxu0 %v10356_v62  ;;  %3951 = vmatprep.mubr.bf16.mxu1 %v10468_v20  ;;  %v3337_v60 = vrot.slane %v3336_v44, 4  ;;  %v2590_v50 = vsel %vm12732_vm4, %v2588_v51, %v2589_v45  ;;  %v13494_v62 = vld [vmem:[%s12708_s13 + $0x58] sm:$0xf]  ;;  %v2229_v16 = vrot.slane %v2228_v57, 4  ;;  %v3346_v20 = vrot.slane %v3344_v13, 4 }
  0xdf   : > { %3952 = vmatmul.mubr.bf16.gmra.mxu1 %v10452_v2  ;;  %2981 = vmatprep.mubr.bf16.mxu0 %v10373_v6  ;;  %v2220_v2 = vsel %vm12742_vm5, %v2215_v40, %v2219_v26  ;;  %v3332_v63 = vsel %vm12742_vm5, %v3327_v58, %v3331_v18  ;;  %v10374_v3 = vcombine.low %v2587_v42, %v2590_v50  ;;  %v3353_v43 = vshll.u32 %v13494_v62, 16  ;;  %v13518_v44 = vld [vmem:[%s12708_s13 + $0x60] sm:$0xf]  ;;  %v13525_v51 = vld [vmem:[%s12708_s13 + $0x64] sm:$0xf] }
  0xe0   : > { %12037 = vmatpush3.bf16.msra.mxu0 %v12290_v7  ;;  %v10357_v53 = vcombine.low %v2210_v12, %v2220_v2  ;;  %v3342_v0 = vsel %vm12742_vm5, %v3337_v60, %v3341_v41  ;;  %v2241_v7 = vshll.u32 %v10290_v17, 16  ;;  %v2238_v10 = vor.u32 %v2237_v4, %v2233_v55  ;;  %v10294_v4 = vld [vmem:[%s12708_s13 + $0x60] sm:$0xf] }
  0xe1   : > { %12038 = vmatprep.subr.bf16.mxu0 %v12293_v34  ;;  %v10469_v11 = vcombine.low %v3332_v63, %v3342_v0  ;;  %v3357_v6 = vshrl.u32 %v13494_v62, 16  ;;  %v3355_v26 = vrot.slane %v3353_v43, 5  ;;  %v10454_v21 = vcombine.low %v13489_v54, %v13494_v62  ;;  %v10328_v54 = vld [vmem:[%s12708_s13 + $0x60] sm:$0xe] }
  0xe2   : > { %v2243_v1 = vrot.slane %v2241_v7, 5  ;;  %v2234_v23 = vsel %vm12742_vm5, %v2229_v16, %v2233_v55  ;;  %v2239_v27 = vrot.slane %v2238_v10, 4  ;;  %v3365_v33 = vrot.slane %v3363_v25, 5  ;;  %v10296_v55 = vld [vmem:[%s12708_s13 + $0x68] sm:$0x1] }
  0xe3   : > { %3959 = vmatprep.mubr.bf16.mxu1 %v10469_v11  ;;  %v3359_v32 = vrot.slane %v3357_v6, 4  ;;  %v3350_v35 = vor.u32 %v3349_v24, %v3346_v20  ;;  %v10343_v28 = vrot.slane %v10327_v19, 9  ;;  %v2596_v17 = vrot.slane %v10293_v5, 5 }
  0xe4   : > { %12039 = vmatpush3.bf16.msra.mxu0 %v12293_v34  ;;  %v10292_v34 = vld [vmem:[%s12708_s13 + $0x58] sm:$0xf]  ;;  %v2246_v12 = vshrl.u32 %v10291_v22, 16  ;;  %v2249_v59 = vshll.u32 %v10291_v22, 16  ;;  %v2265_v42 = vshll.u32 %v10293_v5, 16  ;;  %v3368_v29 = vshrl.u32 %v13518_v44, 16 }
  0xe5   : > { %v2593_v36 = vrot.slane %v10292_v34, 5  ;;  %v3360_v37 = vor.u32 %v3359_v32, %v3355_v26  ;;  %v3351_v31 = vrot.slane %v3350_v35, 4  ;;  %v2255_v38 = vshll.u32 %v10292_v34, 16  ;;  %v10295_v5 = vld [vmem:[%s12708_s13 + $0x64] sm:$0xf] }
  0xe6   : > { %2982 = vmatmul.mubr.bf16.gmra.mxu0 %v10357_v53  ;;  %v2248_v46 = vrot.slane %v2246_v12, 4  ;;  %v2251_v48 = vrot.slane %v2249_v59, 5  ;;  %v2259_v2 = vshrl.u32 %v10292_v34, 16  ;;  %v2267_v15 = vrot.slane %v2265_v42, 5  ;;  %v13552_v12 = vld [vmem:[%s12708_s13 + $0x70] sm:$0xf] }
  0xe7   : > { %2989 = vmatprep.mubr.bf16.mxu0 %v10374_v3  ;;  %3960 = vmatmul.mubr.bf16.gmra.mxu1 %v10453_v14  ;;  %v2244_v14 = vsel %vm12742_vm5, %v2239_v27, %v2243_v1  ;;  %v2594_v39 = vsel %vm12732_vm4, %v10343_v28, %v2593_v36  ;;  %v2595_v40 = vrot.slane %v2593_v36, 4  ;;  %v3361_v41 = vrot.slane %v3360_v37, 4  ;;  %v13547_v28 = vld [vmem:[%s12708_s13 + $0x6c] sm:$0xf] }
  0xe8   : > { %v10358_v18 = vcombine.low %v2234_v23, %v2244_v14  ;;  %v3356_v45 = vsel %vm12742_vm5, %v3351_v31, %v3355_v26  ;;  %v2252_v58 = vor.u32 %v2251_v48, %v2248_v46  ;;  %v2257_v60 = vrot.slane %v2255_v38, 5 }
  0xe9   : > { %v2597_v30 = vsel %vm12732_vm4, %v2595_v40, %v2596_v17  ;;  %v3366_v52 = vsel %vm12742_vm5, %v3361_v41, %v3365_v33  ;;  %v2261_v61 = vrot.slane %v2259_v2, 4  ;;  %v3371_v63 = vshll.u32 %v13518_v44, 16  ;;  %v10440_v40 = vld [vmem:[%s12708_s13 + $0x74] sm:$0x1] }
  0xea   : > { %v10375_v53 = vcombine.low %v2594_v39, %v2597_v30  ;;  %v10470_v50 = vcombine.low %v3356_v45, %v3366_v52  ;;  %v2253_v62 = vrot.slane %v2252_v58, 4  ;;  %v3377_v0 = vshll.u32 %v13525_v51, 16  ;;  %v10329_v45 = vld [vmem:[%s12708_s13 + $0x6c] sm:$0xe] }
  0xeb   : > { %v3381_v3 = vshrl.u32 %v13525_v51, 16  ;;  %v2262_v7 = vor.u32 %v2261_v61, %v2257_v60  ;;  %v3370_v9 = vrot.slane %v3368_v29, 4  ;;  %v3387_v11 = vshll.u32 %v10439_v49, 16 }
  0xec   : > { %3967 = vmatprep.mubr.bf16.mxu1 %v10470_v50  ;;  %v10455_v57 = vcombine.low %v13518_v44, %v13525_v51  ;;  %v2258_v1 = vsel %vm12742_vm5, %v2253_v62, %v2257_v60  ;;  %v3373_v13 = vrot.slane %v3371_v63, 5  ;;  %v3379_v8 = vrot.slane %v3377_v0, 5  ;;  %v10299_v44 = vld [vmem:[%s12708_s13 + $0x74] sm:$0x1] }
  0xed   : > { %v3383_v43 = vrot.slane %v3381_v3, 4  ;;  %v2263_v16 = vrot.slane %v2262_v7, 4  ;;  %v3389_v10 = vrot.slane %v3387_v11, 5  ;;  %v10344_v6 = vrot.slane %v10328_v54, 9  ;;  %v10298_v3 = vld [vmem:[%s12708_s13 + $0x70] sm:$0xf] }
  0xee   : > { %2990 = vmatmul.mubr.bf16.gmra.mxu0 %v10358_v18  ;;  %v2600_v25 = vrot.slane %v10295_v5, 5  ;;  %v3374_v19 = vor.u32 %v3373_v13, %v3370_v9  ;;  %v2603_v24 = vrot.slane %v10296_v55, 5  ;;  %v2270_v26 = vshrl.u32 %v10294_v4, 16 }
  0xef   : > { %2997 = vmatprep.mubr.bf16.mxu0 %v10375_v53  ;;  %3968 = vmatmul.mubr.bf16.gmra.mxu1 %v10454_v21  ;;  %v3384_v20 = vor.u32 %v3383_v43, %v3379_v8  ;;  %v2268_v21 = vsel %vm12742_vm5, %v2263_v16, %v2267_v15  ;;  %v2273_v27 = vshll.u32 %v10294_v4, 16  ;;  %v2279_v14 = vshll.u32 %v10295_v5, 16  ;;  %v10297_v15 = vld [vmem:[%s12708_s13 + $0x6c] sm:$0xf] }
  0xf0   : > { %v2601_v22 = vsel %vm12732_vm4, %v10344_v6, %v2600_v25  ;;  %v2602_v23 = vrot.slane %v2600_v25, 4  ;;  %v10359_v32 = vcombine.low %v2258_v1, %v2268_v21  ;;  %v3375_v33 = vrot.slane %v3374_v19, 4 }
  0xf1   : > { %v3385_v34 = vrot.slane %v3384_v20, 4  ;;  %v2272_v35 = vrot.slane %v2270_v26, 4  ;;  %v2275_v17 = vrot.slane %v2273_v27, 5  ;;  %v2283_v37 = vshrl.u32 %v10295_v5, 16  ;;  %v13576_v20 = vld [vmem:[%s12708_s13 + $0x78] sm:$0xf] }
  0xf2   : > { %v2604_v36 = vsel %vm12732_vm4, %v2602_v23, %v2603_v24  ;;  %v3380_v59 = vsel %vm12742_vm5, %v3375_v33, %v3379_v8  ;;  %v2289_v39 = vshll.u32 %v10296_v55, 16  ;;  %v2281_v48 = vrot.slane %v2279_v14, 5  ;;  %v13583_v27 = vld [vmem:[%s12708_s13 + $0x7c] sm:$0xf] }
  0xf3   : > { %v3390_v18 = vsel %vm12742_vm5, %v3385_v34, %v3389_v10  ;;  %v10376_v31 = vcombine.low %v2601_v22, %v2604_v36  ;;  %v2276_v46 = vor.u32 %v2275_v17, %v2272_v35  ;;  %v2285_v38 = vrot.slane %v2283_v37, 4 }
  0xf4   : > { %v10471_v41 = vcombine.low %v3380_v59, %v3390_v18  ;;  %v2291_v30 = vrot.slane %v2289_v39, 5  ;;  %v3392_v2 = vshrl.u32 %v13547_v28, 16  ;;  %v3395_v42 = vshll.u32 %v13547_v28, 16 }
  0xf5   : > { %v3401_v51 = vshll.u32 %v13552_v12, 16  ;;  %v2277_v52 = vrot.slane %v2276_v46, 4  ;;  %v2286_v53 = vor.u32 %v2285_v38, %v2281_v48  ;;  %v3405_v58 = vshrl.u32 %v13552_v12, 16 }
  0xf6   : > { %2998 = vmatmul.mubr.bf16.gmra.mxu0 %v10359_v32  ;;  %3975 = vmatprep.mubr.bf16.mxu1 %v10471_v41  ;;  %v3411_v60 = vshll.u32 %v10440_v40, 16  ;;  %v3394_v49 = vrot.slane %v3392_v2, 4  ;;  %v3397_v54 = vrot.slane %v3395_v42, 5  ;;  %v10456_v61 = vcombine.low %v13547_v28, %v13552_v12  ;;  %v10441_v28 = vld [vmem:[%s12708_s13 + $0x80] sm:$0x1] }
  0xf7   : > { %3005 = vmatprep.mubr.bf16.mxu0 %v10376_v31  ;;  %3976 = vmatmul.mubr.bf16.gmra.mxu1 %v10455_v57  ;;  %v3403_v50 = vrot.slane %v3401_v51, 5  ;;  %v2282_v29 = vsel %vm12742_vm5, %v2277_v52, %v2281_v48  ;;  %v2287_v62 = vrot.slane %v2286_v53, 4  ;;  %v3407_v63 = vrot.slane %v3405_v58, 4  ;;  %v10302_v53 = vld [vmem:[%s12708_s13 + $0x80] sm:$0x1] }
  0xf8   : > { %v3413_v0 = vrot.slane %v3411_v60, 5  ;;  %v3398_v7 = vor.u32 %v3397_v54, %v3394_v49  ;;  %v10345_v9 = vrot.slane %v10329_v45, 9  ;;  %v2607_v11 = vrot.slane %v10298_v3, 5 }
  0xf9   : > { %v2610_v55 = vrot.slane %v10299_v44, 5  ;;  %v2292_v57 = vsel %vm12742_vm5, %v2287_v62, %v2291_v30  ;;  %v3408_v4 = vor.u32 %v3407_v63, %v3403_v50  ;;  %v2294_v1 = vshrl.u32 %v10297_v15, 16  ;;  %v10330_v30 = vld [vmem:[%s12708_s13 + $0x78] sm:$0xe] }
  0xfa   : > { %v2297_v13 = vshll.u32 %v10297_v15, 16  ;;  %v10360_v8 = vcombine.low %v2282_v29, %v2292_v57  ;;  %v3399_v43 = vrot.slane %v3398_v7, 4  ;;  %v2608_v5 = vsel %vm12732_vm4, %v10345_v9, %v2607_v11 }
  0xfb   : > { %v2609_v16 = vrot.slane %v2607_v11, 4  ;;  %v3409_v10 = vrot.slane %v3408_v4, 4  ;;  %v2296_v6 = vrot.slane %v2294_v1, 4  ;;  %v2303_v19 = vshll.u32 %v10298_v3, 16 }
  0xfc   : > { %v2299_v25 = vrot.slane %v2297_v13, 5  ;;  %v3404_v24 = vsel %vm12742_vm5, %v3399_v43, %v3403_v50  ;;  %v2307_v22 = vshrl.u32 %v10298_v3, 16  ;;  %v2313_v23 = vshll.u32 %v10299_v44, 16  ;;  %v10300_v3 = vld [vmem:[%s12708_s13 + $0x78] sm:$0xf] }
  0xfd   : > { %v2611_v26 = vsel %vm12732_vm4, %v2609_v16, %v2610_v55  ;;  %v3414_v32 = vsel %vm12742_vm5, %v3409_v10, %v3413_v0  ;;  %v2305_v35 = vrot.slane %v2303_v19, 5  ;;  %v3416_v12 = vshrl.u32 %v13576_v20, 16 }
  0xfe   : > { %3006 = vmatmul.mubr.bf16.gmra.mxu0 %v10360_v8  ;;  %v10377_v33 = vcombine.low %v2608_v5, %v2611_v26  ;;  %v2300_v34 = vor.u32 %v2299_v25, %v2296_v6  ;;  %v10472_v36 = vcombine.low %v3404_v24, %v3414_v32  ;;  %v2309_v14 = vrot.slane %v2307_v22, 4  ;;  %v13613_v22 = vld [vmem:[%s12708_s13 + $0x84] sm:$0xf] }
  0xff   : > { %v2315_v37 = vrot.slane %v2313_v23, 5  ;;  %v3419_v31 = vshll.u32 %v13576_v20, 16  ;;  %v3425_v39 = vshll.u32 %v13583_v27, 16  ;;  %v3429_v40 = vshrl.u32 %v13583_v27, 16  ;;  %v13616_v23 = vld [vmem:[%s12708_s13 + $0x88] sm:$0xf] }
 0x100   : > { %3013 = vmatprep.mubr.bf16.mxu0 %v10377_v33  ;;  %v2301_v18 = vrot.slane %v2300_v34, 4  ;;  %3983 = vmatprep.mubr.bf16.mxu1 %v10472_v36  ;;  %v2310_v41 = vor.u32 %v2309_v14, %v2305_v35  ;;  %v3418_v46 = vrot.slane %v3416_v12, 4  ;;  %v3435_v48 = vshll.u32 %v10441_v28, 16 }
 0x101   : > { %3984 = vmatmul.mubr.bf16.gmra.mxu1 %v10456_v61  ;;  %v3421_v42 = vrot.slane %v3419_v31, 5  ;;  %v3427_v51 = vrot.slane %v3425_v39, 5  ;;  %v3431_v52 = vrot.slane %v3429_v40, 4  ;;  %v10457_v54 = vcombine.low %v13576_v20, %v13583_v27  ;;  %v10301_v61 = vld [vmem:[%s12708_s13 + $0x7c] sm:$0xf] }
 0x102   : > { %v2306_v2 = vsel %vm12742_vm5, %v2301_v18, %v2305_v35  ;;  %v2311_v58 = vrot.slane %v2310_v41, 4  ;;  %v3437_v60 = vrot.slane %v3435_v48, 5  ;;  %v10346_v0 = vrot.slane %v10330_v30, 9  ;;  %v10442_v35 = vld [vmem:[%s12708_s13 + $0x8c] sm:$0x1] }
 0x103   : > { %v3422_v29 = vor.u32 %v3421_v42, %v3418_v46  ;;  %v3432_v62 = vor.u32 %v3431_v52, %v3427_v51  ;;  %v2614_v55 = vrot.slane %v10301_v61, 5  ;;  %v2617_v57 = vrot.slane %v10302_v53, 5 }
 0x104   : > { %v2316_v7 = vsel %vm12742_vm5, %v2311_v58, %v2315_v37  ;;  %v2318_v6 = vshrl.u32 %v10300_v3, 16  ;;  %v2321_v25 = vshll.u32 %v10300_v3, 16  ;;  %v2331_v37 = vshrl.u32 %v10301_v61, 16 }
 0x105   : > { %v10361_v1 = vcombine.low %v2306_v2, %v2316_v7  ;;  %v3423_v13 = vrot.slane %v3422_v29, 4  ;;  %v3433_v8 = vrot.slane %v3432_v62, 4  ;;  %v2615_v5 = vsel %vm12732_vm4, %v10346_v0, %v2614_v55 }
 0x106   : > { %v11096_v17 = vpop.f32.mrf.mxu0  ;;  %v2616_v16 = vrot.slane %v2614_v55, 4  ;;  %v2320_v33 = vrot.slane %v2318_v6, 4  ;;  %v2323_v34 = vrot.slane %v2321_v25, 5  ;;  %v2337_v12 = vshll.u32 %v10302_v53, 16 }
 0x107   : > { %v11208_v21 = vpop.f32.mrf.mxu1  ;;  %3014 = vmatmul.mubr.bf16.gmra.mxu0 %v10361_v1  ;;  %v3428_v20 = vsel %vm12742_vm5, %v3423_v13, %v3427_v51  ;;  %v3438_v24 = vsel %vm12742_vm5, %v3433_v8, %v3437_v60  ;;  %v3440_v18 = vshrl.u32 %v13613_v22, 16  ;;  %v3443_v31 = vshll.u32 %v13613_v22, 16 }
 0x108   : > { %v11097_v38 = vpop.f32.mrf.mxu0  ;;  %v10473_v27 = vcombine.low %v3428_v20, %v3438_v24  ;;  %v2618_v32 = vsel %vm12732_vm4, %v2616_v16, %v2617_v57  ;;  %v3449_v39 = vshll.u32 %v13616_v23, 16  ;;  %v2333_v46 = vrot.slane %v2331_v37, 4  ;;  %v10304_v57 = vld [vmem:[%s12708_s13 + $0x88] sm:$0xf] }
 0x109   : > { %v11209_v59 = vpop.f32.mrf.mxu1  ;;  %v11098_v49 = vadd.f32 %v11097_v38, %v11096_v17  ;;  %v10378_v17 = vcombine.low %v2615_v5, %v2618_v32  ;;  %v2339_v48 = vrot.slane %v2337_v12, 5  ;;  %v3453_v38 = vshrl.u32 %v13616_v23, 16  ;;  %v10303_v5 = vld [vmem:[%s12708_s13 + $0x84] sm:$0xf]  ;;  %v13657_v12 = vld [vmem:[%s12708_s13 + $0x94] sm:$0xf] }
 0x10a   : > { %v11210_v44 = vadd.f32 %v11209_v59, %v11208_v21  ;;  %v11099_v50 = vpop.f32.mrf.mxu0  ;;  %v2327_v21 = vshll.u32 %v10301_v61, 16  ;;  %3991 = vmatprep.mubr.bf16.mxu1 %v10473_v27  ;;  %v2324_v59 = vor.u32 %v2323_v34, %v2320_v33  ;;  %v3442_v30 = vrot.slane %v3440_v18, 4 }
 0x10b   : > { %v11211_v45 = vpop.f32.mrf.mxu1  ;;  %3992 = vmatmul.mubr.bf16.gmra.mxu1 %v10457_v54  ;;  %3021 = vmatprep.mubr.bf16.mxu0 %v10378_v17  ;;  %v3445_v2 = vrot.slane %v3443_v31, 5  ;;  %v3451_v42 = vrot.slane %v3449_v39, 5  ;;  %v3455_v58 = vrot.slane %v3453_v38, 4  ;;  %v10331_v54 = vld [vmem:[%s12708_s13 + $0x84] sm:$0xe]  ;;  %v10458_v62 = vcombine.low %v13613_v22, %v13616_v23 }
 0x10c   : > { %v13602_v9 = vadd.f32 %v11210_v44, %v11098_v49  ;;  %v11100_v11 = vpop.f32.mrf.mxu0  ;;  %v2329_v14 = vrot.slane %v2327_v21, 5  ;;  %v3459_v44 = vshll.u32 %v10442_v35, 16  ;;  %v10347_v8 = vrot.slane %v10331_v54, 9 }
 0x10d   : > { %v11212_v15 = vpop.f32.mrf.mxu1  ;;  %v11101_v43 = vadd.f32 %v11100_v11, %v11099_v50  ;;  %v3456_v7 = vor.u32 %v3455_v58, %v3451_v42  ;;  %v2342_v33 = vshrl.u32 %v10303_v5, 16  ;;  %v2345_v34 = vshll.u32 %v10303_v5, 16 }
 0x10e   : > { %v11213_v63 = vadd.f32 %v11212_v15, %v11211_v45  ;;  %v11102_v10 = vpop.f32.mrf.mxu0  ;;  %v2325_v45 = vrot.slane %v2324_v59, 4  ;;  %v2334_v53 = vor.u32 %v2333_v46, %v2329_v14  ;;  %v3461_v60 = vrot.slane %v3459_v44, 5  ;;  %v10443_v59 = vld [vmem:[%s12708_s13 + $0x98] sm:$0x1] }
 0x10f   : > { %v11214_v4 = vpop.f32.mrf.mxu1  ;;  %v3446_v15 = vor.u32 %v3445_v2, %v3442_v30  ;;  %v3457_v6 = vrot.slane %v3456_v7, 4  ;;  %v2351_v35 = vshll.u32 %v10304_v57, 16  ;;  %v3483_v58 = vshll.u32 %v10443_v59, 16 }
 0x110   : > { %v13610_v26 = vadd.f32 %v11213_v63, %v11101_v43  ;;  %v11103_v28 = vpop.f32.mrf.mxu0  ;;  %v2330_v50 = vsel %vm12742_vm5, %v2325_v45, %v2329_v14  ;;  %v10305_v63 = vld [vmem:[%s12708_s13 + $0x8c] sm:$0x1]  ;;  %v2335_v3 = vrot.slane %v2334_v53, 4  ;;  %v2621_v43 = vrot.slane %v10304_v57, 5 }
 0x111   : > { %v11215_v19 = vpop.f32.mrf.mxu1  ;;  %v11104_v49 = vadd.f32 %v11103_v28, %v11102_v10  ;;  %v3447_v1 = vrot.slane %v3446_v15, 4  ;;  %v3462_v32 = vsel %vm12742_vm5, %v3457_v6, %v3461_v60  ;;  %v13652_v28 = vld [vmem:[%s12708_s13 + $0x90] sm:$0xf]  ;;  %v2355_v14 = vshrl.u32 %v10304_v57, 16 }
 0x112   : > { %v11105_v40 = vpop.f32.mrf.mxu0  ;;  %v11216_v29 = vadd.f32 %v11215_v19, %v11214_v4  ;;  %v2340_v10 = vsel %vm12742_vm5, %v2335_v3, %v2339_v48  ;;  %v2624_v19 = vrot.slane %v10305_v63, 5  ;;  %v2622_v21 = vsel %vm12732_vm4, %v10347_v8, %v2621_v43 }
 0x113   : > { %v11217_v36 = vpop.f32.mrf.mxu1  ;;  %v10362_v20 = vcombine.low %v2330_v50, %v2340_v10  ;;  %v3452_v24 = vsel %vm12742_vm5, %v3447_v1, %v3451_v42  ;;  %v2623_v22 = vrot.slane %v2621_v43, 4  ;;  %v2361_v37 = vshll.u32 %v10305_v63, 16  ;;  %v10308_v43 = vld [vmem:[%s12708_s13 + $0x98] sm:$0x1] }
 0x114   : > { %v11106_v51 = vpop.f32.mrf.mxu0  ;;  %v13636_v13 = vadd.f32 %v11216_v29, %v11104_v49  ;;  %v2353_v46 = vrot.slane %v2351_v35, 5  ;;  %v2357_v48 = vrot.slane %v2355_v14, 4  ;;  %v3464_v44 = vshrl.u32 %v13652_v28, 16 }
 0x115   : > { %v11218_v41 = vpop.f32.mrf.mxu1  ;;  %v11107_v11 = vadd.f32 %v11106_v51, %v11105_v40  ;;  %3022 = vmatmul.mubr.bf16.gmra.mxu0 %v10362_v20  ;;  %v2625_v17 = vsel %vm12732_vm4, %v2623_v22, %v2624_v19  ;;  %v2344_v40 = vrot.slane %v2342_v33, 4  ;;  %v2363_v38 = vrot.slane %v2361_v37, 5  ;;  %v13705_v37 = vld [vmem:[%s12708_s13 + $0xa0] sm:$0xf] }
 0x116   : > { %v11108_v61 = vpop.f32.mrf.mxu0  ;;  %v11219_v55 = vadd.f32 %v11218_v41, %v11217_v36  ;;  %16719 = vst [vmem:[#allocation12_spill] sm:$0xff] %v13636_v13  ;;  %v10474_v36 = vcombine.low %v3452_v24, %v3462_v32  ;;  %v10379_v39 = vcombine.low %v2622_v21, %v2625_v17  ;;  %v2347_v41 = vrot.slane %v2345_v34, 5  ;;  %v10306_v24 = vld [vmem:[%s12708_s13 + $0x90] sm:$0xf]  ;;  %v13694_v32 = vld [vmem:[%s12708_s13 + $0x9c] sm:$0xf] }
 0x117   : > { %v13625_v52 = vpop.f32.mrf.mxu1  ;;  %v3467_v45 = vshll.u32 %v13652_v28, 16  ;;  %v3473_v51 = vshll.u32 %v13657_v12, 16  ;;  %v3477_v53 = vshrl.u32 %v13657_v12, 16  ;;  %v2358_v60 = vor.u32 %v2357_v48, %v2353_v46 }
 0x118   : > { %v11109_v16 = vpop.f32.mrf.mxu0  ;;  %v13643_v25 = vadd.f32 %v11219_v55, %v11107_v11  ;;  %3999 = vmatprep.mubr.bf16.mxu1 %v10474_v36  ;;  %3029 = vmatprep.mubr.bf16.mxu0 %v10379_v39  ;;  %v2348_v42 = vor.u32 %v2347_v41, %v2344_v40  ;;  %v3466_v49 = vrot.slane %v3464_v44, 4  ;;  %v3485_v7 = vrot.slane %v3483_v58, 5  ;;  %v10332_v11 = vld [vmem:[%s12708_s13 + $0x90] sm:$0xe] }
 0x119   : > { %v13633_v0 = vpop.f32.mrf.mxu1  ;;  %4000 = vmatmul.mubr.bf16.gmra.mxu1 %v10458_v62  ;;  %v3469_v54 = vrot.slane %v3467_v45, 5  ;;  %v11110_v50 = vadd.f32 %v11109_v16, %v11108_v61  ;;  %v3475_v62 = vrot.slane %v3473_v51, 5  ;;  %v3479_v3 = vrot.slane %v3477_v53, 4  ;;  %v10307_v61 = vld [vmem:[%s12708_s13 + $0x94] sm:$0xf] }
 0x11a   : > { %16720 = vst [vmem:[#allocation13_spill] sm:$0xff] %v13643_v25  ;;  %v11111_v23 = vpop.f32.mrf.mxu0  ;;  %v2349_v63 = vrot.slane %v2348_v42, 4  ;;  %v2359_v55 = vrot.slane %v2358_v60, 4  ;;  %v11222_v1 = vadd.f32 %v13633_v0, %v13625_v52  ;;  %v10459_v8 = vcombine.low %v13652_v28, %v13657_v12  ;;  %v10500_v25 = vld [vmem:[%s12708_s13 + $0x24] sm:$0xe] }
 0x11b   : > { %v13639_v4 = vpop.f32.mrf.mxu1  ;;  %v3470_v57 = vor.u32 %v3469_v54, %v3466_v49  ;;  %v3480_v6 = vor.u32 %v3479_v3, %v3475_v62  ;;  %v10348_v22 = vrot.slane %v10332_v11, 9  ;;  %v2631_v36 = vrot.slane %v10308_v43, 5 }
 0x11c   : > { %v11112_v18 = vpop.f32.mrf.mxu0  ;;  %v2354_v10 = vsel %vm12742_vm5, %v2349_v63, %v2353_v46  ;;  %v2364_v52 = vsel %vm12742_vm5, %v2359_v55, %v2363_v38  ;;  %v13691_v21 = vadd.f32 %v11222_v1, %v11110_v50  ;;  %v2366_v17 = vshrl.u32 %v10306_v24, 16  ;;  %v10444_v46 = vld [vmem:[%s12708_s13 + $0xa4] sm:$0x1] }
 0x11d   : > { %v11224_v27 = vpop.f32.mrf.mxu1  ;;  %v11113_v19 = vadd.f32 %v11112_v18, %v11111_v23  ;;  %v3471_v0 = vrot.slane %v3470_v57, 4  ;;  %v10363_v35 = vcombine.low %v2354_v10, %v2364_v52  ;;  %v3481_v23 = vrot.slane %v3480_v6, 4  ;;  %v12297_v10 = vld [vmem:[#allocation4 + $0x38] sm:$0xff]   ;;  %v10311_v52 = vld [vmem:[%s12708_s13 + $0xa4] sm:$0x1] }
 0x11e   : > { %v13664_v30 = vpop.f32.mrf.mxu0  ;;  %v11225_v20 = vadd.f32 %v11224_v27, %v13639_v4  ;;  %16721 = vst [vmem:[#allocation14_spill] sm:$0xff] %v13691_v21  ;;  %v2628_v4 = vrot.slane %v10307_v61, 5  ;;  %v2369_v14 = vshll.u32 %v10306_v24, 16  ;;  %v2375_v41 = vshll.u32 %v10307_v61, 16 }
 0x11f   : > { %v13660_v31 = vpop.f32.mrf.mxu1  ;;  %v3476_v27 = vsel %vm12742_vm5, %v3471_v0, %v3475_v62  ;;  %3030 = vmatmul.mubr.bf16.gmra.mxu0 %v10363_v35  ;;  %v3486_v18 = vsel %vm12742_vm5, %v3481_v23, %v3485_v7  ;;  %v2368_v38 = vrot.slane %v2366_v17, 4  ;;  %v2379_v45 = vshrl.u32 %v10307_v61, 16  ;;  %v13731_v61 = vld [vmem:[%s12708_s13 + $0xa0] sm:$0xf]  ;;  %v10333_v0 = vld [vmem:[%s12708_s13 + $0x9c] sm:$0xe] }
 0x120   : > { %v13670_v15 = vpop.f32.mrf.mxu0  ;;  %v13700_v28 = vadd.f32 %v11225_v20, %v11113_v19  ;;  %v2629_v39 = vsel %vm12732_vm4, %v10348_v22, %v2628_v4  ;;  %v2630_v40 = vrot.slane %v2628_v4, 4  ;;  %v10475_v48 = vcombine.low %v3476_v27, %v3486_v18 }
 0x121   : > { %v13666_v2 = vpop.f32.mrf.mxu1  ;;  %v2371_v44 = vrot.slane %v2369_v14, 5  ;;  %v2377_v58 = vrot.slane %v2375_v41, 5  ;;  %v2385_v60 = vshll.u32 %v10308_v43, 16  ;;  %v3488_v49 = vshrl.u32 %v13694_v32, 16  ;;  %v12296_v43 = vld [vmem:[#allocation4 + $0x78] sm:$0xff]  }
 0x122   : > { %v13681_v5 = vpop.f32.mrf.mxu0  ;;  %16722 = vst [vmem:[#allocation15_spill] sm:$0xff] %v13700_v28  ;;  %v2632_v53 = vsel %vm12732_vm4, %v2630_v40, %v2631_v36  ;;  %4007 = vmatprep.mubr.bf16.mxu1 %v10475_v48  ;;  %v2381_v63 = vrot.slane %v2379_v45, 4  ;;  %v3491_v62 = vshll.u32 %v13694_v32, 16  ;;  %v3497_v57 = vshll.u32 %v13705_v37, 16  ;;  %11552 = vmatprep.subr.bf16.mxu1 %v12296_v43  ;;  %v13762_v45 = vld [vmem:[%s12708_s13 + $0xa8] sm:$0xf] }
 0x123   : > { %v13672_v29 = vpop.f32.mrf.mxu1  ;;  %v10380_v54 = vcombine.low %v2629_v39, %v2632_v53  ;;  %v2372_v50 = vor.u32 %v2371_v44, %v2368_v38  ;;  %4008 = vmatmul.mubr.bf16.gmra.mxu1 %v10459_v8  ;;  %v2387_v11 = vrot.slane %v2385_v60, 5  ;;  %v3490_v55 = vrot.slane %v3488_v49, 4  ;;  %v10309_v39 = vld [vmem:[%s12708_s13 + $0x9c] sm:$0xf] }
 0x124   : > { %v13696_v33 = vpop.f32.mrf.mxu0  ;;  %v3501_v1 = vshrl.u32 %v13705_v37, 16  ;;  %v2382_v19 = vor.u32 %v2381_v63, %v2377_v58  ;;  %v3493_v20 = vrot.slane %v3491_v62, 5  ;;  %v3507_v24 = vshll.u32 %v10444_v46, 16  ;;  %11553 = vmatpush3.bf16.msra.mxu1 %v12297_v10 }
 0x125   : > { %v13683_v16 = vpop.f32.mrf.mxu1  ;;  %3037 = vmatprep.mubr.bf16.mxu0 %v10380_v54  ;;  %v2373_v6 = vrot.slane %v2372_v50, 4  ;;  %v3499_v35 = vrot.slane %v3497_v57, 5  ;;  %v11116_v4 = vadd.f32 %v13670_v15, %v13664_v30  ;;  %v11228_v27 = vadd.f32 %v13666_v2, %v13660_v31 }
 0x126   : > { %v13707_v12 = vpop.f32.mrf.mxu0  ;;  %v3503_v23 = vrot.slane %v3501_v1, 4  ;;  %v2383_v17 = vrot.slane %v2382_v19, 4  ;;  %v3494_v14 = vor.u32 %v3493_v20, %v3490_v55  ;;  %v3509_v18 = vrot.slane %v3507_v24, 5  ;;  %v10445_v1 = vld [vmem:[%s12708_s13 + $0xb0] sm:$0x1] }
 0x127   : > { %v13698_v34 = vpop.f32.mrf.mxu1  ;;  %v2378_v36 = vsel %vm12742_vm5, %v2373_v6, %v2377_v58  ;;  %v13750_v30 = vadd.f32 %v11228_v27, %v11116_v4  ;;  %v10460_v31 = vcombine.low %v13694_v32, %v13705_v37  ;;  %v11119_v2 = vadd.f32 %v13696_v33, %v13681_v5  ;;  %v13769_v33 = vld [vmem:[%s12708_s13 + $0xac] sm:$0xf] }
 0x128   : > { %v13716_v42 = vpop.f32.mrf.mxu0  ;;  %v3504_v46 = vor.u32 %v3503_v23, %v3499_v35  ;;  %v2388_v15 = vsel %vm12742_vm5, %v2383_v17, %v2387_v11  ;;  %v3495_v48 = vrot.slane %v3494_v14, 4  ;;  %v11231_v38 = vadd.f32 %v13683_v16, %v13672_v29 }
 0x129   : > { %v13709_v59 = vpop.f32.mrf.mxu1  ;;  %16723 = vst [vmem:[#allocation16_spill] sm:$0xff] %v13750_v30  ;;  %v2403_v44 = vshrl.u32 %v13731_v61, 16  ;;  %v10364_v60 = vcombine.low %v2378_v36, %v2388_v15  ;;  %v2409_v37 = vshll.u32 %v10311_v52, 16  ;;  %v10349_v5 = vrot.slane %v10333_v0, 9  ;;  %v13803_v15 = vld [vmem:[%s12708_s13 + $0xac] sm:$0xf] }
 0x12a   : > { %v13724_v3 = vpop.f32.mrf.mxu0  ;;  %v3505_v32 = vrot.slane %v3504_v46, 4  ;;  %v3500_v49 = vsel %vm12742_vm5, %v3495_v48, %v3499_v35  ;;  %v13773_v54 = vadd.f32 %v11231_v38, %v11119_v2  ;;  %v2635_v16 = vrot.slane %v13731_v61, 5 }
 0x12b   : > { %v13718_v51 = vpop.f32.mrf.mxu1  ;;  %v2405_v29 = vrot.slane %v2403_v44, 4  ;;  %3038 = vmatmul.mubr.bf16.gmra.mxu0 %v10364_v60  ;;  %v13782_v11 = vrot.slane %v2409_v37, 5  ;;  %v2638_v55 = vrot.slane %v10311_v52, 5  ;;  %v2390_v57 = vshrl.u32 %v10309_v39, 16  ;;  %v10334_v37 = vld [vmem:[%s12708_s13 + $0xa8] sm:$0xe] }
 0x12c   : > { %v13735_v22 = vpop.f32.mrf.mxu0  ;;  %16724 = vst [vmem:[#allocation17_spill] sm:$0xff] %v13773_v54  ;;  %v3510_v62 = vsel %vm12742_vm5, %v3505_v32, %v3509_v18  ;;  %v2636_v10 = vsel %vm12732_vm4, %v10349_v5, %v2635_v16  ;;  %v2637_v6 = vrot.slane %v2635_v16, 4  ;;  %v2393_v19 = vshll.u32 %v10309_v39, 16  ;;  %v13806_v32 = vld [vmem:[%s12708_s13 + $0xb0] sm:$0x1] }
 0x12d   : > { %v13726_v7 = vpop.f32.mrf.mxu1  ;;  %v10476_v43 = vcombine.low %v3500_v49, %v3510_v62  ;;  %v2392_v0 = vrot.slane %v2390_v57, 4  ;;  %v2399_v35 = vshll.u32 %v13731_v61, 16  ;;  %v3512_v23 = vshrl.u32 %v13762_v45, 16 }
 0x12e   : > { %v13746_v40 = vpop.f32.mrf.mxu0  ;;  %v3515_v52 = vshll.u32 %v13762_v45, 16  ;;  %v2639_v4 = vsel %vm12732_vm4, %v2637_v6, %v2638_v55  ;;  %v2395_v27 = vrot.slane %v2393_v19, 5  ;;  %v3521_v36 = vshll.u32 %v13769_v33, 16 }
 0x12f   : > { %v13737_v8 = vpop.f32.mrf.mxu1  ;;  %4015 = vmatprep.mubr.bf16.mxu1 %v10476_v43  ;;  %v3525_v17 = vshrl.u32 %v13769_v33, 16  ;;  %v10381_v61 = vcombine.low %v2636_v10, %v2639_v4  ;;  %v2401_v39 = vrot.slane %v2399_v35, 5  ;;  %v3514_v46 = vrot.slane %v3512_v23, 4 }
 0x130   : > { %v13764_v53 = vpop.f32.mrf.mxu0  ;;  %4016 = vmatmul.mubr.bf16.gmra.mxu1 %v10460_v31  ;;  %v3517_v2 = vrot.slane %v3515_v52, 5  ;;  %v2396_v48 = vor.u32 %v2395_v27, %v2392_v0  ;;  %v3523_v38 = vrot.slane %v3521_v36, 5  ;;  %v3531_v60 = vshll.u32 %v10445_v1, 16  ;;  %v13837_v52 = vld [vmem:[%s12708_s13 + $0xb8] sm:$0xf] }
 0x131   : > { %v13748_v41 = vpop.f32.mrf.mxu1  ;;  %v3527_v44 = vrot.slane %v3525_v17, 4  ;;  %3045 = vmatprep.mubr.bf16.mxu0 %v10381_v61  ;;  %v2406_v31 = vor.u32 %v2405_v29, %v2401_v39  ;;  %v11122_v62 = vadd.f32 %v13716_v42, %v13707_v12  ;;  %v11234_v55 = vadd.f32 %v13709_v59, %v13698_v34  ;;  %v10312_v42 = vld [vmem:[%s12708_s13 + $0xa8] sm:$0xf]  ;;  %v13829_v34 = vld [vmem:[%s12708_s13 + $0xb4] sm:$0xf] }
 0x132   : > { %v13776_v50 = vpop.f32.mrf.mxu0  ;;  %v3518_v16 = vor.u32 %v3517_v2, %v3514_v46  ;;  %v2397_v57 = vrot.slane %v2396_v48, 4  ;;  %v3533_v43 = vrot.slane %v3531_v60, 5  ;;  %v10461_v10 = vcombine.low %v13762_v45, %v13769_v33  ;;  %v10446_v60 = vld [vmem:[%s12708_s13 + $0xbc] sm:$0x1] }
 0x133   : > { %v13766_v58 = vpop.f32.mrf.mxu1  ;;  %v3528_v1 = vor.u32 %v3527_v44, %v3523_v38  ;;  %v2407_v0 = vrot.slane %v2406_v31, 4  ;;  %v13823_v35 = vadd.f32 %v11234_v55, %v11122_v62  ;;  %v11125_v12 = vadd.f32 %v13735_v22, %v13724_v3  ;;  %v12299_v31 = vld [vmem:[#allocation4 + $0x30] sm:$0xff]  }
 0x134   : > { %v13787_v20 = vpop.f32.mrf.mxu0  ;;  %v3519_v29 = vrot.slane %v3518_v16, 4  ;;  %v2402_v59 = vsel %vm12742_vm5, %v2397_v57, %v2401_v39  ;;  %v11237_v45 = vadd.f32 %v13726_v7, %v13718_v51  ;;  %v2427_v33 = vshrl.u32 %v13803_v15, 16 }
 0x135   : > { %v13778_v63 = vpop.f32.mrf.mxu1  ;;  %16725 = vst [vmem:[#allocation18_spill] sm:$0xff] %v13823_v35  ;;  %v3529_v23 = vrot.slane %v3528_v1, 4  ;;  %v2412_v3 = vsel %vm12742_vm5, %v2407_v0, %v13782_v11  ;;  %v2433_v36 = vshll.u32 %v13806_v32, 16  ;;  %v10350_v17 = vrot.slane %v10334_v37, 9  ;;  %v12298_v37 = vld [vmem:[#allocation4 + $0x70] sm:$0xff]  }
 0x136   : > { %v13798_v14 = vpop.f32.mrf.mxu0  ;;  %v3524_v22 = vsel %vm12742_vm5, %v3519_v29, %v3523_v38  ;;  %v10365_v51 = vcombine.low %v2402_v59, %v2412_v3  ;;  %v13851_v61 = vadd.f32 %v11237_v45, %v11125_v12  ;;  %v2429_v39 = vrot.slane %v2427_v33, 4  ;;  %11554 = vmatprep.subr.bf16.mxu1 %v12298_v37  ;;  %v10317_v37 = vld [vmem:[%s12708_s13 + $0xbc] sm:$0x1] }
 0x137   : > { %v13789_v24 = vpop.f32.mrf.mxu1  ;;  %v3534_v7 = vsel %vm12742_vm5, %v3529_v23, %v3533_v43  ;;  %v13857_v44 = vrot.slane %v2433_v36, 5  ;;  %v2642_v11 = vrot.slane %v13803_v15, 5  ;;  %v2645_v38 = vrot.slane %v13806_v32, 5  ;;  %11555 = vmatpush3.bf16.msra.mxu1 %v12299_v31 }
 0x138   : > { %v13809_v5 = vpop.f32.mrf.mxu0  ;;  %16726 = vst [vmem:[#allocation19_spill] sm:$0xff] %v13851_v61  ;;  %v10477_v48 = vcombine.low %v3524_v22, %v3534_v7  ;;  %3046 = vmatmul.mubr.bf16.gmra.mxu0 %v10365_v51  ;;  %v2414_v16 = vshrl.u32 %v10312_v42, 16  ;;  %v2417_v62 = vshll.u32 %v10312_v42, 16  ;;  %v2423_v55 = vshll.u32 %v13803_v15, 16  ;;  %v13880_v51 = vld [vmem:[%s12708_s13 + $0xb8] sm:$0xf] }
 0x139   : > { %v13800_v18 = vpop.f32.mrf.mxu1  ;;  %v3536_v57 = vshrl.u32 %v13829_v34, 16  ;;  %v2643_v0 = vsel %vm12732_vm4, %v10350_v17, %v2642_v11  ;;  %v2644_v32 = vrot.slane %v2642_v11, 4  ;;  %v3539_v29 = vshll.u32 %v13829_v34, 16  ;;  %v10336_v61 = vld [vmem:[%s12708_s13 + $0xc0] sm:$0xe] }
 0x13a   : > { %v13819_v6 = vpop.f32.mrf.mxu0  ;;  %4023 = vmatprep.mubr.bf16.mxu1 %v10477_v48  ;;  %v3545_v12 = vshll.u32 %v13837_v52, 16  ;;  %v2416_v42 = vrot.slane %v2414_v16, 4  ;;  %v2419_v15 = vrot.slane %v2417_v62, 5  ;;  %v2425_v59 = vrot.slane %v2423_v55, 5 }
 0x13b   : > { %v13811_v49 = vpop.f32.mrf.mxu1  ;;  %4024 = vmatmul.mubr.bf16.gmra.mxu1 %v10461_v10  ;;  %v3538_v23 = vrot.slane %v3536_v57, 4  ;;  %v2646_v3 = vsel %vm12732_vm4, %v2644_v32, %v2645_v38  ;;  %v3541_v22 = vrot.slane %v3539_v29, 5  ;;  %v3549_v17 = vshrl.u32 %v13837_v52, 16  ;;  %v10335_v29 = vld [vmem:[%s12708_s13 + $0xb4] sm:$0xe] }
 0x13c   : > { %v13839_v4 = vpop.f32.mrf.mxu0  ;;  %v3547_v36 = vrot.slane %v3545_v12, 5  ;;  %v10382_v10 = vcombine.low %v2643_v0, %v2646_v3  ;;  %v2420_v7 = vor.u32 %v2419_v15, %v2416_v42  ;;  %v2430_v48 = vor.u32 %v2429_v39, %v2425_v59  ;;  %v10315_v12 = vld [vmem:[%s12708_s13 + $0xb4] sm:$0xf] }
 0x13d   : > { %v13821_v19 = vpop.f32.mrf.mxu1  ;;  %v3555_v11 = vshll.u32 %v10446_v60, 16  ;;  %v3542_v55 = vor.u32 %v3541_v22, %v3538_v23  ;;  %v3551_v38 = vrot.slane %v3549_v17, 4  ;;  %v11128_v57 = vadd.f32 %v13764_v53, %v13746_v40  ;;  %v13912_v22 = vld [vmem:[%s12708_s13 + $0xc0] sm:$0xf] }
 0x13e   : > { %v13853_v46 = vpop.f32.mrf.mxu0  ;;  %v11240_v32 = vadd.f32 %v13748_v41, %v13737_v8  ;;  %3053 = vmatprep.mubr.bf16.mxu0 %v10382_v10  ;;  %v2421_v31 = vrot.slane %v2420_v7, 4  ;;  %v2431_v0 = vrot.slane %v2430_v48, 4  ;;  %v10462_v60 = vcombine.low %v13829_v34, %v13837_v52  ;;  %v13921_v48 = vld [vmem:[%s12708_s13 + $0xc4] sm:$0xf] }
 0x13f   : > { %v13841_v27 = vpop.f32.mrf.mxu1  ;;  %v3557_v39 = vrot.slane %v3555_v11, 5  ;;  %v3543_v23 = vrot.slane %v3542_v55, 4  ;;  %v3552_v40 = vor.u32 %v3551_v38, %v3547_v36  ;;  %v11131_v8 = vadd.f32 %v13787_v20, %v13776_v50 }
 0x140   : > { %v13864_v1 = vpop.f32.mrf.mxu0  ;;  %v13899_v53 = vadd.f32 %v11240_v32, %v11128_v57  ;;  %v2426_v41 = vsel %vm12742_vm5, %v2421_v31, %v2425_v59  ;;  %v2436_v34 = vsel %vm12742_vm5, %v2431_v0, %v13857_v44  ;;  %v11243_v52 = vadd.f32 %v13778_v63, %v13766_v58  ;;  %v10447_v0 = vld [vmem:[%s12708_s13 + $0xc8] sm:$0x1] }
 0x141   : > { %v13855_v2 = vpop.f32.mrf.mxu1  ;;  %v2451_v3 = vshrl.u32 %v13880_v51, 16  ;;  %v10366_v7 = vcombine.low %v2426_v41, %v2436_v34  ;;  %v3548_v50 = vsel %vm12742_vm5, %v3543_v23, %v3547_v36  ;;  %v3553_v20 = vrot.slane %v3552_v40, 4 }
 0x142   : > { %v13872_v45 = vpop.f32.mrf.mxu0  ;;  %16727 = vst [vmem:[#allocation20_spill] sm:$0xff] %v13899_v53  ;;  %v2457_v59 = vshll.u32 %v10317_v37, 16  ;;  %v13923_v44 = vadd.f32 %v11243_v52, %v11131_v8  ;;  %v10351_v63 = vrot.slane %v10335_v29, 9  ;;  %v2649_v11 = vrot.slane %v13880_v51, 5  ;;  %v13956_v53 = vld [vmem:[%s12708_s13 + $0xc8] sm:$0x1] }
 0x143   : > { %v13866_v43 = vpop.f32.mrf.mxu1  ;;  %v2453_v58 = vrot.slane %v2451_v3, 4  ;;  %3054 = vmatmul.mubr.bf16.gmra.mxu0 %v10366_v7  ;;  %v3558_v57 = vsel %vm12742_vm5, %v3553_v20, %v3557_v39  ;;  %v2652_v36 = vrot.slane %v10317_v37, 5  ;;  %v2438_v31 = vshrl.u32 %v10315_v12, 16 }
 0x144   : > { %v13883_v16 = vpop.f32.mrf.mxu0  ;;  %16728 = vst [vmem:[#allocation21_spill] sm:$0xff] %v13923_v44  ;;  %v13932_v32 = vrot.slane %v2457_v59, 5  ;;  %v10478_v23 = vcombine.low %v3548_v50, %v3558_v57  ;;  %v2650_v40 = vsel %vm12732_vm4, %v10351_v63, %v2649_v11  ;;  %v2651_v29 = vrot.slane %v2649_v11, 4 }
 0x145   : > { %v13874_v33 = vpop.f32.mrf.mxu1  ;;  %v2441_v8 = vshll.u32 %v10315_v12, 16  ;;  %v2440_v52 = vrot.slane %v2438_v31, 4  ;;  %v2447_v3 = vshll.u32 %v13880_v51, 16  ;;  %v3560_v39 = vshrl.u32 %v13912_v22, 16 }
 0x146   : > { %v13895_v42 = vpop.f32.mrf.mxu0  ;;  %v3563_v37 = vshll.u32 %v13912_v22, 16  ;;  %4031 = vmatprep.mubr.bf16.mxu1 %v10478_v23  ;;  %v2653_v7 = vsel %vm12732_vm4, %v2651_v29, %v2652_v36  ;;  %v3569_v12 = vshll.u32 %v13921_v48, 16  ;;  %v3573_v20 = vshrl.u32 %v13921_v48, 16  ;;  %v13953_v23 = vld [vmem:[%s12708_s13 + $0xc4] sm:$0xf] }
 0x147   : > { %v13885_v62 = vpop.f32.mrf.mxu1  ;;  %v2443_v50 = vrot.slane %v2441_v8, 5  ;;  %4032 = vmatmul.mubr.bf16.gmra.mxu1 %v10462_v60  ;;  %v10383_v51 = vcombine.low %v2650_v40, %v2653_v7  ;;  %v2449_v11 = vrot.slane %v2447_v3, 5  ;;  %v3562_v57 = vrot.slane %v3560_v39, 4 }
 0x148   : > { %v13914_v17 = vpop.f32.mrf.mxu0  ;;  %v3565_v31 = vrot.slane %v3563_v37, 5  ;;  %v3571_v36 = vrot.slane %v3569_v12, 5  ;;  %v3575_v29 = vrot.slane %v3573_v20, 4  ;;  %v3579_v8 = vshll.u32 %v10447_v0, 16 }
 0x149   : > { %v13897_v15 = vpop.f32.mrf.mxu1  ;;  %v2444_v44 = vor.u32 %v2443_v50, %v2440_v52  ;;  %3061 = vmatprep.mubr.bf16.mxu0 %v10383_v51  ;;  %v2454_v60 = vor.u32 %v2453_v58, %v2449_v11  ;;  %v11134_v3 = vadd.f32 %v13809_v5, %v13798_v14  ;;  %v11246_v52 = vadd.f32 %v13800_v18, %v13789_v24  ;;  %v10318_v5 = vld [vmem:[%s12708_s13 + $0xc0] sm:$0xf]  ;;  %v13979_v24 = vld [vmem:[%s12708_s13 + $0xcc] sm:$0xf] }
 0x14a   : > { %v13926_v55 = vpop.f32.mrf.mxu0  ;;  %v3566_v40 = vor.u32 %v3565_v31, %v3562_v57  ;;  %v3576_v0 = vor.u32 %v3575_v29, %v3571_v36  ;;  %v3581_v37 = vrot.slane %v3579_v8, 5  ;;  %v10463_v7 = vcombine.low %v13912_v22, %v13921_v48  ;;  %v13987_v57 = vld [vmem:[%s12708_s13 + $0xd0] sm:$0xf]  ;;  %v12300_v8 = vld [vmem:[#allocation4 + $0x68] sm:$0xff]  }
 0x14b   : > { %v13916_v10 = vpop.f32.mrf.mxu1  ;;  %v2445_v39 = vrot.slane %v2444_v44, 4  ;;  %v2455_v20 = vrot.slane %v2454_v60, 4  ;;  %v13973_v51 = vadd.f32 %v11246_v52, %v11134_v3  ;;  %v11137_v14 = vadd.f32 %v13839_v4, %v13819_v6  ;;  %v12301_v6 = vld [vmem:[#allocation4 + $0x28] sm:$0xff]   ;;  %11556 = vmatprep.subr.bf16.mxu1 %v12300_v8 }
 0x14c   : > { %v13937_v41 = vpop.f32.mrf.mxu0  ;;  %v3567_v58 = vrot.slane %v3566_v40, 4  ;;  %v3577_v44 = vrot.slane %v3576_v0, 4  ;;  %v11249_v22 = vadd.f32 %v13821_v19, %v13811_v49  ;;  %v2475_v48 = vshrl.u32 %v13953_v23, 16  ;;  %11557 = vmatpush3.bf16.msra.mxu1 %v12301_v6 }
 0x14d   : > { %v13928_v38 = vpop.f32.mrf.mxu1  ;;  %16729 = vst [vmem:[#allocation22_spill] sm:$0xff] %v13973_v51  ;;  %v2450_v18 = vsel %vm12742_vm5, %v2445_v39, %v2449_v11  ;;  %v2460_v4 = vsel %vm12742_vm5, %v2455_v20, %v13932_v32  ;;  %v2481_v49 = vshll.u32 %v13956_v53, 16  ;;  %v10352_v19 = vrot.slane %v10336_v61, 9 }
 0x14e   : > { %v13948_v59 = vpop.f32.mrf.mxu0  ;;  %v3572_v11 = vsel %vm12742_vm5, %v3567_v58, %v3571_v36  ;;  %v10367_v60 = vcombine.low %v2450_v18, %v2460_v4  ;;  %v3582_v40 = vsel %vm12742_vm5, %v3577_v44, %v3581_v37  ;;  %v14001_v3 = vadd.f32 %v11249_v22, %v11137_v14  ;;  %v10448_v58 = vld [vmem:[%s12708_s13 + $0xd4] sm:$0x1] }
 0x14f   : > { %v13939_v34 = vpop.f32.mrf.mxu1  ;;  %v2477_v52 = vrot.slane %v2475_v48, 4  ;;  %v10479_v51 = vcombine.low %v3572_v11, %v3582_v40  ;;  %v2483_v32 = vrot.slane %v2481_v49, 5  ;;  %v2656_v20 = vrot.slane %v13953_v23, 5 }
 0x150   : > { %v13959_v35 = vpop.f32.mrf.mxu0  ;;  %16730 = vst [vmem:[#allocation23_spill] sm:$0xff] %v14001_v3  ;;  %v2659_v36 = vrot.slane %v13956_v53, 5  ;;  %3062 = vmatmul.mubr.bf16.gmra.mxu0 %v10367_v60  ;;  %v2462_v61 = vshrl.u32 %v10318_v5, 16  ;;  %v2465_v18 = vshll.u32 %v10318_v5, 16  ;;  %v2471_v37 = vshll.u32 %v13953_v23, 16 }
 0x151   : > { %v13950_v63 = vpop.f32.mrf.mxu1  ;;  %v3584_v14 = vshrl.u32 %v13979_v24, 16  ;;  %4039 = vmatprep.mubr.bf16.mxu1 %v10479_v51  ;;  %v2657_v48 = vsel %vm12732_vm4, %v10352_v19, %v2656_v20  ;;  %v2658_v8 = vrot.slane %v2656_v20, 4  ;;  %v3587_v53 = vshll.u32 %v13979_v24, 16 }
 0x152   : > { %v13969_v50 = vpop.f32.mrf.mxu0  ;;  %v3593_v6 = vshll.u32 %v13987_v57, 16  ;;  %4040 = vmatmul.mubr.bf16.gmra.mxu1 %v10463_v7  ;;  %v2464_v5 = vrot.slane %v2462_v61, 4  ;;  %v2467_v23 = vrot.slane %v2465_v18, 5  ;;  %v2473_v4 = vrot.slane %v2471_v37, 5  ;;  %v10497_v7 = vld [vmem:[%s12708_s13 + $0x18] sm:$0xe] }
 0x153   : > { %v13961_v54 = vpop.f32.mrf.mxu1  ;;  %v3586_v11 = vrot.slane %v3584_v14, 4  ;;  %v2660_v51 = vsel %vm12732_vm4, %v2658_v8, %v2659_v36  ;;  %v3589_v19 = vrot.slane %v3587_v53, 5  ;;  %v3597_v20 = vshrl.u32 %v13987_v57, 16  ;;  %v10498_v14 = vld [vmem:[%s12708_s13 + $0x1c] sm:$0xf] }
 0x154   : > { %v13989_v31 = vpop.f32.mrf.mxu0  ;;  %v3595_v40 = vrot.slane %v3593_v6, 5  ;;  %v10384_v3 = vcombine.low %v2657_v48, %v2660_v51  ;;  %v2468_v61 = vor.u32 %v2467_v23, %v2464_v5  ;;  %v2478_v18 = vor.u32 %v2477_v52, %v2473_v4  ;;  %v10499_v6 = vld [vmem:[%s12708_s13 + $0x20] sm:$0x1]  ;;  %v10501_v48 = vld [vmem:[%s12708_s13 + $0x28] sm:$0xf] }
 0x155   : > { %v13971_v12 = vpop.f32.mrf.mxu1  ;;  %v3603_v37 = vshll.u32 %v10448_v58, 16  ;;  %v3590_v21 = vor.u32 %v3589_v19, %v3586_v11  ;;  %v3599_v36 = vrot.slane %v3597_v20, 4  ;;  %v11140_v8 = vadd.f32 %v13864_v1, %v13853_v46  ;;  %v10502_v51 = vld [vmem:[%s12708_s13 + $0x2c] sm:$0x1] }
 0x156   : > { %v14003_v39 = vpop.f32.mrf.mxu0  ;;  %v11252_v53 = vadd.f32 %v13855_v2, %v13841_v27  ;;  %3069 = vmatprep.mubr.bf16.mxu0 %v10384_v3  ;;  %v2469_v52 = vrot.slane %v2468_v61, 4  ;;  %v2479_v58 = vrot.slane %v2478_v18, 4  ;;  %v10464_v23 = vcombine.low %v13979_v24, %v13987_v57 }
 0x157   : > { %v13991_v29 = vpop.f32.mrf.mxu1  ;;  %v3605_v5 = vrot.slane %v3603_v37, 5  ;;  %v3591_v46 = vrot.slane %v3590_v21, 4  ;;  %v3600_v1 = vor.u32 %v3599_v36, %v3595_v40  ;;  %v11143_v2 = vadd.f32 %v13883_v16, %v13872_v45  ;;  %v10504_v37 = vld [vmem:[%s12708_s13 + $0x34] sm:$0xf] }
 0x158   : > { %v14012_v44 = vpop.f32.mrf.mxu0  ;;  %v14047_v27 = vadd.f32 %v11252_v53, %v11140_v8  ;;  %v2474_v3 = vsel %vm12742_vm5, %v2469_v52, %v2473_v4  ;;  %v2484_v24 = vsel %vm12742_vm5, %v2479_v58, %v2483_v32  ;;  %v11255_v57 = vadd.f32 %v13874_v33, %v13866_v43  ;;  %v10503_v4 = vld [vmem:[%s12708_s13 + $0x30] sm:$0xe]  ;;  %v10505_v33 = vld [vmem:[%s12708_s13 + $0x38] sm:$0x1] }
 0x159   : > { %v14005_v0 = vpop.f32.mrf.mxu1  ;;  %v10545_v19 = vrot.slane %v10497_v7, 9  ;;  %v10368_v61 = vcombine.low %v2474_v3, %v2484_v24  ;;  %v3596_v18 = vsel %vm12742_vm5, %v3591_v46, %v3595_v40  ;;  %v3601_v45 = vrot.slane %v3600_v1, 4  ;;  %v10506_v46 = vld [vmem:[%s12708_s13 + $0x3c] sm:$0xe]  ;;  %v10507_v1 = vld [vmem:[%s12708_s13 + $0x40] sm:$0xf] }
 0x15a   : > { %v14020_v49 = vpop.f32.mrf.mxu0  ;;  %v4250_v16 = vrot.slane %v10498_v14, 5  ;;  %v14065_v36 = vadd.f32 %v11255_v57, %v11143_v2  ;;  %v4253_v32 = vrot.slane %v10499_v6, 5  ;;  %v10546_v8 = vrot.slane %v10500_v25, 9  ;;  %v10508_v3 = vld [vmem:[%s12708_s13 + $0x44] sm:$0x1] }
 0x15b   : > { %v14014_v22 = vpop.f32.mrf.mxu1  ;;  %v4257_v43 = vrot.slane %v10501_v48, 5  ;;  %3070 = vmatmul.mubr.bf16.gmra.mxu0 %v10368_v61  ;;  %v3606_v40 = vsel %vm12742_vm5, %v3601_v45, %v3605_v5  ;;  %v4260_v58 = vrot.slane %v10502_v51, 5  ;;  %v11146_v2 = vadd.f32 %v13914_v17, %v13895_v42 }
 0x15c   : > { %v14029_v30 = vpop.f32.mrf.mxu0  ;;  %v4251_v14 = vsel %vm12732_vm4, %v10545_v19, %v4250_v16  ;;  %v4252_v52 = vrot.slane %v4250_v16, 4  ;;  %v10480_v6 = vcombine.low %v3596_v18, %v3606_v40  ;;  %v11258_v57 = vadd.f32 %v13897_v15, %v13885_v62  ;;  %v10509_v16 = vld [vmem:[%s12708_s13 + $0x48] sm:$0xe] }
 0x15d   : > { %v14022_v60 = vpop.f32.mrf.mxu1  ;;  %v4258_v25 = vsel %vm12732_vm4, %v10546_v8, %v4257_v43  ;;  %v4259_v48 = vrot.slane %v4257_v43, 4  ;;  %v11149_v19 = vadd.f32 %v13937_v41, %v13926_v55  ;;  %v11261_v61 = vadd.f32 %v13928_v38, %v13916_v10  ;;  %v10511_v41 = vld [vmem:[%s12708_s13 + $0x50] sm:$0x1]  ;;  %v14109_v43 = vld [vmem:[%s12708_s13 + $0x54] sm:$0xe] }
 0x15e   : > { %v14043_v13 = vpop.f32.mrf.mxu0  ;;  %v4254_v51 = vsel %vm12732_vm4, %v4252_v52, %v4253_v32  ;;  %4047 = vmatprep.mubr.bf16.mxu1 %v10480_v6  ;;  %v10547_v18 = vrot.slane %v10503_v4, 9  ;;  %v4264_v45 = vrot.slane %v10504_v37, 5  ;;  %v10510_v32 = vld [vmem:[%s12708_s13 + $0x4c] sm:$0xf]  ;;  %v14103_v55 = vadd.f32 %v11258_v57, %v11146_v2  ;;  %v14114_v52 = vld [vmem:[%s12708_s13 + $0x58] sm:$0xf] }
 0x15f   : > { %v14031_v28 = vpop.f32.mrf.mxu1  ;;  %v10561_v42 = vcombine.low %v4251_v14, %v4254_v51  ;;  %v4261_v17 = vsel %vm12732_vm4, %v4259_v48, %v4260_v58  ;;  %4048 = vmatmul.mubr.bf16.gmra.mxu1 %v10464_v23  ;;  %v14105_v10 = vadd.f32 %v11261_v61, %v11149_v19  ;;  %v4267_v38 = vrot.slane %v10505_v33, 5  ;;  %v10514_v51 = vld [vmem:[%s12708_s13 + $0x5c] sm:$0x1]  ;;  %v10515_v57 = vld [vmem:[%s12708_s13 + $0x60] sm:$0xe] }
 0x160   : > { %v14057_v20 = vpop.f32.mrf.mxu0  ;;  %v10562_v15 = vcombine.low %v4258_v25, %v4261_v17  ;;  %v4265_v4 = vsel %vm12732_vm4, %v10547_v18, %v4264_v45  ;;  %v4266_v37 = vrot.slane %v4264_v45, 4  ;;  %v10548_v40 = vrot.slane %v10506_v46, 9  ;;  %v10516_v19 = vld [vmem:[%s12708_s13 + $0x64] sm:$0xf]  ;;  %v10517_v17 = vld [vmem:[%s12708_s13 + $0x68] sm:$0x1] }
 0x161   : > { %v14045_v11 = vpop.f32.mrf.mxu1  ;;  %12040 = vmatprep.mubr.bf16.mxu0 %v10561_v42  ;;  %v4271_v14 = vrot.slane %v10507_v1, 5  ;;  %v4274_v6 = vrot.slane %v10508_v3, 5  ;;  %v11152_v33 = vadd.f32 %v13959_v35, %v13948_v59  ;;  %v11264_v25 = vadd.f32 %v13950_v63, %v13939_v34 }
 0x162   : > { %v14068_v7 = vpop.f32.mrf.mxu0  ;;  %v11155_v48 = vadd.f32 %v13989_v31, %v13969_v50  ;;  %v4268_v46 = vsel %vm12732_vm4, %v4266_v37, %v4267_v38  ;;  %v11267_v3 = vadd.f32 %v13971_v12, %v13961_v54  ;;  %v10549_v50 = vrot.slane %v10509_v16, 9  ;;  %v12303_v38 = vld [vmem:[#allocation4 + $0x20] sm:$0xff]  }
 0x163   : > { %v14059_v21 = vpop.f32.mrf.mxu1  ;;  %v4272_v1 = vsel %vm12732_vm4, %v10548_v40, %v4271_v14  ;;  %v4273_v2 = vrot.slane %v4271_v14, 4  ;;  %12041 = vmatmul.mubr.bf16.vlgmr.msra.gmra.mxu0 %v10562_v15  ;;  %v10563_v34 = vcombine.low %v4265_v4, %v4268_v46  ;;  %v14137_v63 = vadd.f32 %v11264_v25, %v11152_v33  ;;  %v12302_v15 = vld [vmem:[#allocation4 + $0x60] sm:$0xff]   ;;  %v14161_v14 = vld [vmem:[%s12708_s13 + $0x70] sm:$0xf] }
 0x164   : > { %v14083_v24 = vpop.f32.mrf.mxu0  ;;  %v4278_v31 = vrot.slane %v10510_v32, 5  ;;  %v14143_v42 = vadd.f32 %v11267_v3, %v11155_v48  ;;  %v4281_v54 = vrot.slane %v10511_v41, 5  ;;  %v10550_v12 = vrot.slane %v14109_v43, 9  ;;  %11558 = vmatprep.subr.bf16.mxu1 %v12302_v15  ;;  %v10518_v48 = vld [vmem:[%s12708_s13 + $0x6c] sm:$0xe] }
 0x165   : > { %v14070_v53 = vpop.f32.mrf.mxu1  ;;  %v4275_v61 = vsel %vm12732_vm4, %v4273_v2, %v4274_v6  ;;  %12044 = vmatprep.mubr.bf16.mxu0 %v10563_v34  ;;  %v4285_v4 = vrot.slane %v14114_v52, 5  ;;  %v11158_v41 = vadd.f32 %v14012_v44, %v14003_v39  ;;  %v11270_v43 = vadd.f32 %v14005_v0, %v13991_v29  ;;  %11559 = vmatpush3.bf16.msra.mxu1 %v12303_v38  ;;  %v10522_v46 = vld [vmem:[%s12708_s13 + $0x7c] sm:$0xf] }
 0x166   : > { %v14099_v8 = vpop.f32.mrf.mxu0  ;;  %v4279_v16 = vsel %vm12732_vm4, %v10549_v50, %v4278_v31  ;;  %v4280_v32 = vrot.slane %v4278_v31, 4  ;;  %v10564_v37 = vcombine.low %v4272_v1, %v4275_v61  ;;  %v11161_v40 = vadd.f32 %v14029_v30, %v14020_v49  ;;  %v10520_v50 = vld [vmem:[%s12708_s13 + $0x74] sm:$0x1] }
 0x167   : > { %v14085_v5 = vpop.f32.mrf.mxu1  ;;  %v4287_v39 = vrot.slane %v4285_v4, 4  ;;  %v4288_v44 = vrot.slane %v10514_v51, 5  ;;  %v11273_v29 = vadd.f32 %v14022_v60, %v14014_v22  ;;  %v14171_v25 = vadd.f32 %v11270_v43, %v11158_v41  ;;  %v10525_v41 = vld [vmem:[%s12708_s13 + $0x88] sm:$0xf] }
 0x168   : > { %v14116_v23 = vpop.f32.mrf.mxu0  ;;  %v4282_v52 = vsel %vm12732_vm4, %v4280_v32, %v4281_v54  ;;  %v10551_v30 = vrot.slane %v10515_v57, 9  ;;  %v4292_v49 = vrot.slane %v10516_v19, 5  ;;  %v4295_v34 = vrot.slane %v10517_v17, 5  ;;  %v10521_v17 = vld [vmem:[%s12708_s13 + $0x78] sm:$0xe] }
 0x169   : > { %v14101_v62 = vpop.f32.mrf.mxu1  ;;  %v10565_v0 = vcombine.low %v4279_v16, %v4282_v52  ;;  %v14177_v3 = vadd.f32 %v11273_v29, %v11161_v40  ;;  %v4299_v22 = vrot.slane %v14161_v14, 5  ;;  %v4286_v57 = vsel %vm12732_vm4, %v10550_v12, %v4285_v4 }
 0x16a   : > { %v14133_v35 = vpop.f32.mrf.mxu0  ;;  %v4294_v51 = vrot.slane %v4292_v49, 4  ;;  %v11164_v19 = vadd.f32 %v14057_v20, %v14043_v13  ;;  %v11276_v61 = vadd.f32 %v14045_v11, %v14031_v28  ;;  %v11167_v54 = vadd.f32 %v14083_v24, %v14068_v7  ;;  %v10523_v20 = vld [vmem:[%s12708_s13 + $0x80] sm:$0x1] }
 0x16b   : > { %v14118_v58 = vpop.f32.mrf.mxu1  ;;  %12045 = vmatmul.mubr.bf16.gmra.mxu0 %v10564_v37  ;;  %v4289_v15 = vsel %vm12732_vm4, %v4287_v39, %v4288_v44  ;;  %v4293_v38 = vsel %vm12732_vm4, %v10551_v30, %v4292_v49  ;;  %v11279_v13 = vadd.f32 %v14070_v53, %v14059_v21  ;;  %v10552_v16 = vrot.slane %v10518_v48, 9 }
 0x16c   : > { %v14147_v18 = vpop.f32.mrf.mxu0  ;;  %12048 = vmatprep.mubr.bf16.mxu0 %v10565_v0  ;;  %v4296_v12 = vsel %vm12732_vm4, %v4294_v51, %v4295_v34  ;;  %v14199_v7 = vadd.f32 %v11276_v61, %v11164_v19  ;;  %v4306_v24 = vrot.slane %v10522_v46, 5  ;;  %v4301_v32 = vrot.slane %v4299_v22, 4  ;;  %v10528_v34 = vld [vmem:[%s12708_s13 + $0x94] sm:$0xf] }
 0x16d   : > { %v14135_v59 = vpop.f32.mrf.mxu1  ;;  %v4302_v4 = vrot.slane %v10520_v50, 5  ;;  %v14201_v37 = vadd.f32 %v11279_v13, %v11167_v54  ;;  %v10566_v14 = vcombine.low %v4286_v57, %v4289_v15  ;;  %v10567_v52 = vcombine.low %v4293_v38, %v4296_v12  ;;  %v10524_v57 = vld [vmem:[%s12708_s13 + $0x84] sm:$0xe]  ;;  %v10527_v38 = vld [vmem:[%s12708_s13 + $0x90] sm:$0xe] }
 0x16e   : > { %v14163_v6 = vpop.f32.mrf.mxu0  ;;  %v10553_v39 = vrot.slane %v10521_v17, 9  ;;  %v4309_v21 = vrot.slane %v10523_v20, 5  ;;  %v4308_v53 = vrot.slane %v4306_v24, 4  ;;  %v11170_v44 = vadd.f32 %v14116_v23, %v14099_v8  ;;  %v10529_v12 = vld [vmem:[%s12708_s13 + $0x98] sm:$0x1] }
 0x16f   : > { %v14149_v45 = vpop.f32.mrf.mxu1  ;;  %v11282_v29 = vadd.f32 %v14101_v62, %v14085_v5  ;;  %v11173_v0 = vadd.f32 %v14147_v18, %v14133_v35  ;;  %v11285_v48 = vadd.f32 %v14135_v59, %v14118_v58  ;;  %v4313_v8 = vrot.slane %v10525_v41, 5  ;;  %v10526_v59 = vld [vmem:[%s12708_s13 + $0x8c] sm:$0x1] }
 0x170   : > { %v11175_v1 = vpop.f32.mrf.mxu0  ;;  %v4300_v62 = vsel %vm12732_vm4, %v10552_v16, %v4299_v22  ;;  %v4303_v23 = vsel %vm12732_vm4, %v4301_v32, %v4302_v4  ;;  %v4307_v58 = vsel %vm12732_vm4, %v10553_v39, %v4306_v24  ;;  %v4310_v35 = vsel %vm12732_vm4, %v4308_v53, %v4309_v21  ;;  %v10534_v39 = vld [vmem:[%s12708_s13 + $0xac] sm:$0xf] }
 0x171   : > { %v14165_v33 = vpop.f32.mrf.mxu1  ;;  %v14212_v46 = vadd.f32 %v11282_v29, %v11170_v44  ;;  %v14216_v5 = vadd.f32 %v11285_v48, %v11173_v0  ;;  %v4320_v61 = vrot.slane %v10528_v34, 5  ;;  %v11176_v54 = vadd.f32 %v11175_v1, %v14163_v6  ;;  %v10530_v48 = vld [vmem:[%s12708_s13 + $0x9c] sm:$0xe] }
 0x172   : > { %v11177_v60 = vpop.f32.mrf.mxu0  ;;  %v11288_v17 = vadd.f32 %v14165_v33, %v14149_v45  ;;  %v10554_v22 = vrot.slane %v10524_v57, 9  ;;  %v10568_v24 = vcombine.low %v4300_v62, %v4303_v23  ;;  %v4315_v32 = vrot.slane %v4313_v8, 4  ;;  %v10532_v57 = vld [vmem:[%s12708_s13 + $0xa4] sm:$0x1] }
 0x173   : > { %v14175_v2 = vpop.f32.mrf.mxu1  ;;  %12049 = vmatmul.mubr.bf16.gmra.mxu0 %v10566_v14  ;;  %v4316_v4 = vrot.slane %v10526_v59, 5  ;;  %v10569_v14 = vcombine.low %v4307_v58, %v4310_v35  ;;  %v10555_v1 = vrot.slane %v10527_v38, 9  ;;  %v10556_v59 = vrot.slane %v10530_v48, 9  ;;  %v10536_v48 = vld [vmem:[%s12708_s13 + $0xb4] sm:$0xe] }
 0x174   : > { %v11178_v28 = vpop.f32.mrf.mxu0  ;;  %12052 = vmatprep.mubr.bf16.mxu0 %v10567_v52  ;;  %v14233_v41 = vadd.f32 %v11288_v17, %v11176_v54  ;;  %v10531_v52 = vld [vmem:[%s12708_s13 + $0xa0] sm:$0xf]  ;;  %v4314_v29 = vsel %vm12732_vm4, %v10554_v22, %v4313_v8  ;;  %v4334_v8 = vrot.slane %v10534_v39, 5 }
 0x175   : > { %v11290_v31 = vpop.f32.mrf.mxu1  ;;  %v11179_v15 = vadd.f32 %v11178_v28, %v11177_v60  ;;  %v4322_v60 = vrot.slane %v4320_v61, 4  ;;  %v4323_v28 = vrot.slane %v10529_v12, 5  ;;  %v4317_v0 = vsel %vm12732_vm4, %v4315_v32, %v4316_v4 }
 0x176   : > { %v11180_v43 = vpop.f32.mrf.mxu0  ;;  %v11291_v13 = vadd.f32 %v11290_v31, %v14175_v2  ;;  %v4327_v62 = vrot.slane %v10531_v52, 5  ;;  %v10570_v35 = vcombine.low %v4314_v29, %v4317_v0 }
 0x177   : > { %v11292_v11 = vpop.f32.mrf.mxu1 }
 0x178   : > { %v11181_v30 = vpop.f32.mrf.mxu0  ;;  %v14235_v6 = vadd.f32 %v11291_v13, %v11179_v15  ;;  %v4330_v15 = vrot.slane %v10532_v57, 5  ;;  %v4329_v13 = vrot.slane %v4327_v62, 4 }
 0x179   : > { %v11293_v40 = vpop.f32.mrf.mxu1  ;;  %v11182_v2 = vadd.f32 %v11181_v30, %v11180_v43  ;;  %v4324_v30 = vsel %vm12732_vm4, %v4322_v60, %v4323_v28  ;;  %v10537_v28 = vld [vmem:[%s12708_s13 + $0xb8] sm:$0xf] }
 0x17a   : > { %v11183_v50 = vpop.f32.mrf.mxu0  ;;  %v11294_v31 = vadd.f32 %v11293_v40, %v11292_v11  ;;  %v4321_v40 = vsel %vm12732_vm4, %v10555_v1, %v4320_v61  ;;  %v4336_v1 = vrot.slane %v4334_v8, 4 }
 0x17b   : > { %v11295_v49 = vpop.f32.mrf.mxu1  ;;  %12053 = vmatmul.mubr.bf16.gmra.mxu0 %v10568_v24  ;;  %v10571_v12 = vcombine.low %v4321_v40, %v4324_v30 }
 0x17c   : > { %v11184_v18 = vpop.f32.mrf.mxu0  ;;  %12056 = vmatprep.mubr.bf16.mxu0 %v10569_v14  ;;  %v14245_v23 = vadd.f32 %v11294_v31, %v11182_v2  ;;  %v4328_v2 = vsel %vm12732_vm4, %v10556_v59, %v4327_v62  ;;  %v4331_v31 = vsel %vm12732_vm4, %v4329_v13, %v4330_v15  ;;  %v10541_v62 = vld [vmem:[%s12708_s13 + $0xc8] sm:$0x1] }
 0x17d   : > { %v11296_v51 = vpop.f32.mrf.mxu1  ;;  %v11185_v21 = vadd.f32 %v11184_v18, %v11183_v50  ;;  %v10533_v50 = vld [vmem:[%s12708_s13 + $0xa8] sm:$0xe]  ;;  %v10535_v18 = vld [vmem:[%s12708_s13 + $0xb0] sm:$0x1] }
 0x17e   : > { %v11186_v20 = vpop.f32.mrf.mxu0  ;;  %v11297_v34 = vadd.f32 %v11296_v51, %v11295_v49  ;;  %v12304_v49 = vld [vmem:[#allocation4 + $0x58] sm:$0xff]   ;;  %v10557_v24 = vrot.slane %v10533_v50, 9  ;;  %v4337_v60 = vrot.slane %v10535_v18, 5  ;;  %v10572_v50 = vcombine.low %v4328_v2, %v4331_v31  ;;  %v10542_v2 = vld [vmem:[%s12708_s13 + $0xcc] sm:$0xe] }
 0x17f   : > { %v11298_v19 = vpop.f32.mrf.mxu1  ;;  %v12305_v51 = vld [vmem:[#allocation4 + $0x18] sm:$0xff]   ;;  %11560 = vmatprep.subr.bf16.mxu1 %v12304_v49 }
 0x180   : > { %v11187_v45 = vpop.f32.mrf.mxu0  ;;  %v14254_v58 = vadd.f32 %v11297_v34, %v11185_v21  ;;  %11561 = vmatpush3.bf16.msra.mxu1 %v12305_v51  ;;  %v4341_v21 = vrot.slane %v10537_v28, 5  ;;  %v4335_v29 = vsel %vm12732_vm4, %v10557_v24, %v4334_v8  ;;  %v4338_v0 = vsel %vm12732_vm4, %v4336_v1, %v4337_v60  ;;  %v10544_v31 = vld [vmem:[%s12708_s13 + $0xd4] sm:$0x1] }
 0x181   : > { %v11299_v16 = vpop.f32.mrf.mxu1  ;;  %v11188_v22 = vadd.f32 %v11187_v45, %v11186_v20  ;;  %v10540_v20 = vld [vmem:[%s12708_s13 + $0xc4] sm:$0xf]  ;;  %v10573_v51 = vcombine.low %v4335_v29, %v4338_v0 }
 0x182   : > { %v11189_v53 = vpop.f32.mrf.mxu0  ;;  %v11300_v61 = vadd.f32 %v11299_v16, %v11298_v19  ;;  %v4348_v34 = vrot.slane %v10540_v20, 5  ;;  %v4343_v8 = vrot.slane %v4341_v21, 4 }
 0x183   : > { %v11301_v33 = vpop.f32.mrf.mxu1  ;;  %12057 = vmatmul.mubr.bf16.gmra.mxu0 %v10570_v35  ;;  %v10558_v35 = vrot.slane %v10536_v48, 9  ;;  %v16736_v48 = vld [vmem:[#allocation13_spill] sm:$0xff] }
 0x184   : > { %v11190_v11 = vpop.f32.mrf.mxu0  ;;  %v14262_v52 = vadd.f32 %v11300_v61, %v11188_v22  ;;  %12060 = vmatprep.mubr.bf16.mxu0 %v10571_v12  ;;  %v4350_v22 = vrot.slane %v4348_v34, 4  ;;  %v4351_v61 = vrot.slane %v10541_v62, 5 }
 0x185   : > { %v11302_v44 = vpop.f32.mrf.mxu1  ;;  %v11191_v38 = vadd.f32 %v11190_v11, %v11189_v53  ;;  %v10539_v11 = vld [vmem:[%s12708_s13 + $0xc0] sm:$0xe] }
 0x186   : > { %v11320_v54 = vpop.f32.mrf.mxu0  ;;  %v11303_v32 = vadd.f32 %v11302_v44, %v11301_v33  ;;  %16731 = vst [vmem:[#allocation24_spill] sm:$0xff] %v14262_v52  ;;  %v10559_v15 = vrot.slane %v10539_v11, 9  ;;  %v10560_v11 = vrot.slane %v10542_v2, 9 }
 0x187   : > { %v14247_v43 = vpop.f32.mrf.mxu1 }
 0x188   : > { %v11321_v4 = vpop.f32.mrf.mxu0  ;;  %v14265_v19 = vadd.f32 %v11303_v32, %v11191_v38  ;;  %v10543_v38 = vld [vmem:[%s12708_s13 + $0xd0] sm:$0xf]  ;;  %v4349_v20 = vsel %vm12732_vm4, %v10559_v15, %v4348_v34 }
 0x189   : > { %v14257_v17 = vpop.f32.mrf.mxu1  ;;  %v11322_v39 = vadd.f32 %v11321_v4, %v11320_v54  ;;  %v4342_v4 = vsel %vm12732_vm4, %v10558_v35, %v4341_v21  ;;  %v4355_v60 = vrot.slane %v10543_v38, 5 }
 0x18a   : > { %16732 = vst [vmem:[#allocation25_spill] sm:$0xff] %v14265_v19  ;;  %v11323_v16 = vpop.f32.mrf.mxu0  ;;  %v12315_v19 = vld [vmem:[#allocation4 + $0xa8] sm:$0xff]  }
 0x18b   : > { %v14259_v14 = vpop.f32.mrf.mxu1  ;;  %v14270_v33 = vadd.f32 %v11322_v39, %v13602_v9  ;;  %v10538_v9 = vld [vmem:[%s12708_s13 + $0xbc] sm:$0x1]  ;;  %12061 = vmatmul.mubr.bf16.gmra.mxu0 %v10572_v50  ;;  %v4357_v62 = vrot.slane %v4355_v60, 4  ;;  %v4356_v15 = vsel %vm12732_vm4, %v10560_v11, %v4355_v60  ;;  %s12448_s13 = sshll.u32 %s12514_s6, 4  ;;  %s12449_s13 = int_to_ptr.vmem [resolvable:$false] %s12448_s13 }
 0x18c   : > { %v11324_v53 = vpop.f32.mrf.mxu0  ;;  %v4344_v59 = vrot.slane %v10538_v9, 5  ;;  %12064 = vmatprep.mubr.bf16.mxu0 %v10573_v51  ;;  %s12450_s7 = scalar_lea.vmem %s12449_s13, 4096  ;;  %p12451_p11 = scmp.lt.s32.totalorder %s16652_s17, %s12449_s13 }
 0x18d   : > { %v14267_v45 = vpop.f32.mrf.mxu1  ;;  %v11325_v57 = vadd.f32 %v11324_v53, %v11323_v16  ;;  %v4352_v16 = vsel %vm12732_vm4, %v4350_v22, %v4351_v61  ;;  %p12452_p12 = scmp.lt.s32.totalorder %s12450_s7, %s12444_s22 }
 0x18e   : > { %v11326_v40 = vpop.f32.mrf.mxu0  ;;  %v4345_v1 = vsel %vm12732_vm4, %v4343_v8, %v4344_v59  ;;  %v16738_v8 = vld [vmem:[#allocation14_spill] sm:$0xff] }
 0x18f   : > { %v14276_v44 = vpop.f32.mrf.mxu1  ;;  %v14289_v49 = vadd.f32 %v11325_v57, %v13610_v26  ;;  %v16734_v26 = vld [vmem:[#allocation12_spill] sm:$0xff]  ;;  %v10574_v21 = vcombine.low %v4342_v4, %v4345_v1  ;;  %v10575_v57 = vcombine.low %v4349_v20, %v4352_v16  ;;  %v16740_v1 = vld [vmem:[#allocation15_spill] sm:$0xff]  ;;  %p12453_p13 = por %p12452_p12, %p12451_p11 }
 0x190   : > { %v11327_v18 = vpop.f32.mrf.mxu0 }
 0x191   : > { %v14286_v30 = vpop.f32.mrf.mxu1  ;;  %16733 = vst [vmem:[#allocation26_spill] sm:$0xff] %v14289_v49  ;;  %v11328_v12 = vadd.f32 %v11327_v18, %v11326_v40  ;;  %v4358_v40 = vrot.slane %v10544_v31, 5  ;;  %v12321_v49 = vld [vmem:[#allocation4] sm:$0xff]   ;;  %p12454_p0 = pnand %p12453_p13, %p12447_p10 }
 0x192   : > { %v11329_v13 = vpop.f32.mrf.mxu0 }
 0x193   : > { %v14291_v54 = vpop.f32.mrf.mxu1  ;;  %v14297_v32 = vadd.f32 %v11328_v12, %v16734_v26  ;;  %12065 = vmatmul.mubr.bf16.gmra.mxu0 %v10574_v21  ;;  %v4359_v22 = vsel %vm12732_vm4, %v4357_v62, %v4358_v40  ;;  %v12306_v12 = vld [vmem:[#allocation4 + $0x50] sm:$0xff]   ;;  %v16744_v40 = vld [vmem:[#allocation17_spill] sm:$0xff] }
 0x194   : > { %v11330_v28 = vpop.f32.mrf.mxu0  ;;  %12068 = vmatprep.mubr.bf16.mxu0 %v10575_v57  ;;  %v10576_v4 = vcombine.low %v4356_v15, %v4359_v22  ;;  %11562 = vmatprep.subr.bf16.mxu1 %v12306_v12  ;;  %v16746_v22 = vld [vmem:[#allocation18_spill] sm:$0xff]  ;;  %v12308_v12 = vld [vmem:[#allocation4 + $0xf8] sm:$0xff]  }
 0x195   : > { %v14294_v24 = vpop.f32.mrf.mxu1  ;;  %16735 = vst [vmem:[#allocation12_spill] sm:$0xff] %v14297_v32  ;;  %v11331_v53 = vadd.f32 %v11330_v28, %v11329_v13  ;;  %v12307_v13 = vld [vmem:[#allocation4 + $0x10] sm:$0xff]   ;;  %11664 = vmatprep.subr.bf16.mxu0 %v12308_v12  ;;  %v12314_v12 = vld [vmem:[#allocation4 + $0xe8] sm:$0xff]  }
 0x196   : > { %v11332_v29 = vpop.f32.mrf.mxu0  ;;  %11563 = vmatpush3.bf16.msra.mxu1 %v12307_v13 }
 0x197   : > { %v14303_v39 = vpop.f32.mrf.mxu1  ;;  %v14314_v9 = vadd.f32 %v11331_v53, %v16736_v48  ;;  %v16742_v53 = vld [vmem:[#allocation16_spill] sm:$0xff] }
 0x198   : > { %v11333_v50 = vpop.f32.mrf.mxu0 }
 0x199   : > { %v14311_v0 = vpop.f32.mrf.mxu1  ;;  %16737 = vst [vmem:[#allocation13_spill] sm:$0xff] %v14314_v9  ;;  %v11334_v34 = vadd.f32 %v11333_v50, %v11332_v29 }
 0x19a   : > { %v11335_v35 = vpop.f32.mrf.mxu0 }
 0x19b   : > { %v14316_v51 = vpop.f32.mrf.mxu1  ;;  %v14319_v59 = vadd.f32 %v11334_v34, %v16738_v8  ;;  %12069 = vmatmul.mubr.bf16.gmra.mxu0 %v10576_v4 }
 0x19c   : > { %v11336_v61 = vpop.f32.mrf.mxu0 }
 0x19d   : > { %16739 = vst [vmem:[#allocation14_spill] sm:$0xff] %v14319_v59  ;;  %v14321_v18 = vpop.f32.mrf.mxu1  ;;  %v11337_v38 = vadd.f32 %v11336_v61, %v11335_v35 }
 0x19e   : > { %v11338_v26 = vpop.f32.mrf.mxu0 }
 0x19f   : > { %v14328_v28 = vadd.f32 %v11337_v38, %v16740_v1  ;;  %v14330_v20 = vpop.f32.mrf.mxu1 }
 0x1a0   : > { %v11339_v16 = vpop.f32.mrf.mxu0 }
 0x1a1   : > { %16741 = vst [vmem:[#allocation15_spill] sm:$0xff] %v14328_v28  ;;  %v11340_v2 = vadd.f32 %v11339_v16, %v11338_v26  ;;  %v14332_v31 = vpop.f32.mrf.mxu1  ;;  %v12310_v26 = vld [vmem:[#allocation4 + $0xb8] sm:$0xff]   ;;  %v253_v16 = vld [vmem:[#allocation2 + $0x18] sm:$0x1]  ;;  %v16769_v28 = vld [vmem:[#allocation23_spill] sm:$0xff] }
 0x1a2   : > { %v11341_v60 = vpop.f32.mrf.mxu0  ;;  %11665 = vmatpush3.bf16.msra.mxu0 %v12310_v26 }
 0x1a3   : > { %v14335_v29 = vadd.f32 %v11340_v2, %v16742_v53  ;;  %v14337_v21 = vpop.f32.mrf.mxu1  ;;  %v16748_v2 = vld [vmem:[#allocation19_spill] sm:$0xff] }
 0x1a4   : > { %v11342_v48 = vpop.f32.mrf.mxu0 }
 0x1a5   : > { %16743 = vst [vmem:[#allocation16_spill] sm:$0xff] %v14335_v29  ;;  %v11343_v57 = vadd.f32 %v11342_v48, %v11341_v60  ;;  %v14339_v11 = vpop.f32.mrf.mxu1  ;;  %v16750_v48 = vmov 0  ;;  %v12319_v29 = vld [vmem:[#allocation4 + $0x40] sm:$0xff]  }
 0x1a6   : > { %v11344_v62 = vpop.f32.mrf.mxu0  ;;  %v16751_v48 = vsel %vm14358_vm8, 4294967295, %v16750_v48 }
 0x1a7   : > { %v14342_v50 = vadd.f32 %v11343_v57, %v16744_v40  ;;  %v14344_v8 = vpop.f32.mrf.mxu1  ;;  %16752 = vst [vmem:[#allocation27_spill] sm:$0xff] %v16751_v48  ;;  %v12312_v57 = vld [vmem:[#allocation4 + $0xf0] sm:$0xff]   ;;  %v254_v40 = vsel %vm14358_vm8, 0, %v253_v16 }
 0x1a8   : > { %v11345_v34 = vpop.f32.mrf.mxu0  ;;  %255 = vst [vmem:[#allocation2 + $0x18] sm:$0x1] %v254_v40  ;;  %11666 = vmatprep.subr.bf16.mxu0 %v12312_v57  ;;  %v250_v16 = vld [vmem:[#allocation2 + $0xc] sm:$0x1] }
 0x1a9   : > { %16745 = vst [vmem:[#allocation17_spill] sm:$0xff] %v14342_v50  ;;  %v11346_v35 = vadd.f32 %v11345_v34, %v11344_v62  ;;  %v14349_v38 = vpop.f32.mrf.mxu1  ;;  %v12313_v34 = vld [vmem:[#allocation4 + $0xb0] sm:$0xff]   ;;  %v16765_v50 = vld [vmem:[#allocation22_spill] sm:$0xff] }
 0x1aa   : > { %v11347_v15 = vpop.f32.mrf.mxu0  ;;  %11667 = vmatpush3.bf16.msra.mxu0 %v12313_v34 }
 0x1ab   : > { %v14347_v61 = vadd.f32 %v11346_v35, %v16746_v22  ;;  %v14351_v1 = vpop.f32.mrf.mxu1  ;;  %11668 = vmatprep.subr.bf16.mxu0 %v12314_v12  ;;  %v12316_v12 = vld [vmem:[#allocation4 + $0xe0] sm:$0xff]  }
 0x1ac   : > { %v11348_v13 = vpop.f32.mrf.mxu0 }
 0x1ad   : > { %16747 = vst [vmem:[#allocation18_spill] sm:$0xff] %v14347_v61  ;;  %v11349_v4 = vadd.f32 %v11348_v13, %v11347_v15  ;;  %v14362_v62 = vpop.f32.mrf.mxu1  ;;  %v16754_v13 = vld [vmem:[#allocation20_spill] sm:$0xff] }
 0x1ae   : > { %v11350_v53 = vpop.f32.mrf.mxu0  ;;  %16753 = vst [vmem:[#allocation28_spill] sm:$0xff] %v14362_v62  ;;  %11669 = vmatpush3.bf16.msra.mxu0 %v12315_v19 }
 0x1af   : > { %v14354_v60 = vadd.f32 %v11349_v4, %v16748_v2  ;;  %v14369_v4 = vpop.f32.mrf.mxu1  ;;  %11670 = vmatprep.subr.bf16.mxu0 %v12316_v12 }
 0x1b0   : > { %v11351_v35 = vpop.f32.mrf.mxu0  ;;  %16756 = vst [vmem:[#allocation29_spill] sm:$0xff] %v14369_v4 }
 0x1b1   : > { %16749 = vst [vmem:[#allocation19_spill] sm:$0xff] %v14354_v60  ;;  %v11352_v15 = vadd.f32 %v11351_v35, %v11350_v53  ;;  %v251_v53 = vsel %vm14358_vm8, 0, %v250_v16  ;;  %v14379_v57 = vpop.f32.mrf.mxu1  ;;  %v303_v35 = vld [vmem:[#allocation2 + $0x20] sm:$0x1]  ;;  %v300_v60 = vld [vmem:[#allocation2 + $0x14] sm:$0x1] }
 0x1b2   : > { %v11353_v22 = vpop.f32.mrf.mxu0  ;;  %16759 = vst [vmem:[#allocation30_spill] sm:$0xff] %v14379_v57  ;;  %252 = vst [vmem:[#allocation2 + $0xc] sm:$0x1] %v251_v53  ;;  %v301_v16 = vsel %vm14373_vm10, 0, %v300_v60 }
 0x1b3   : > { %v14367_v26 = vadd.f32 %v11352_v15, %v16754_v13  ;;  %v304_v15 = vsel %vm14373_vm10, 0, %v303_v35  ;;  %v16760_v13 = vld [vmem:[#allocation21_spill] sm:$0xff]  ;;  %v14386_v47 = vpop.f32.mrf.mxu1  ;;  %302 = vst [vmem:[#allocation2 + $0x14] sm:$0x1] %v301_v16  ;;  %v12513_v35 = vmov 0  }
 0x1b4   : > { %v11354_v40 = vpop.f32.mrf.mxu0  ;;  %16762 = vst [vmem:[#allocation31_spill] sm:$0xff] %v14386_v47  ;;  %305 = vst [vmem:[#allocation2 + $0x20] sm:$0x1] %v304_v15  ;;  %v12309_v15 = vld [vmem:[#allocation4 + $0x48] sm:$0xff]  }
 0x1b5   : > { %16755 = vst [vmem:[#allocation20_spill] sm:$0xff] %v14367_v26  ;;  %v11355_v34 = vadd.f32 %v11354_v40, %v11353_v22  ;;  %v14390_v61 = vpop.f32.mrf.mxu1  ;;  %v259_v22 = vld [vmem:[#allocation2 + $0x30] sm:$0x1]  ;;  %v12317_v40 = vld [vmem:[#allocation4 + $0xa0] sm:$0xff]   ;;  %239 = vst [vmem:[#allocation2] sm:$0xf] %v12513_v35  ;;  %11564 = vmatprep.subr.bf16.mxu1 %v12309_v15 }
 0x1b6   : > { %v11356_v26 = vpop.f32.mrf.mxu0  ;;  %16763 = vst [vmem:[#allocation32_spill] sm:$0xff] %v14390_v61  ;;  %v260_v19 = vsel %vm14358_vm8, 0, %v259_v22  ;;  %240 = vst [vmem:[#allocation2 + $0x4] sm:$0xf] %v12513_v35  ;;  %11671 = vmatpush3.bf16.msra.mxu0 %v12317_v40  ;;  %v309_v22 = vld [vmem:[#allocation2 + $0x38] sm:$0x1] }
 0x1b7   : > { %v14384_v52 = vadd.f32 %v11355_v34, %v16760_v13  ;;  %261 = vst [vmem:[#allocation2 + $0x30] sm:$0x1] %v260_v19  ;;  %v256_v34 = vld [vmem:[#allocation2 + $0x24] sm:$0x1]  ;;  %241 = vst [vmem:[#allocation2 + $0x8] sm:$0x1] %v12513_v35  ;;  %v14394_v16 = vpop.f32.mrf.mxu1 }
 0x1b8   : > { %v11357_v53 = vpop.f32.mrf.mxu0  ;;  %243 = vst [vmem:[#allocation2 + $0xcc] sm:$0xf] %v12513_v35  ;;  %244 = vst [vmem:[#allocation2 + $0xd0] sm:$0xf] %v12513_v35  ;;  %v12311_v13 = vld [vmem:[#allocation4 + $0x8] sm:$0xff]   ;;  %v257_v12 = vsel %vm14358_vm8, 0, %v256_v34 }
 0x1b9   : > { %16761 = vst [vmem:[#allocation21_spill] sm:$0xff] %v14384_v52  ;;  %245 = vst [vmem:[#allocation2 + $0xd4] sm:$0x1] %v12513_v35  ;;  %v11358_v60 = vadd.f32 %v11357_v53, %v11356_v26  ;;  %v12318_v19 = vld [vmem:[#allocation4 + $0xd8] sm:$0xff]   ;;  %v310_v35 = vsel %vm14373_vm10, 0, %v309_v22  ;;  %v14403_v26 = vpop.f32.mrf.mxu1  ;;  %11565 = vmatpush3.bf16.msra.mxu1 %v12311_v13  ;;  %v12322_v15 = vld [vmem:[#allocation4 + $0xd0] sm:$0xff]  }
 0x1ba   : > { %16764 = vst [vmem:[#allocation33_spill] sm:$0xff] %v14394_v16  ;;  %v11359_v52 = vpop.f32.mrf.mxu0  ;;  %258 = vst [vmem:[#allocation2 + $0x24] sm:$0x1] %v257_v12  ;;  %11672 = vmatprep.subr.bf16.mxu0 %v12318_v19  ;;  %v12320_v40 = vld [vmem:[#allocation4 + $0x98] sm:$0xff]   ;;  %v306_v34 = vld [vmem:[#allocation2 + $0x2c] sm:$0x1]  ;;  %11566 = vmatprep.subr.bf16.mxu1 %v12319_v29 }
 0x1bb   : > { %v14399_v61 = vadd.f32 %v11358_v60, %v16765_v50  ;;  %16767 = vst [vmem:[#allocation34_spill] sm:$0xff] %v14403_v26  ;;  %311 = vst [vmem:[#allocation2 + $0x38] sm:$0x1] %v310_v35  ;;  %v14405_v47 = vpop.f32.mrf.mxu1  ;;  %11673 = vmatpush3.bf16.msra.mxu0 %v12320_v40  ;;  %v307_v60 = vsel %vm14373_vm10, 0, %v306_v34  ;;  %v12323_v13 = vld [vmem:[#allocation4 + $0x90] sm:$0xff]  }
 0x1bc   : > { %v11360_v53 = vpop.f32.mrf.mxu0  ;;  %16768 = vst [vmem:[#allocation35_spill] sm:$0xff] %v14405_v47  ;;  %v14412_v12 = vld [vmem:[#allocation2] sm:$0xf]  ;;  %308 = vst [vmem:[#allocation2 + $0x2c] sm:$0x1] %v307_v60  ;;  %11674 = vmatprep.subr.bf16.mxu0 %v12322_v15 }
 0x1bd   : > { %16766 = vst [vmem:[#allocation22_spill] sm:$0xff] %v14399_v61  ;;  %v11361_v16 = vadd.f32 %v11360_v53, %v11359_v52  ;;  %v14414_v35 = vld [vmem:[#allocation2 + $0x4] sm:$0xf]  ;;  %v5429_v52 = vshrl.u32 %v14412_v12, 16  ;;  %v5432_v19 = vshll.u32 %v14412_v12, 16  ;;  %v14418_v53 = vpop.f32.mrf.mxu1  ;;  %11567 = vmatpush3.bf16.msra.mxu1 %v12321_v49 }
 0x1be   : > { %v11362_v22 = vpop.f32.mrf.mxu0  ;;  %16771 = vst [vmem:[#allocation36_spill] sm:$0xff] %v14418_v53  ;;  %v265_v40 = vld [vmem:[#allocation2 + $0x48] sm:$0x1]  ;;  %v262_v26 = vld [vmem:[#allocation2 + $0x3c] sm:$0x1] }
 0x1bf   : > { %v14408_v50 = vadd.f32 %v11361_v16, %v16769_v28  ;;  %v5438_v28 = vshll.u32 %v14414_v35, 16  ;;  %v5442_v16 = vshrl.u32 %v14414_v35, 16  ;;  %11675 = vmatpush3.bf16.msra.mxu0 %v12323_v13  ;;  %v5431_v60 = vrot.slane %v5429_v52, 4  ;;  %v5412_v59 = vld [vmem:[#allocation2 + $0x8] sm:$0x1]  ;;  %v12324_v52 = vld [vmem:[#allocation4 + $0xc8] sm:$0xff]  }
 0x1c0   : > { %v11363_v34 = vpop.f32.mrf.mxu0  ;;  %v5434_v61 = vrot.slane %v5432_v19, 5  ;;  %v263_v15 = vsel %vm14358_vm8, 0, %v262_v26  ;;  %v5448_v4 = vshll.u32 %v5412_v59, 16  ;;  %11676 = vmatprep.subr.bf16.mxu0 %v12324_v52 }
 0x1c1   : > { %16770 = vst [vmem:[#allocation23_spill] sm:$0xff] %v14408_v50  ;;  %v266_v50 = vsel %vm14358_vm8, 0, %v265_v40  ;;  %v11364_v47 = vadd.f32 %v11363_v34, %v11362_v22  ;;  %v5440_v9 = vrot.slane %v5438_v28, 5  ;;  %v5444_v57 = vrot.slane %v5442_v16, 4  ;;  %v14429_v13 = vpop.f32.mrf.mxu1  ;;  %264 = vst [vmem:[#allocation2 + $0x3c] sm:$0x1] %v263_v15 }
 0x1c2   : > { %267 = vst [vmem:[#allocation2 + $0x48] sm:$0x1] %v266_v50  ;;  %v11365_v53 = vpop.f32.mrf.mxu0  ;;  %v5435_v32 = vor.u32 %v5434_v61, %v5431_v60  ;;  %v315_v22 = vld [vmem:[#allocation2 + $0x50] sm:$0x1]  ;;  %v5450_v28 = vrot.slane %v5448_v4, 5  ;;  %v12325_v61 = vld [vmem:[#allocation4 + $0x88] sm:$0xff]   ;;  %v10618_v16 = vcombine.low %v14412_v12, %v14414_v35 }
 0x1c3   : > { %v14427_v62 = vadd.f32 %v11364_v47, %v14047_v27  ;;  %v5445_v40 = vor.u32 %v5444_v57, %v5440_v9  ;;  %v14431_v34 = vpop.f32.mrf.mxu1  ;;  %v316_v59 = vsel %vm14373_vm10, 0, %v315_v22  ;;  %v312_v47 = vld [vmem:[#allocation2 + $0x44] sm:$0x1]  ;;  %11677 = vmatpush3.bf16.msra.mxu0 %v12325_v61  ;;  %v271_v57 = vld [vmem:[#allocation2 + $0x60] sm:$0x1]  ;;  %v12327_v60 = vld [vmem:[#allocation4 + $0xc0] sm:$0xff]  }
 0x1c4   : > { %v11366_v50 = vpop.f32.mrf.mxu0  ;;  %v5436_v19 = vrot.slane %v5435_v32, 4  ;;  %317 = vst [vmem:[#allocation2 + $0x50] sm:$0x1] %v316_v59  ;;  %v313_v4 = vsel %vm14373_vm10, 0, %v312_v47  ;;  %11678 = vmatprep.subr.bf16.mxu0 %v12327_v60  ;;  %v12328_v22 = vld [vmem:[#allocation4 + $0x80] sm:$0xff]  }
 0x1c5   : > { %v11367_v26 = vadd.f32 %v11366_v50, %v11365_v53  ;;  %v5446_v29 = vrot.slane %v5445_v40, 4  ;;  %v14440_v32 = vpop.f32.mrf.mxu1  ;;  %314 = vst [vmem:[#allocation2 + $0x44] sm:$0x1] %v313_v4  ;;  %v268_v12 = vld [vmem:[#allocation2 + $0x54] sm:$0x1] }
 0x1c6   : > { %v5441_v27 = vsel %vm12742_vm5, %v5436_v19, %v5440_v9  ;;  %v321_v47 = vld [vmem:[#allocation2 + $0x68] sm:$0x1] }
 0x1c7   : > { %v14438_v49 = vadd.f32 %v11367_v26, %v14065_v36  ;;  %v5451_v53 = vsel %vm12742_vm5, %v5446_v29, %v5450_v28  ;;  %v11368_v9 = vpop.f32.mrf.mxu0  ;;  %v14448_v15 = vpop.f32.mrf.mxu1  ;;  %v272_v36 = vsel %vm14358_vm8, 0, %v271_v57  ;;  %11679 = vmatpush3.bf16.msra.mxu0 %v12328_v22  ;;  %v269_v26 = vsel %vm14358_vm8, 0, %v268_v12  ;;  %v318_v57 = vld [vmem:[#allocation2 + $0x5c] sm:$0x1] }
 0x1c8   : > { %v10634_v50 = vcombine.low %v5441_v27, %v5451_v53  ;;  %273 = vst [vmem:[#allocation2 + $0x60] sm:$0x1] %v272_v36  ;;  %270 = vst [vmem:[#allocation2 + $0x54] sm:$0x1] %v269_v26  ;;  %v322_v29 = vsel %vm14373_vm10, 0, %v321_v47 }
 0x1c9   : > { %v11369_v52 = vpop.f32.mrf.mxu0  ;;  %323 = vst [vmem:[#allocation2 + $0x68] sm:$0x1] %v322_v29 }
 0x1ca   : > { %6132 = vmatprep.mubr.bf16.mxu1 %v10634_v50  ;;  %v11370_v19 = vadd.f32 %v11369_v52, %v11368_v9  ;;  %v274_v50 = vld [vmem:[#allocation2 + $0x6c] sm:$0x1] }
 0x1cb   : > { %6133 = vmatmul.mubr.bf16.vlgmr.msra.gmra.mxu1 %v10618_v16  ;;  %v14452_v40 = vpop.f32.mrf.mxu1  ;;  %v11371_v28 = vpop.f32.mrf.mxu0  ;;  %v277_v16 = vld [vmem:[#allocation2 + $0x78] sm:$0x1]  ;;  %v275_v22 = vsel %vm14358_vm8, 0, %v274_v50 }
 0x1cc   : > { %v14455_v35 = vadd.f32 %v11370_v19, %v14103_v55  ;;  %v319_v55 = vsel %vm14373_vm10, 0, %v318_v57  ;;  %v278_v9 = vsel %vm14358_vm8, 0, %v277_v16  ;;  %276 = vst [vmem:[#allocation2 + $0x6c] sm:$0x1] %v275_v22 }
 0x1cd   : > { %v14459_v59 = vpop.f32.mrf.mxu1  ;;  %v11372_v61 = vpop.f32.mrf.mxu0  ;;  %320 = vst [vmem:[#allocation2 + $0x5c] sm:$0x1] %v319_v55  ;;  %279 = vst [vmem:[#allocation2 + $0x78] sm:$0x1] %v278_v9  ;;  %v12331_v9 = vld [vmem:[#allocation4 + $0x178] sm:$0xff]  }
 0x1ce   : > { %v11373_v27 = vadd.f32 %v11372_v61, %v11371_v28  ;;  %v324_v61 = vld [vmem:[#allocation2 + $0x74] sm:$0x1]  ;;  %11776 = vmatprep.subr.bf16.mxu1 %v12331_v9 }
 0x1cf   : > { %v14463_v4 = vpop.f32.mrf.mxu1  ;;  %v325_v29 = vsel %vm14373_vm10, 0, %v324_v61 }
 0x1d0   : > { %v14466_v53 = vadd.f32 %v11373_v27, %v14105_v10  ;;  %v327_v10 = vld [vmem:[#allocation2 + $0x80] sm:$0x1]  ;;  %326 = vst [vmem:[#allocation2 + $0x74] sm:$0x1] %v325_v29 }
 0x1d1   : > { %v14470_v60 = vpop.f32.mrf.mxu1  ;;  %v328_v12 = vsel %vm14373_vm10, 0, %v327_v10 }
 0x1d2   : > { %16772 = vst [vmem:[#allocation37_spill] sm:$0xff] %v14466_v53  ;;  %329 = vst [vmem:[#allocation2 + $0x80] sm:$0x1] %v328_v12  ;;  %v333_v53 = vld [vmem:[#allocation2 + $0x98] sm:$0x1] }
 0x1d5   : > { %v11374_v36 = vpop.f32.mrf.mxu0 }
 0x1d7   : > { %v11375_v52 = vpop.f32.mrf.mxu0 }
 0x1d8   : > { %v11376_v19 = vadd.f32 %v11375_v52, %v11374_v36  ;;  %v12332_v36 = vld [vmem:[#allocation4 + $0x138] sm:$0xff]  }
 0x1d9   : > { %v14476_v28 = vpop.f32.mrf.mxu1  ;;  %v11377_v26 = vpop.f32.mrf.mxu0  ;;  %11777 = vmatpush3.bf16.msra.mxu1 %v12332_v36 }
 0x1da   : > { %v14481_v47 = vadd.f32 %v11376_v19, %v14137_v63  ;;  %v283_v63 = vld [vmem:[#allocation2 + $0x90] sm:$0x1] }
 0x1db   : > { %v14483_v27 = vpop.f32.mrf.mxu1  ;;  %v11378_v57 = vpop.f32.mrf.mxu0  ;;  %v284_v10 = vsel %vm14358_vm8, 0, %v283_v63 }
 0x1dc   : > { %16773 = vst [vmem:[#allocation38_spill] sm:$0xff] %v14481_v47  ;;  %v11379_v55 = vadd.f32 %v11378_v57, %v11377_v26  ;;  %285 = vst [vmem:[#allocation2 + $0x90] sm:$0x1] %v284_v10  ;;  %v339_v47 = vld [vmem:[#allocation2 + $0xb0] sm:$0x1] }
 0x1dd   : > { %v14487_v16 = vpop.f32.mrf.mxu1 }
 0x1de   : > { %v14490_v50 = vadd.f32 %v11379_v55, %v14143_v42 }
 0x1df   : > { %v11380_v22 = vpop.f32.mrf.mxu0  ;;  %v14492_v52 = vpop.f32.mrf.mxu1 }
 0x1e0   : > { %16774 = vst [vmem:[#allocation39_spill] sm:$0xff] %v14490_v50 }
 0x1e1   : > { %v11381_v19 = vpop.f32.mrf.mxu0 }
 0x1e2   : > { %v11382_v12 = vadd.f32 %v11381_v19, %v11380_v22  ;;  %v281_v22 = vsel %vm14358_vm8, 0, %v280_v56  ;;  %v334_v56 = vsel %vm14373_vm10, 0, %v333_v53 }
 0x1e3   : > { %v14496_v26 = vpop.f32.mrf.mxu1  ;;  %v11383_v61 = vpop.f32.mrf.mxu0  ;;  %282 = vst [vmem:[#allocation2 + $0x84] sm:$0x1] %v281_v22  ;;  %335 = vst [vmem:[#allocation2 + $0x98] sm:$0x1] %v334_v56 }
 0x1e4   : > { %v14499_v29 = vadd.f32 %v11382_v12, %v14171_v25 }
 0x1e5   : > { %v14501_v42 = vpop.f32.mrf.mxu1  ;;  %v11384_v57 = vpop.f32.mrf.mxu0 }
 0x1e6   : > { %16775 = vst [vmem:[#allocation40_spill] sm:$0xff] %v14499_v29  ;;  %v11385_v55 = vadd.f32 %v11384_v57, %v11383_v61 }
 0x1e7   : > { %v14503_v9 = vpop.f32.mrf.mxu1 }
 0x1e8   : > { %v14506_v36 = vadd.f32 %v11385_v55, %v14177_v3 }
 0x1e9   : > { %v14508_v50 = vpop.f32.mrf.mxu1 }
 0x1ea   : > { %16776 = vst [vmem:[#allocation41_spill] sm:$0xff] %v14506_v36 }
 0x1eb   : > { %v11386_v63 = vpop.f32.mrf.mxu0 }
 0x1ed   : > { %v11387_v10 = vpop.f32.mrf.mxu0 }
 0x1ee   : > { %v11388_v25 = vadd.f32 %v11387_v10, %v11386_v63  ;;  %v330_v10 = vld [vmem:[#allocation2 + $0x8c] sm:$0x1] }
 0x1ef   : > { %v11389_v12 = vpop.f32.mrf.mxu0 }
 0x1f0   : > { %v14512_v19 = vpop.f32.mrf.mxu1  ;;  %v14515_v61 = vadd.f32 %v11388_v25, %v14199_v7  ;;  %v331_v7 = vsel %vm14373_vm10, 0, %v330_v10  ;;  %v289_v25 = vld [vmem:[#allocation2 + $0xa8] sm:$0x1] }
 0x1f1   : > { %v11390_v3 = vpop.f32.mrf.mxu0  ;;  %332 = vst [vmem:[#allocation2 + $0x8c] sm:$0x1] %v331_v7 }
 0x1f2   : > { %16777 = vst [vmem:[#allocation42_spill] sm:$0xff] %v14515_v61  ;;  %v14517_v57 = vpop.f32.mrf.mxu1  ;;  %v11391_v55 = vadd.f32 %v11390_v3, %v11389_v12  ;;  %v286_v3 = vld [vmem:[#allocation2 + $0x9c] sm:$0x1] }
 0x1f3   : > { %v287_v53 = vsel %vm14358_vm8, 0, %v286_v3  ;;  %v12338_v3 = vld [vmem:[#allocation4 + $0x130] sm:$0xff]  }
 0x1f4   : > { %v14519_v36 = vpop.f32.mrf.mxu1  ;;  %v14522_v29 = vadd.f32 %v11391_v55, %v14201_v37  ;;  %v290_v37 = vsel %vm14358_vm8, 0, %v289_v25  ;;  %288 = vst [vmem:[#allocation2 + $0x9c] sm:$0x1] %v287_v53 }
 0x1f5   : > { %16778 = vst [vmem:[#allocation43_spill] sm:$0xff] %v14519_v36  ;;  %291 = vst [vmem:[#allocation2 + $0xa8] sm:$0x1] %v290_v37 }
 0x1f6   : > { %16779 = vst [vmem:[#allocation44_spill] sm:$0xff] %v14522_v29  ;;  %v14526_v63 = vpop.f32.mrf.mxu1 }
 0x1f7   : > { %16780 = vst [vmem:[#allocation45_spill] sm:$0xff] %v14526_v63 }
 0x1f8   : > { %v11392_v22 = vpop.f32.mrf.mxu0 }
 0x1fa   : > { %v11393_v61 = vpop.f32.mrf.mxu0 }
 0x1fb   : > { %v14530_v12 = vpop.f32.mrf.mxu1  ;;  %v11394_v55 = vadd.f32 %v11393_v61, %v11392_v22  ;;  %v12337_v22 = vld [vmem:[#allocation4 + $0x170] sm:$0xff]  }
 0x1fc   : > { %16781 = vst [vmem:[#allocation46_spill] sm:$0xff] %v14530_v12  ;;  %v11395_v56 = vpop.f32.mrf.mxu0  ;;  %11778 = vmatprep.subr.bf16.mxu1 %v12337_v22  ;;  %v295_v22 = vld [vmem:[#allocation2 + $0xc0] sm:$0x1] }
 0x1fd   : > { %v14536_v29 = vpop.f32.mrf.mxu1  ;;  %v14539_v10 = vadd.f32 %v11394_v55, %v14212_v46  ;;  %v340_v46 = vsel %vm14373_vm10, 0, %v339_v47  ;;  %11779 = vmatpush3.bf16.msra.mxu1 %v12338_v3  ;;  %v296_v47 = vsel %vm14358_vm8, 0, %v295_v22  ;;  %v6294_v22 = vld [vmem:[#allocation2 + $0x4] sm:$0xf] }
 0x1fe   : > { %16782 = vst [vmem:[#allocation47_spill] sm:$0xff] %v14536_v29  ;;  %v11396_v63 = vpop.f32.mrf.mxu0  ;;  %341 = vst [vmem:[#allocation2 + $0xb0] sm:$0x1] %v340_v46 }
 0x1ff   : > { %16783 = vst [vmem:[#allocation48_spill] sm:$0xff] %v14539_v10  ;;  %v11397_v36 = vadd.f32 %v11396_v63, %v11395_v56  ;;  %v14541_v12 = vpop.f32.mrf.mxu1  ;;  %297 = vst [vmem:[#allocation2 + $0xc0] sm:$0x1] %v296_v47  ;;  %v11440_v47 = vadd.f32 %v14286_v30, %v14276_v44  ;;  %v6391_v44 = vrot.slane %v6294_v22, 5  ;;  %v11455_v30 = vadd.f32 %v14339_v11, %v14337_v21  ;;  %v342_v11 = vld [vmem:[#allocation2 + $0xbc] sm:$0x1] }
 0x201   : > { %v14544_v7 = vadd.f32 %v11397_v36, %v14216_v5  ;;  %v14546_v61 = vpop.f32.mrf.mxu1 }
 0x203   : > { %16784 = vst [vmem:[#allocation49_spill] sm:$0xff] %v14544_v7  ;;  %v11398_v25 = vpop.f32.mrf.mxu0  ;;  %v336_v7 = vld [vmem:[#allocation2 + $0xa4] sm:$0x1] }
 0x205   : > { %v11399_v37 = vpop.f32.mrf.mxu0 }
 0x206   : > { %v11400_v29 = vadd.f32 %v11399_v37, %v11398_v25  ;;  %v337_v25 = vsel %vm14373_vm10, 0, %v336_v7  ;;  %v292_v37 = vld [vmem:[#allocation2 + $0xb4] sm:$0x1] }
 0x207   : > { %v14550_v55 = vpop.f32.mrf.mxu1  ;;  %v11401_v63 = vpop.f32.mrf.mxu0  ;;  %338 = vst [vmem:[#allocation2 + $0xa4] sm:$0x1] %v337_v25  ;;  %v11437_v25 = vadd.f32 %v14267_v45, %v14259_v14  ;;  %v11452_v14 = vadd.f32 %v14332_v31, %v14330_v20  ;;  %v6293_v45 = vld [vmem:[#allocation2] sm:$0xe]  ;;  %v16789_v20 = vld [vmem:[#allocation29_spill] sm:$0xff]  ;;  %v16790_v31 = vld [vmem:[#allocation30_spill] sm:$0xff] }
 0x208   : > { %v14553_v5 = vadd.f32 %v11400_v29, %v14233_v41  ;;  %v293_v41 = vsel %vm14358_vm8, 0, %v292_v37 }
 0x209   : > { %v14555_v36 = vpop.f32.mrf.mxu1  ;;  %v11402_v53 = vpop.f32.mrf.mxu0  ;;  %294 = vst [vmem:[#allocation2 + $0xb4] sm:$0x1] %v293_v41  ;;  %v345_v41 = vld [vmem:[#allocation2 + $0xc8] sm:$0x1] }
 0x20a   : > { %16785 = vst [vmem:[#allocation50_spill] sm:$0xff] %v14553_v5  ;;  %v11403_v56 = vadd.f32 %v11402_v53, %v11401_v63 }
 0x20b   : > { %v14557_v10 = vpop.f32.mrf.mxu1 }
 0x20c   : > { %16786 = vst [vmem:[#allocation51_spill] sm:$0xff] %v14557_v10  ;;  %v14564_v3 = vadd.f32 %v11403_v56, %v14235_v6  ;;  %v11434_v6 = vadd.f32 %v14257_v17, %v14247_v43  ;;  %v11449_v17 = vadd.f32 %v14321_v18, %v14316_v51  ;;  %v16788_v51 = vld [vmem:[#allocation28_spill] sm:$0xff] }
 0x20d   : > { %v14568_v29 = vpop.f32.mrf.mxu1  ;;  %v11461_v18 = vadd.f32 %v16788_v51, %v14351_v1  ;;  %v10666_v1 = vrot.slane %v6293_v45, 9  ;;  %v16796_v51 = vld [vmem:[#allocation16_spill] sm:$0xff] }
 0x210   : > { %v11404_v46 = vpop.f32.mrf.mxu0 }
 0x212   : > { %v11405_v63 = vpop.f32.mrf.mxu0  ;;  %v14570_v53 = vpop.f32.mrf.mxu1 }
 0x213   : > { %v11406_v7 = vadd.f32 %v11405_v63, %v11404_v46  ;;  %v11443_v46 = vadd.f32 %v14294_v24, %v14291_v54  ;;  %v11446_v63 = vadd.f32 %v14311_v0, %v14303_v39  ;;  %v11458_v54 = vadd.f32 %v14349_v38, %v14344_v8  ;;  %v6295_v0 = vld [vmem:[#allocation2 + $0x8] sm:$0x1]  ;;  %v12343_v8 = vld [vmem:[#allocation4 + $0x168] sm:$0xff]  }
 0x214   : > { %v11407_v5 = vpop.f32.mrf.mxu0  ;;  %v14572_v10 = vpop.f32.mrf.mxu1  ;;  %v14603_v39 = vadd.f32 %v11434_v6, %v14270_v33  ;;  %v16794_v6 = vld [vmem:[#allocation14_spill] sm:$0xff]  ;;  %11780 = vmatprep.subr.bf16.mxu1 %v12343_v8  ;;  %v16809_v8 = vld [vmem:[#allocation19_spill] sm:$0xff] }
 0x215   : > { %v14577_v56 = vadd.f32 %v11406_v7, %v14245_v23  ;;  %v346_v23 = vsel %vm14373_vm10, 0, %v345_v41  ;;  %v16791_v7 = vld [vmem:[#allocation12_spill] sm:$0xff]  ;;  %v14619_v41 = vadd.f32 %v11446_v63, %v16794_v6  ;;  %v16803_v63 = vld [vmem:[#allocation34_spill] sm:$0xff] }
 0x216   : > { %v11408_v37 = vpop.f32.mrf.mxu0  ;;  %v14587_v43 = vpop.f32.mrf.mxu1  ;;  %347 = vst [vmem:[#allocation2 + $0xc8] sm:$0x1] %v346_v23  ;;  %v4090_v22 = vadd.f32 %v11440_v47, %v16791_v7  ;;  %v343_v23 = vsel %vm14373_vm10, 0, %v342_v11  ;;  %v14624_v47 = vadd.f32 %v11452_v14, %v16796_v51  ;;  %v6394_v7 = vrot.slane %v6295_v0, 5  ;;  %v16805_v11 = vld [vmem:[#allocation18_spill] sm:$0xff]  ;;  %v16806_v51 = vld [vmem:[#allocation35_spill] sm:$0xff] }
 0x217   : > { %v11409_v48 = vadd.f32 %v11408_v37, %v11407_v5  ;;  %v11464_v5 = vadd.f32 %v16790_v31, %v16789_v20  ;;  %v16792_v37 = vld [vmem:[#allocation26_spill] sm:$0xff]  ;;  %16795 = vst [vmem:[#allocation28_spill] sm:$0xff] %v14619_v41  ;;  %v6393_v31 = vrot.slane %v6391_v44, 4  ;;  %344 = vst [vmem:[#allocation2 + $0xbc] sm:$0x1] %v343_v23  ;;  %v16804_v41 = vld [vmem:[#allocation17_spill] sm:$0xff]  ;;  %v14637_v14 = vadd.f32 %v11458_v54, %v16805_v11 }
 0x218   : > { %v14611_v21 = vadd.f32 %v11437_v25, %v16792_v37  ;;  %16797 = vst [vmem:[#allocation29_spill] sm:$0xff] %v14624_v47  ;;  %v16798_v25 = vld [vmem:[#allocation15_spill] sm:$0xff]  ;;  %v14634_v2 = vadd.f32 %v11455_v30, %v16804_v41  ;;  %v16808_v0 = vld [vmem:[#allocation20_spill] sm:$0xff]  ;;  %v14645_v47 = vadd.f32 %v11461_v18, %v16809_v8  ;;  %v11479_v30 = vadd.f32 %v14448_v15, %v14440_v32  ;;  %v16816_v11 = vld [vmem:[#allocation38_spill] sm:$0xff] }
 0x219   : > { %v14600_v24 = vadd.f32 %v11409_v48, %v14254_v58  ;;  %v14613_v58 = vpop.f32.mrf.mxu1  ;;  %v16793_v48 = vld [vmem:[#allocation13_spill] sm:$0xff]  ;;  %v14627_v20 = vadd.f32 %v11449_v17, %v16798_v25  ;;  %v16800_v37 = vld [vmem:[#allocation31_spill] sm:$0xff]  ;;  %v16807_v17 = vld [vmem:[#allocation36_spill] sm:$0xff]  ;;  %v14642_v23 = vadd.f32 %v11464_v5, %v16808_v0  ;;  %v11482_v54 = vadd.f32 %v14459_v59, %v14452_v40 }
 0x21a   : > { %v14616_v33 = vadd.f32 %v11443_v46, %v16793_v48  ;;  %v16801_v46 = vld [vmem:[#allocation32_spill] sm:$0xff]  ;;  %v11473_v25 = vadd.f32 %v16807_v17, %v16806_v51  ;;  %v11485_v5 = vadd.f32 %v14470_v60, %v14463_v4  ;;  %v11488_v18 = vadd.f32 %v14483_v27, %v14476_v28  ;;  %v16813_v60 = vld [vmem:[#allocation22_spill] sm:$0xff]  ;;  %v12344_v27 = vld [vmem:[#allocation4 + $0x128] sm:$0xff]  }
 0x21b   : > { %16787 = vst [vmem:[#allocation52_spill] sm:$0xff] %v14600_v24  ;;  %v11410_v38 = vpop.f32.mrf.mxu0  ;;  %16799 = vst [vmem:[#allocation30_spill] sm:$0xff] %v14627_v20  ;;  %v11467_v48 = vadd.f32 %v16801_v46, %v16800_v37  ;;  %v16802_v24 = vld [vmem:[#allocation33_spill] sm:$0xff]  ;;  %v11491_v32 = vadd.f32 %v14492_v52, %v14487_v16  ;;  %v11494_v15 = vadd.f32 %v14501_v42, %v14496_v26  ;;  %v16814_v16 = vld [vmem:[#allocation23_spill] sm:$0xff]  ;;  %11781 = vmatpush3.bf16.msra.mxu1 %v12344_v27 }
 0x21c   : > { %v11470_v6 = vadd.f32 %v16803_v63, %v16802_v24  ;;  %v11476_v24 = vadd.f32 %v14431_v34, %v14429_v13  ;;  %v16811_v63 = vld [vmem:[#allocation24_spill] sm:$0xff]  ;;  %v14666_v34 = vsel %vm12732_vm4, %v6393_v31, %v6394_v7  ;;  %v14683_v52 = vadd.f32 %v11473_v25, %v16814_v16  ;;  %v14688_v7 = vld [vmem:[%s16700_s2] ss:$0 sm:$0xff]  ;;  %v16817_v17 = vld [vmem:[#allocation37_spill] sm:$0xff] }
 0x21d   : > { %v11411_v45 = vpop.f32.mrf.mxu0  ;;  %v14703_v51 = vadd.f32 %v11488_v18, %v16816_v11  ;;  %v16818_v25 = vld [vmem:[#allocation43_spill] sm:$0xff]  ;;  %v16820_v8 = vld [vmem:[#allocation46_spill] sm:$0xff]  ;;  %v16825_v27 = vld [vmem:[#allocation41_spill] sm:$0xff]  ;;  %v11509_v16 = vadd.f32 %v14546_v61, %v14541_v12 }
 0x21e   : > { %v11412_v20 = vadd.f32 %v11411_v45, %v11410_v38  ;;  %v14655_v38 = vsel %vm12732_vm4, %v10666_v1, %v6391_v44  ;;  %v16812_v44 = vld [vmem:[#allocation21_spill] sm:$0xff]  ;;  %v14676_v28 = vadd.f32 %v11470_v6, %v16813_v60  ;;  %v11497_v1 = vadd.f32 %v14508_v50, %v14503_v9 }
 0x21f   : > { %v11522_v41 = vpop.f32.mrf.mxu1  ;;  %v11413_v37 = vpop.f32.mrf.mxu0  ;;  %v14673_v4 = vadd.f32 %v11467_v48, %v16812_v44  ;;  %v14691_v48 = vadd.f32 %v11476_v24, %v14427_v62  ;;  %v14694_v6 = vadd.f32 %v11479_v30, %v14438_v49  ;;  %v10682_v50 = vcombine.low %v14655_v38, %v14666_v34  ;;  %v16819_v49 = vld [vmem:[#allocation45_spill] sm:$0xff]  ;;  %v16821_v24 = vld [vmem:[#allocation47_spill] sm:$0xff]  ;;  %v5296_v34 = vld [vmem:[#allocation2 + $0x3c] sm:$0xf] }
 0x220   : > { %v14662_v13 = vadd.f32 %v11412_v20, %v16811_v63  ;;  %v11500_v20 = vadd.f32 %v14517_v57, %v14512_v19  ;;  %v14699_v9 = vadd.f32 %v11482_v54, %v14455_v35  ;;  %v16815_v19 = vld [vmem:[#allocation25_spill] sm:$0xff]  ;;  %v14706_v62 = vadd.f32 %v11485_v5, %v16817_v17  ;;  %v16822_v35 = vld [vmem:[#allocation39_spill] sm:$0xff]  ;;  %v16823_v63 = vld [vmem:[#allocation40_spill] sm:$0xff] }
 0x221   : > { %v11523_v40 = vpop.f32.mrf.mxu1  ;;  %v11414_v59 = vpop.f32.mrf.mxu0  ;;  %v11503_v0 = vadd.f32 %v16819_v49, %v16818_v25  ;;  %v11506_v30 = vadd.f32 %v16821_v24, %v16820_v8  ;;  %v14713_v54 = vadd.f32 %v11491_v32, %v16822_v35  ;;  %v16824_v5 = vld [vmem:[#allocation42_spill] sm:$0xff]  ;;  %v11512_v32 = vadd.f32 %v14555_v36, %v14550_v55  ;;  %v16827_v55 = vld [vmem:[#allocation44_spill] sm:$0xff] }
 0x222   : > { %v11415_v31 = vadd.f32 %v11414_v59, %v11413_v37  ;;  %v14716_v59 = vadd.f32 %v11494_v15, %v16823_v63  ;;  %v14721_v60 = vadd.f32 %v11500_v20, %v16824_v5  ;;  %v11524_v12 = vadd.f32 %v11523_v40, %v11522_v41  ;;  %v16829_v24 = vld [vmem:[#allocation50_spill] sm:$0xff]  ;;  %v16830_v40 = vld [vmem:[#allocation49_spill] sm:$0xff]  ;;  %v16831_v63 = vld [vmem:[#allocation52_spill] sm:$0xff] }
 0x223   : > { %v11525_v26 = vpop.f32.mrf.mxu1  ;;  %v12042_v42 = vpop.f32.mrf.mxu0  ;;  %v14739_v36 = vadd.f32 %v11503_v0, %v16827_v55 }
 0x224   : > { %v3141_v57 = vadd.f32 %v11415_v31, %v16815_v19  ;;  %v4683_v45 = vadd.f32 %v12042_v42, %v4090_v22  ;;  %v14724_v31 = vadd.f32 %v11497_v1, %v16825_v27  ;;  %v16826_v42 = vld [vmem:[#allocation51_spill] sm:$0xff]  ;;  %v11518_v19 = vadd.f32 %v14572_v10, %v14570_v53 }
 0x225   : > { %v4522_v37 = vpop.f32.mrf.mxu0  ;;  %v11526_v22 = vpop.f32.mrf.mxu1  ;;  %v11515_v15 = vadd.f32 %v14568_v29, %v16826_v42  ;;  %v16828_v29 = vld [vmem:[#allocation48_spill] sm:$0xff] }
 0x226   : > { %v4786_v18 = vadd.f32 %v14688_v7, %v4683_v45  ;;  %v4681_v44 = vadd.f32 %v4522_v37, %v14603_v39  ;;  %v11521_v39 = vadd.f32 %v14613_v58, %v14587_v43  ;;  %v11527_v61 = vadd.f32 %v11526_v22, %v11525_v26  ;;  %v12349_v58 = vld [vmem:[#allocation4 + $0x160] sm:$0xff]  }
 0x227   : > { %v12043_v45 = vpop.f32.mrf.mxu0  ;;  %v14742_v25 = vadd.f32 %v11506_v30, %v16828_v29  ;;  %v14750_v41 = vadd.f32 %v11515_v15, %v14564_v3  ;;  %v14753_v26 = vadd.f32 %v11509_v16, %v16830_v40  ;;  %v14756_v0 = vadd.f32 %v11518_v19, %v14577_v56  ;;  %11782 = vmatprep.subr.bf16.mxu1 %v12349_v58  ;;  %v12350_v15 = vld [vmem:[#allocation4 + $0x120] sm:$0xff]   ;;  %v5268_v29 = vld [vmem:[#allocation2 + $0xc] sm:$0xf] }
 0x228   : > { %v4818_v20 = vmax.f32 %v4786_v18, 0.0  ;;  %v4784_v1 = vadd.f32 %v14688_v7, %v4681_v44  ;;  %v4684_v11 = vadd.f32 %v12043_v45, %v14616_v33  ;;  %v14747_v33 = vadd.f32 %v11512_v32, %v16829_v24  ;;  %v16832_v18 = vld [vmem:[#allocation29_spill] sm:$0xff]  ;;  %v5275_v45 = vld [vmem:[#allocation2 + $0x18] sm:$0xf]  ;;  %11783 = vmatpush3.bf16.msra.mxu1 %v12350_v15 }
 0x229   : > { %v4525_v17 = vpop.f32.mrf.mxu0  ;;  %v14759_v22 = vadd.f32 %v11521_v39, %v16831_v63  ;;  %v14764_v3 = vadd.f32 %v11524_v12, %v14662_v13  ;;  %v14766_v27 = vadd.f32 %v11527_v61, %v3141_v57  ;;  %v16835_v13 = vld [vmem:[#allocation28_spill] sm:$0xff]  ;;  %v12353_v15 = vld [vmem:[#allocation4 + $0x1f8] sm:$0xff]  }
 0x22a   : > { %v10922_v10 = vpack.c.bf16 %v4818_v20, %v4818_v20  ;;  %v4816_v53 = vmax.f32 %v4784_v1, 0.0  ;;  %v4787_v49 = vadd.f32 %v14688_v7, %v4684_v11  ;;  %v4682_v43 = vadd.f32 %v4525_v17, %v14611_v21  ;;  %11888 = vmatprep.subr.bf16.mxu0 %v12353_v15 }
 0x22b   : > { %v12046_v8 = vpop.f32.mrf.mxu0 }
 0x22c   : > { %v4964_v30 = vshrl.u32 %v10922_v10, 16  ;;  %v10920_v37 = vpack.c.bf16 %v4816_v53, %v4816_v53  ;;  %v4819_v35 = vmax.f32 %v4787_v49, 0.0  ;;  %v4785_v21 = vadd.f32 %v14688_v7, %v4682_v43 }
 0x22d   : > { %v4687_v44 = vadd.f32 %v12046_v8, %v16832_v18  ;;  %v4538_v5 = vpop.f32.mrf.mxu0  ;;  %v4967_v56 = vshll.u32 %v10922_v10, 16 }
 0x22e   : > { %v4966_v16 = vrot.slane %v4964_v30, 7  ;;  %v4947_v32 = vshrl.u32 %v10920_v37, 16  ;;  %v10923_v42 = vpack.c.bf16 %v4819_v35, %v4819_v35  ;;  %v4950_v39 = vshll.u32 %v10920_v37, 16  ;;  %v5279_v35 = vld [vmem:[#allocation2 + $0x20] sm:$0x1] }
 0x22f   : > { %v4817_v20 = vmax.f32 %v4785_v21, 0.0  ;;  %v4790_v1 = vadd.f32 %v14688_v7, %v4687_v44  ;;  %v4685_v11 = vadd.f32 %v4538_v5, %v16835_v13  ;;  %v12047_v57 = vpop.f32.mrf.mxu0 }
 0x230   : > { %v4969_v12 = vor.u32 %v4967_v56, %v4966_v16  ;;  %v4970_v61 = vrot.slane %v4966_v16, 4  ;;  %v4949_v17 = vrot.slane %v4947_v32, 7  ;;  %v4972_v55 = vshrl.u32 %v10923_v42, 16 }
 0x231   : > { %v4975_v10 = vshll.u32 %v10923_v42, 16  ;;  %v10921_v53 = vpack.c.bf16 %v4817_v20, %v4817_v20  ;;  %v4822_v49 = vmax.f32 %v4790_v1, 0.0  ;;  %v4788_v43 = vadd.f32 %v14688_v7, %v4685_v11  ;;  %v4541_v58 = vpop.f32.mrf.mxu0 }
 0x232   : > { %v5276_v8 = vsel %vm14770_vm13, %v4969_v12, %v5275_v45  ;;  %v4952_v24 = vor.u32 %v4950_v39, %v4949_v17  ;;  %v4953_v40 = vrot.slane %v4949_v17, 4  ;;  %v4974_v30 = vrot.slane %v4972_v55, 7  ;;  %v5272_v55 = vld [vmem:[#allocation2 + $0x14] sm:$0x1] }
 0x233   : > { %5277 = vst [vmem:[#allocation2 + $0x18] sm:$0xf] %v5276_v8  ;;  %v4955_v63 = vshrl.u32 %v10921_v53, 16  ;;  %v4958_v21 = vshll.u32 %v10921_v53, 16  ;;  %v10926_v18 = vpack.c.bf16 %v4822_v49, %v4822_v49  ;;  %v4820_v44 = vmax.f32 %v4788_v43, 0.0  ;;  %v12050_v5 = vpop.f32.mrf.mxu0 }
 0x234   : > { %v5269_v16 = vsel %vm14770_vm13, %v4952_v24, %v5268_v29  ;;  %v4977_v56 = vor.u32 %v4975_v10, %v4974_v30  ;;  %v4979_v32 = vrot.slane %v4974_v30, 4  ;;  %v4688_v42 = vadd.f32 %v12047_v57, %v14634_v2  ;;  %v16839_v10 = vld [vmem:[#allocation30_spill] sm:$0xff]  ;;  %v5289_v24 = vld [vmem:[#allocation2 + $0x30] sm:$0xf] }
 0x235   : > { %5270 = vst [vmem:[#allocation2 + $0xc] sm:$0xf] %v5269_v16  ;;  %v4957_v45 = vrot.slane %v4955_v63, 7  ;;  %v4998_v39 = vshrl.u32 %v10926_v18, 16  ;;  %v5001_v20 = vshll.u32 %v10926_v18, 16  ;;  %v10924_v1 = vpack.c.bf16 %v4820_v44, %v4820_v44  ;;  %v4554_v13 = vpop.f32.mrf.mxu0 }
 0x236   : > { %v4978_v11 = vsel %vm14781_vm14, %v4970_v61, %v4977_v56  ;;  %v5280_v17 = vsel %vm14358_vm8, %v4979_v32, %v5279_v35  ;;  %v4791_v29 = vadd.f32 %v14688_v7, %v4688_v42  ;;  %v4686_v53 = vadd.f32 %v4541_v58, %v16839_v10 }
 0x237   : > { %5278 = vst [vmem:[#allocation2 + $0x1c] sm:$0xf] %v4978_v11  ;;  %5281 = vst [vmem:[#allocation2 + $0x20] sm:$0x1] %v5280_v17  ;;  %v4960_v2 = vor.u32 %v4958_v21, %v4957_v45  ;;  %v4962_v57 = vrot.slane %v4957_v45, 4  ;;  %v14794_v49 = vrot.slane %v4998_v39, 7  ;;  %v12051_v8 = vpop.f32.mrf.mxu0  ;;  %v4691_v35 = vadd.f32 %v12050_v5, %v14642_v23 }
 0x238   : > { %v4981_v43 = vshrl.u32 %v10924_v1, 16  ;;  %v4984_v30 = vshll.u32 %v10924_v1, 16  ;;  %v4823_v61 = vmax.f32 %v4791_v29, 0.0  ;;  %v4789_v63 = vadd.f32 %v14688_v7, %v4686_v53  ;;  %v12357_v1 = vld [vmem:[#allocation4 + $0x158] sm:$0xff]  }
 0x239   : > { %v4961_v18 = vsel %vm14781_vm14, %v4953_v40, %v4960_v2  ;;  %v5273_v58 = vsel %vm14358_vm8, %v4962_v57, %v5272_v55  ;;  %v5003_v21 = vor.u32 %v5001_v20, %v14794_v49  ;;  %v5004_v44 = vrot.slane %v14794_v49, 4  ;;  %v4557_v16 = vpop.f32.mrf.mxu0  ;;  %v5282_v40 = vld [vmem:[#allocation2 + $0x24] sm:$0xf]  ;;  %v12358_v11 = vld [vmem:[#allocation4 + $0x118] sm:$0xff]   ;;  %11784 = vmatprep.subr.bf16.mxu1 %v12357_v1 }
 0x23a   : > { %5271 = vst [vmem:[#allocation2 + $0x10] sm:$0xf] %v4961_v18  ;;  %5274 = vst [vmem:[#allocation2 + $0x14] sm:$0x1] %v5273_v58  ;;  %v14804_v56 = vrot.slane %v4981_v43, 7  ;;  %v10927_v32 = vpack.c.bf16 %v4823_v61, %v4823_v61  ;;  %v4821_v42 = vmax.f32 %v4789_v63, 0.0  ;;  %v4794_v15 = vadd.f32 %v14688_v7, %v4691_v35  ;;  %11785 = vmatpush3.bf16.msra.mxu1 %v12358_v11 }
 0x23b   : > { %v5290_v23 = vsel %vm14770_vm13, %v5003_v21, %v5289_v24  ;;  %v4689_v5 = vadd.f32 %v4554_v13, %v14637_v14  ;;  %v4692_v45 = vadd.f32 %v12051_v8, %v14673_v4  ;;  %v4690_v39 = vadd.f32 %v4557_v16, %v14645_v47  ;;  %v12054_v20 = vpop.f32.mrf.mxu0  ;;  %v5293_v8 = vld [vmem:[#allocation2 + $0x38] sm:$0x1] }
 0x23c   : > { %5291 = vst [vmem:[#allocation2 + $0x30] sm:$0xf] %v5290_v23  ;;  %v4986_v17 = vor.u32 %v4984_v30, %v14804_v56  ;;  %v4987_v55 = vrot.slane %v14804_v56, 4  ;;  %v5006_v29 = vshrl.u32 %v10927_v32, 16  ;;  %v5009_v10 = vshll.u32 %v10927_v32, 16  ;;  %v12354_v56 = vld [vmem:[#allocation4 + $0x1b8] sm:$0xff]  }
 0x23d   : > { %v10925_v53 = vpack.c.bf16 %v4821_v42, %v4821_v42  ;;  %v4826_v2 = vmax.f32 %v4794_v15, 0.0  ;;  %v4792_v57 = vadd.f32 %v14688_v7, %v4689_v5  ;;  %v4795_v14 = vadd.f32 %v14688_v7, %v4692_v45  ;;  %v14816_v13 = vpop.f32.mrf.mxu0 }
 0x23e   : > { %v5283_v47 = vsel %vm14770_vm13, %v4986_v17, %v5282_v40  ;;  %v5008_v4 = vrot.slane %v5006_v29, 7  ;;  %v4793_v49 = vadd.f32 %v14688_v7, %v4690_v39  ;;  %v4695_v43 = vadd.f32 %v12054_v20, %v14691_v48  ;;  %v5286_v39 = vld [vmem:[#allocation2 + $0x2c] sm:$0x1] }
 0x23f   : > { %5284 = vst [vmem:[#allocation2 + $0x24] sm:$0xf] %v5283_v47  ;;  %v4989_v24 = vshrl.u32 %v10925_v53, 16  ;;  %v4992_v30 = vshll.u32 %v10925_v53, 16  ;;  %v10930_v61 = vpack.c.bf16 %v4826_v2, %v4826_v2  ;;  %v4824_v63 = vmax.f32 %v4792_v57, 0.0  ;;  %v12055_v35 = vpop.f32.mrf.mxu0  ;;  %v12330_v2 = vld [vmem:[#allocation2 + $0x18] sm:$0xff]  }
 0x240   : > { %v5011_v18 = vor.u32 %v5009_v10, %v5008_v4  ;;  %v5013_v58 = vrot.slane %v5008_v4, 4  ;;  %v4827_v21 = vmax.f32 %v4795_v14, 0.0  ;;  %v4825_v16 = vmax.f32 %v4793_v49, 0.0  ;;  %v12361_v57 = vld [vmem:[#allocation4 + $0x1f0] sm:$0xff]  }
 0x241   : > { %v4991_v32 = vrot.slane %v4989_v24, 7  ;;  %v5032_v42 = vshrl.u32 %v10930_v61, 16  ;;  %v5035_v15 = vshll.u32 %v10930_v61, 16  ;;  %v10928_v23 = vpack.c.bf16 %v4824_v63, %v4824_v63  ;;  %v14822_v40 = vpop.f32.mrf.mxu0  ;;  %v12329_v48 = vld [vmem:[#allocation2 + $0xc] sm:$0xff]   ;;  %v5303_v14 = vld [vmem:[#allocation2 + $0x48] sm:$0xf] }
 0x242   : > { %v5012_v5 = vsel %vm14781_vm14, %v5004_v44, %v5011_v18  ;;  %v5294_v45 = vsel %vm14358_vm8, %v5013_v58, %v5293_v8  ;;  %v10931_v20 = vpack.c.bf16 %v4827_v21, %v4827_v21  ;;  %v10929_v1 = vpack.c.bf16 %v4825_v16, %v4825_v16  ;;  %6853 = vmatprep.mubr.bf16.mxu0 %v12329_v48  ;;  %v12362_v63 = vld [vmem:[#allocation4 + $0x1b0] sm:$0xff]  }
 0x243   : > { %5292 = vst [vmem:[#allocation2 + $0x34] sm:$0xf] %v5012_v5  ;;  %5295 = vst [vmem:[#allocation2 + $0x38] sm:$0x1] %v5294_v45  ;;  %v4994_v11 = vor.u32 %v4992_v30, %v4991_v32  ;;  %v4996_v17 = vrot.slane %v4991_v32, 4  ;;  %v5034_v29 = vrot.slane %v5032_v42, 7  ;;  %v12058_v53 = vpop.f32.mrf.mxu0  ;;  %6854 = vmatmul.mubr.bf16.vlgmr.msra.gmra.mxu0 %v10682_v50  ;;  %v4693_v42 = vadd.f32 %v14816_v13, %v14676_v28 }
 0x244   : > { %v5015_v10 = vshrl.u32 %v10928_v23, 16  ;;  %v5018_v47 = vshll.u32 %v10928_v23, 16  ;;  %v5040_v4 = vshrl.u32 %v10931_v20, 16  ;;  %v5043_v44 = vshll.u32 %v10931_v20, 16  ;;  %6861 = vmatprep.mubr.bf16.mxu0 %v12330_v2  ;;  %11889 = vmatpush3.bf16.msra.mxu0 %v12354_v56  ;;  %v5307_v50 = vld [vmem:[#allocation2 + $0x50] sm:$0x1] }
 0x245   : > { %v5023_v49 = vshrl.u32 %v10929_v1, 16  ;;  %v4995_v8 = vsel %vm14781_vm14, %v4987_v55, %v4994_v11  ;;  %v5287_v24 = vsel %vm14358_vm8, %v4996_v17, %v5286_v39  ;;  %v5037_v30 = vor.u32 %v5035_v15, %v5034_v29  ;;  %v4586_v32 = vpop.f32.mrf.mxu0  ;;  %11890 = vmatprep.subr.bf16.mxu0 %v12361_v57  ;;  %v5300_v45 = vld [vmem:[#allocation2 + $0x44] sm:$0x1]  ;;  %v12365_v57 = vld [vmem:[#allocation4 + $0x150] sm:$0xff]  }
 0x246   : > { %v5038_v61 = vrot.slane %v5034_v29, 4  ;;  %5285 = vst [vmem:[#allocation2 + $0x28] sm:$0xf] %v4995_v8  ;;  %5288 = vst [vmem:[#allocation2 + $0x2c] sm:$0x1] %v5287_v24  ;;  %v5017_v18 = vrot.slane %v5015_v10, 7  ;;  %v4798_v55 = vadd.f32 %v14688_v7, %v4695_v43  ;;  %v4696_v56 = vadd.f32 %v12055_v35, %v14694_v6  ;;  %11786 = vmatprep.subr.bf16.mxu1 %v12365_v57 }
 0x247   : > { %v5042_v58 = vrot.slane %v5040_v4, 7  ;;  %v5025_v21 = vrot.slane %v5023_v49, 7  ;;  %v5026_v16 = vshll.u32 %v10929_v1, 16  ;;  %v5304_v38 = vsel %vm14770_vm13, %v5037_v30, %v5303_v14  ;;  %v12059_v35 = vpop.f32.mrf.mxu0  ;;  %v12366_v49 = vld [vmem:[#allocation4 + $0x110] sm:$0xff]  }
 0x248   : > { %5305 = vst [vmem:[#allocation2 + $0x48] sm:$0xf] %v5304_v38  ;;  %v5020_v15 = vor.u32 %v5018_v47, %v5017_v18  ;;  %v5021_v23 = vrot.slane %v5017_v18, 4  ;;  %v4830_v1 = vmax.f32 %v4798_v55, 0.0  ;;  %v4796_v11 = vadd.f32 %v14688_v7, %v4693_v42  ;;  %11891 = vmatpush3.bf16.msra.mxu0 %v12362_v63  ;;  %11787 = vmatpush3.bf16.msra.mxu1 %v12366_v49  ;;  %v5310_v42 = vld [vmem:[#allocation2 + $0x54] sm:$0xf] }
 0x249   : > { %v5045_v48 = vor.u32 %v5043_v44, %v5042_v58  ;;  %v5047_v5 = vrot.slane %v5042_v58, 4  ;;  %v5028_v39 = vor.u32 %v5026_v16, %v5025_v21  ;;  %v5030_v20 = vrot.slane %v5025_v21, 4 }
 0x24a   : > { %v5297_v43 = vsel %vm14770_vm13, %v5020_v15, %v5296_v34  ;;  %v4799_v13 = vadd.f32 %v14688_v7, %v4696_v56  ;;  %v10934_v10 = vpack.c.bf16 %v4830_v1, %v4830_v1  ;;  %v4828_v2 = vmax.f32 %v4796_v11, 0.0  ;;  %v4589_v15 = vpop.f32.mrf.mxu0  ;;  %v5321_v11 = vld [vmem:[#allocation2 + $0x68] sm:$0x1] }
 0x24b   : > { %v5046_v28 = vsel %vm14781_vm14, %v5038_v61, %v5045_v48  ;;  %v5308_v6 = vsel %vm14358_vm8, %v5047_v5, %v5307_v50  ;;  %5298 = vst [vmem:[#allocation2 + $0x3c] sm:$0xf] %v5297_v43  ;;  %v5029_v17 = vsel %vm14781_vm14, %v5021_v23, %v5028_v39  ;;  %v5301_v29 = vsel %vm14358_vm8, %v5030_v20, %v5300_v45 }
 0x24c   : > { %5306 = vst [vmem:[#allocation2 + $0x4c] sm:$0xf] %v5046_v28  ;;  %5309 = vst [vmem:[#allocation2 + $0x50] sm:$0x1] %v5308_v6  ;;  %v4831_v14 = vmax.f32 %v4799_v13, 0.0  ;;  %v4694_v47 = vadd.f32 %v14822_v40, %v14683_v52  ;;  %v4699_v4 = vadd.f32 %v12058_v53, %v14703_v51  ;;  %v4697_v44 = vadd.f32 %v4586_v32, %v14699_v9 }
 0x24d   : > { %5299 = vst [vmem:[#allocation2 + $0x40] sm:$0xf] %v5029_v17  ;;  %5302 = vst [vmem:[#allocation2 + $0x44] sm:$0x1] %v5301_v29  ;;  %v5066_v8 = vshrl.u32 %v10934_v10, 16  ;;  %v5069_v24 = vshll.u32 %v10934_v10, 16  ;;  %v10932_v30 = vpack.c.bf16 %v4828_v2, %v4828_v2  ;;  %v4700_v61 = vadd.f32 %v12059_v35, %v14713_v54 }
 0x24e   : > { %v10935_v63 = vpack.c.bf16 %v4831_v14, %v4831_v14  ;;  %v4797_v18 = vadd.f32 %v14688_v7, %v4694_v47  ;;  %v4802_v58 = vadd.f32 %v14688_v7, %v4699_v4  ;;  %v4800_v21 = vadd.f32 %v14688_v7, %v4697_v44  ;;  %v5317_v40 = vld [vmem:[#allocation2 + $0x60] sm:$0xf]  ;;  %v12062_v14 = vpop.f32.mrf.mxu0  ;;  %v14866_v47 = vld [vmem:[#allocation2 + $0xc] sm:$0xf] }
 0x24f   : > { %v5068_v52 = vrot.slane %v5066_v8, 7  ;;  %v5049_v51 = vshrl.u32 %v10932_v30, 16  ;;  %v5052_v53 = vshll.u32 %v10932_v30, 16  ;;  %v4803_v9 = vadd.f32 %v14688_v7, %v4700_v61  ;;  %v12369_v17 = vld [vmem:[#allocation4 + $0x1e8] sm:$0xff]   ;;  %v5314_v30 = vld [vmem:[#allocation2 + $0x5c] sm:$0x1] }
 0x250   : > { %v5074_v16 = vshrl.u32 %v10935_v63, 16  ;;  %v5077_v32 = vshll.u32 %v10935_v63, 16  ;;  %v4829_v38 = vmax.f32 %v4797_v18, 0.0  ;;  %v4834_v34 = vmax.f32 %v4802_v58, 0.0  ;;  %v12370_v4 = vld [vmem:[#allocation4 + $0x1a8] sm:$0xff]   ;;  %11892 = vmatprep.subr.bf16.mxu0 %v12369_v17 }
 0x251   : > { %v5071_v54 = vor.u32 %v5069_v24, %v5068_v52  ;;  %v5072_v50 = vrot.slane %v5068_v52, 4  ;;  %v5051_v55 = vrot.slane %v5049_v51, 7  ;;  %v4832_v56 = vmax.f32 %v4800_v21, 0.0  ;;  %11893 = vmatpush3.bf16.msra.mxu0 %v12370_v4  ;;  %v5324_v51 = vld [vmem:[#allocation2 + $0x6c] sm:$0xf] }
 0x252   : > { %v5076_v23 = vrot.slane %v5074_v16, 7  ;;  %v10933_v48 = vpack.c.bf16 %v4829_v38, %v4829_v38  ;;  %v10938_v5 = vpack.c.bf16 %v4834_v34, %v4834_v34  ;;  %v4835_v45 = vmax.f32 %v4803_v9, 0.0  ;;  %v6311_v12 = vld [vmem:[#allocation2 + $0x48] sm:$0xe] }
 0x253   : > { %v5318_v39 = vsel %vm14770_vm13, %v5071_v54, %v5317_v40  ;;  %v5054_v20 = vor.u32 %v5052_v53, %v5051_v55  ;;  %v5055_v1 = vrot.slane %v5051_v55, 4  ;;  %v10936_v43 = vpack.c.bf16 %v4832_v56, %v4832_v56  ;;  %v5331_v40 = vld [vmem:[#allocation2 + $0x78] sm:$0xf]  ;;  %v14879_v54 = vld [vmem:[#allocation2 + $0x10] sm:$0xf] }
 0x254   : > { %5319 = vst [vmem:[#allocation2 + $0x60] sm:$0xf] %v5318_v39  ;;  %v5079_v28 = vor.u32 %v5077_v32, %v5076_v23  ;;  %v5081_v6 = vrot.slane %v5076_v23, 4  ;;  %v5057_v13 = vshrl.u32 %v10933_v48, 16  ;;  %v5060_v35 = vshll.u32 %v10933_v48, 16 }
 0x255   : > { %v5311_v29 = vsel %vm14770_vm13, %v5054_v20, %v5310_v42  ;;  %v5100_v10 = vshrl.u32 %v10938_v5, 16  ;;  %v5103_v2 = vshll.u32 %v10938_v5, 16  ;;  %v5083_v57 = vshrl.u32 %v10936_v43, 16  ;;  %v5413_v56 = vld [vmem:[#allocation2 + $0x14] sm:$0x1]  ;;  %v4602_v20 = vpop.f32.mrf.mxu0 }
 0x256   : > { %5312 = vst [vmem:[#allocation2 + $0x54] sm:$0xf] %v5311_v29  ;;  %v5080_v44 = vsel %vm14781_vm14, %v5072_v50, %v5079_v28  ;;  %v5322_v49 = vsel %vm14358_vm8, %v5081_v6, %v5321_v11  ;;  %v5059_v8 = vrot.slane %v5057_v13, 7  ;;  %v5086_v24 = vshll.u32 %v10936_v43, 16  ;;  %v5335_v48 = vld [vmem:[#allocation2 + $0x80] sm:$0x1] }
 0x257   : > { %5320 = vst [vmem:[#allocation2 + $0x64] sm:$0xf] %v5080_v44  ;;  %5323 = vst [vmem:[#allocation2 + $0x68] sm:$0x1] %v5322_v49  ;;  %v5102_v61 = vrot.slane %v5100_v10, 7  ;;  %v14872_v63 = vrot.slane %v5083_v57, 7  ;;  %v10939_v18 = vpack.c.bf16 %v4835_v45, %v4835_v45  ;;  %v4698_v58 = vadd.f32 %v4589_v15, %v14706_v62 }
 0x258   : > { %v5062_v21 = vor.u32 %v5060_v35, %v5059_v8  ;;  %v5064_v52 = vrot.slane %v5059_v8, 4  ;;  %v4703_v53 = vadd.f32 %v12062_v14, %v14721_v60  ;;  %v5453_v9 = vshrl.u32 %v14866_v47, 16  ;;  %v12373_v60 = vld [vmem:[#allocation4 + $0x148] sm:$0xff]   ;;  %v6296_v39 = vld [vmem:[#allocation2 + $0xc] sm:$0xe] }
 0x259   : > { %v5105_v16 = vor.u32 %v5103_v2, %v5102_v61  ;;  %v5106_v32 = vrot.slane %v5102_v61, 4  ;;  %v5088_v38 = vor.u32 %v5086_v24, %v14872_v63  ;;  %v5089_v34 = vrot.slane %v14872_v63, 4  ;;  %11788 = vmatprep.subr.bf16.mxu1 %v12373_v60  ;;  %v12374_v6 = vld [vmem:[#allocation4 + $0x108] sm:$0xff]   ;;  %v6297_v24 = vld [vmem:[#allocation2 + $0x10] sm:$0xf]  ;;  %v12063_v61 = vpop.f32.mrf.mxu0 }
 0x25a   : > { %v5063_v62 = vsel %vm14781_vm14, %v5055_v1, %v5062_v21  ;;  %v5315_v50 = vsel %vm14358_vm8, %v5064_v52, %v5314_v30  ;;  %v5108_v55 = vshrl.u32 %v10939_v18, 16  ;;  %v5111_v42 = vshll.u32 %v10939_v18, 16  ;;  %11789 = vmatpush3.bf16.msra.mxu1 %v12374_v6  ;;  %v6298_v30 = vld [vmem:[#allocation2 + $0x14] sm:$0x1]  ;;  %v14903_v60 = vld [vmem:[#allocation2 + $0x18] sm:$0xf] }
 0x25b   : > { %5313 = vst [vmem:[#allocation2 + $0x58] sm:$0xf] %v5063_v62  ;;  %5316 = vst [vmem:[#allocation2 + $0x5c] sm:$0x1] %v5315_v50  ;;  %v5332_v15 = vsel %vm14770_vm13, %v5105_v16, %v5331_v40  ;;  %v5325_v23 = vsel %vm14770_vm13, %v5088_v38, %v5324_v51  ;;  %v4801_v5 = vadd.f32 %v14688_v7, %v4698_v58  ;;  %v5455_v11 = vrot.slane %v5453_v9, 4  ;;  %v12334_v63 = vld [vmem:[#allocation2 + $0x24] sm:$0xff]  }
 0x25c   : > { %v4806_v45 = vadd.f32 %v14688_v7, %v4703_v53  ;;  %5333 = vst [vmem:[#allocation2 + $0x78] sm:$0xf] %v5332_v15  ;;  %5326 = vst [vmem:[#allocation2 + $0x6c] sm:$0xf] %v5325_v23  ;;  %v5110_v1 = vrot.slane %v5108_v55, 7  ;;  %v5456_v43 = vshll.u32 %v14866_v47, 16  ;;  %v4605_v15 = vpop.f32.mrf.mxu0 }
 0x25d   : > { %v5462_v28 = vshll.u32 %v14879_v54, 16  ;;  %v4833_v13 = vmax.f32 %v4801_v5, 0.0  ;;  %v5466_v17 = vshrl.u32 %v14879_v54, 16  ;;  %v5472_v29 = vshll.u32 %v5413_v56, 16  ;;  %v5328_v23 = vld [vmem:[#allocation2 + $0x74] sm:$0x1] }
 0x25e   : > { %v4838_v35 = vmax.f32 %v4806_v45, 0.0  ;;  %v5113_v10 = vor.u32 %v5111_v42, %v5110_v1  ;;  %v5115_v2 = vrot.slane %v5110_v1, 4  ;;  %v5458_v57 = vrot.slane %v5456_v43, 5 }
 0x25f   : > { %v5464_v14 = vrot.slane %v5462_v28, 5  ;;  %v10937_v4 = vpack.c.bf16 %v4833_v13, %v4833_v13  ;;  %v5468_v49 = vrot.slane %v5466_v17, 4  ;;  %v5474_v8 = vrot.slane %v5472_v29, 5  ;;  %v12377_v29 = vld [vmem:[#allocation4 + $0x1e0] sm:$0xff]  }
 0x260   : > { %v10942_v44 = vpack.c.bf16 %v4838_v35, %v4838_v35  ;;  %v5114_v18 = vsel %vm14781_vm14, %v5106_v32, %v5113_v10  ;;  %v5336_v58 = vsel %vm14358_vm8, %v5115_v2, %v5335_v48  ;;  %v5459_v21 = vor.u32 %v5458_v57, %v5455_v11  ;;  %v5345_v48 = vld [vmem:[#allocation2 + $0x90] sm:$0xf]  ;;  %v5414_v35 = vld [vmem:[#allocation2 + $0x20] sm:$0x1]  ;;  %11894 = vmatprep.subr.bf16.mxu0 %v12377_v29 }
 0x261   : > { %v10667_v52 = vrot.slane %v6296_v39, 9  ;;  %5334 = vst [vmem:[#allocation2 + $0x7c] sm:$0xf] %v5114_v18  ;;  %5337 = vst [vmem:[#allocation2 + $0x80] sm:$0x1] %v5336_v58  ;;  %v5091_v40 = vshrl.u32 %v10937_v4, 16  ;;  %v5469_v38 = vor.u32 %v5468_v49, %v5464_v14  ;;  %v4701_v32 = vadd.f32 %v4602_v20, %v14716_v59 }
 0x262   : > { %v5094_v51 = vshll.u32 %v10937_v4, 16  ;;  %v5134_v53 = vshrl.u32 %v10942_v44, 16  ;;  %v5137_v9 = vshll.u32 %v10942_v44, 16  ;;  %v5460_v16 = vrot.slane %v5459_v21, 4  ;;  %v12066_v4 = vpop.f32.mrf.mxu0  ;;  %v12378_v21 = vld [vmem:[#allocation4 + $0x1a0] sm:$0xff]  }
 0x263   : > { %v6398_v62 = vrot.slane %v6297_v24, 5  ;;  %v6401_v50 = vrot.slane %v6298_v30, 5  ;;  %v5093_v55 = vrot.slane %v5091_v40, 7  ;;  %v10619_v56 = vcombine.low %v14866_v47, %v14879_v54  ;;  %v14911_v47 = vld [vmem:[#allocation2 + $0x1c] sm:$0xf]  ;;  %11895 = vmatpush3.bf16.msra.mxu0 %v12378_v21 }
 0x264   : > { %v14898_v42 = vrot.slane %v5134_v53, 7  ;;  %v5465_v45 = vsel %vm12742_vm5, %v5460_v16, %v5464_v14  ;;  %v5470_v39 = vrot.slane %v5469_v38, 4  ;;  %v4804_v13 = vadd.f32 %v14688_v7, %v4701_v32  ;;  %v6300_v16 = vld [vmem:[#allocation2 + $0x1c] sm:$0xf]  ;;  %v12379_v38 = vld [vmem:[#allocation4 + $0x1d8] sm:$0xff]  }
 0x265   : > { %v6399_v1 = vsel %vm12732_vm4, %v10667_v52, %v6398_v62  ;;  %v6400_v11 = vrot.slane %v6398_v62, 4  ;;  %v5096_v43 = vor.u32 %v5094_v51, %v5093_v55  ;;  %v5098_v28 = vrot.slane %v5093_v55, 4  ;;  %11896 = vmatprep.subr.bf16.mxu0 %v12379_v38  ;;  %v5349_v38 = vld [vmem:[#allocation2 + $0x98] sm:$0x1] }
 0x266   : > { %v5139_v59 = vor.u32 %v5137_v9, %v14898_v42  ;;  %v5140_v20 = vrot.slane %v14898_v42, 4  ;;  %v5475_v54 = vsel %vm12742_vm5, %v5470_v39, %v5474_v8  ;;  %v5477_v17 = vshrl.u32 %v14903_v60, 16  ;;  %v6299_v9 = vld [vmem:[#allocation2 + $0x18] sm:$0xe]  ;;  %v12385_v39 = vld [vmem:[#allocation4 + $0x1d0] sm:$0xff]  }
 0x267   : > { %v6402_v6 = vsel %vm12732_vm4, %v6400_v11, %v6401_v50  ;;  %v5097_v10 = vsel %vm14781_vm14, %v5089_v34, %v5096_v43  ;;  %v5329_v2 = vsel %vm14358_vm8, %v5098_v28, %v5328_v23  ;;  %v10635_v14 = vcombine.low %v5465_v45, %v5475_v54  ;;  %v14934_v23 = vld [vmem:[#allocation2 + $0x20] sm:$0x1]  ;;  %v12384_v45 = vld [vmem:[#allocation4 + $0x100] sm:$0xff]   ;;  %v5338_v54 = vld [vmem:[#allocation2 + $0x84] sm:$0xf] }
 0x268   : > { %v5346_v57 = vsel %vm14770_vm13, %v5139_v59, %v5345_v48  ;;  %5327 = vst [vmem:[#allocation2 + $0x70] sm:$0xf] %v5097_v10  ;;  %5330 = vst [vmem:[#allocation2 + $0x74] sm:$0x1] %v5329_v2  ;;  %v10683_v44 = vcombine.low %v6399_v1, %v6402_v6  ;;  %v4836_v49 = vmax.f32 %v4804_v13, 0.0  ;;  %v5479_v8 = vrot.slane %v5477_v17, 4 }
 0x269   : > { %5347 = vst [vmem:[#allocation2 + $0x90] sm:$0xf] %v5346_v57  ;;  %v5480_v24 = vshll.u32 %v14903_v60, 16  ;;  %6140 = vmatprep.mubr.bf16.mxu1 %v10635_v14  ;;  %v5486_v34 = vshll.u32 %v14911_v47, 16  ;;  %v5490_v30 = vshrl.u32 %v14911_v47, 16  ;;  %v5496_v18 = vshll.u32 %v5414_v35, 16 }
 0x26a   : > { %v4704_v58 = vadd.f32 %v12063_v61, %v14739_v36  ;;  %6862 = vmatmul.mubr.bf16.gmra.mxu0 %v10683_v44  ;;  %v10940_v52 = vpack.c.bf16 %v4836_v49, %v4836_v49  ;;  %6141 = vmatmul.mubr.bf16.gmra.mxu1 %v10619_v56  ;;  %v4702_v51 = vadd.f32 %v4605_v15, %v14724_v31  ;;  %v12382_v36 = vld [vmem:[#allocation4 + $0x140] sm:$0xff]   ;;  %v4618_v15 = vpop.f32.mrf.mxu0  ;;  %v10668_v28 = vrot.slane %v6299_v9, 9  ;;  %v12386_v57 = vld [vmem:[#allocation4 + $0x190] sm:$0xff]  }
 0x26b   : > { %v5482_v40 = vrot.slane %v5480_v24, 5  ;;  %v4707_v53 = vadd.f32 %v12066_v4, %v14747_v33  ;;  %6869 = vmatprep.mubr.bf16.mxu0 %v12334_v63  ;;  %v5488_v62 = vrot.slane %v5486_v34, 5  ;;  %v5492_v50 = vrot.slane %v5490_v30, 4  ;;  %v12383_v33 = vld [vmem:[#allocation4 + $0x198] sm:$0xff]   ;;  %11790 = vmatprep.subr.bf16.mxu1 %v12382_v36  ;;  %v12389_v36 = vld [vmem:[#allocation4 + $0x188] sm:$0xff]  }
 0x26c   : > { %v5498_v55 = vrot.slane %v5496_v18, 5  ;;  %v4807_v32 = vadd.f32 %v14688_v7, %v4704_v58  ;;  %v5117_v61 = vshrl.u32 %v10940_v52, 16  ;;  %v5120_v56 = vshll.u32 %v10940_v52, 16  ;;  %11791 = vmatpush3.bf16.msra.mxu1 %v12384_v45  ;;  %11897 = vmatpush3.bf16.msra.mxu0 %v12383_v33  ;;  %v14945_v49 = vpop.f32.mrf.mxu0  ;;  %v14951_v52 = vld [vmem:[#allocation2 + $0x24] sm:$0xf] }
 0x26d   : > { %v5483_v48 = vor.u32 %v5482_v40, %v5479_v8  ;;  %v4805_v31 = vadd.f32 %v14688_v7, %v4702_v51  ;;  %v5493_v1 = vor.u32 %v5492_v50, %v5488_v62  ;;  %v4810_v43 = vadd.f32 %v14688_v7, %v4707_v53  ;;  %11898 = vmatprep.subr.bf16.mxu0 %v12385_v39 }
 0x26e   : > { %v4839_v11 = vmax.f32 %v4807_v32, 0.0  ;;  %v14938_v59 = vrot.slane %v5117_v61, 7  ;;  %v6405_v35 = vrot.slane %v6300_v16, 5  ;;  %v6408_v2 = vrot.slane %v14934_v23, 5  ;;  %v12387_v16 = vld [vmem:[#allocation4 + $0x1c8] sm:$0xff]   ;;  %v4621_v23 = vpop.f32.mrf.mxu0  ;;  %v12391_v61 = vld [vmem:[#allocation4 + $0x1c0] sm:$0xff]  }
 0x26f   : > { %v5484_v6 = vrot.slane %v5483_v48, 4  ;;  %v4837_v13 = vmax.f32 %v4805_v31, 0.0  ;;  %v5494_v17 = vrot.slane %v5493_v1, 4  ;;  %v4842_v10 = vmax.f32 %v4810_v43, 0.0  ;;  %v5342_v31 = vld [vmem:[#allocation2 + $0x8c] sm:$0x1] }
 0x270   : > { %v10943_v29 = vpack.c.bf16 %v4839_v11, %v4839_v11  ;;  %v5122_v14 = vor.u32 %v5120_v56, %v14938_v59  ;;  %v5123_v7 = vrot.slane %v14938_v59, 4  ;;  %v6406_v9 = vsel %vm12732_vm4, %v10668_v28, %v6405_v35  ;;  %11899 = vmatpush3.bf16.msra.mxu0 %v12386_v57  ;;  %v5359_v11 = vld [vmem:[#allocation2 + $0xa8] sm:$0xf] }
 0x271   : > { %v5489_v4 = vsel %vm12742_vm5, %v5484_v6, %v5488_v62  ;;  %v10941_v44 = vpack.c.bf16 %v4837_v13, %v4837_v13  ;;  %v5499_v8 = vsel %vm12742_vm5, %v5494_v17, %v5498_v55  ;;  %v10946_v34 = vpack.c.bf16 %v4842_v10, %v4842_v10  ;;  %11900 = vmatprep.subr.bf16.mxu0 %v12387_v16  ;;  %v5415_v6 = vld [vmem:[#allocation2 + $0x2c] sm:$0x1]  ;;  %v12392_v13 = vld [vmem:[#allocation4 + $0x180] sm:$0xff]  }
 0x272   : > { %v5142_v24 = vshrl.u32 %v10943_v29, 16  ;;  %v5145_v63 = vshll.u32 %v10943_v29, 16  ;;  %v5339_v30 = vsel %vm14770_vm13, %v5122_v14, %v5338_v54  ;;  %v10636_v18 = vcombine.low %v5489_v4, %v5499_v8  ;;  %v12070_v29 = vpop.f32.mrf.mxu0 }
 0x273   : > { %v5125_v58 = vshrl.u32 %v10941_v44, 16  ;;  %v5128_v21 = vshll.u32 %v10941_v44, 16  ;;  %5340 = vst [vmem:[#allocation2 + $0x84] sm:$0xf] %v5339_v30  ;;  %v5168_v51 = vshrl.u32 %v10946_v34, 16  ;;  %v5171_v53 = vshll.u32 %v10946_v34, 16 }
 0x274   : > { %v5144_v40 = vrot.slane %v5142_v24, 7  ;;  %6148 = vmatprep.mubr.bf16.mxu1 %v10636_v18  ;;  %v6407_v50 = vrot.slane %v6405_v35, 4  ;;  %v4705_v55 = vadd.f32 %v4618_v15, %v14742_v25  ;;  %v10620_v32 = vcombine.low %v14903_v60, %v14911_v47  ;;  %v14966_v60 = vld [vmem:[%s16700_s2] ss:$0 sm:$0xff]  ;;  %v14969_v15 = vld [vmem:[#allocation2 + $0x28] sm:$0xf]  ;;  %11901 = vmatpush3.bf16.msra.mxu0 %v12389_v36 }
 0x275   : > { %v5127_v62 = vrot.slane %v5125_v58, 7  ;;  %v14958_v33 = vrot.slane %v5168_v51, 7  ;;  %v5501_v45 = vshrl.u32 %v14951_v52, 16  ;;  %11902 = vmatprep.subr.bf16.mxu0 %v12391_v61  ;;  %v5504_v14 = vshll.u32 %v14951_v52, 16 }
 0x276   : > { %v5147_v56 = vor.u32 %v5145_v63, %v5144_v40  ;;  %v5149_v48 = vrot.slane %v5144_v40, 4  ;;  %v6409_v25 = vsel %vm12732_vm4, %v6407_v50, %v6408_v2  ;;  %v4808_v47 = vadd.f32 %v14966_v60, %v4705_v55  ;;  %6149 = vmatmul.mubr.bf16.gmra.mxu1 %v10620_v32  ;;  %v12336_v2 = vld [vmem:[#allocation2 + $0x30] sm:$0xff]   ;;  %v6302_v63 = vld [vmem:[#allocation2 + $0x24] sm:$0xe] }
 0x277   : > { %v5130_v39 = vor.u32 %v5128_v21, %v5127_v62  ;;  %v5132_v1 = vrot.slane %v5127_v62, 4  ;;  %v5173_v59 = vor.u32 %v5171_v53, %v14958_v33  ;;  %v5174_v54 = vrot.slane %v14958_v33, 4  ;;  %v6303_v21 = vld [vmem:[#allocation2 + $0x28] sm:$0xf]  ;;  %v12393_v40 = vld [vmem:[#allocation4 + $0x238] sm:$0xff]  }
 0x278   : > { %v5148_v43 = vsel %vm14781_vm14, %v5140_v20, %v5147_v56  ;;  %v5350_v28 = vsel %vm14358_vm8, %v5149_v48, %v5349_v38  ;;  %v10684_v17 = vcombine.low %v6406_v9, %v6409_v25  ;;  %v4840_v20 = vmax.f32 %v4808_v47, 0.0  ;;  %11903 = vmatpush3.bf16.msra.mxu0 %v12392_v13  ;;  %v5352_v38 = vld [vmem:[#allocation2 + $0x9c] sm:$0xf]  ;;  %12072 = vmatprep.subr.bf16.mxu1 %v12393_v40 }
 0x279   : > { %5348 = vst [vmem:[#allocation2 + $0x94] sm:$0xf] %v5148_v43  ;;  %5351 = vst [vmem:[#allocation2 + $0x98] sm:$0x1] %v5350_v28  ;;  %v5131_v35 = vsel %vm14781_vm14, %v5123_v7, %v5130_v39  ;;  %v5343_v42 = vsel %vm14358_vm8, %v5132_v1, %v5342_v31  ;;  %v5360_v10 = vsel %vm14770_vm13, %v5173_v59, %v5359_v11  ;;  %v5503_v57 = vrot.slane %v5501_v45, 4  ;;  %v4634_v11 = vpop.f32.mrf.mxu0 }
 0x27a   : > { %5341 = vst [vmem:[#allocation2 + $0x88] sm:$0xf] %v5131_v35  ;;  %5344 = vst [vmem:[#allocation2 + $0x8c] sm:$0x1] %v5343_v42  ;;  %v5510_v4 = vshll.u32 %v14969_v15, 16  ;;  %6870 = vmatmul.mubr.bf16.gmra.mxu0 %v10684_v17  ;;  %v10944_v7 = vpack.c.bf16 %v4840_v20, %v4840_v20  ;;  %v5514_v44 = vshrl.u32 %v14969_v15, 16  ;;  %v4708_v24 = vadd.f32 %v14945_v49, %v14750_v41 }
 0x27b   : > { %5361 = vst [vmem:[#allocation2 + $0xa8] sm:$0xf] %v5360_v10  ;;  %v5520_v8 = vshll.u32 %v5415_v6, 16  ;;  %6877 = vmatprep.mubr.bf16.mxu0 %v12336_v2  ;;  %v5506_v34 = vrot.slane %v5504_v14, 5  ;;  %v4706_v18 = vadd.f32 %v4621_v23, %v14753_v26  ;;  %v4711_v58 = vadd.f32 %v12070_v29, %v14764_v3  ;;  %v6304_v3 = vld [vmem:[#allocation2 + $0x2c] sm:$0x1] }
 0x27c   : > { %v5512_v30 = vrot.slane %v5510_v4, 5  ;;  %v5151_v51 = vshrl.u32 %v10944_v7, 16  ;;  %v5154_v53 = vshll.u32 %v10944_v7, 16  ;;  %v5516_v9 = vrot.slane %v5514_v44, 4  ;;  %v15007_v10 = vld [vmem:[#allocation2 + $0x30] sm:$0xf]  ;;  %v12071_v7 = vpop.f32.mrf.mxu0 }
 0x27d   : > { %v5522_v16 = vrot.slane %v5520_v8, 5  ;;  %v5507_v62 = vor.u32 %v5506_v34, %v5503_v57  ;;  %v4811_v50 = vadd.f32 %v14966_v60, %v4708_v24  ;;  %v4809_v41 = vadd.f32 %v14966_v60, %v4706_v18  ;;  %v5363_v8 = vld [vmem:[#allocation2 + $0xb0] sm:$0x1] }
 0x27e   : > { %v4814_v49 = vadd.f32 %v14966_v60, %v4711_v58  ;;  %v14995_v55 = vrot.slane %v5151_v51, 7  ;;  %v5517_v26 = vor.u32 %v5516_v9, %v5512_v30  ;;  %v10669_v32 = vrot.slane %v6302_v63, 9 }
 0x27f   : > { %v6412_v23 = vrot.slane %v6303_v21, 5  ;;  %v5508_v36 = vrot.slane %v5507_v62, 4  ;;  %v4843_v61 = vmax.f32 %v4811_v50, 0.0  ;;  %v4841_v56 = vmax.f32 %v4809_v41, 0.0  ;;  %v12340_v21 = vld [vmem:[#allocation2 + $0x3c] sm:$0xff]  }
 0x280   : > { %v4846_v48 = vmax.f32 %v4814_v49, 0.0  ;;  %v5156_v31 = vor.u32 %v5154_v53, %v14995_v55  ;;  %v5157_v45 = vrot.slane %v14995_v55, 4  ;;  %v5518_v39 = vrot.slane %v5517_v26, 4  ;;  %v5373_v62 = vld [vmem:[#allocation2 + $0xc0] sm:$0xf]  ;;  %v4637_v55 = vpop.f32.mrf.mxu0 }
 0x281   : > { %v6413_v1 = vsel %vm12732_vm4, %v10669_v32, %v6412_v23  ;;  %v5513_v25 = vsel %vm12742_vm5, %v5508_v36, %v5512_v30  ;;  %v10947_v47 = vpack.c.bf16 %v4843_v61, %v4843_v61  ;;  %v10945_v43 = vpack.c.bf16 %v4841_v56, %v4841_v56  ;;  %v5356_v30 = vld [vmem:[#allocation2 + $0xa4] sm:$0x1]  ;;  %v15018_v50 = vld [vmem:[#allocation2 + $0x34] sm:$0xf]  ;;  %v6305_v36 = vld [vmem:[#allocation2 + $0x30] sm:$0xe] }
 0x282   : > { %v10950_v28 = vpack.c.bf16 %v4846_v48, %v4846_v48  ;;  %v5353_v59 = vsel %vm14770_vm13, %v5156_v31, %v5352_v38  ;;  %v5523_v6 = vsel %vm12742_vm5, %v5518_v39, %v5522_v16  ;;  %v6414_v13 = vrot.slane %v6412_v23, 4 }
 0x283   : > { %v6415_v35 = vrot.slane %v6304_v3, 5  ;;  %5354 = vst [vmem:[#allocation2 + $0x9c] sm:$0xf] %v5353_v59  ;;  %v10637_v42 = vcombine.low %v5513_v25, %v5523_v6  ;;  %v5176_v17 = vshrl.u32 %v10947_v47, 16  ;;  %v5179_v20 = vshll.u32 %v10947_v47, 16 }
 0x284   : > { %v5159_v29 = vshrl.u32 %v10945_v43, 16  ;;  %v5162_v2 = vshll.u32 %v10945_v43, 16  ;;  %v5202_v57 = vshrl.u32 %v10950_v28, 16  ;;  %v5205_v14 = vshll.u32 %v10950_v28, 16  ;;  %v6307_v43 = vld [vmem:[#allocation2 + $0x38] sm:$0x1] }
 0x285   : > { %v6416_v4 = vsel %vm12732_vm4, %v6414_v13, %v6415_v35  ;;  %6156 = vmatprep.mubr.bf16.mxu1 %v10637_v42  ;;  %v5178_v44 = vrot.slane %v5176_v17, 7  ;;  %v4709_v34 = vadd.f32 %v4634_v11, %v14756_v0  ;;  %v10621_v58 = vcombine.low %v14951_v52, %v14969_v15  ;;  %v5416_v52 = vld [vmem:[#allocation2 + $0x38] sm:$0x1] }
 0x286   : > { %v5161_v24 = vrot.slane %v5159_v29, 7  ;;  %v10685_v63 = vcombine.low %v6413_v1, %v6416_v4  ;;  %v15012_v18 = vrot.slane %v5202_v57, 7  ;;  %v5525_v40 = vshrl.u32 %v15007_v10, 16  ;;  %v6306_v1 = vld [vmem:[#allocation2 + $0x34] sm:$0xf] }
 0x287   : > { %v5528_v51 = vshll.u32 %v15007_v10, 16  ;;  %v5181_v53 = vor.u32 %v5179_v20, %v5178_v44  ;;  %v5183_v9 = vrot.slane %v5178_v44, 4  ;;  %v4812_v49 = vadd.f32 %v14966_v60, %v4709_v34  ;;  %6157 = vmatmul.mubr.bf16.gmra.mxu1 %v10621_v58 }
 0x288   : > { %v5164_v16 = vor.u32 %v5162_v2, %v5161_v24  ;;  %v5166_v38 = vrot.slane %v5161_v24, 4  ;;  %6878 = vmatmul.mubr.bf16.gmra.mxu0 %v10685_v63  ;;  %v5207_v0 = vor.u32 %v5205_v14, %v15012_v18  ;;  %v5208_v41 = vrot.slane %v15012_v18, 4  ;;  %v15041_v14 = vld [vmem:[#allocation2 + $0x3c] sm:$0xf] }
 0x289   : > { %6885 = vmatprep.mubr.bf16.mxu0 %v12340_v21  ;;  %v5527_v15 = vrot.slane %v5525_v40, 4  ;;  %v5182_v26 = vsel %vm14781_vm14, %v5174_v54, %v5181_v53  ;;  %v5364_v3 = vsel %vm14358_vm8, %v5183_v9, %v5363_v8  ;;  %v4844_v61 = vmax.f32 %v4812_v49, 0.0  ;;  %v5417_v53 = vld [vmem:[#allocation2 + $0x44] sm:$0x1]  ;;  %v6308_v49 = vld [vmem:[#allocation2 + $0x3c] sm:$0xe] }
 0x28a   : > { %v5165_v32 = vsel %vm14781_vm14, %v5157_v45, %v5164_v16  ;;  %v5357_v23 = vsel %vm14358_vm8, %v5166_v38, %v5356_v30  ;;  %5362 = vst [vmem:[#allocation2 + $0xac] sm:$0xf] %v5182_v26  ;;  %5365 = vst [vmem:[#allocation2 + $0xb0] sm:$0x1] %v5364_v3  ;;  %v5374_v33 = vsel %vm14770_vm13, %v5207_v0, %v5373_v62  ;;  %v5530_v56 = vrot.slane %v5528_v51, 5 }
 0x28b   : > { %5355 = vst [vmem:[#allocation2 + $0xa0] sm:$0xf] %v5165_v32  ;;  %5358 = vst [vmem:[#allocation2 + $0xa4] sm:$0x1] %v5357_v23  ;;  %v5534_v54 = vshll.u32 %v15018_v50, 16  ;;  %v5538_v48 = vshrl.u32 %v15018_v50, 16  ;;  %v4712_v45 = vadd.f32 %v12071_v7, %v14766_v27  ;;  %v4710_v39 = vadd.f32 %v4637_v55, %v14759_v22 }
 0x28c   : > { %5375 = vst [vmem:[#allocation2 + $0xc0] sm:$0xf] %v5374_v33  ;;  %v5544_v31 = vshll.u32 %v5416_v52, 16  ;;  %v10948_v11 = vpack.c.bf16 %v4844_v61, %v4844_v61  ;;  %v5531_v25 = vor.u32 %v5530_v56, %v5527_v15  ;;  %v10670_v28 = vrot.slane %v6305_v36, 9  ;;  %v5366_v7 = vld [vmem:[#allocation2 + $0xb4] sm:$0xf] }
 0x28d   : > { %v5536_v47 = vrot.slane %v5534_v54, 5  ;;  %v5540_v59 = vrot.slane %v5538_v48, 4  ;;  %v4815_v13 = vadd.f32 %v14966_v60, %v4712_v45  ;;  %v4813_v35 = vadd.f32 %v14966_v60, %v4710_v39  ;;  %v15051_v51 = vld [vmem:[#allocation2 + $0x40] sm:$0xf]  ;;  %v5377_v52 = vld [vmem:[#allocation2 + $0xc8] sm:$0x1] }
 0x28e   : > { %v5546_v6 = vrot.slane %v5544_v31, 5  ;;  %v5185_v42 = vshrl.u32 %v10948_v11, 16  ;;  %v5188_v17 = vshll.u32 %v10948_v11, 16  ;;  %v5532_v20 = vrot.slane %v5531_v25, 4  ;;  %v5370_v55 = vld [vmem:[#allocation2 + $0xbc] sm:$0x1] }
 0x28f   : > { %v6419_v29 = vrot.slane %v6306_v1, 5  ;;  %v5541_v2 = vor.u32 %v5540_v59, %v5536_v47  ;;  %v4847_v27 = vmax.f32 %v4815_v13, 0.0  ;;  %v4845_v57 = vmax.f32 %v4813_v35, 0.0  ;;  %v12342_v23 = vld [vmem:[#allocation2 + $0x48] sm:$0xff]   ;;  %v6309_v54 = vld [vmem:[#allocation2 + $0x40] sm:$0xf] }
 0x290   : > { %v6422_v22 = vrot.slane %v6307_v43, 5  ;;  %v5187_v4 = vrot.slane %v5185_v42, 7  ;;  %v5537_v44 = vsel %vm12742_vm5, %v5532_v20, %v5536_v47  ;;  %v10622_v30 = vcombine.low %v15007_v10, %v15018_v50  ;;  %v15061_v31 = vld [vmem:[#allocation2 + $0x48] sm:$0xf]  ;;  %v6310_v25 = vld [vmem:[#allocation2 + $0x44] sm:$0x1] }
 0x291   : > { %v6420_v8 = vsel %vm12732_vm4, %v10670_v28, %v6419_v29  ;;  %v6421_v24 = vrot.slane %v6419_v29, 4  ;;  %v5542_v60 = vrot.slane %v5541_v2, 4  ;;  %v10951_v63 = vpack.c.bf16 %v4847_v27, %v4847_v27  ;;  %v15063_v47 = vld [vmem:[#allocation2 + $0x4c] sm:$0xf]  ;;  %v5418_v27 = vld [vmem:[#allocation2 + $0x50] sm:$0x1] }
 0x292   : > { %v10949_v34 = vpack.c.bf16 %v4845_v57, %v4845_v57  ;;  %v5190_v58 = vor.u32 %v5188_v17, %v5187_v4  ;;  %v5191_v21 = vrot.slane %v5187_v4, 4  ;;  %v5549_v9 = vshrl.u32 %v15041_v14, 16  ;;  %v6312_v4 = vld [vmem:[#allocation2 + $0x4c] sm:$0xf] }
 0x293   : > { %v6423_v40 = vsel %vm12732_vm4, %v6421_v24, %v6422_v22  ;;  %v5547_v16 = vsel %vm12742_vm5, %v5542_v60, %v5546_v6  ;;  %v5210_v38 = vshrl.u32 %v10951_v63, 16  ;;  %v5213_v62 = vshll.u32 %v10951_v63, 16 }
 0x294   : > { %v5193_v0 = vshrl.u32 %v10949_v34, 16  ;;  %v5367_v10 = vsel %vm14770_vm13, %v5190_v58, %v5366_v7  ;;  %v10638_v50 = vcombine.low %v5537_v44, %v5547_v16  ;;  %v5196_v15 = vshll.u32 %v10949_v34, 16 }
 0x295   : > { %v10686_v26 = vcombine.low %v6420_v8, %v6423_v40  ;;  %5368 = vst [vmem:[#allocation2 + $0xb4] sm:$0xf] %v5367_v10  ;;  %v5212_v3 = vrot.slane %v5210_v38, 7  ;;  %v5551_v36 = vrot.slane %v5549_v9, 4  ;;  %v5552_v33 = vshll.u32 %v15041_v14, 16 }
 0x296   : > { %v5195_v32 = vrot.slane %v5193_v0, 7  ;;  %6164 = vmatprep.mubr.bf16.mxu1 %v10638_v50  ;;  %v5558_v61 = vshll.u32 %v15051_v51, 16  ;;  %v5562_v56 = vshrl.u32 %v15051_v51, 16  ;;  %v5568_v19 = vshll.u32 %v5417_v53, 16  ;;  %v15089_v53 = vld [vmem:[#allocation2 + $0x54] sm:$0xf] }
 0x297   : > { %6886 = vmatmul.mubr.bf16.gmra.mxu0 %v10686_v26  ;;  %v10671_v48 = vrot.slane %v6308_v49, 9  ;;  %v5215_v45 = vor.u32 %v5213_v62, %v5212_v3  ;;  %v5217_v39 = vrot.slane %v5212_v3, 4  ;;  %6165 = vmatmul.mubr.bf16.gmra.mxu1 %v10622_v30  ;;  %v5554_v43 = vrot.slane %v5552_v33, 5  ;;  %v15091_v0 = vld [vmem:[#allocation2 + $0x58] sm:$0xf] }
 0x298   : > { %v5198_v1 = vor.u32 %v5196_v15, %v5195_v32  ;;  %v5200_v11 = vrot.slane %v5195_v32, 4  ;;  %6893 = vmatprep.mubr.bf16.mxu0 %v12342_v23  ;;  %v5560_v28 = vrot.slane %v5558_v61, 5  ;;  %v5564_v59 = vrot.slane %v5562_v56, 4  ;;  %v12346_v49 = vld [vmem:[#allocation2 + $0x54] sm:$0xff]   ;;  %v5419_v23 = vld [vmem:[#allocation2 + $0x5c] sm:$0x1] }
 0x299   : > { %v5570_v6 = vrot.slane %v5568_v19, 5  ;;  %v5216_v13 = vsel %vm14781_vm14, %v5208_v41, %v5215_v45  ;;  %v5378_v35 = vsel %vm14358_vm8, %v5217_v39, %v5377_v52  ;;  %v5555_v20 = vor.u32 %v5554_v43, %v5551_v36 }
 0x29a   : > { %v5199_v42 = vsel %vm14781_vm14, %v5191_v21, %v5198_v1  ;;  %v5371_v17 = vsel %vm14358_vm8, %v5200_v11, %v5370_v55  ;;  %5376 = vst [vmem:[#allocation2 + $0xc4] sm:$0xf] %v5216_v13  ;;  %5379 = vst [vmem:[#allocation2 + $0xc8] sm:$0x1] %v5378_v35  ;;  %v5565_v29 = vor.u32 %v5564_v59, %v5560_v28  ;;  %v6426_v2 = vrot.slane %v6309_v54, 5 }
 0x29b   : > { %5369 = vst [vmem:[#allocation2 + $0xb8] sm:$0xf] %v5199_v42  ;;  %5372 = vst [vmem:[#allocation2 + $0xbc] sm:$0x1] %v5371_v17  ;;  %v6429_v18 = vrot.slane %v6310_v25, 5  ;;  %v10623_v41 = vcombine.low %v15041_v14, %v15051_v51  ;;  %v5573_v57 = vshrl.u32 %v15061_v31, 16  ;;  %v10624_v32 = vcombine.low %v15061_v31, %v15063_v47 }
 0x29c   : > { %v5576_v37 = vshll.u32 %v15061_v31, 16  ;;  %v5582_v22 = vshll.u32 %v15063_v47, 16  ;;  %v5556_v7 = vrot.slane %v5555_v20, 4  ;;  %v5566_v44 = vrot.slane %v5565_v29, 4  ;;  %v6313_v14 = vld [vmem:[#allocation2 + $0x50] sm:$0x1] }
 0x29d   : > { %v6427_v8 = vsel %vm12732_vm4, %v10671_v48, %v6426_v2  ;;  %v6428_v24 = vrot.slane %v6426_v2, 4  ;;  %v5575_v60 = vrot.slane %v5573_v57, 4  ;;  %v5586_v30 = vshrl.u32 %v15063_v47, 16  ;;  %v6314_v55 = vld [vmem:[#allocation2 + $0x54] sm:$0xe] }
 0x29e   : > { %v5578_v63 = vrot.slane %v5576_v37, 5  ;;  %v5584_v34 = vrot.slane %v5582_v22, 5  ;;  %v5561_v58 = vsel %vm12742_vm5, %v5556_v7, %v5560_v28  ;;  %v5571_v21 = vsel %vm12742_vm5, %v5566_v44, %v5570_v6  ;;  %v15100_v54 = vld [vmem:[#allocation2 + $0x60] sm:$0xf]  ;;  %v6315_v1 = vld [vmem:[#allocation2 + $0x58] sm:$0xf] }
 0x29f   : > { %v6430_v40 = vsel %vm12732_vm4, %v6428_v24, %v6429_v18  ;;  %v5592_v51 = vshll.u32 %v5418_v27, 16  ;;  %v10639_v9 = vcombine.low %v5561_v58, %v5571_v21  ;;  %v5588_v62 = vrot.slane %v5586_v30, 4  ;;  %v6316_v28 = vld [vmem:[#allocation2 + $0x5c] sm:$0x1]  ;;  %v15109_v2 = vld [vmem:[#allocation2 + $0x64] sm:$0xf] }
 0x2a0   : > { %v10687_v16 = vcombine.low %v6427_v8, %v6430_v40  ;;  %v5579_v38 = vor.u32 %v5578_v63, %v5575_v60  ;;  %v10672_v50 = vrot.slane %v6311_v12, 9  ;;  %v6433_v52 = vrot.slane %v6312_v4, 5  ;;  %v5420_v57 = vld [vmem:[#allocation2 + $0x68] sm:$0x1]  ;;  %v12348_v22 = vld [vmem:[#allocation2 + $0x60] sm:$0xff]  }
 0x2a1   : > { %v5594_v10 = vrot.slane %v5592_v51, 5  ;;  %v6436_v15 = vrot.slane %v6313_v14, 5  ;;  %6172 = vmatprep.mubr.bf16.mxu1 %v10639_v9  ;;  %v5589_v3 = vor.u32 %v5588_v62, %v5584_v34  ;;  %v5597_v36 = vshrl.u32 %v15089_v53, 16  ;;  %v6318_v40 = vld [vmem:[#allocation2 + $0x64] sm:$0xf] }
 0x2a2   : > { %6894 = vmatmul.mubr.bf16.gmra.mxu0 %v10687_v16  ;;  %v5580_v26 = vrot.slane %v5579_v38, 4  ;;  %6173 = vmatmul.mubr.bf16.gmra.mxu1 %v10623_v41  ;;  %v6434_v33 = vsel %vm12732_vm4, %v10672_v50, %v6433_v52  ;;  %v6435_v61 = vrot.slane %v6433_v52, 4  ;;  %v5600_v56 = vshll.u32 %v15089_v53, 16  ;;  %v6319_v51 = vld [vmem:[#allocation2 + $0x68] sm:$0x1] }
 0x2a3   : > { %6901 = vmatprep.mubr.bf16.mxu0 %v12346_v49  ;;  %v5606_v19 = vshll.u32 %v15091_v0, 16  ;;  %v5590_v45 = vrot.slane %v5589_v3, 4  ;;  %v5599_v31 = vrot.slane %v5597_v36, 4  ;;  %v5610_v39 = vshrl.u32 %v15091_v0, 16  ;;  %v15125_v62 = vld [vmem:[#allocation2 + $0x6c] sm:$0xf] }
 0x2a4   : > { %v5585_v48 = vsel %vm12742_vm5, %v5580_v26, %v5584_v34  ;;  %v6437_v11 = vsel %vm12732_vm4, %v6435_v61, %v6436_v15  ;;  %v5602_v25 = vrot.slane %v5600_v56, 5  ;;  %v5616_v43 = vshll.u32 %v5419_v23, 16  ;;  %v6317_v34 = vld [vmem:[#allocation2 + $0x60] sm:$0xe]  ;;  %v5421_v23 = vld [vmem:[#allocation2 + $0x74] sm:$0x1] }
 0x2a5   : > { %v5608_v47 = vrot.slane %v5606_v19, 5  ;;  %v5595_v59 = vsel %vm12742_vm5, %v5590_v45, %v5594_v10  ;;  %v10688_v6 = vcombine.low %v6434_v33, %v6437_v11  ;;  %v5612_v13 = vrot.slane %v5610_v39, 4  ;;  %v12352_v39 = vld [vmem:[#allocation2 + $0x6c] sm:$0xff]  }
 0x2a6   : > { %v10673_v35 = vrot.slane %v6314_v55, 9  ;;  %v10640_v42 = vcombine.low %v5585_v48, %v5595_v59  ;;  %v5603_v17 = vor.u32 %v5602_v25, %v5599_v31  ;;  %v5618_v20 = vrot.slane %v5616_v43, 5  ;;  %v6320_v31 = vld [vmem:[#allocation2 + $0x6c] sm:$0xe]  ;;  %v6321_v43 = vld [vmem:[#allocation2 + $0x70] sm:$0xf] }
 0x2a7   : > { %v6440_v29 = vrot.slane %v6315_v1, 5  ;;  %v5613_v18 = vor.u32 %v5612_v13, %v5608_v47  ;;  %v6443_v27 = vrot.slane %v6316_v28, 5  ;;  %v10625_v41 = vcombine.low %v15089_v53, %v15091_v0  ;;  %v15127_v0 = vld [vmem:[#allocation2 + $0x70] sm:$0xf] }
 0x2a8   : > { %v5621_v37 = vshrl.u32 %v15100_v54, 16  ;;  %6180 = vmatprep.mubr.bf16.mxu1 %v10640_v42  ;;  %v5604_v12 = vrot.slane %v5603_v17, 4  ;;  %v5624_v44 = vshll.u32 %v15100_v54, 16  ;;  %v5630_v60 = vshll.u32 %v15109_v2, 16  ;;  %v15143_v42 = vld [vmem:[#allocation2 + $0x78] sm:$0xf] }
 0x2a9   : > { %v6441_v4 = vsel %vm12732_vm4, %v10673_v35, %v6440_v29  ;;  %v6442_v7 = vrot.slane %v6440_v29, 4  ;;  %v5614_v8 = vrot.slane %v5613_v18, 4  ;;  %v5634_v63 = vshrl.u32 %v15109_v2, 16  ;;  %v6322_v35 = vld [vmem:[#allocation2 + $0x74] sm:$0x1] }
 0x2aa   : > { %6902 = vmatmul.mubr.bf16.gmra.mxu0 %v10688_v6  ;;  %v5623_v24 = vrot.slane %v5621_v37, 4  ;;  %6181 = vmatmul.mubr.bf16.gmra.mxu1 %v10624_v32  ;;  %v5609_v30 = vsel %vm12742_vm5, %v5604_v12, %v5608_v47  ;;  %v5626_v58 = vrot.slane %v5624_v44, 5  ;;  %v5640_v21 = vshll.u32 %v5420_v57, 16  ;;  %v15145_v18 = vld [vmem:[#allocation2 + $0x7c] sm:$0xf] }
 0x2ab   : > { %6909 = vmatprep.mubr.bf16.mxu0 %v12348_v22  ;;  %v6444_v14 = vsel %vm12732_vm4, %v6442_v7, %v6443_v27  ;;  %v5619_v53 = vsel %vm12742_vm5, %v5614_v8, %v5618_v20  ;;  %v5632_v16 = vrot.slane %v5630_v60, 5  ;;  %v5636_v38 = vrot.slane %v5634_v63, 4  ;;  %v5422_v7 = vld [vmem:[#allocation2 + $0x80] sm:$0x1] }
 0x2ac   : > { %v10689_v9 = vcombine.low %v6441_v4, %v6444_v14  ;;  %v10641_v49 = vcombine.low %v5609_v30, %v5619_v53  ;;  %v5627_v10 = vor.u32 %v5626_v58, %v5623_v24  ;;  %v5642_v50 = vrot.slane %v5640_v21, 5 }
 0x2ad   : > { %v10674_v52 = vrot.slane %v6317_v34, 9  ;;  %v5637_v15 = vor.u32 %v5636_v38, %v5632_v16  ;;  %v6447_v55 = vrot.slane %v6318_v40, 5  ;;  %v6450_v26 = vrot.slane %v6319_v51, 5  ;;  %v6323_v34 = vld [vmem:[#allocation2 + $0x78] sm:$0xe] }
 0x2ae   : > { %v10626_v3 = vcombine.low %v15100_v54, %v15109_v2  ;;  %6188 = vmatprep.mubr.bf16.mxu1 %v10641_v49  ;;  %v5628_v32 = vrot.slane %v5627_v10, 4  ;;  %v5645_v36 = vshrl.u32 %v15125_v62, 16  ;;  %v5648_v33 = vshll.u32 %v15125_v62, 16  ;;  %v6324_v40 = vld [vmem:[#allocation2 + $0x7c] sm:$0xf] }
 0x2af   : > { %v5654_v61 = vshll.u32 %v15127_v0, 16  ;;  %v5638_v56 = vrot.slane %v5637_v15, 4  ;;  %v6448_v19 = vsel %vm12732_vm4, %v10674_v52, %v6447_v55  ;;  %v6449_v48 = vrot.slane %v6447_v55, 4  ;;  %v6325_v38 = vld [vmem:[#allocation2 + $0x80] sm:$0x1]  ;;  %v12356_v10 = vld [vmem:[#allocation2 + $0x78] sm:$0xff]  }
 0x2b0   : > { %v5658_v45 = vshrl.u32 %v15127_v0, 16  ;;  %v5633_v1 = vsel %vm12742_vm5, %v5628_v32, %v5632_v16  ;;  %v5647_v11 = vrot.slane %v5645_v36, 4  ;;  %v5650_v25 = vrot.slane %v5648_v33, 5  ;;  %v15159_v49 = vld [vmem:[#allocation2 + $0x84] sm:$0xf] }
 0x2b1   : > { %v5656_v47 = vrot.slane %v5654_v61, 5  ;;  %v5643_v28 = vsel %vm12742_vm5, %v5638_v56, %v5642_v50  ;;  %v6451_v59 = vsel %vm12732_vm4, %v6449_v48, %v6450_v26  ;;  %v5664_v13 = vshll.u32 %v5421_v23, 16  ;;  %v15163_v26 = vld [vmem:[#allocation2 + $0x88] sm:$0xf]  ;;  %v5423_v48 = vld [vmem:[#allocation2 + $0x8c] sm:$0x1] }
 0x2b2   : > { %6910 = vmatmul.mubr.bf16.gmra.mxu0 %v10689_v9  ;;  %v5660_v6 = vrot.slane %v5658_v45, 4  ;;  %6189 = vmatmul.mubr.bf16.gmra.mxu1 %v10625_v41  ;;  %v10642_v17 = vcombine.low %v5633_v1, %v5643_v28  ;;  %v10690_v20 = vcombine.low %v6448_v19, %v6451_v59  ;;  %v5651_v29 = vor.u32 %v5650_v25, %v5647_v11  ;;  %v6326_v25 = vld [vmem:[#allocation2 + $0x84] sm:$0xe]  ;;  %v6327_v28 = vld [vmem:[#allocation2 + $0x88] sm:$0xf] }
 0x2b3   : > { %6917 = vmatprep.mubr.bf16.mxu0 %v12352_v39  ;;  %v5666_v57 = vrot.slane %v5664_v13, 5  ;;  %v10675_v37 = vrot.slane %v6320_v31, 9  ;;  %v6454_v22 = vrot.slane %v6321_v43, 5  ;;  %v6457_v4 = vrot.slane %v6322_v35, 5 }
 0x2b4   : > { %v5661_v27 = vor.u32 %v5660_v6, %v5656_v47  ;;  %6196 = vmatprep.mubr.bf16.mxu1 %v10642_v17  ;;  %v5652_v12 = vrot.slane %v5651_v29, 4  ;;  %v5669_v44 = vshrl.u32 %v15143_v42, 16  ;;  %v5672_v8 = vshll.u32 %v15143_v42, 16  ;;  %v6328_v17 = vld [vmem:[#allocation2 + $0x8c] sm:$0x1] }
 0x2b5   : > { %v6456_v41 = vrot.slane %v6454_v22, 4  ;;  %v10627_v60 = vcombine.low %v15125_v62, %v15127_v0  ;;  %v5678_v63 = vshll.u32 %v15145_v18, 16  ;;  %v5682_v21 = vshrl.u32 %v15145_v18, 16  ;;  %v6330_v0 = vld [vmem:[#allocation2 + $0x94] sm:$0xf] }
 0x2b6   : > { %v5662_v24 = vrot.slane %v5661_v27, 4  ;;  %v5657_v30 = vsel %vm12742_vm5, %v5652_v12, %v5656_v47  ;;  %v5671_v14 = vrot.slane %v5669_v44, 4  ;;  %v5674_v58 = vrot.slane %v5672_v8, 5  ;;  %v15173_v47 = vld [vmem:[#allocation2 + $0x90] sm:$0xf]  ;;  %v12360_v44 = vld [vmem:[#allocation2 + $0x84] sm:$0xff]  }
 0x2b7   : > { %v6458_v53 = vsel %vm12732_vm4, %v6456_v41, %v6457_v4  ;;  %v5680_v9 = vrot.slane %v5678_v63, 5  ;;  %v5688_v16 = vshll.u32 %v5422_v7, 16  ;;  %v6455_v52 = vsel %vm12732_vm4, %v10675_v37, %v6454_v22  ;;  %v15190_v7 = vld [vmem:[#allocation2 + $0x94] sm:$0xf]  ;;  %v5424_v63 = vld [vmem:[#allocation2 + $0x98] sm:$0x1] }
 0x2b8   : > { %v5667_v51 = vsel %vm12742_vm5, %v5662_v24, %v5666_v57  ;;  %v5675_v15 = vor.u32 %v5674_v58, %v5671_v14  ;;  %v5684_v55 = vrot.slane %v5682_v21, 4  ;;  %v10691_v32 = vcombine.low %v6455_v52, %v6458_v53 }
 0x2b9   : > { %v10643_v50 = vcombine.low %v5657_v30, %v5667_v51  ;;  %v5690_v23 = vrot.slane %v5688_v16, 5  ;;  %v10676_v36 = vrot.slane %v6323_v34, 9  ;;  %v6461_v33 = vrot.slane %v6324_v40, 5  ;;  %v6329_v16 = vld [vmem:[#allocation2 + $0x90] sm:$0xe] }
 0x2ba   : > { %6918 = vmatmul.mubr.bf16.gmra.mxu0 %v10690_v20  ;;  %6197 = vmatmul.mubr.bf16.gmra.mxu1 %v10626_v3  ;;  %v5676_v61 = vrot.slane %v5675_v15, 4  ;;  %v5685_v56 = vor.u32 %v5684_v55, %v5680_v9  ;;  %v6464_v19 = vrot.slane %v6325_v38, 5  ;;  %v5693_v45 = vshrl.u32 %v15159_v49, 16 }
 0x2bb   : > { %6925 = vmatprep.mubr.bf16.mxu0 %v12356_v10  ;;  %6204 = vmatprep.mubr.bf16.mxu1 %v10643_v50  ;;  %v6463_v31 = vrot.slane %v6461_v33, 4  ;;  %v10628_v39 = vcombine.low %v15143_v42, %v15145_v18  ;;  %v5696_v1 = vshll.u32 %v15159_v49, 16  ;;  %v5702_v11 = vshll.u32 %v15163_v26, 16 }
 0x2bc   : > { %v5686_v54 = vrot.slane %v5685_v56, 4  ;;  %v15177_v2 = vsel %vm12732_vm4, %v10676_v36, %v6461_v33  ;;  %v5695_v3 = vrot.slane %v5693_v45, 4  ;;  %v5706_v43 = vshrl.u32 %v15163_v26, 16  ;;  %v15215_v36 = vld [vmem:[#allocation2 + $0xa0] sm:$0xf] }
 0x2bd   : > { %v15182_v59 = vsel %vm12732_vm4, %v6463_v31, %v6464_v19  ;;  %v5698_v6 = vrot.slane %v5696_v1, 5  ;;  %v5704_v13 = vrot.slane %v5702_v11, 5  ;;  %v5712_v35 = vshll.u32 %v5423_v48, 16 }
 0x2be   : > { %v5681_v20 = vsel %vm12742_vm5, %v5676_v61, %v5680_v9  ;;  %v5691_v29 = vsel %vm12742_vm5, %v5686_v54, %v5690_v23  ;;  %v10692_v27 = vcombine.low %v15177_v2, %v15182_v59  ;;  %v5708_v57 = vrot.slane %v5706_v43, 4  ;;  %v15213_v23 = vld [vmem:[#allocation2 + $0x9c] sm:$0xf]  ;;  %v12364_v43 = vld [vmem:[#allocation2 + $0x90] sm:$0xff]  }
 0x2bf   : > { %v10644_v37 = vcombine.low %v5681_v20, %v5691_v29  ;;  %v5699_v22 = vor.u32 %v5698_v6, %v5695_v3  ;;  %v10677_v12 = vrot.slane %v6326_v25, 9  ;;  %v6468_v4 = vrot.slane %v6327_v28, 5  ;;  %v5425_v25 = vld [vmem:[#allocation2 + $0xa4] sm:$0x1] }
 0x2c0   : > { %v5709_v8 = vor.u32 %v5708_v57, %v5704_v13  ;;  %v5714_v24 = vrot.slane %v5712_v35, 5  ;;  %v6471_v41 = vrot.slane %v6328_v17, 5  ;;  %v5717_v34 = vshrl.u32 %v15173_v47, 16  ;;  %v6332_v35 = vld [vmem:[#allocation2 + $0x9c] sm:$0xe] }
 0x2c1   : > { %v5700_v30 = vrot.slane %v5699_v22, 4  ;;  %v6470_v14 = vrot.slane %v6468_v4, 4  ;;  %v10629_v58 = vcombine.low %v15159_v49, %v15163_v26  ;;  %v5720_v21 = vshll.u32 %v15173_v47, 16 }
 0x2c2   : > { %6926 = vmatmul.mubr.bf16.gmra.mxu0 %v10691_v32  ;;  %6205 = vmatmul.mubr.bf16.gmra.mxu1 %v10627_v60  ;;  %v5710_v40 = vrot.slane %v5709_v8, 4  ;;  %v5719_v51 = vrot.slane %v5717_v34, 4  ;;  %v5726_v53 = vshll.u32 %v15190_v7, 16  ;;  %v5730_v9 = vshrl.u32 %v15190_v7, 16  ;;  %v6331_v60 = vld [vmem:[#allocation2 + $0x98] sm:$0x1] }
 0x2c3   : > { %6933 = vmatprep.mubr.bf16.mxu0 %v12360_v44  ;;  %6212 = vmatprep.mubr.bf16.mxu1 %v10644_v37  ;;  %v15203_v38 = vsel %vm12732_vm4, %v10677_v12, %v6468_v4  ;;  %v15207_v10 = vsel %vm12732_vm4, %v6470_v14, %v6471_v41  ;;  %v5722_v50 = vrot.slane %v5720_v21, 5  ;;  %v5736_v62 = vshll.u32 %v5424_v63, 16  ;;  %v6333_v37 = vld [vmem:[#allocation2 + $0xa0] sm:$0xf]  ;;  %v6334_v44 = vld [vmem:[#allocation2 + $0xa4] sm:$0x1] }
 0x2c4   : > { %v5705_v52 = vsel %vm12742_vm5, %v5700_v30, %v5704_v13  ;;  %v5715_v15 = vsel %vm12742_vm5, %v5710_v40, %v5714_v24  ;;  %v5728_v55 = vrot.slane %v5726_v53, 5  ;;  %v5732_v32 = vrot.slane %v5730_v9, 4  ;;  %v15238_v8 = vld [vmem:[#allocation2 + $0xa8] sm:$0xf] }
 0x2c5   : > { %v10645_v33 = vcombine.low %v5705_v52, %v5715_v15  ;;  %v10693_v61 = vcombine.low %v15203_v38, %v15207_v10  ;;  %v5723_v56 = vor.u32 %v5722_v50, %v5719_v51  ;;  %v5738_v19 = vrot.slane %v5736_v62, 5  ;;  %v5426_v51 = vld [vmem:[#allocation2 + $0xb0] sm:$0x1]  ;;  %v12368_v52 = vld [vmem:[#allocation2 + $0x9c] sm:$0xff]  }
 0x2c6   : > { %v5733_v48 = vor.u32 %v5732_v32, %v5728_v55  ;;  %v10678_v45 = vrot.slane %v6329_v16, 9  ;;  %v6475_v31 = vrot.slane %v6330_v0, 5  ;;  %v6478_v1 = vrot.slane %v6331_v60, 5  ;;  %v6335_v60 = vld [vmem:[#allocation2 + $0xa8] sm:$0xe] }
 0x2c7   : > { %v5724_v11 = vrot.slane %v5723_v56, 4  ;;  %v5741_v54 = vshrl.u32 %v15213_v23, 16  ;;  %v5744_v2 = vshll.u32 %v15213_v23, 16  ;;  %v5750_v3 = vshll.u32 %v15215_v36, 16  ;;  %v6336_v56 = vld [vmem:[#allocation2 + $0xac] sm:$0xf] }
 0x2c8   : > { %v5734_v28 = vrot.slane %v5733_v48, 4  ;;  %v15224_v59 = vsel %vm12732_vm4, %v10678_v45, %v6475_v31  ;;  %v6477_v6 = vrot.slane %v6475_v31, 4  ;;  %v5754_v13 = vshrl.u32 %v15215_v36, 16 }
 0x2c9   : > { %v5729_v17 = vsel %vm12742_vm5, %v5724_v11, %v5728_v55  ;;  %v5743_v20 = vrot.slane %v5741_v54, 4  ;;  %v5746_v29 = vrot.slane %v5744_v2, 5  ;;  %v5752_v57 = vrot.slane %v5750_v3, 5  ;;  %v15260_v11 = vld [vmem:[#allocation2 + $0xb4] sm:$0xf] }
 0x2ca   : > { %6934 = vmatmul.mubr.bf16.gmra.mxu0 %v10692_v27  ;;  %6213 = vmatmul.mubr.bf16.gmra.mxu1 %v10628_v39  ;;  %v5739_v22 = vsel %vm12742_vm5, %v5734_v28, %v5738_v19  ;;  %v15236_v12 = vsel %vm12732_vm4, %v6477_v6, %v6478_v1  ;;  %v5756_v27 = vrot.slane %v5754_v13, 4  ;;  %v5760_v4 = vshll.u32 %v5425_v25, 16  ;;  %v15244_v39 = vld [vmem:[#allocation2 + $0xac] sm:$0xf]  ;;  %v6337_v1 = vld [vmem:[#allocation2 + $0xb0] sm:$0x1] }
 0x2cb   : > { %6941 = vmatprep.mubr.bf16.mxu0 %v12364_v43  ;;  %6220 = vmatprep.mubr.bf16.mxu1 %v10645_v33  ;;  %v10646_v24 = vcombine.low %v5729_v17, %v5739_v22  ;;  %v10694_v41 = vcombine.low %v15224_v59, %v15236_v12  ;;  %v10630_v42 = vcombine.low %v15173_v47, %v15190_v7  ;;  %v10679_v30 = vrot.slane %v6332_v35, 9  ;;  %v15269_v43 = vld [vmem:[#allocation2 + $0xb8] sm:$0xf]  ;;  %v5427_v17 = vld [vmem:[#allocation2 + $0xbc] sm:$0x1] }
 0x2cc   : > { %v5747_v18 = vor.u32 %v5746_v29, %v5743_v20  ;;  %v5757_v63 = vor.u32 %v5756_v27, %v5752_v57  ;;  %v5762_v34 = vrot.slane %v5760_v4, 5  ;;  %v6482_v14 = vrot.slane %v6333_v37, 5  ;;  %v15281_v37 = vld [vmem:[#allocation2 + $0x18] sm:$0xf] }
 0x2cd   : > { %v6485_v40 = vrot.slane %v6334_v44, 5  ;;  %v5765_v53 = vshrl.u32 %v15238_v8, 16  ;;  %v5768_v9 = vshll.u32 %v15238_v8, 16  ;;  %v10631_v62 = vcombine.low %v15213_v23, %v15215_v36 }
 0x2ce   : > { %v5748_v21 = vrot.slane %v5747_v18, 4  ;;  %v5758_v16 = vrot.slane %v5757_v63, 4  ;;  %v6484_v50 = vrot.slane %v6482_v14, 4  ;;  %v5774_v0 = vshll.u32 %v15244_v39, 16 }
 0x2cf   : > { %v5767_v55 = vrot.slane %v5765_v53, 4  ;;  %v5770_v32 = vrot.slane %v5768_v9, 5  ;;  %v5778_v33 = vshrl.u32 %v15244_v39, 16  ;;  %v5784_v31 = vshll.u32 %v5426_v51, 16  ;;  %v12372_v9 = vld [vmem:[#allocation2 + $0xa8] sm:$0xff]  }
 0x2d0   : > { %v5753_v15 = vsel %vm12742_vm5, %v5748_v21, %v5752_v57  ;;  %v5763_v19 = vsel %vm12742_vm5, %v5758_v16, %v5762_v34  ;;  %v15258_v48 = vsel %vm12732_vm4, %v6484_v50, %v6485_v40  ;;  %v5776_v45 = vrot.slane %v5774_v0, 5 }
 0x2d1   : > { %v10647_v25 = vcombine.low %v5753_v15, %v5763_v19  ;;  %v15267_v54 = vsel %vm12732_vm4, %v10679_v30, %v6482_v14  ;;  %v5771_v2 = vor.u32 %v5770_v32, %v5767_v55  ;;  %v5780_v3 = vrot.slane %v5778_v33, 4  ;;  %v6340_v14 = vld [vmem:[#allocation2 + $0xbc] sm:$0x1]  ;;  %v8232_v33 = vld [vmem:[#allocation2 + $0x20] sm:$0x1] }
 0x2d2   : > { %6942 = vmatmul.mubr.bf16.gmra.mxu0 %v10693_v61  ;;  %6221 = vmatmul.mubr.bf16.gmra.mxu1 %v10629_v58  ;;  %v10695_v28 = vcombine.low %v15267_v54, %v15258_v48  ;;  %v5786_v6 = vrot.slane %v5784_v31, 5  ;;  %v10680_v38 = vrot.slane %v6335_v60, 9  ;;  %v6489_v10 = vrot.slane %v6336_v56, 5  ;;  %v6338_v58 = vld [vmem:[#allocation2 + $0xb4] sm:$0xe] }
 0x2d3   : > { %6949 = vmatprep.mubr.bf16.mxu0 %v12368_v52  ;;  %6228 = vmatprep.mubr.bf16.mxu1 %v10646_v24  ;;  %v5772_v61 = vrot.slane %v5771_v2, 4  ;;  %v5781_v13 = vor.u32 %v5780_v3, %v5776_v45  ;;  %v6492_v35 = vrot.slane %v6337_v1, 5  ;;  %v5789_v20 = vshrl.u32 %v15260_v11, 16  ;;  %v6339_v24 = vld [vmem:[#allocation2 + $0xb8] sm:$0xf] }
 0x2d4   : > { %v6491_v29 = vrot.slane %v6489_v10, 4  ;;  %v10632_v57 = vcombine.low %v15238_v8, %v15244_v39  ;;  %v5792_v49 = vshll.u32 %v15260_v11, 16  ;;  %v5798_v26 = vshll.u32 %v15269_v43, 16  ;;  %v15298_v52 = vld [vmem:[#allocation2 + $0x1c] sm:$0xf] }
 0x2d5   : > { %v5782_v22 = vrot.slane %v5781_v13, 4  ;;  %v15285_v27 = vsel %vm12732_vm4, %v10680_v38, %v6489_v10  ;;  %v5791_v4 = vrot.slane %v5789_v20, 4  ;;  %v5802_v44 = vshrl.u32 %v15269_v43, 16  ;;  %v7080_v38 = vld [vmem:[#allocation2 + $0x14] sm:$0x1] }
 0x2d6   : > { %v15290_v18 = vsel %vm12732_vm4, %v6491_v29, %v6492_v35  ;;  %v5794_v63 = vrot.slane %v5792_v49, 5  ;;  %v5800_v34 = vrot.slane %v5798_v26, 5  ;;  %v5808_v30 = vshll.u32 %v5427_v17, 16  ;;  %v7510_v35 = vld [vmem:[#allocation2 + $0xc] sm:$0xe] }
 0x2d7   : > { %v5777_v21 = vsel %vm12742_vm5, %v5772_v61, %v5776_v45  ;;  %v5787_v40 = vsel %vm12742_vm5, %v5782_v22, %v5786_v6  ;;  %v10696_v51 = vcombine.low %v15285_v27, %v15290_v18  ;;  %v5804_v53 = vrot.slane %v5802_v44, 4  ;;  %v7079_v6 = vld [vmem:[#allocation2 + $0x10] sm:$0xf]  ;;  %v7078_v44 = vld [vmem:[#allocation2 + $0xc] sm:$0xf] }
 0x2d8   : > { %v10648_v16 = vcombine.low %v5777_v21, %v5787_v40  ;;  %v5795_v50 = vor.u32 %v5794_v63, %v5791_v4  ;;  %v10681_v0 = vrot.slane %v6338_v58, 9  ;;  %v6496_v60 = vrot.slane %v6339_v24, 5  ;;  %v12376_v24 = vld [vmem:[#allocation2 + $0xb4] sm:$0xff]   ;;  %v15330_v21 = vld [vmem:[#allocation2 + $0x24] sm:$0xf] }
 0x2d9   : > { %v5805_v15 = vor.u32 %v5804_v53, %v5800_v34  ;;  %v5810_v55 = vrot.slane %v5808_v30, 5  ;;  %v6499_v32 = vrot.slane %v6340_v14, 5  ;;  %v8249_v56 = vshrl.u32 %v15281_v37, 16 }
 0x2da   : > { %6950 = vmatmul.mubr.bf16.gmra.mxu0 %v10694_v41  ;;  %6229 = vmatmul.mubr.bf16.gmra.mxu1 %v10630_v42  ;;  %v5796_v19 = vrot.slane %v5795_v50, 4  ;;  %v6498_v45 = vrot.slane %v6496_v60, 4  ;;  %v10633_v31 = vcombine.low %v15260_v11, %v15269_v43  ;;  %v8252_v1 = vshll.u32 %v15281_v37, 16 }
 0x2db   : > { %6957 = vmatprep.mubr.bf16.mxu0 %v12372_v9  ;;  %6236 = vmatprep.mubr.bf16.mxu1 %v10647_v25  ;;  %v5806_v59 = vrot.slane %v5805_v15, 4  ;;  %v8251_v12 = vrot.slane %v8249_v56, 4  ;;  %v8258_v41 = vshll.u32 %v15298_v52, 16  ;;  %v8262_v2 = vshrl.u32 %v15298_v52, 16 }
 0x2dc   : > { %v15314_v3 = vsel %vm12732_vm4, %v10681_v0, %v6496_v60  ;;  %v15318_v47 = vsel %vm12732_vm4, %v6498_v45, %v6499_v32  ;;  %v8254_v7 = vrot.slane %v8252_v1, 5  ;;  %v8268_v42 = vshll.u32 %v8232_v33, 16  ;;  %v15342_v32 = vld [vmem:[#allocation2 + $0x28] sm:$0xf]  ;;  %v8233_v33 = vld [vmem:[#allocation2 + $0x2c] sm:$0x1] }
 0x2dd   : > { %v5801_v25 = vsel %vm12742_vm5, %v5796_v19, %v5800_v34  ;;  %v5811_v10 = vsel %vm12742_vm5, %v5806_v59, %v5810_v55  ;;  %v8260_v61 = vrot.slane %v8258_v41, 5  ;;  %v8264_v13 = vrot.slane %v8262_v2, 4  ;;  %v7082_v19 = vld [vmem:[#allocation2 + $0x1c] sm:$0xf]  ;;  %v7083_v45 = vld [vmem:[#allocation2 + $0x20] sm:$0x1] }
 0x2de   : > { %v15324_v17 = vcombine.low %v5801_v25, %v5811_v10  ;;  %v10697_v20 = vcombine.low %v15314_v3, %v15318_v47  ;;  %v8255_v29 = vor.u32 %v8254_v7, %v8251_v12  ;;  %v8270_v49 = vrot.slane %v8268_v42, 5 }
 0x2df   : > { %v8265_v26 = vor.u32 %v8264_v13, %v8260_v61  ;;  %v7136_v58 = vshll.u32 %v7079_v6, 16  ;;  %v7140_v22 = vshrl.u32 %v7079_v6, 16  ;;  %v7146_v4 = vshll.u32 %v7080_v38, 16  ;;  %v7511_v13 = vld [vmem:[#allocation2 + $0x18] sm:$0xe] }
 0x2e0   : > { %v8256_v63 = vrot.slane %v8255_v29, 4  ;;  %v10794_v34 = vcombine.low %v15281_v37, %v15298_v52  ;;  %v10730_v30 = vrot.slane %v7510_v35, 9  ;;  %v7576_v14 = vrot.slane %v7079_v6, 5  ;;  %v12381_v35 = vld [vmem:[#allocation2 + $0xc0] sm:$0xff]  }
 0x2e1   : > { %v8266_v40 = vrot.slane %v8265_v26, 4  ;;  %v7138_v53 = vrot.slane %v7136_v58, 5  ;;  %v7142_v9 = vrot.slane %v7140_v22, 4  ;;  %v7579_v50 = vrot.slane %v7080_v38, 5  ;;  %v7081_v22 = vld [vmem:[#allocation2 + $0x18] sm:$0xf] }
 0x2e2   : > { %6958 = vmatmul.mubr.bf16.gmra.mxu0 %v10695_v28  ;;  %6237 = vmatmul.mubr.bf16.gmra.mxu1 %v10631_v62  ;;  %v8261_v0 = vsel %vm12742_vm5, %v8256_v63, %v8260_v61  ;;  %v7148_v60 = vrot.slane %v7146_v4, 5  ;;  %v7578_v15 = vrot.slane %v7576_v14, 4  ;;  %v7127_v55 = vshrl.u32 %v7078_v44, 16 }
 0x2e3   : > { %6965 = vmatprep.mubr.bf16.mxu0 %v12376_v24  ;;  %6244 = vmatprep.mubr.bf16.mxu1 %v10648_v16  ;;  %v8271_v48 = vsel %vm12742_vm5, %v8266_v40, %v8270_v49  ;;  %v7143_v54 = vor.u32 %v7142_v9, %v7138_v53  ;;  %v7130_v28 = vshll.u32 %v7078_v44, 16  ;;  %v8273_v56 = vshrl.u32 %v15330_v21, 16 }
 0x2e4   : > { %v15347_v23 = vsel %vm12732_vm4, %v10730_v30, %v7576_v14  ;;  %v15351_v36 = vsel %vm12732_vm4, %v7578_v15, %v7579_v50  ;;  %v7129_v62 = vrot.slane %v7127_v55, 4  ;;  %v8276_v16 = vshll.u32 %v15330_v21, 16  ;;  %v15370_v50 = vld [vmem:[#allocation2 + $0x30] sm:$0xf] }
 0x2e5   : > { %v15354_v1 = vcombine.low %v8261_v0, %v8271_v48  ;;  %v7144_v59 = vrot.slane %v7143_v54, 4  ;;  %v7132_v12 = vrot.slane %v7130_v28, 5  ;;  %v8275_v41 = vrot.slane %v8273_v56, 4  ;;  %v8234_v28 = vld [vmem:[#allocation2 + $0x38] sm:$0x1] }
 0x2e6   : > { %v8278_v2 = vrot.slane %v8276_v16, 5  ;;  %v8282_v7 = vshll.u32 %v15342_v32, 16  ;;  %v8286_v42 = vshrl.u32 %v15342_v32, 16  ;;  %v8292_v6 = vshll.u32 %v8233_v33, 16 }
 0x2e7   : > { %v10762_v38 = vcombine.low %v15347_v23, %v15351_v36  ;;  %v7133_v25 = vor.u32 %v7132_v12, %v7129_v62  ;;  %v7164_v10 = vshrl.u32 %v7082_v19, 16  ;;  %v7170_v61 = vshll.u32 %v7083_v45, 16  ;;  %v7085_v12 = vld [vmem:[#allocation2 + $0x28] sm:$0xf]  ;;  %v15419_v36 = vld [vmem:[#allocation2 + $0x3c] sm:$0xf] }
 0x2e8   : > { %v7149_v29 = vsel %vm12742_vm5, %v7144_v59, %v7148_v60  ;;  %v8279_v49 = vor.u32 %v8278_v2, %v8275_v41  ;;  %v8284_v26 = vrot.slane %v8282_v7, 5  ;;  %v8288_v58 = vrot.slane %v8286_v42, 4  ;;  %v15375_v60 = vld [vmem:[#allocation2 + $0x34] sm:$0xf]  ;;  %v7086_v41 = vld [vmem:[#allocation2 + $0x2c] sm:$0x1] }
 0x2e9   : > { %v7134_v4 = vrot.slane %v7133_v25, 4  ;;  %v8294_v44 = vrot.slane %v8292_v6, 5  ;;  %v7166_v24 = vrot.slane %v7164_v10, 4  ;;  %v15365_v63 = vrot.slane %v7170_v61, 5  ;;  %v7512_v25 = vld [vmem:[#allocation2 + $0x24] sm:$0xe] }
 0x2ea   : > { %6966 = vmatmul.mubr.bf16.gmra.mxu0 %v10696_v51  ;;  %6245 = vmatmul.mubr.bf16.gmra.mxu1 %v10632_v57  ;;  %v8280_v30 = vrot.slane %v8279_v49, 4  ;;  %v8289_v14 = vor.u32 %v8288_v58, %v8284_v26  ;;  %v10731_v40 = vrot.slane %v7511_v13, 9  ;;  %v7583_v9 = vrot.slane %v7082_v19, 5 }
 0x2eb   : > { %6973 = vmatprep.mubr.bf16.mxu0 %v12381_v35  ;;  %6252 = vmatprep.mubr.bf16.mxu1 %v15324_v17  ;;  %v7139_v27 = vsel %vm12742_vm5, %v7134_v4, %v7138_v53  ;;  %v7586_v18 = vrot.slane %v7083_v45, 5  ;;  %v7151_v51 = vshrl.u32 %v7081_v22, 16  ;;  %v7154_v0 = vshll.u32 %v7081_v22, 16  ;;  %v7084_v4 = vld [vmem:[#allocation2 + $0x24] sm:$0xf] }
 0x2ec   : > { %v15377_v15 = vcombine.low %v7139_v27, %v7149_v29  ;;  %v8285_v8 = vsel %vm12742_vm5, %v8280_v30, %v8284_v26  ;;  %v8290_v39 = vrot.slane %v8289_v14, 4  ;;  %v10795_v57 = vcombine.low %v15330_v21, %v15342_v32 }
 0x2ed   : > { %v7585_v55 = vrot.slane %v7583_v9, 4  ;;  %v7153_v48 = vrot.slane %v7151_v51, 4  ;;  %v7156_v17 = vrot.slane %v7154_v0, 5  ;;  %v7160_v54 = vshll.u32 %v7082_v19, 16 }
 0x2ee   : > { %v8295_v53 = vsel %vm12742_vm5, %v8290_v39, %v8294_v44  ;;  %v8297_v33 = vshrl.u32 %v15370_v50, 16  ;;  %v8300_v56 = vshll.u32 %v15370_v50, 16  ;;  %v8306_v62 = vshll.u32 %v15375_v60, 16  ;;  %v8235_v39 = vld [vmem:[#allocation2 + $0x44] sm:$0x1] }
 0x2ef   : > { %v15390_v16 = vsel %vm12732_vm4, %v10731_v40, %v7583_v9  ;;  %v15394_v45 = vsel %vm12732_vm4, %v7585_v55, %v7586_v18  ;;  %v7157_v59 = vor.u32 %v7156_v17, %v7153_v48  ;;  %v7162_v19 = vrot.slane %v7160_v54, 5  ;;  %v12396_v54 = vld [vmem:[#allocation4 + $0x230] sm:$0xff]  }
 0x2f0   : > { %v10811_v2 = vcombine.low %v8285_v8, %v8295_v53  ;;  %v8299_v7 = vrot.slane %v8297_v33, 4  ;;  %v8302_v42 = vrot.slane %v8300_v56, 5  ;;  %v15396_v6 = vrot.slane %v8306_v62, 5  ;;  %v15444_v62 = vld [vmem:[#allocation2 + $0x34] sm:$0xf] }
 0x2f1   : > { %v7158_v10 = vrot.slane %v7157_v59, 4  ;;  %v7167_v61 = vor.u32 %v7166_v24, %v7162_v19  ;;  %v8310_v13 = vshrl.u32 %v15375_v60, 16  ;;  %v8316_v35 = vshll.u32 %v8234_v28, 16 }
 0x2f2   : > { %6974 = vmatmul.mubr.bf16.gmra.mxu0 %v10697_v20  ;;  %6253 = vmatmul.mubr.bf16.gmra.mxu1 %v10633_v31  ;;  %v10763_v29 = vcombine.low %v15390_v16, %v15394_v45  ;;  %v8303_v49 = vor.u32 %v8302_v42, %v8299_v7  ;;  %v7188_v26 = vshrl.u32 %v7085_v12, 16  ;;  %v7194_v58 = vshll.u32 %v7086_v41, 16  ;;  %v15446_v16 = vld [vmem:[#allocation2 + $0x38] sm:$0x1]  ;;  %v7513_v42 = vld [vmem:[#allocation2 + $0x30] sm:$0xe] }
 0x2f3   : > { %8952 = vmatprep.mubr.bf16.mxu0 %v15354_v1  ;;  %7974 = vmatprep.mubr.bf16.mxu1 %v10762_v38  ;;  %v7163_v3 = vsel %vm12742_vm5, %v7158_v10, %v7162_v19  ;;  %v7168_v47 = vrot.slane %v7167_v61, 4  ;;  %v8312_v20 = vrot.slane %v8310_v13, 4  ;;  %v10732_v22 = vrot.slane %v7512_v25, 9  ;;  %v15421_v38 = vld [vmem:[#allocation2 + $0x40] sm:$0xf] }
 0x2f4   : > { %v8304_v11 = vrot.slane %v8303_v49, 4  ;;  %v8318_v43 = vrot.slane %v8316_v35, 5  ;;  %v7190_v31 = vrot.slane %v7188_v26, 4  ;;  %v7590_v1 = vrot.slane %v7085_v12, 5  ;;  %v12399_v10 = vld [vmem:[#allocation4 + $0x228] sm:$0xff]  }
 0x2f5   : > { %v7173_v44 = vsel %vm12742_vm5, %v7168_v47, %v15365_v63  ;;  %v8313_v24 = vor.u32 %v8312_v20, %v15396_v6  ;;  %v15417_v30 = vrot.slane %v7194_v58, 5  ;;  %v7593_v23 = vrot.slane %v7086_v41, 5  ;;  %v7087_v49 = vld [vmem:[#allocation2 + $0x30] sm:$0xf] }
 0x2f6   : > { %v15423_v14 = vcombine.low %v7163_v3, %v7173_v44  ;;  %v8309_v40 = vsel %vm12742_vm5, %v8304_v11, %v15396_v6  ;;  %v7592_v9 = vrot.slane %v7590_v1, 4  ;;  %v10796_v27 = vcombine.low %v15370_v50, %v15375_v60  ;;  %v15499_v50 = vld [vmem:[#allocation2 + $0x54] sm:$0xf]  ;;  %v15501_v60 = vld [vmem:[#allocation2 + $0x58] sm:$0xf] }
 0x2f7   : > { %v8314_v63 = vrot.slane %v8313_v24, 4  ;;  %v7175_v18 = vshrl.u32 %v7084_v4, 16  ;;  %v7178_v51 = vshll.u32 %v7084_v4, 16  ;;  %v7184_v0 = vshll.u32 %v7085_v12, 16 }
 0x2f8   : > { %v15432_v8 = vsel %vm12732_vm4, %v7592_v9, %v7593_v23  ;;  %v8321_v55 = vshrl.u32 %v15419_v36, 16  ;;  %v8324_v48 = vshll.u32 %v15419_v36, 16  ;;  %v8330_v17 = vshll.u32 %v15421_v38, 16  ;;  %v15466_v23 = vld [vmem:[#allocation2 + $0x4c] sm:$0xf] }
 0x2f9   : > { %v8319_v53 = vsel %vm12742_vm5, %v8314_v63, %v8318_v43  ;;  %v7591_v28 = vsel %vm12732_vm4, %v10732_v22, %v7590_v1  ;;  %v7177_v33 = vrot.slane %v7175_v18, 4  ;;  %v7180_v56 = vrot.slane %v7178_v51, 5 }
 0x2fa   : > { %8953 = vmatmul.mubr.bf16.vlgmr.msra.gmra.mxu0 %v10794_v34  ;;  %7975 = vmatmul.mubr.bf16.vlgmr.msra.gmra.mxu1 %v15377_v15  ;;  %v10764_v45 = vcombine.low %v7591_v28, %v15432_v8  ;;  %v7186_v59 = vrot.slane %v7184_v0, 5  ;;  %v8323_v37 = vrot.slane %v8321_v55, 4  ;;  %v8326_v52 = vrot.slane %v8324_v48, 5  ;;  %v12417_v34 = vld [vmem:[#allocation4 + $0x238] sm:$0xff]  }
 0x2fb   : > { %8960 = vmatprep.mubr.bf16.mxu0 %v10811_v2  ;;  %7982 = vmatprep.mubr.bf16.mxu1 %v10763_v29  ;;  %v7181_v19 = vor.u32 %v7180_v56, %v7177_v33  ;;  %v8332_v12 = vrot.slane %v8330_v17, 5  ;;  %v8334_v41 = vshrl.u32 %v15421_v38, 16  ;;  %v8340_v7 = vshll.u32 %v8235_v39, 16  ;;  %v7092_v33 = vld [vmem:[#allocation2 + $0x44] sm:$0x1]  ;;  %v12405_v56 = vld [vmem:[#allocation4 + $0x218] sm:$0xff]  }
 0x2fc   : > { %12073 = vmatpush3.bf16.msra.mxu1 %v12417_v34  ;;  %v7191_v6 = vor.u32 %v7190_v31, %v7186_v59  ;;  %v8327_v25 = vor.u32 %v8326_v52, %v8323_v37  ;;  %v7212_v15 = vshrl.u32 %v15444_v62, 16  ;;  %v7218_v2 = vshll.u32 %v15446_v16, 16  ;;  %v15458_v31 = vld [vmem:[#allocation2 + $0x48] sm:$0xf]  ;;  %v7514_v37 = vld [vmem:[#allocation2 + $0x3c] sm:$0xe] }
 0x2fd   : > { %12074 = vmatprep.subr.bf16.mxu1 %v12396_v54  ;;  %v10812_v61 = vcombine.low %v8309_v40, %v8319_v53  ;;  %v7182_v13 = vrot.slane %v7181_v19, 4  ;;  %v8336_v35 = vrot.slane %v8334_v41, 4  ;;  %v8342_v29 = vrot.slane %v8340_v7, 5  ;;  %v12402_v40 = vld [vmem:[#allocation4 + $0x220] sm:$0xff]  }
 0x2fe   : > { %v7192_v26 = vrot.slane %v7191_v6, 4  ;;  %v8328_v58 = vrot.slane %v8327_v25, 4  ;;  %v7214_v3 = vrot.slane %v7212_v15, 4  ;;  %v10733_v47 = vrot.slane %v7513_v42, 9 }
 0x2ff   : > { %v7187_v20 = vsel %vm12742_vm5, %v7182_v13, %v7186_v59  ;;  %v8337_v22 = vor.u32 %v8336_v35, %v8332_v12  ;;  %v15455_v11 = vrot.slane %v7218_v2, 5  ;;  %v7597_v43 = vrot.slane %v15444_v62, 5 }
 0x300   : > { %12075 = vmatpush3.bf16.msra.mxu1 %v12396_v54  ;;  %v7197_v1 = vsel %vm12742_vm5, %v7192_v26, %v15417_v30  ;;  %v8333_v4 = vsel %vm12742_vm5, %v8328_v58, %v8332_v12  ;;  %v7600_v44 = vrot.slane %v15446_v16, 5  ;;  %v7199_v24 = vshrl.u32 %v7087_v49, 16  ;;  %v7090_v26 = vld [vmem:[#allocation2 + $0x3c] sm:$0xf] }
 0x301   : > { %12076 = vmatprep.subr.bf16.mxu1 %v12399_v10  ;;  %v10748_v9 = vcombine.low %v7187_v20, %v7197_v1  ;;  %v8338_v63 = vrot.slane %v8337_v22, 4  ;;  %v7599_v18 = vrot.slane %v7597_v43, 4  ;;  %v10797_v30 = vcombine.low %v15419_v36, %v15421_v38 }
 0x302   : > { %8961 = vmatmul.mubr.bf16.gmra.mxu0 %v10795_v57  ;;  %7983 = vmatmul.mubr.bf16.gmra.mxu1 %v15423_v14  ;;  %v7201_v51 = vrot.slane %v7199_v24, 4  ;;  %v7202_v0 = vshll.u32 %v7087_v49, 16  ;;  %v7208_v8 = vshll.u32 %v15444_v62, 16  ;;  %v8345_v39 = vshrl.u32 %v15458_v31, 16  ;;  %v8236_v57 = vld [vmem:[#allocation2 + $0x50] sm:$0x1] }
 0x303   : > { %8968 = vmatprep.mubr.bf16.mxu0 %v10812_v61  ;;  %7990 = vmatprep.mubr.bf16.mxu1 %v10764_v45  ;;  %v8343_v21 = vsel %vm12742_vm5, %v8338_v63, %v8342_v29  ;;  %v7598_v32 = vsel %vm12732_vm4, %v10733_v47, %v7597_v43  ;;  %v8348_v55 = vshll.u32 %v15458_v31, 16  ;;  %v8354_v48 = vshll.u32 %v15466_v23, 16  ;;  %v15482_v14 = vld [vmem:[#allocation2 + $0x40] sm:$0xf]  ;;  %v12408_v61 = vld [vmem:[#allocation4 + $0x210] sm:$0xff]  }
 0x304   : > { %12077 = vmatpush3.bf16.msra.mxu1 %v12399_v10  ;;  %v10813_v17 = vcombine.low %v8333_v4, %v8343_v21  ;;  %v7601_v54 = vsel %vm12732_vm4, %v7599_v18, %v7600_v44  ;;  %v7204_v53 = vrot.slane %v7202_v0, 5  ;;  %v7210_v28 = vrot.slane %v7208_v8, 5  ;;  %v8237_v63 = vld [vmem:[#allocation2 + $0x5c] sm:$0x1] }
 0x305   : > { %12078 = vmatprep.subr.bf16.mxu1 %v12402_v40  ;;  %v8347_v62 = vrot.slane %v8345_v39, 4  ;;  %v8350_v16 = vrot.slane %v8348_v55, 5  ;;  %v8356_v45 = vrot.slane %v8354_v48, 5  ;;  %v8358_v59 = vshrl.u32 %v15466_v23, 16  ;;  %v7095_v55 = vld [vmem:[#allocation2 + $0x50] sm:$0x1] }
 0x306   : > { %v7205_v52 = vor.u32 %v7204_v53, %v7201_v51  ;;  %v7215_v34 = vor.u32 %v7214_v3, %v7210_v28  ;;  %v8364_v19 = vshll.u32 %v8236_v57, 16  ;;  %v7236_v12 = vshrl.u32 %v15482_v14, 16  ;;  %v7094_v57 = vld [vmem:[#allocation2 + $0x4c] sm:$0xf] }
 0x307   : > { %v10765_v41 = vcombine.low %v7598_v32, %v7601_v54  ;;  %v8351_v7 = vor.u32 %v8350_v16, %v8347_v62  ;;  %v8360_v42 = vrot.slane %v8358_v59, 4  ;;  %v7242_v6 = vshll.u32 %v7092_v33, 16  ;;  %v7515_v62 = vld [vmem:[#allocation2 + $0x48] sm:$0xe]  ;;  %v12414_v16 = vld [vmem:[#allocation4 + $0x200] sm:$0xff]  }
 0x308   : > { %12079 = vmatpush3.bf16.msra.mxu1 %v12402_v40  ;;  %v7206_v25 = vrot.slane %v7205_v52, 4  ;;  %v7216_v15 = vrot.slane %v7215_v34, 4  ;;  %v8366_v2 = vrot.slane %v8364_v19, 5  ;;  %v10734_v10 = vrot.slane %v7514_v37, 9  ;;  %v12411_v40 = vld [vmem:[#allocation4 + $0x208] sm:$0xff]  }
 0x309   : > { %12080 = vmatprep.subr.bf16.mxu1 %v12405_v56  ;;  %v8352_v13 = vrot.slane %v8351_v7, 4  ;;  %v8361_v35 = vor.u32 %v8360_v42, %v8356_v45  ;;  %v7238_v29 = vrot.slane %v7236_v12, 4  ;;  %v7604_v49 = vrot.slane %v15482_v14, 5  ;;  %v7093_v7 = vld [vmem:[#allocation2 + $0x48] sm:$0xf] }
 0x30a   : > { %8969 = vmatmul.mubr.bf16.gmra.mxu0 %v10796_v27  ;;  %7991 = vmatmul.mubr.bf16.gmra.mxu1 %v10748_v9  ;;  %v7211_v58 = vsel %vm12742_vm5, %v7206_v25, %v7210_v28  ;;  %v7221_v3 = vsel %vm12742_vm5, %v7216_v15, %v15455_v11  ;;  %v15497_v47 = vrot.slane %v7242_v6, 5  ;;  %v7607_v20 = vrot.slane %v7092_v33, 5 }
 0x30b   : > { %8976 = vmatprep.mubr.bf16.mxu0 %v10813_v17  ;;  %7998 = vmatprep.mubr.bf16.mxu1 %v10765_v41  ;;  %v10749_v27 = vcombine.low %v7211_v58, %v7221_v3  ;;  %v8357_v22 = vsel %vm12742_vm5, %v8352_v13, %v8356_v45  ;;  %v8362_v43 = vrot.slane %v8361_v35, 4  ;;  %v7605_v1 = vsel %vm12732_vm4, %v10734_v10, %v7604_v49  ;;  %v15525_v10 = vld [vmem:[#allocation2 + $0x60] sm:$0xf]  ;;  %v15532_v35 = vld [vmem:[#allocation2 + $0x64] sm:$0xf] }
 0x30c   : > { %12081 = vmatpush3.bf16.msra.mxu1 %v12405_v56  ;;  %v7606_v4 = vrot.slane %v7604_v49, 4  ;;  %v7223_v44 = vshrl.u32 %v7090_v26, 16  ;;  %v7226_v11 = vshll.u32 %v7090_v26, 16  ;;  %v7232_v24 = vshll.u32 %v15482_v14, 16 }
 0x30d   : > { %12082 = vmatprep.subr.bf16.mxu1 %v12408_v61  ;;  %v8367_v9 = vsel %vm12742_vm5, %v8362_v43, %v8366_v2  ;;  %v8369_v18 = vshrl.u32 %v15499_v50, 16  ;;  %v8372_v51 = vshll.u32 %v15499_v50, 16  ;;  %v8378_v0 = vshll.u32 %v15501_v60, 16 }
 0x30e   : > { %v10814_v8 = vcombine.low %v8357_v22, %v8367_v9  ;;  %v7608_v39 = vsel %vm12732_vm4, %v7606_v4, %v7607_v20  ;;  %v7225_v21 = vrot.slane %v7223_v44, 4  ;;  %v7228_v32 = vrot.slane %v7226_v11, 5  ;;  %v15543_v11 = vld [vmem:[#allocation2 + $0x58] sm:$0xf] }
 0x30f   : > { %v10766_v48 = vcombine.low %v7605_v1, %v7608_v39  ;;  %v7234_v14 = vrot.slane %v7232_v24, 5  ;;  %v8371_v17 = vrot.slane %v8369_v18, 4  ;;  %v8374_v54 = vrot.slane %v8372_v51, 5  ;;  %v8238_v1 = vld [vmem:[#allocation2 + $0x68] sm:$0x1] }
 0x310   : > { %12083 = vmatpush3.bf16.msra.mxu1 %v12408_v61  ;;  %v7229_v53 = vor.u32 %v7228_v32, %v7225_v21  ;;  %v8380_v28 = vrot.slane %v8378_v0, 5  ;;  %v8382_v33 = vshrl.u32 %v15501_v60, 16  ;;  %v8388_v56 = vshll.u32 %v8237_v63, 16  ;;  %v7098_v18 = vld [vmem:[#allocation2 + $0x5c] sm:$0x1]  ;;  %v15546_v32 = vpop.f32.mrf.mxu0 }
 0x311   : > { %12084 = vmatprep.subr.bf16.mxu1 %v12411_v40  ;;  %v7239_v45 = vor.u32 %v7238_v29, %v7234_v14  ;;  %v8375_v59 = vor.u32 %v8374_v54, %v8371_v17  ;;  %v7260_v37 = vshrl.u32 %v7094_v57, 16  ;;  %v7266_v52 = vshll.u32 %v7095_v55, 16  ;;  %v7516_v21 = vld [vmem:[#allocation2 + $0x54] sm:$0xe] }
 0x312   : > { %8977 = vmatmul.mubr.bf16.gmra.mxu0 %v10797_v30  ;;  %7999 = vmatmul.mubr.bf16.gmra.mxu1 %v10749_v27  ;;  %v10798_v34 = vcombine.low %v15458_v31, %v15466_v23  ;;  %v7230_v19 = vrot.slane %v7229_v53, 4  ;;  %v8384_v12 = vrot.slane %v8382_v33, 4  ;;  %v8390_v41 = vrot.slane %v8388_v56, 5  ;;  %v15551_v33 = vpop.f32.mrf.mxu1 }
 0x313   : > { %8984 = vmatprep.mubr.bf16.mxu0 %v10814_v8  ;;  %8006 = vmatprep.mubr.bf16.mxu1 %v10766_v48  ;;  %v7240_v42 = vrot.slane %v7239_v45, 4  ;;  %v8376_v6 = vrot.slane %v8375_v59, 4  ;;  %v7262_v25 = vrot.slane %v7260_v37, 4  ;;  %v10735_v15 = vrot.slane %v7515_v62, 9 }
 0x314   : > { %12085 = vmatpush3.bf16.msra.mxu1 %v12411_v40  ;;  %v7235_v36 = vsel %vm12742_vm5, %v7230_v19, %v7234_v14  ;;  %v8385_v38 = vor.u32 %v8384_v12, %v8380_v28  ;;  %v15523_v30 = vrot.slane %v7266_v52, 5  ;;  %v7611_v2 = vrot.slane %v7094_v57, 5  ;;  %v7096_v19 = vld [vmem:[#allocation2 + $0x54] sm:$0xf]  ;;  %v15554_v12 = vpop.f32.mrf.mxu0 }
 0x315   : > { %12086 = vmatprep.subr.bf16.mxu1 %v12414_v16  ;;  %v7245_v31 = vsel %vm12742_vm5, %v7240_v42, %v15497_v47  ;;  %v8381_v23 = vsel %vm12742_vm5, %v8376_v6, %v8380_v28  ;;  %v7614_v61 = vrot.slane %v7095_v55, 5  ;;  %v7247_v13 = vshrl.u32 %v7093_v7, 16  ;;  %v15563_v42 = vld [vmem:[#allocation2 + $0x6c] sm:$0xf]  ;;  %v15565_v6 = vld [vmem:[#allocation2 + $0x70] sm:$0xf] }
 0x316   : > { %v10750_v29 = vcombine.low %v7235_v36, %v7245_v31  ;;  %v8386_v49 = vrot.slane %v8385_v38, 4  ;;  %v7612_v26 = vsel %vm12732_vm4, %v10735_v15, %v7611_v2  ;;  %v7613_v58 = vrot.slane %v7611_v2, 4  ;;  %v15571_v2 = vpop.f32.mrf.mxu1 }
 0x317   : > { %v7249_v3 = vrot.slane %v7247_v13, 4  ;;  %v7250_v20 = vshll.u32 %v7093_v7, 16  ;;  %v7256_v27 = vshll.u32 %v7094_v57, 16  ;;  %v8393_v22 = vshrl.u32 %v15525_v10, 16 }
 0x318   : > { %12087 = vmatpush3.bf16.msra.mxu1 %v12414_v16  ;;  %v8391_v47 = vsel %vm12742_vm5, %v8386_v49, %v8390_v41  ;;  %v7615_v43 = vsel %vm12732_vm4, %v7613_v58, %v7614_v61  ;;  %v8396_v4 = vshll.u32 %v15525_v10, 16  ;;  %v8402_v44 = vshll.u32 %v15532_v35, 16 }
 0x319   : > { %v10815_v24 = vcombine.low %v8381_v23, %v8391_v47  ;;  %v10767_v40 = vcombine.low %v7612_v26, %v7615_v43  ;;  %v7252_v9 = vrot.slane %v7250_v20, 5  ;;  %v7258_v63 = vrot.slane %v7256_v27, 5  ;;  %v7100_v43 = vld [vmem:[#allocation2 + $0x64] sm:$0xf] }
 0x31a   : > { %8985 = vmatmul.mubr.bf16.gmra.mxu0 %v10798_v34  ;;  %8007 = vmatmul.mubr.bf16.gmra.mxu1 %v10750_v29  ;;  %v8395_v51 = vrot.slane %v8393_v22, 4  ;;  %v8398_v0 = vrot.slane %v8396_v4, 5  ;;  %v8404_v8 = vrot.slane %v8402_v44, 5  ;;  %v8406_v39 = vshrl.u32 %v15532_v35, 16  ;;  %v8239_v29 = vld [vmem:[#allocation2 + $0x74] sm:$0x1] }
 0x31b   : > { %8992 = vmatprep.mubr.bf16.mxu0 %v10815_v24  ;;  %8014 = vmatprep.mubr.bf16.mxu1 %v10767_v40  ;;  %v7253_v57 = vor.u32 %v7252_v9, %v7249_v3  ;;  %v7263_v55 = vor.u32 %v7262_v25, %v7258_v63  ;;  %v8412_v48 = vshll.u32 %v8238_v1, 16  ;;  %v7284_v14 = vshrl.u32 %v15543_v11, 16  ;;  %v15579_v3 = vpop.f32.mrf.mxu0  ;;  %v15583_v24 = vld [vmem:[#allocation2 + $0x68] sm:$0x1]  ;;  %v15585_v40 = vpop.f32.mrf.mxu1 }
 0x31c   : > { %v10799_v17 = vcombine.low %v15499_v50, %v15501_v60  ;;  %v8399_v54 = vor.u32 %v8398_v0, %v8395_v51  ;;  %v8408_v53 = vrot.slane %v8406_v39, 4  ;;  %v7290_v28 = vshll.u32 %v7098_v18, 16  ;;  %v7517_v0 = vld [vmem:[#allocation2 + $0x60] sm:$0xe] }
 0x31d   : > { %v7254_v56 = vrot.slane %v7253_v57, 4  ;;  %v7264_v62 = vrot.slane %v7263_v55, 4  ;;  %v8414_v16 = vrot.slane %v8412_v48, 5  ;;  %v10736_v45 = vrot.slane %v7516_v21, 9  ;;  %v15590_v55 = vpop.f32.mrf.mxu0 }
 0x31e   : > { %v8400_v59 = vrot.slane %v8399_v54, 4  ;;  %v8409_v37 = vor.u32 %v8408_v53, %v8404_v8  ;;  %v7286_v52 = vrot.slane %v7284_v14, 4  ;;  %v7618_v34 = vrot.slane %v15543_v11, 5  ;;  %v7099_v53 = vld [vmem:[#allocation2 + $0x60] sm:$0xf] }
 0x31f   : > { %v7259_v50 = vsel %vm12742_vm5, %v7254_v56, %v7258_v63  ;;  %v7269_v60 = vsel %vm12742_vm5, %v7264_v62, %v15523_v30  ;;  %v15561_v41 = vrot.slane %v7290_v28, 5  ;;  %v7621_v7 = vrot.slane %v7098_v18, 5 }
 0x320   : > { %v10751_v25 = vcombine.low %v7259_v50, %v7269_v60  ;;  %v8405_v15 = vsel %vm12742_vm5, %v8400_v59, %v8404_v8  ;;  %v8410_v36 = vrot.slane %v8409_v37, 4  ;;  %v7619_v38 = vsel %vm12732_vm4, %v10736_v45, %v7618_v34  ;;  %v15593_v45 = vpop.f32.mrf.mxu1 }
 0x321   : > { %v7620_v31 = vrot.slane %v7618_v34, 4  ;;  %v7271_v30 = vshrl.u32 %v7096_v19, 16  ;;  %v7274_v23 = vshll.u32 %v7096_v19, 16  ;;  %v7280_v61 = vshll.u32 %v15543_v11, 16 }
 0x322   : > { %8993 = vmatmul.mubr.bf16.gmra.mxu0 %v10799_v17  ;;  %8015 = vmatmul.mubr.bf16.gmra.mxu1 %v10751_v25  ;;  %v8415_v13 = vsel %vm12742_vm5, %v8410_v36, %v8414_v16  ;;  %v8417_v49 = vshrl.u32 %v15563_v42, 16  ;;  %v8420_v26 = vshll.u32 %v15563_v42, 16  ;;  %v8426_v58 = vshll.u32 %v15565_v6, 16 }
 0x323   : > { %v10816_v20 = vcombine.low %v8405_v15, %v8415_v13  ;;  %v7622_v27 = vsel %vm12732_vm4, %v7620_v31, %v7621_v7  ;;  %v7273_v22 = vrot.slane %v7271_v30, 4  ;;  %v7276_v47 = vrot.slane %v7274_v23, 5  ;;  %v15607_v7 = vld [vmem:[#allocation2 + $0x7c] sm:$0xf] }
 0x324   : > { %v10768_v1 = vcombine.low %v7619_v38, %v7622_v27  ;;  %v7282_v4 = vrot.slane %v7280_v61, 5  ;;  %v8419_v44 = vrot.slane %v8417_v49, 4  ;;  %v8422_v11 = vrot.slane %v8420_v26, 5  ;;  %v8240_v49 = vld [vmem:[#allocation2 + $0x80] sm:$0x1] }
 0x325   : > { %9000 = vmatprep.mubr.bf16.mxu0 %v10816_v20  ;;  %v7277_v9 = vor.u32 %v7276_v47, %v7273_v22  ;;  %v8428_v63 = vrot.slane %v8426_v58, 5  ;;  %v8430_v18 = vshrl.u32 %v15565_v6, 16  ;;  %v8436_v51 = vshll.u32 %v8239_v29, 16  ;;  %v7103_v20 = vld [vmem:[#allocation2 + $0x70] sm:$0xf] }
 0x326   : > { %8022 = vmatprep.mubr.bf16.mxu1 %v10768_v1  ;;  %v10800_v8 = vcombine.low %v15525_v10, %v15532_v35  ;;  %v7287_v39 = vor.u32 %v7286_v52, %v7282_v4  ;;  %v8423_v21 = vor.u32 %v8422_v11, %v8419_v44  ;;  %v7308_v57 = vshrl.u32 %v7100_v43, 16  ;;  %v15598_v52 = vld [vmem:[#allocation2 + $0x78] sm:$0xf]  ;;  %v7518_v1 = vld [vmem:[#allocation2 + $0x6c] sm:$0xe] }
 0x327   : > { %v7278_v48 = vrot.slane %v7277_v9, 4  ;;  %v8432_v14 = vrot.slane %v8430_v18, 4  ;;  %v8438_v17 = vrot.slane %v8436_v51, 5  ;;  %v7314_v54 = vshll.u32 %v15583_v24, 16 }
 0x328   : > { %v7288_v28 = vrot.slane %v7287_v39, 4  ;;  %v8424_v56 = vrot.slane %v8423_v21, 4  ;;  %v7310_v62 = vrot.slane %v7308_v57, 4  ;;  %v10737_v16 = vrot.slane %v7517_v0, 9 }
 0x329   : > { %v7283_v10 = vsel %vm12742_vm5, %v7278_v48, %v7282_v4  ;;  %v8433_v35 = vor.u32 %v8432_v14, %v8428_v63  ;;  %v7625_v59 = vrot.slane %v7100_v43, 5  ;;  %v7628_v37 = vrot.slane %v15583_v24, 5 }
 0x32a   : > { %9001 = vmatmul.mubr.bf16.gmra.mxu0 %v10800_v8  ;;  %v7293_v34 = vsel %vm12742_vm5, %v7288_v28, %v15561_v41  ;;  %v8429_v19 = vsel %vm12742_vm5, %v8424_v56, %v8428_v63  ;;  %v10801_v50 = vcombine.low %v15563_v42, %v15565_v6  ;;  %v7295_v60 = vshrl.u32 %v7099_v53, 16  ;;  %v15609_v25 = vpop.f32.mrf.mxu0  ;;  %v15611_v15 = vpop.f32.mrf.mxu1  ;;  %v15627_v63 = vld [vmem:[#allocation2 + $0x74] sm:$0x1] }
 0x32b   : > { %v10752_v36 = vcombine.low %v7283_v10, %v7293_v34  ;;  %v8434_v38 = vrot.slane %v8433_v35, 4  ;;  %v7626_v31 = vsel %vm12732_vm4, %v10737_v16, %v7625_v59  ;;  %v7627_v30 = vrot.slane %v7625_v59, 4 }
 0x32c   : > { %v7297_v41 = vrot.slane %v7295_v60, 4  ;;  %v7298_v23 = vshll.u32 %v7099_v53, 16  ;;  %v7304_v61 = vshll.u32 %v7100_v43, 16  ;;  %v8441_v13 = vshrl.u32 %v15598_v52, 16  ;;  %v15616_v29 = vpop.f32.mrf.mxu1  ;;  %v15624_v4 = vpop.f32.mrf.mxu0 }
 0x32d   : > { %8023 = vmatmul.mubr.bf16.gmra.mxu1 %v10752_v36  ;;  %v8439_v42 = vsel %vm12742_vm5, %v8434_v38, %v8438_v17  ;;  %v7629_v6 = vsel %vm12732_vm4, %v7627_v30, %v7628_v37  ;;  %v8444_v26 = vshll.u32 %v15598_v52, 16  ;;  %v8450_v58 = vshll.u32 %v15607_v7, 16 }
 0x32e   : > { %v10817_v27 = vcombine.low %v8429_v19, %v8439_v42  ;;  %v10769_v22 = vcombine.low %v7626_v31, %v7629_v6  ;;  %v7300_v47 = vrot.slane %v7298_v23, 5  ;;  %v7306_v43 = vrot.slane %v7304_v61, 5  ;;  %v15629_v39 = vpop.f32.mrf.mxu1  ;;  %v15632_v56 = vpop.f32.mrf.mxu0  ;;  %v15649_v42 = vld [vmem:[#allocation2 + $0x88] sm:$0xf] }
 0x32f   : > { %v8443_v44 = vrot.slane %v8441_v13, 4  ;;  %v8446_v11 = vrot.slane %v8444_v26, 5  ;;  %v8452_v24 = vrot.slane %v8450_v58, 5  ;;  %v8454_v9 = vshrl.u32 %v15607_v7, 16  ;;  %v8241_v58 = vld [vmem:[#allocation2 + $0x8c] sm:$0x1] }
 0x330   : > { %9008 = vmatprep.mubr.bf16.mxu0 %v10817_v27  ;;  %8030 = vmatprep.mubr.bf16.mxu1 %v10769_v22  ;;  %v7301_v18 = vor.u32 %v7300_v47, %v7297_v41  ;;  %v7311_v51 = vor.u32 %v7310_v62, %v7306_v43  ;;  %v8460_v0 = vshll.u32 %v8240_v49, 16  ;;  %v7332_v8 = vshrl.u32 %v7103_v20, 16  ;;  %v7102_v62 = vld [vmem:[#allocation2 + $0x6c] sm:$0xf]  ;;  %v15641_v60 = vpop.f32.mrf.mxu1  ;;  %v15651_v6 = vpop.f32.mrf.mxu0 }
 0x331   : > { %v7316_v21 = vrot.slane %v7314_v54, 5  ;;  %v8447_v57 = vor.u32 %v8446_v11, %v8443_v44  ;;  %v8456_v48 = vrot.slane %v8454_v9, 4  ;;  %v7338_v53 = vshll.u32 %v15627_v63, 16 }
 0x332   : > { %9009 = vmatmul.mubr.bf16.gmra.mxu0 %v10801_v50  ;;  %v7302_v14 = vrot.slane %v7301_v18, 4  ;;  %v7312_v17 = vrot.slane %v7311_v51, 4  ;;  %v10738_v28 = vrot.slane %v7518_v1, 9  ;;  %v8462_v35 = vrot.slane %v8460_v0, 5  ;;  %v15639_v50 = vld [vmem:[#allocation2 + $0x84] sm:$0xf] }
 0x333   : > { %v8448_v16 = vrot.slane %v8447_v57, 4  ;;  %v8457_v10 = vor.u32 %v8456_v48, %v8452_v24  ;;  %v7632_v59 = vrot.slane %v7103_v20, 5  ;;  %v7334_v34 = vrot.slane %v7332_v8, 4  ;;  %v7106_v1 = vld [vmem:[#allocation2 + $0x7c] sm:$0xf] }
 0x334   : > { %v7307_v37 = vsel %vm12742_vm5, %v7302_v14, %v7306_v43  ;;  %v7317_v54 = vsel %vm12742_vm5, %v7312_v17, %v7316_v21  ;;  %v7635_v19 = vrot.slane %v15627_v63, 5  ;;  %v10802_v23 = vcombine.low %v15598_v52, %v15607_v7 }
 0x335   : > { %v10753_v36 = vcombine.low %v7307_v37, %v7317_v54  ;;  %v8453_v38 = vsel %vm12742_vm5, %v8448_v16, %v8452_v24  ;;  %v8458_v31 = vrot.slane %v8457_v10, 4  ;;  %v7633_v30 = vsel %vm12732_vm4, %v10738_v28, %v7632_v59  ;;  %v7519_v16 = vld [vmem:[#allocation2 + $0x78] sm:$0xe] }
 0x336   : > { %v7634_v41 = vrot.slane %v7632_v59, 4  ;;  %v7319_v61 = vshrl.u32 %v7102_v62, 16  ;;  %v7322_v13 = vshll.u32 %v7102_v62, 16  ;;  %v7328_v26 = vshll.u32 %v7103_v20, 16  ;;  %v15659_v44 = vpop.f32.mrf.mxu1 }
 0x337   : > { %8031 = vmatmul.mubr.bf16.gmra.mxu1 %v10753_v36  ;;  %v8463_v49 = vsel %vm12742_vm5, %v8458_v31, %v8462_v35  ;;  %v8465_v27 = vshrl.u32 %v15639_v50, 16  ;;  %v8468_v22 = vshll.u32 %v15639_v50, 16  ;;  %v8474_v18 = vshll.u32 %v15649_v42, 16 }
 0x338   : > { %v10818_v47 = vcombine.low %v8453_v38, %v8463_v49  ;;  %v7636_v52 = vsel %vm12732_vm4, %v7634_v41, %v7635_v19  ;;  %v7321_v7 = vrot.slane %v7319_v61, 4  ;;  %v7324_v43 = vrot.slane %v7322_v13, 5  ;;  %v15667_v35 = vpop.f32.mrf.mxu1  ;;  %v7107_v19 = vld [vmem:[#allocation2 + $0x80] sm:$0x1]  ;;  %v7105_v61 = vld [vmem:[#allocation2 + $0x78] sm:$0xf] }
 0x339   : > { %v10770_v11 = vcombine.low %v7633_v30, %v7636_v52  ;;  %v7330_v24 = vrot.slane %v7328_v26, 5  ;;  %v8467_v9 = vrot.slane %v8465_v27, 4  ;;  %v8470_v63 = vrot.slane %v8468_v22, 5  ;;  %v15681_v26 = vld [vmem:[#allocation2 + $0x90] sm:$0xf] }
 0x33a   : > { %9016 = vmatprep.mubr.bf16.mxu0 %v10818_v47  ;;  %v7325_v20 = vor.u32 %v7324_v43, %v7321_v7  ;;  %v8478_v51 = vshrl.u32 %v15649_v42, 16  ;;  %v8484_v0 = vshll.u32 %v8241_v58, 16  ;;  %v15663_v8 = vpop.f32.mrf.mxu0  ;;  %v7356_v48 = vshrl.u32 %v7106_v1, 16  ;;  %v15683_v58 = vpop.f32.mrf.mxu1 }
 0x33b   : > { %8038 = vmatprep.mubr.bf16.mxu1 %v10770_v11  ;;  %9017 = vmatmul.mubr.bf16.gmra.mxu0 %v10802_v23  ;;  %v7335_v21 = vor.u32 %v7334_v34, %v7330_v24  ;;  %v8471_v57 = vor.u32 %v8470_v63, %v8467_v9  ;;  %v8476_v17 = vrot.slane %v8474_v18, 5  ;;  %v7340_v59 = vrot.slane %v7338_v53, 5  ;;  %v15693_v9 = vld [vmem:[#allocation2 + $0x94] sm:$0xf] }
 0x33c   : > { %v7326_v14 = vrot.slane %v7325_v20, 4  ;;  %v8480_v28 = vrot.slane %v8478_v51, 4  ;;  %v15665_v10 = vpop.f32.mrf.mxu0  ;;  %v15671_v54 = vadd.f32 %v15554_v12, %v15546_v32  ;;  %v8486_v34 = vrot.slane %v8484_v0, 5  ;;  %v8242_v51 = vld [vmem:[#allocation2 + $0x98] sm:$0x1] }
 0x33d   : > { %v7336_v62 = vrot.slane %v7335_v21, 4  ;;  %v8472_v37 = vrot.slane %v8471_v57, 4  ;;  %v7358_v38 = vrot.slane %v7356_v48, 4  ;;  %v10739_v41 = vrot.slane %v7519_v16, 9 }
 0x33e   : > { %v8481_v36 = vor.u32 %v8480_v28, %v8476_v17  ;;  %v7331_v31 = vsel %vm12742_vm5, %v7326_v14, %v7330_v24  ;;  %v7639_v23 = vrot.slane %v7106_v1, 5  ;;  %v15677_v53 = vpop.f32.mrf.mxu0  ;;  %v7362_v49 = vshll.u32 %v7107_v19, 16  ;;  %v15702_v14 = vld [vmem:[#allocation2 + $0x88] sm:$0xf] }
 0x33f   : > { %v7341_v30 = vsel %vm12742_vm5, %v7336_v62, %v7340_v59  ;;  %v8477_v32 = vsel %vm12742_vm5, %v8472_v37, %v8476_v17  ;;  %v7642_v47 = vrot.slane %v7107_v19, 5  ;;  %v15689_v52 = vadd.f32 %v15590_v55, %v15579_v3  ;;  %v15711_v19 = vld [vmem:[#allocation2 + $0x8c] sm:$0x1] }
 0x340   : > { %v10754_v13 = vcombine.low %v7331_v31, %v7341_v30  ;;  %v8482_v12 = vrot.slane %v8481_v36, 4  ;;  %v7640_v27 = vsel %vm12732_vm4, %v10739_v41, %v7639_v23  ;;  %v7641_v22 = vrot.slane %v7639_v23, 4  ;;  %v15700_v55 = vpop.f32.mrf.mxu0  ;;  %v7520_v41 = vld [vmem:[#allocation2 + $0x84] sm:$0xe] }
 0x341   : > { %v7343_v43 = vshrl.u32 %v7105_v61, 16  ;;  %v7346_v11 = vshll.u32 %v7105_v61, 16  ;;  %v7352_v24 = vshll.u32 %v7106_v1, 16  ;;  %v10803_v18 = vcombine.low %v15639_v50, %v15649_v42  ;;  %v15704_v1 = vpop.f32.mrf.mxu1 }
 0x342   : > { %8039 = vmatmul.mubr.bf16.gmra.mxu1 %v10754_v13  ;;  %v8487_v7 = vsel %vm12742_vm5, %v8482_v12, %v8486_v34  ;;  %v7643_v20 = vsel %vm12732_vm4, %v7641_v22, %v7642_v47  ;;  %v8489_v3 = vshrl.u32 %v15681_v26, 16  ;;  %v8492_v28 = vshll.u32 %v15681_v26, 16 }
 0x343   : > { %v10819_v63 = vcombine.low %v8477_v32, %v8487_v7  ;;  %v10771_v0 = vcombine.low %v7640_v27, %v7643_v20  ;;  %v7345_v21 = vrot.slane %v7343_v43, 4  ;;  %v7348_v57 = vrot.slane %v7346_v11, 5 }
 0x344   : > { %v7354_v48 = vrot.slane %v7352_v24, 5  ;;  %v8491_v17 = vrot.slane %v8489_v3, 4  ;;  %v8498_v16 = vshll.u32 %v15693_v9, 16  ;;  %v8502_v50 = vshrl.u32 %v15693_v9, 16 }
 0x345   : > { %9024 = vmatprep.mubr.bf16.mxu0 %v10819_v63  ;;  %8046 = vmatprep.mubr.bf16.mxu1 %v10771_v0  ;;  %v7349_v42 = vor.u32 %v7348_v57, %v7345_v21  ;;  %v8508_v62 = vshll.u32 %v8242_v51, 16  ;;  %v11688_v37 = vadd.f32 %v15624_v4, %v15609_v25  ;;  %v8494_v36 = vrot.slane %v8492_v28, 5  ;;  %v7108_v51 = vld [vmem:[#allocation2 + $0x84] sm:$0xf] }
 0x346   : > { %9025 = vmatmul.mubr.bf16.gmra.mxu0 %v10803_v18  ;;  %v7359_v59 = vor.u32 %v7358_v38, %v7354_v48  ;;  %v8500_v34 = vrot.slane %v8498_v16, 5  ;;  %v8504_v31 = vrot.slane %v8502_v50, 4  ;;  %v7380_v30 = vshrl.u32 %v15702_v14, 16 }
 0x347   : > { %v7364_v61 = vrot.slane %v7362_v49, 5  ;;  %v7350_v13 = vrot.slane %v7349_v42, 4  ;;  %v8510_v12 = vrot.slane %v8508_v62, 5  ;;  %v15716_v27 = vpop.f32.mrf.mxu1  ;;  %v8495_v38 = vor.u32 %v8494_v36, %v8491_v17  ;;  %v15745_v42 = vld [vmem:[#allocation2 + $0x9c] sm:$0xf] }
 0x348   : > { %v15714_v23 = vpop.f32.mrf.mxu0  ;;  %v7360_v32 = vrot.slane %v7359_v59, 4  ;;  %v8505_v22 = vor.u32 %v8504_v31, %v8500_v34  ;;  %v15718_v47 = vrot.slane %v7380_v30, 4  ;;  %v7386_v25 = vshll.u32 %v15711_v19, 16  ;;  %v15747_v59 = vld [vmem:[#allocation2 + $0xa0] sm:$0xf] }
 0x349   : > { %v7355_v4 = vsel %vm12742_vm5, %v7350_v13, %v7354_v48  ;;  %v10740_v43 = vrot.slane %v7520_v41, 9  ;;  %v7646_v49 = vrot.slane %v15702_v14, 5  ;;  %v8496_v63 = vrot.slane %v8495_v38, 4  ;;  %v15729_v3 = vpop.f32.mrf.mxu1  ;;  %v8243_v62 = vld [vmem:[#allocation2 + $0xa4] sm:$0x1] }
 0x34a   : > { %v7365_v7 = vsel %vm12742_vm5, %v7360_v32, %v7364_v61  ;;  %v15726_v11 = vpop.f32.mrf.mxu0  ;;  %v8506_v20 = vrot.slane %v8505_v22, 4  ;;  %v7649_v18 = vrot.slane %v15711_v19, 5  ;;  %v11576_v57 = vadd.f32 %v15616_v29, %v15611_v15  ;;  %v15763_v41 = vld [vmem:[#allocation2 + $0x94] sm:$0xf] }
 0x34b   : > { %v10755_v24 = vcombine.low %v7355_v4, %v7365_v7  ;;  %v7647_v0 = vsel %vm12732_vm4, %v10740_v43, %v7646_v49  ;;  %v7648_v21 = vrot.slane %v7646_v49, 4  ;;  %v11691_v48 = vadd.f32 %v15651_v6, %v15632_v56 }
 0x34c   : > { %v8501_v17 = vsel %vm12742_vm5, %v8496_v63, %v8500_v34  ;;  %v8511_v28 = vsel %vm12742_vm5, %v8506_v20, %v8510_v12  ;;  %v11579_v16 = vadd.f32 %v15641_v60, %v15629_v39  ;;  %v10804_v50 = vcombine.low %v15681_v26, %v15693_v9  ;;  %v15753_v19 = vpop.f32.mrf.mxu0  ;;  %v15758_v26 = vpop.f32.mrf.mxu1 }
 0x34d   : > { %8047 = vmatmul.mubr.bf16.gmra.mxu1 %v10755_v24  ;;  %v10820_v15 = vcombine.low %v8501_v17, %v8511_v28  ;;  %v7650_v29 = vsel %vm12732_vm4, %v7648_v21, %v7649_v18  ;;  %v15751_v56 = vadd.f32 %v11688_v37, %v11576_v57  ;;  %v7367_v6 = vshrl.u32 %v7108_v51, 16  ;;  %v15771_v18 = vld [vmem:[#allocation2 + $0x98] sm:$0x1] }
 0x34e   : > { %v10772_v36 = vcombine.low %v7647_v0, %v7650_v29  ;;  %v15755_v34 = vadd.f32 %v11691_v48, %v11579_v16  ;;  %v7370_v39 = vshll.u32 %v7108_v51, 16  ;;  %v7376_v60 = vshll.u32 %v15702_v14, 16  ;;  %v7521_v14 = vld [vmem:[#allocation2 + $0x90] sm:$0xe]  ;;  %v15768_v43 = vpop.f32.mrf.mxu0  ;;  %v15773_v51 = vpop.f32.mrf.mxu1 }
 0x34f   : > { %9032 = vmatprep.mubr.bf16.mxu0 %v10820_v15  ;;  %v7369_v9 = vrot.slane %v7367_v6, 4  ;;  %v8513_v31 = vshrl.u32 %v15745_v42, 16  ;;  %v8516_v30 = vshll.u32 %v15745_v42, 16  ;;  %v8522_v37 = vshll.u32 %v15747_v59, 16 }
 0x350   : > { %16841 = vst [vmem:[#allocation12_spill] sm:$0xff] %v15755_v34  ;;  %8054 = vmatprep.mubr.bf16.mxu1 %v10772_v36  ;;  %9033 = vmatmul.mubr.bf16.gmra.mxu0 %v10804_v50  ;;  %v7372_v61 = vrot.slane %v7370_v39, 5  ;;  %v7378_v13 = vrot.slane %v7376_v60, 5  ;;  %v8526_v32 = vshrl.u32 %v15747_v59, 16  ;;  %v8532_v12 = vshll.u32 %v8243_v62, 16 }
 0x351   : > { %v8515_v38 = vrot.slane %v8513_v31, 4  ;;  %v8518_v22 = vrot.slane %v8516_v30, 5  ;;  %v8524_v4 = vrot.slane %v8522_v37, 5  ;;  %v11694_v7 = vadd.f32 %v15665_v10, %v15663_v8  ;;  %v7111_v39 = vld [vmem:[#allocation2 + $0x90] sm:$0xf] }
 0x352   : > { %v7388_v49 = vrot.slane %v7386_v25, 5  ;;  %v7373_v24 = vor.u32 %v7372_v61, %v7369_v9  ;;  %v7383_v63 = vor.u32 %v15718_v47, %v7378_v13  ;;  %v8528_v20 = vrot.slane %v8526_v32, 4 }
 0x353   : > { %v8519_v0 = vor.u32 %v8518_v22, %v8515_v38  ;;  %v8534_v21 = vrot.slane %v8532_v12, 5  ;;  %v7404_v57 = vshrl.u32 %v15763_v41, 16  ;;  %v10741_v48 = vrot.slane %v7521_v14, 9  ;;  %v15805_v38 = vld [vmem:[#allocation2 + $0xa8] sm:$0xf] }
 0x354   : > { %v7374_v17 = vrot.slane %v7373_v24, 4  ;;  %v7384_v28 = vrot.slane %v7383_v63, 4  ;;  %v8529_v16 = vor.u32 %v8528_v20, %v8524_v4  ;;  %v7653_v8 = vrot.slane %v15763_v41, 5  ;;  %v15807_v22 = vld [vmem:[#allocation2 + $0xac] sm:$0xf] }
 0x355   : > { %v8520_v10 = vrot.slane %v8519_v0, 4  ;;  %v15777_v25 = vrot.slane %v7404_v57, 4  ;;  %v7410_v47 = vshll.u32 %v15771_v18, 16  ;;  %v7656_v50 = vrot.slane %v15771_v18, 5 }
 0x356   : > { %v7379_v29 = vsel %vm12742_vm5, %v7374_v17, %v7378_v13  ;;  %v7389_v6 = vsel %vm12742_vm5, %v7384_v28, %v7388_v49  ;;  %v8530_v62 = vrot.slane %v8529_v16, 4  ;;  %v7654_v36 = vsel %vm12732_vm4, %v10741_v48, %v7653_v8  ;;  %v15826_v16 = vld [vmem:[#allocation2 + $0xa0] sm:$0xf] }
 0x357   : > { %v15781_v15 = vpop.f32.mrf.mxu0  ;;  %v15789_v60 = vpop.f32.mrf.mxu1  ;;  %v10756_v9 = vcombine.low %v7379_v29, %v7389_v6  ;;  %v8525_v31 = vsel %vm12742_vm5, %v8520_v10, %v8524_v4  ;;  %v7655_v30 = vrot.slane %v7653_v8, 4  ;;  %v11582_v37 = vadd.f32 %v15667_v35, %v15659_v44 }
 0x358   : > { %v8535_v13 = vsel %vm12742_vm5, %v8530_v62, %v8534_v21  ;;  %v11697_v32 = vadd.f32 %v15700_v55, %v15677_v53  ;;  %v11585_v12 = vadd.f32 %v15704_v1, %v15683_v58  ;;  %v10805_v14 = vcombine.low %v15745_v42, %v15747_v59  ;;  %v8244_v55 = vld [vmem:[#allocation2 + $0xb0] sm:$0x1]  ;;  %v7522_v21 = vld [vmem:[#allocation2 + $0x9c] sm:$0xe] }
 0x359   : > { %v15795_v61 = vpop.f32.mrf.mxu0  ;;  %v15809_v4 = vpop.f32.mrf.mxu1  ;;  %8055 = vmatmul.mubr.bf16.gmra.mxu1 %v10756_v9  ;;  %v10821_v44 = vcombine.low %v8525_v31, %v8535_v13  ;;  %v7657_v35 = vsel %vm12732_vm4, %v7655_v30, %v7656_v50  ;;  %v15813_v49 = vadd.f32 %v11694_v7, %v11582_v37  ;;  %v7391_v53 = vshrl.u32 %v7111_v39, 16  ;;  %v15835_v31 = vld [vmem:[#allocation2 + $0xa4] sm:$0x1] }
 0x35a   : > { %v10773_v58 = vcombine.low %v7654_v36, %v7657_v35  ;;  %v15817_v1 = vadd.f32 %v11697_v32, %v11585_v12  ;;  %v7394_v42 = vshll.u32 %v7111_v39, 16  ;;  %v7400_v59 = vshll.u32 %v15763_v41, 16 }
 0x35b   : > { %16842 = vst [vmem:[#allocation26_spill] sm:$0xff] %v15813_v49  ;;  %v15815_v24 = vpop.f32.mrf.mxu0  ;;  %v15820_v63 = vpop.f32.mrf.mxu1  ;;  %9040 = vmatprep.mubr.bf16.mxu0 %v10821_v44  ;;  %v7393_v20 = vrot.slane %v7391_v53, 4  ;;  %v8537_v18 = vshrl.u32 %v15805_v38, 16  ;;  %v8540_v0 = vshll.u32 %v15805_v38, 16  ;;  %v8546_v7 = vshll.u32 %v15807_v22, 16 }
 0x35c   : > { %16843 = vst [vmem:[#allocation13_spill] sm:$0xff] %v15817_v1  ;;  %8062 = vmatprep.mubr.bf16.mxu1 %v10773_v58  ;;  %9041 = vmatmul.mubr.bf16.gmra.mxu0 %v10805_v14  ;;  %v7396_v57 = vrot.slane %v7394_v42, 5  ;;  %v7402_v48 = vrot.slane %v7400_v59, 5  ;;  %v8550_v17 = vshrl.u32 %v15807_v22, 16  ;;  %v8556_v28 = vshll.u32 %v8244_v55, 16 }
 0x35d   : > { %v15828_v41 = vpop.f32.mrf.mxu0  ;;  %v8539_v8 = vrot.slane %v8537_v18, 4  ;;  %v8542_v10 = vrot.slane %v8540_v0, 5  ;;  %v8548_v50 = vrot.slane %v8546_v7, 5  ;;  %v11700_v29 = vadd.f32 %v15726_v11, %v15714_v23  ;;  %v15832_v6 = vpop.f32.mrf.mxu1  ;;  %v7114_v18 = vld [vmem:[#allocation2 + $0x9c] sm:$0xf] }
 0x35e   : > { %v7412_v62 = vrot.slane %v7410_v47, 5  ;;  %v7397_v36 = vor.u32 %v7396_v57, %v7393_v20  ;;  %v7407_v39 = vor.u32 %v15777_v25, %v7402_v48  ;;  %v8552_v9 = vrot.slane %v8550_v17, 4 }
 0x35f   : > { %v8543_v30 = vor.u32 %v8542_v10, %v8539_v8  ;;  %v8558_v37 = vrot.slane %v8556_v28, 5  ;;  %v7428_v13 = vshrl.u32 %v15826_v16, 16  ;;  %v10742_v32 = vrot.slane %v7522_v21, 9 }
 0x360   : > { %v7398_v12 = vrot.slane %v7397_v36, 4  ;;  %v7408_v14 = vrot.slane %v7407_v39, 4  ;;  %v8553_v44 = vor.u32 %v8552_v9, %v8548_v50  ;;  %v7660_v35 = vrot.slane %v15826_v16, 5  ;;  %v15869_v36 = vld [vmem:[#allocation2 + $0xb4] sm:$0xf] }
 0x361   : > { %v8544_v11 = vrot.slane %v8543_v30, 4  ;;  %v15841_v47 = vrot.slane %v7428_v13, 4  ;;  %v7434_v25 = vshll.u32 %v15835_v31, 16  ;;  %v7663_v53 = vrot.slane %v15835_v31, 5 }
 0x362   : > { %v15839_v23 = vpop.f32.mrf.mxu0  ;;  %v15845_v55 = vpop.f32.mrf.mxu1  ;;  %v7403_v58 = vsel %vm12742_vm5, %v7398_v12, %v7402_v48  ;;  %v7413_v42 = vsel %vm12742_vm5, %v7408_v14, %v7412_v62  ;;  %v8554_v59 = vrot.slane %v8553_v44, 4  ;;  %v7661_v20 = vsel %vm12732_vm4, %v10742_v32, %v7660_v35  ;;  %v7523_v12 = vld [vmem:[#allocation2 + $0xa8] sm:$0xe] }
 0x363   : > { %v10757_v7 = vcombine.low %v7403_v58, %v7413_v42  ;;  %v8549_v21 = vsel %vm12742_vm5, %v8544_v11, %v8548_v50  ;;  %v7662_v57 = vrot.slane %v7660_v35, 4  ;;  %v11588_v17 = vadd.f32 %v15729_v3, %v15716_v27  ;;  %v15871_v50 = vld [vmem:[#allocation2 + $0xb8] sm:$0xf] }
 0x364   : > { %v15853_v0 = vpop.f32.mrf.mxu0  ;;  %v15859_v28 = vpop.f32.mrf.mxu1  ;;  %v8559_v48 = vsel %vm12742_vm5, %v8554_v59, %v8558_v37  ;;  %v11703_v8 = vadd.f32 %v15768_v43, %v15753_v19  ;;  %v11591_v10 = vadd.f32 %v15773_v51, %v15758_v26  ;;  %v10806_v62 = vcombine.low %v15805_v38, %v15807_v22  ;;  %v8245_v43 = vld [vmem:[#allocation2 + $0xbc] sm:$0x1] }
 0x365   : > { %8063 = vmatmul.mubr.bf16.gmra.mxu1 %v10757_v7  ;;  %v10822_v27 = vcombine.low %v8549_v21, %v8559_v48  ;;  %v7664_v3 = vsel %vm12732_vm4, %v7662_v57, %v7663_v53  ;;  %v15877_v9 = vadd.f32 %v11700_v29, %v11588_v17  ;;  %v7415_v19 = vshrl.u32 %v7114_v18, 16  ;;  %v15892_v53 = vld [vmem:[#allocation2 + $0xac] sm:$0xf] }
 0x366   : > { %v15873_v39 = vpop.f32.mrf.mxu0  ;;  %v15879_v31 = vpop.f32.mrf.mxu1  ;;  %v10774_v26 = vcombine.low %v7661_v20, %v7664_v3  ;;  %v15881_v51 = vadd.f32 %v11703_v8, %v11591_v10  ;;  %v7418_v38 = vshll.u32 %v7114_v18, 16  ;;  %v7424_v22 = vshll.u32 %v15826_v16, 16  ;;  %v15901_v8 = vld [vmem:[#allocation2 + $0xb0] sm:$0x1] }
 0x367   : > { %16844 = vst [vmem:[#allocation14_spill] sm:$0xff] %v15877_v9  ;;  %9048 = vmatprep.mubr.bf16.mxu0 %v10822_v27  ;;  %v7417_v37 = vrot.slane %v7415_v19, 4  ;;  %v8561_v13 = vshrl.u32 %v15869_v36, 16  ;;  %v8564_v32 = vshll.u32 %v15869_v36, 16  ;;  %v8570_v29 = vshll.u32 %v15871_v50, 16 }
 0x368   : > { %16845 = vst [vmem:[#allocation16_spill] sm:$0xff] %v15881_v51  ;;  %v15884_v30 = vpop.f32.mrf.mxu0  ;;  %v15889_v14 = vpop.f32.mrf.mxu1  ;;  %8070 = vmatprep.mubr.bf16.mxu1 %v10774_v26  ;;  %9049 = vmatmul.mubr.bf16.gmra.mxu0 %v10806_v62  ;;  %v7420_v44 = vrot.slane %v7418_v38, 5  ;;  %v7426_v35 = vrot.slane %v7424_v22, 5  ;;  %v8574_v11 = vshrl.u32 %v15871_v50, 16  ;;  %v8580_v16 = vshll.u32 %v8245_v43, 16 }
 0x369   : > { %v8563_v42 = vrot.slane %v8561_v13, 4  ;;  %v8566_v59 = vrot.slane %v8564_v32, 5  ;;  %v8572_v20 = vrot.slane %v8570_v29, 5  ;;  %v11706_v18 = vadd.f32 %v15795_v61, %v15781_v15 }
 0x36a   : > { %v15894_v58 = vpop.f32.mrf.mxu0  ;;  %v15898_v7 = vpop.f32.mrf.mxu1  ;;  %v7436_v21 = vrot.slane %v7434_v25, 5  ;;  %v7421_v57 = vor.u32 %v7420_v44, %v7417_v37  ;;  %v7431_v17 = vor.u32 %v15841_v47, %v7426_v35  ;;  %v8576_v48 = vrot.slane %v8574_v11, 4 }
 0x36b   : > { %v8567_v62 = vor.u32 %v8566_v59, %v8563_v42  ;;  %v8582_v27 = vrot.slane %v8580_v16, 5  ;;  %v7452_v3 = vshrl.u32 %v15892_v53, 16  ;;  %v10743_v19 = vrot.slane %v7523_v12, 9  ;;  %v7117_v16 = vld [vmem:[#allocation2 + $0xa8] sm:$0xf] }
 0x36c   : > { %v15903_v10 = vpop.f32.mrf.mxu0  ;;  %v15906_v43 = vpop.f32.mrf.mxu1  ;;  %v7422_v26 = vrot.slane %v7421_v57, 4  ;;  %v7432_v15 = vrot.slane %v7431_v17, 4  ;;  %v8577_v61 = vor.u32 %v8576_v48, %v8572_v20  ;;  %v7667_v25 = vrot.slane %v15892_v53, 5 }
 0x36d   : > { %v8568_v47 = vrot.slane %v8567_v62, 4  ;;  %v15911_v22 = vrot.slane %v7452_v3, 4  ;;  %v7458_v37 = vshll.u32 %v15901_v8, 16  ;;  %v7670_v13 = vrot.slane %v15901_v8, 5 }
 0x36e   : > { %v15909_v38 = vpop.f32.mrf.mxu0  ;;  %v15915_v32 = vpop.f32.mrf.mxu1  ;;  %v7427_v29 = vsel %vm12742_vm5, %v7422_v26, %v7426_v35  ;;  %v7437_v12 = vsel %vm12742_vm5, %v7432_v15, %v7436_v21  ;;  %v8578_v44 = vrot.slane %v8577_v61, 4  ;;  %v7668_v11 = vsel %vm12732_vm4, %v10743_v19, %v7667_v25  ;;  %v15939_v19 = vld [vmem:[#allocation2 + $0xc0] sm:$0xf] }
 0x36f   : > { %v10758_v59 = vcombine.low %v7427_v29, %v7437_v12  ;;  %v8573_v57 = vsel %vm12742_vm5, %v8568_v47, %v8572_v20  ;;  %v7669_v17 = vrot.slane %v7667_v25, 4  ;;  %v11594_v48 = vadd.f32 %v15809_v4, %v15789_v60  ;;  %v15941_v20 = vld [vmem:[#allocation2 + $0xc4] sm:$0xf]  ;;  %v7524_v29 = vld [vmem:[#allocation2 + $0xb4] sm:$0xe] }
 0x370   : > { %v15923_v42 = vpop.f32.mrf.mxu0  ;;  %v15929_v8 = vpop.f32.mrf.mxu1  ;;  %v8583_v35 = vsel %vm12742_vm5, %v8578_v44, %v8582_v27  ;;  %v11709_v21 = vadd.f32 %v15828_v41, %v15815_v24  ;;  %v11597_v62 = vadd.f32 %v15832_v6, %v15820_v63  ;;  %v10807_v3 = vcombine.low %v15869_v36, %v15871_v50  ;;  %v8246_v41 = vld [vmem:[#allocation2 + $0xc8] sm:$0x1] }
 0x371   : > { %8071 = vmatmul.mubr.bf16.gmra.mxu1 %v10758_v59  ;;  %v10823_v60 = vcombine.low %v8573_v57, %v8583_v35  ;;  %v7671_v4 = vsel %vm12732_vm4, %v7669_v17, %v7670_v13  ;;  %v15947_v27 = vadd.f32 %v11706_v18, %v11594_v48  ;;  %v7439_v24 = vshrl.u32 %v7117_v16, 16  ;;  %v15962_v59 = vld [vmem:[#allocation2 + $0xb8] sm:$0xf] }
 0x372   : > { %v15943_v26 = vpop.f32.mrf.mxu0  ;;  %v15949_v15 = vpop.f32.mrf.mxu1  ;;  %v10775_v63 = vcombine.low %v7668_v11, %v7671_v4  ;;  %v15951_v6 = vadd.f32 %v11709_v21, %v11597_v62  ;;  %v7442_v36 = vshll.u32 %v7117_v16, 16  ;;  %v7448_v50 = vshll.u32 %v15892_v53, 16 }
 0x373   : > { %16846 = vst [vmem:[#allocation15_spill] sm:$0xff] %v15947_v27  ;;  %9056 = vmatprep.mubr.bf16.mxu0 %v10823_v60  ;;  %v7441_v25 = vrot.slane %v7439_v24, 4  ;;  %v8585_v47 = vshrl.u32 %v15939_v19, 16  ;;  %v8588_v13 = vshll.u32 %v15939_v19, 16  ;;  %v8594_v18 = vshll.u32 %v15941_v20, 16 }
 0x374   : > { %16847 = vst [vmem:[#allocation31_spill] sm:$0xff] %v15951_v6  ;;  %v15954_v61 = vpop.f32.mrf.mxu0  ;;  %v15959_v12 = vpop.f32.mrf.mxu1  ;;  %8078 = vmatprep.mubr.bf16.mxu1 %v10775_v63  ;;  %9057 = vmatmul.mubr.bf16.gmra.mxu0 %v10807_v3  ;;  %v7444_v44 = vrot.slane %v7442_v36, 5  ;;  %v7450_v11 = vrot.slane %v7448_v50, 5  ;;  %v8598_v16 = vshrl.u32 %v15941_v20, 16  ;;  %v8604_v53 = vshll.u32 %v8246_v41, 16 }
 0x375   : > { %v8587_v17 = vrot.slane %v8585_v47, 4  ;;  %v8590_v48 = vrot.slane %v8588_v13, 5  ;;  %v8596_v35 = vrot.slane %v8594_v18, 5  ;;  %v11712_v21 = vadd.f32 %v15853_v0, %v15839_v23  ;;  %v7122_v63 = vld [vmem:[#allocation2 + $0xbc] sm:$0x1] }
 0x376   : > { %v15964_v57 = vpop.f32.mrf.mxu0  ;;  %v15968_v62 = vpop.f32.mrf.mxu1  ;;  %v7460_v60 = vrot.slane %v7458_v37, 5  ;;  %v7445_v4 = vor.u32 %v7444_v44, %v7441_v25  ;;  %v7455_v3 = vor.u32 %v15911_v22, %v7450_v11  ;;  %v8600_v24 = vrot.slane %v8598_v16, 4 }
 0x377   : > { %v8591_v41 = vor.u32 %v8590_v48, %v8587_v17  ;;  %v8606_v50 = vrot.slane %v8604_v53, 5  ;;  %v7476_v6 = vshrl.u32 %v15962_v59, 16  ;;  %v10744_v47 = vrot.slane %v7524_v29, 9 }
 0x378   : > { %v15971_v36 = vpop.f32.mrf.mxu0  ;;  %v15974_v13 = vpop.f32.mrf.mxu1  ;;  %v7446_v18 = vrot.slane %v7445_v4, 4  ;;  %v7456_v27 = vrot.slane %v7455_v3, 4  ;;  %v8601_v23 = vor.u32 %v8600_v24, %v8596_v35  ;;  %v7674_v0 = vrot.slane %v15962_v59, 5  ;;  %v7120_v4 = vld [vmem:[#allocation2 + $0xb4] sm:$0xf] }
 0x379   : > { %v8592_v25 = vrot.slane %v8591_v41, 4  ;;  %v15979_v22 = vrot.slane %v7476_v6, 4  ;;  %v7482_v44 = vshll.u32 %v7122_v63, 16  ;;  %v7677_v16 = vrot.slane %v7122_v63, 5 }
 0x37a   : > { %v15977_v37 = vpop.f32.mrf.mxu0  ;;  %v15981_v51 = vpop.f32.mrf.mxu1  ;;  %v7451_v53 = vsel %vm12742_vm5, %v7446_v18, %v7450_v11  ;;  %v7461_v29 = vsel %vm12742_vm5, %v7456_v27, %v7460_v60  ;;  %v8602_v17 = vrot.slane %v8601_v23, 4  ;;  %v7675_v48 = vsel %vm12732_vm4, %v10744_v47, %v7674_v0  ;;  %v16005_v18 = vld [vmem:[#allocation2 + $0xc4] sm:$0xf] }
 0x37b   : > { %v10759_v24 = vcombine.low %v7451_v53, %v7461_v29  ;;  %v8597_v6 = vsel %vm12742_vm5, %v8592_v25, %v8596_v35  ;;  %v7676_v63 = vrot.slane %v7674_v0, 4  ;;  %v11600_v41 = vadd.f32 %v15859_v28, %v15845_v55  ;;  %v7525_v0 = vld [vmem:[#allocation2 + $0xc0] sm:$0xe] }
 0x37c   : > { %v15989_v3 = vpop.f32.mrf.mxu0  ;;  %v15995_v9 = vpop.f32.mrf.mxu1  ;;  %v8607_v27 = vsel %vm12742_vm5, %v8602_v17, %v8606_v50  ;;  %v11715_v11 = vadd.f32 %v15884_v30, %v15873_v39  ;;  %v11603_v60 = vadd.f32 %v15889_v14, %v15879_v31  ;;  %v10808_v47 = vcombine.low %v15939_v19, %v15941_v20  ;;  %v16018_v20 = vld [vmem:[#allocation2 + $0xc8] sm:$0x1] }
 0x37d   : > { %8079 = vmatmul.mubr.bf16.gmra.mxu1 %v10759_v24  ;;  %v10824_v55 = vcombine.low %v8597_v6, %v8607_v27  ;;  %v7678_v28 = vsel %vm12732_vm4, %v7676_v63, %v7677_v16  ;;  %v16011_v23 = vadd.f32 %v11712_v21, %v11600_v41  ;;  %v7463_v50 = vshrl.u32 %v7120_v4, 16  ;;  %v7123_v6 = vld [vmem:[#allocation2 + $0xc0] sm:$0xf] }
 0x37e   : > { %v16007_v35 = vpop.f32.mrf.mxu0  ;;  %v16013_v39 = vpop.f32.mrf.mxu1  ;;  %v10776_v30 = vcombine.low %v7675_v48, %v7678_v28  ;;  %v16015_v31 = vadd.f32 %v11715_v11, %v11603_v60  ;;  %v7466_v14 = vshll.u32 %v7120_v4, 16  ;;  %v7472_v19 = vshll.u32 %v15962_v59, 16 }
 0x37f   : > { %16848 = vst [vmem:[#allocation32_spill] sm:$0xff] %v16011_v23  ;;  %9064 = vmatprep.mubr.bf16.mxu0 %v10824_v55  ;;  %v7484_v53 = vrot.slane %v7482_v44, 5  ;;  %v7465_v29 = vrot.slane %v7463_v50, 4  ;;  %v11718_v21 = vadd.f32 %v15903_v10, %v15894_v58  ;;  %v7500_v16 = vshrl.u32 %v16005_v18, 16 }
 0x380   : > { %16849 = vst [vmem:[#allocation33_spill] sm:$0xff] %v16015_v31  ;;  %v16020_v25 = vpop.f32.mrf.mxu0  ;;  %v16025_v17 = vpop.f32.mrf.mxu1  ;;  %8086 = vmatprep.mubr.bf16.mxu1 %v10776_v30  ;;  %9065 = vmatmul.mubr.bf16.gmra.mxu0 %v10808_v47  ;;  %v7468_v48 = vrot.slane %v7466_v14, 5  ;;  %v7474_v4 = vrot.slane %v7472_v19, 5  ;;  %v10745_v24 = vrot.slane %v7525_v0, 9  ;;  %v7681_v59 = vrot.slane %v16005_v18, 5 }
 0x381   : > { %v7502_v41 = vrot.slane %v7500_v16, 4  ;;  %v7506_v44 = vshll.u32 %v16018_v20, 16  ;;  %v7684_v27 = vrot.slane %v16018_v20, 5  ;;  %v11606_v58 = vadd.f32 %v15906_v43, %v15898_v7 }
 0x382   : > { %v16028_v63 = vpop.f32.mrf.mxu0  ;;  %v16034_v10 = vpop.f32.mrf.mxu1  ;;  %v7469_v11 = vor.u32 %v7468_v48, %v7465_v29  ;;  %v7479_v60 = vor.u32 %v15979_v22, %v7474_v4  ;;  %v7682_v47 = vsel %vm12732_vm4, %v10745_v24, %v7681_v59  ;;  %v7683_v55 = vrot.slane %v7681_v59, 4  ;;  %v16051_v29 = vld [vmem:[#allocation2 + $0xcc] sm:$0xf] }
 0x383   : > { %v16041_v50 = vadd.f32 %v11718_v21, %v11606_v58  ;;  %v11721_v0 = vadd.f32 %v15923_v42, %v15909_v38  ;;  %v11609_v30 = vadd.f32 %v15929_v8, %v15915_v32  ;;  %v7487_v7 = vshrl.u32 %v7123_v6, 16  ;;  %v16058_v32 = vld [vmem:[#allocation2 + $0xd0] sm:$0xf]  ;;  %v8247_v8 = vld [vmem:[#allocation2 + $0xd4] sm:$0x1] }
 0x384   : > { %v16039_v28 = vpop.f32.mrf.mxu0  ;;  %v16047_v43 = vpop.f32.mrf.mxu1  ;;  %v7470_v14 = vrot.slane %v7469_v11, 4  ;;  %v7480_v19 = vrot.slane %v7479_v60, 4  ;;  %v7685_v22 = vsel %vm12732_vm4, %v7683_v55, %v7684_v27  ;;  %v7490_v20 = vshll.u32 %v7123_v6, 16 }
 0x385   : > { %16850 = vst [vmem:[#allocation34_spill] sm:$0xff] %v16041_v50  ;;  %v10777_v21 = vcombine.low %v7682_v47, %v7685_v22  ;;  %v16055_v48 = vadd.f32 %v11721_v0, %v11609_v30  ;;  %v7489_v38 = vrot.slane %v7487_v7, 4  ;;  %v7496_v42 = vshll.u32 %v16005_v18, 16  ;;  %v9177_v0 = vld [vmem:[#allocation2 + $0x18] sm:$0xe] }
 0x386   : > { %v16053_v16 = vpop.f32.mrf.mxu0  ;;  %v16060_v24 = vpop.f32.mrf.mxu1  ;;  %v7475_v59 = vsel %vm12742_vm5, %v7470_v14, %v7474_v4  ;;  %v7485_v6 = vsel %vm12742_vm5, %v7480_v19, %v7484_v53  ;;  %v7492_v27 = vrot.slane %v7490_v20, 5  ;;  %v11724_v58 = vadd.f32 %v15954_v61, %v15943_v26  ;;  %v9178_v19 = vld [vmem:[#allocation2 + $0x1c] sm:$0xf] }
 0x387   : > { %16851 = vst [vmem:[#allocation17_spill] sm:$0xff] %v16055_v48  ;;  %v10760_v60 = vcombine.low %v7475_v59, %v7485_v6  ;;  %v7498_v47 = vrot.slane %v7496_v42, 5  ;;  %v8609_v18 = vshrl.u32 %v16051_v29, 16  ;;  %v8612_v55 = vshll.u32 %v16051_v29, 16  ;;  %v9179_v42 = vld [vmem:[#allocation2 + $0x20] sm:$0x1] }
 0x388   : > { %v16068_v11 = vpop.f32.mrf.mxu0  ;;  %v16072_v30 = vpop.f32.mrf.mxu1  ;;  %v7493_v7 = vor.u32 %v7492_v27, %v7489_v38  ;;  %v8618_v4 = vshll.u32 %v16058_v32, 16  ;;  %v8622_v53 = vshrl.u32 %v16058_v32, 16  ;;  %v8628_v14 = vshll.u32 %v8247_v8, 16 }
 0x389   : > { %8087 = vmatmul.mubr.bf16.gmra.mxu1 %v10760_v60  ;;  %v7503_v26 = vor.u32 %v7502_v41, %v7498_v47  ;;  %v8611_v61 = vrot.slane %v8609_v18, 4  ;;  %v8614_v20 = vrot.slane %v8612_v55, 5  ;;  %v7508_v6 = vrot.slane %v7506_v44, 5 }
 0x38a   : > { %v16076_v22 = vpop.f32.mrf.mxu0  ;;  %v16078_v59 = vpop.f32.mrf.mxu1  ;;  %8094 = vmatprep.mubr.bf16.mxu1 %v10777_v21  ;;  %v7494_v48 = vrot.slane %v7493_v7, 4  ;;  %v8620_v50 = vrot.slane %v8618_v4, 5  ;;  %v8624_v38 = vrot.slane %v8622_v53, 4  ;;  %v10842_v8 = vrot.slane %v9177_v0, 9  ;;  %v9181_v0 = vld [vmem:[#allocation2 + $0x28] sm:$0xf] }
 0x38b   : > { %v7504_v31 = vrot.slane %v7503_v26, 4  ;;  %v8615_v23 = vor.u32 %v8614_v20, %v8611_v61  ;;  %v9275_v1 = vrot.slane %v9178_v19, 5  ;;  %v8630_v41 = vrot.slane %v8628_v14, 5  ;;  %v9182_v61 = vld [vmem:[#allocation2 + $0x2c] sm:$0x1] }
 0x38c   : > { %v16080_v27 = vpop.f32.mrf.mxu0  ;;  %v16082_v49 = vpop.f32.mrf.mxu1  ;;  %v8625_v60 = vor.u32 %v8624_v38, %v8620_v50  ;;  %v9278_v18 = vrot.slane %v9179_v42, 5  ;;  %v11612_v55 = vadd.f32 %v15959_v12, %v15949_v15  ;;  %v7499_v44 = vsel %vm12742_vm5, %v7494_v48, %v7498_v47  ;;  %v9184_v20 = vld [vmem:[#allocation2 + $0x34] sm:$0xf]  ;;  %v9180_v42 = vld [vmem:[#allocation2 + $0x24] sm:$0xe] }
 0x38d   : > { %v7509_v21 = vsel %vm12742_vm5, %v7504_v31, %v7508_v6  ;;  %v8616_v7 = vrot.slane %v8615_v23, 4  ;;  %v9277_v4 = vrot.slane %v9275_v1, 4  ;;  %v9276_v14 = vsel %vm12732_vm4, %v10842_v8, %v9275_v1 }
 0x38e   : > { %v16086_v34 = vpop.f32.mrf.mxu0  ;;  %v16092_v53 = vpop.f32.mrf.mxu1  ;;  %v8626_v19 = vrot.slane %v8625_v60, 4  ;;  %v16096_v26 = vadd.f32 %v11724_v58, %v11612_v55  ;;  %v11727_v15 = vadd.f32 %v15971_v36, %v15964_v57  ;;  %v10761_v48 = vcombine.low %v7499_v44, %v7509_v21  ;;  %v16120_v60 = vld [vmem:[#allocation2 + $0x40] sm:$0xf] }
 0x38f   : > { %v8621_v31 = vsel %vm12742_vm5, %v8616_v7, %v8620_v50  ;;  %v9279_v23 = vsel %vm12732_vm4, %v9277_v4, %v9278_v18  ;;  %v11615_v47 = vadd.f32 %v15974_v13, %v15968_v62  ;;  %v10809_v36 = vcombine.low %v16051_v29, %v16058_v32  ;;  %v9185_v13 = vld [vmem:[#allocation2 + $0x38] sm:$0x1]  ;;  %v9183_v29 = vld [vmem:[#allocation2 + $0x30] sm:$0xe] }
 0x390   : > { %v16100_v12 = vpop.f32.mrf.mxu0  ;;  %v16108_v1 = vpop.f32.mrf.mxu1  ;;  %v8631_v58 = vsel %vm12742_vm5, %v8626_v19, %v8630_v41  ;;  %v10858_v57 = vcombine.low %v9276_v14, %v9279_v23  ;;  %v9282_v6 = vrot.slane %v9181_v0, 5  ;;  %v11730_v62 = vadd.f32 %v15989_v3, %v15977_v37 }
 0x391   : > { %8095 = vmatmul.mubr.bf16.gmra.mxu1 %v10761_v48  ;;  %v10825_v38 = vcombine.low %v8621_v31, %v8631_v58  ;;  %v16116_v8 = vadd.f32 %v11727_v15, %v11615_v47  ;;  %v9285_v18 = vrot.slane %v9182_v61, 5  ;;  %v9289_v32 = vrot.slane %v9184_v20, 5  ;;  %v9190_v15 = vld [vmem:[#allocation2 + $0x4c] sm:$0xf]  ;;  %v9188_v20 = vld [vmem:[#allocation2 + $0x44] sm:$0x1] }
 0x392   : > { %v16114_v50 = vpop.f32.mrf.mxu0  ;;  %v16122_v5 = vpop.f32.mrf.mxu1  ;;  %12088 = vmatprep.mubr.bf16.mxu1 %v10858_v57  ;;  %v9284_v41 = vrot.slane %v9282_v6, 4  ;;  %v10843_v44 = vrot.slane %v9180_v42, 9  ;;  %v11618_v21 = vadd.f32 %v15995_v9, %v15981_v51  ;;  %v11733_v37 = vadd.f32 %v16020_v25, %v16007_v35 }
 0x393   : > { %9072 = vmatprep.mubr.bf16.mxu0 %v10825_v38  ;;  %v11621_v3 = vadd.f32 %v16025_v17, %v16013_v39  ;;  %v9291_v0 = vrot.slane %v9289_v32, 4  ;;  %v9292_v19 = vrot.slane %v9185_v13, 5  ;;  %v9296_v14 = vrot.slane %v16120_v60, 5  ;;  %v9189_v38 = vld [vmem:[#allocation2 + $0x48] sm:$0xe] }
 0x394   : > { %v16124_v55 = vpop.f32.mrf.mxu0  ;;  %v16132_v7 = vpop.f32.mrf.mxu1  ;;  %9073 = vmatmul.mubr.bf16.gmra.mxu0 %v10809_v36  ;;  %v9286_v4 = vsel %vm12732_vm4, %v9284_v41, %v9285_v18  ;;  %v10844_v9 = vrot.slane %v9183_v29, 9  ;;  %v16139_v51 = vadd.f32 %v11730_v62, %v11618_v21  ;;  %v9283_v39 = vsel %vm12732_vm4, %v10843_v44, %v9282_v6  ;;  %v9191_v62 = vld [vmem:[#allocation2 + $0x50] sm:$0x1]  ;;  %v9186_v60 = vld [vmem:[#allocation2 + $0x3c] sm:$0xe] }
 0x395   : > { %v16141_v35 = vadd.f32 %v11733_v37, %v11621_v3  ;;  %v9293_v17 = vsel %vm12732_vm4, %v9291_v0, %v9292_v19  ;;  %v11736_v31 = vadd.f32 %v16039_v28, %v16028_v63  ;;  %v10859_v47 = vcombine.low %v9283_v39, %v9286_v4  ;;  %v16161_v18 = vld [vmem:[#allocation2 + $0x58] sm:$0xf] }
 0x396   : > { %v16137_v48 = vpop.f32.mrf.mxu0  ;;  %v16143_v25 = vpop.f32.mrf.mxu1  ;;  %v9290_v61 = vsel %vm12732_vm4, %v10844_v9, %v9289_v32  ;;  %v9298_v58 = vrot.slane %v9296_v14, 4  ;;  %v9303_v57 = vrot.slane %v9190_v15, 5  ;;  %v11624_v6 = vadd.f32 %v16047_v43, %v16034_v10  ;;  %v9196_v43 = vld [vmem:[#allocation2 + $0x64] sm:$0xf] }
 0x397   : > { %v10860_v42 = vcombine.low %v9290_v61, %v9293_v17  ;;  %v11739_v13 = vadd.f32 %v16068_v11, %v16053_v16  ;;  %v11627_v63 = vadd.f32 %v16072_v30, %v16060_v24  ;;  %v9299_v32 = vrot.slane %v9188_v20, 5  ;;  %v9192_v20 = vld [vmem:[#allocation2 + $0x54] sm:$0xe] }
 0x398   : > { %v11750_v23 = vpop.f32.mrf.mxu0  ;;  %v11638_v36 = vpop.f32.mrf.mxu1  ;;  %v9305_v41 = vrot.slane %v9303_v57, 4  ;;  %v16165_v44 = vadd.f32 %v11736_v31, %v11624_v6  ;;  %v9306_v11 = vrot.slane %v9191_v62, 5  ;;  %v11742_v24 = vadd.f32 %v16080_v27, %v16076_v22  ;;  %v16190_v62 = vld [vmem:[#allocation2 + $0x70] sm:$0xf] }
 0x399   : > { %12089 = vmatmul.mubr.bf16.vlgmr.msra.gmra.mxu1 %v10859_v47  ;;  %v16167_v10 = vadd.f32 %v11739_v13, %v11627_v63  ;;  %v10845_v21 = vrot.slane %v9186_v60, 9  ;;  %v9300_v37 = vsel %vm12732_vm4, %v9298_v58, %v9299_v32  ;;  %v10846_v3 = vrot.slane %v9189_v38, 9  ;;  %v9194_v58 = vld [vmem:[#allocation2 + $0x5c] sm:$0x1] }
 0x39a   : > { %v16159_v28 = vpop.f32.mrf.mxu0  ;;  %v16163_v29 = vpop.f32.mrf.mxu1  ;;  %12092 = vmatprep.mubr.bf16.mxu1 %v10860_v42  ;;  %v9310_v4 = vrot.slane %v16161_v18, 5  ;;  %v9307_v19 = vsel %vm12732_vm4, %v9305_v41, %v9306_v11  ;;  %v9317_v15 = vrot.slane %v9196_v43, 5  ;;  %v11630_v9 = vadd.f32 %v16082_v49, %v16078_v59  ;;  %v16194_v63 = vld [vmem:[#allocation2 + $0x7c] sm:$0xf] }
 0x39b   : > { %v11745_v39 = vadd.f32 %v16100_v12, %v16086_v34  ;;  %v9297_v27 = vsel %vm12732_vm4, %v10845_v21, %v9296_v14  ;;  %v11633_v17 = vadd.f32 %v16108_v1, %v16092_v53  ;;  %v9304_v61 = vsel %vm12732_vm4, %v10846_v3, %v9303_v57  ;;  %v9197_v34 = vld [vmem:[#allocation2 + $0x68] sm:$0x1]  ;;  %v9195_v53 = vld [vmem:[#allocation2 + $0x60] sm:$0xe] }
 0x39c   : > { %v11753_v16 = vpop.f32.mrf.mxu0  ;;  %v11641_v30 = vpop.f32.mrf.mxu1  ;;  %v10861_v47 = vcombine.low %v9297_v27, %v9300_v37  ;;  %v16186_v42 = vadd.f32 %v11742_v24, %v11630_v9  ;;  %v10862_v59 = vcombine.low %v9304_v61, %v9307_v19  ;;  %v9312_v38 = vrot.slane %v9310_v4, 4  ;;  %v9200_v9 = vld [vmem:[#allocation2 + $0x74] sm:$0x1] }
 0x39d   : > { %v16188_v12 = vadd.f32 %v11745_v39, %v11633_v17  ;;  %v9319_v1 = vrot.slane %v9317_v15, 4  ;;  %v11748_v6 = vadd.f32 %v16124_v55, %v16114_v50  ;;  %v9313_v13 = vrot.slane %v9194_v58, 5 }
 0x39e   : > { %v11755_v0 = vpop.f32.mrf.mxu0  ;;  %v11643_v22 = vpop.f32.mrf.mxu1  ;;  %v11636_v60 = vadd.f32 %v16132_v7, %v16122_v5  ;;  %v11751_v41 = vadd.f32 %v11750_v23, %v16137_v48  ;;  %v11639_v18 = vadd.f32 %v11638_v36, %v16143_v25  ;;  %v10847_v43 = vrot.slane %v9192_v20, 9 }
 0x39f   : > { %v9320_v11 = vrot.slane %v9197_v34, 5  ;;  %v9324_v24 = vrot.slane %v16190_v62, 5  ;;  %v9314_v50 = vsel %vm12732_vm4, %v9312_v38, %v9313_v13  ;;  %v10848_v55 = vrot.slane %v9195_v53, 9  ;;  %v9203_v38 = vld [vmem:[#allocation2 + $0x80] sm:$0x1] }
 0x3a0   : > { %v11756_v31 = vpop.f32.mrf.mxu0  ;;  %v11644_v49 = vpop.f32.mrf.mxu1  ;;  %v16203_v37 = vadd.f32 %v11748_v6, %v11636_v60  ;;  %v16205_v3 = vadd.f32 %v11751_v41, %v11639_v18  ;;  %v9331_v7 = vrot.slane %v16194_v63, 5  ;;  %v11754_v48 = vadd.f32 %v11753_v16, %v16159_v28  ;;  %v16220_v6 = vld [vmem:[#allocation2 + $0x94] sm:$0xf] }
 0x3a1   : > { %12093 = vmatmul.mubr.bf16.gmra.mxu1 %v10861_v47  ;;  %v9321_v5 = vsel %vm12732_vm4, %v9319_v1, %v9320_v11  ;;  %v9311_v23 = vsel %vm12732_vm4, %v10847_v43, %v9310_v4  ;;  %v9318_v36 = vsel %vm12732_vm4, %v10848_v55, %v9317_v15  ;;  %v9326_v17 = vrot.slane %v9324_v24, 4  ;;  %v16216_v4 = vld [vmem:[#allocation2 + $0x88] sm:$0xf]  ;;  %v9201_v1 = vld [vmem:[#allocation2 + $0x78] sm:$0xe] }
 0x3a2   : > { %v11758_v14 = vpop.f32.mrf.mxu0  ;;  %v11646_v57 = vpop.f32.mrf.mxu1  ;;  %12096 = vmatprep.mubr.bf16.mxu1 %v10862_v59  ;;  %v10863_v27 = vcombine.low %v9311_v23, %v9314_v50  ;;  %v11642_v47 = vadd.f32 %v11641_v30, %v16163_v29  ;;  %v11757_v61 = vadd.f32 %v11756_v31, %v11755_v0  ;;  %v10864_v58 = vcombine.low %v9318_v36, %v9321_v5  ;;  %v9198_v59 = vld [vmem:[#allocation2 + $0x6c] sm:$0xe] }
 0x3a3   : > { %v11645_v34 = vadd.f32 %v11644_v49, %v11643_v22  ;;  %v9327_v16 = vrot.slane %v9200_v9, 5  ;;  %v9333_v62 = vrot.slane %v9331_v7, 4  ;;  %v10849_v0 = vrot.slane %v9198_v59, 9 }
 0x3a4   : > { %v11759_v32 = vpop.f32.mrf.mxu0  ;;  %v11647_v21 = vpop.f32.mrf.mxu1  ;;  %v16218_v53 = vadd.f32 %v11754_v48, %v11642_v47  ;;  %v9334_v31 = vrot.slane %v9203_v38, 5  ;;  %v9338_v63 = vrot.slane %v16216_v4, 5  ;;  %v10850_v11 = vrot.slane %v9201_v1, 9 }
 0x3a5   : > { %v16222_v29 = vadd.f32 %v11757_v61, %v11645_v34  ;;  %v9328_v22 = vsel %vm12732_vm4, %v9326_v17, %v9327_v16  ;;  %v11760_v49 = vadd.f32 %v11759_v32, %v11758_v14  ;;  %v11648_v60 = vadd.f32 %v11647_v21, %v11646_v57  ;;  %v9206_v21 = vld [vmem:[#allocation2 + $0x8c] sm:$0x1]  ;;  %v9209_v17 = vld [vmem:[#allocation2 + $0x98] sm:$0x1]  ;;  %v9207_v61 = vld [vmem:[#allocation2 + $0x90] sm:$0xe] }
 0x3a6   : > { %v11761_v19 = vpop.f32.mrf.mxu0  ;;  %v11649_v25 = vpop.f32.mrf.mxu1  ;;  %v9335_v50 = vsel %vm12732_vm4, %v9333_v62, %v9334_v31  ;;  %v9345_v55 = vrot.slane %v16220_v6, 5  ;;  %v9325_v48 = vsel %vm12732_vm4, %v10849_v0, %v9324_v24  ;;  %v9332_v57 = vsel %vm12732_vm4, %v10850_v11, %v9331_v7  ;;  %v9214_v16 = vld [vmem:[#allocation2 + $0xac] sm:$0xf] }
 0x3a7   : > { %v16232_v23 = vadd.f32 %v11760_v49, %v11648_v60  ;;  %v10865_v36 = vcombine.low %v9325_v48, %v9328_v22  ;;  %v10866_v9 = vcombine.low %v9332_v57, %v9335_v50  ;;  %v9341_v34 = vrot.slane %v9206_v21, 5 }
 0x3a8   : > { %v11762_v39 = vpop.f32.mrf.mxu0  ;;  %v11650_v20 = vpop.f32.mrf.mxu1  ;;  %v9347_v24 = vrot.slane %v9345_v55, 4  ;;  %v9348_v4 = vrot.slane %v9209_v17, 5  ;;  %v10852_v0 = vrot.slane %v9207_v61, 9  ;;  %v9217_v17 = vld [vmem:[#allocation2 + $0xb8] sm:$0xf] }
 0x3a9   : > { %12097 = vmatmul.mubr.bf16.gmra.mxu1 %v10863_v27  ;;  %v11763_v41 = vadd.f32 %v11762_v39, %v11761_v19  ;;  %v11651_v18 = vadd.f32 %v11650_v20, %v11649_v25  ;;  %v9204_v39 = vld [vmem:[#allocation2 + $0x84] sm:$0xe]  ;;  %v9340_v27 = vrot.slane %v9338_v63, 4  ;;  %v16238_v20 = vld [vmem:[#allocation2 + $0xa0] sm:$0xf] }
 0x3aa   : > { %v11764_v28 = vpop.f32.mrf.mxu0  ;;  %v11652_v15 = vpop.f32.mrf.mxu1  ;;  %12100 = vmatprep.mubr.bf16.mxu1 %v10864_v58  ;;  %v9352_v22 = vrot.slane %v16238_v20, 5  ;;  %v9349_v49 = vsel %vm12732_vm4, %v9347_v24, %v9348_v4  ;;  %v9346_v48 = vsel %vm12732_vm4, %v10852_v0, %v9345_v55  ;;  %v9213_v61 = vld [vmem:[#allocation2 + $0xa8] sm:$0xe]  ;;  %v9220_v24 = vld [vmem:[#allocation2 + $0xc4] sm:$0xf] }
 0x3ab   : > { %v16234_v14 = vadd.f32 %v11763_v41, %v11651_v18  ;;  %v9373_v0 = vrot.slane %v9220_v24, 5 }
 0x3ac   : > { %v11765_v30 = vpop.f32.mrf.mxu0  ;;  %v11653_v13 = vpop.f32.mrf.mxu1 }
 0x3ad   : > { %v11766_v19 = vadd.f32 %v11765_v30, %v11764_v28  ;;  %v11654_v58 = vadd.f32 %v11653_v13, %v11652_v15  ;;  %v10851_v28 = vrot.slane %v9204_v39, 9  ;;  %v9342_v30 = vsel %vm12732_vm4, %v9340_v27, %v9341_v34 }
 0x3ae   : > { %v11767_v43 = vpop.f32.mrf.mxu0  ;;  %v11655_v5 = vpop.f32.mrf.mxu1  ;;  %v9359_v13 = vrot.slane %v9214_v16, 5 }
 0x3af   : > { %v16240_v1 = vadd.f32 %v11766_v19, %v11654_v58  ;;  %v9339_v11 = vsel %vm12732_vm4, %v10851_v28, %v9338_v63  ;;  %v10868_v19 = vcombine.low %v9346_v48, %v9349_v49 }
 0x3b0   : > { %v11768_v32 = vpop.f32.mrf.mxu0  ;;  %v11656_v25 = vpop.f32.mrf.mxu1 }
 0x3b1   : > { %12101 = vmatmul.mubr.bf16.gmra.mxu1 %v10865_v36  ;;  %v11769_v59 = vadd.f32 %v11768_v32, %v11767_v43  ;;  %v11657_v7 = vadd.f32 %v11656_v25, %v11655_v5  ;;  %v11570_v43 = vadd.f32 %v15571_v2, %v15551_v33  ;;  %v10867_v5 = vcombine.low %v9339_v11, %v9342_v30  ;;  %v9212_v32 = vld [vmem:[#allocation2 + $0xa4] sm:$0x1]  ;;  %v9210_v33 = vld [vmem:[#allocation2 + $0x9c] sm:$0xe]  ;;  %v9218_v11 = vld [vmem:[#allocation2 + $0xbc] sm:$0x1] }
 0x3b2   : > { %v11770_v47 = vpop.f32.mrf.mxu0  ;;  %v11658_v38 = vpop.f32.mrf.mxu1  ;;  %12104 = vmatprep.mubr.bf16.mxu1 %v10866_v9  ;;  %v9354_v25 = vrot.slane %v9352_v22, 4  ;;  %v9215_v9 = vld [vmem:[#allocation2 + $0xb0] sm:$0x1]  ;;  %v9361_v2 = vrot.slane %v9359_v13, 4  ;;  %v10853_v16 = vrot.slane %v9210_v33, 9 }
 0x3b3   : > { %v16245_v31 = vadd.f32 %v11769_v59, %v11657_v7  ;;  %v7014_v58 = vadd.f32 %v15671_v54, %v11570_v43  ;;  %v9362_v59 = vrot.slane %v9215_v9, 5  ;;  %v11573_v54 = vadd.f32 %v15593_v45, %v15585_v40  ;;  %v9221_v45 = vld [vmem:[#allocation2 + $0xc8] sm:$0x1] }
 0x3b4   : > { %v11771_v62 = vpop.f32.mrf.mxu0  ;;  %v11659_v6 = vpop.f32.mrf.mxu1  ;;  %v9353_v49 = vsel %vm12732_vm4, %v10853_v16, %v9352_v22 }
 0x3b5   : > { %v11772_v60 = vadd.f32 %v11771_v62, %v11770_v47  ;;  %v11660_v41 = vadd.f32 %v11659_v6, %v11658_v38  ;;  %v9355_v47 = vrot.slane %v9212_v32, 5  ;;  %v9366_v62 = vrot.slane %v9217_v17, 5 }
 0x3b6   : > { %v11773_v15 = vpop.f32.mrf.mxu0  ;;  %v11661_v18 = vpop.f32.mrf.mxu1  ;;  %v10854_v6 = vrot.slane %v9213_v61, 9  ;;  %v9363_v30 = vsel %vm12732_vm4, %v9361_v2, %v9362_v59  ;;  %v7015_v32 = vadd.f32 %v15689_v52, %v11573_v54  ;;  %v9376_v52 = vrot.slane %v9221_v45, 5 }
 0x3b7   : > { %v16255_v36 = vadd.f32 %v11772_v60, %v11660_v41  ;;  %v9356_v7 = vsel %vm12732_vm4, %v9354_v25, %v9355_v47  ;;  %v9368_v40 = vrot.slane %v9366_v62, 4  ;;  %v9375_v25 = vrot.slane %v9373_v0, 4  ;;  %v9224_v47 = vld [vmem:[#allocation2 + $0xd4] sm:$0x1] }
 0x3b8   : > { %v11774_v50 = vpop.f32.mrf.mxu0  ;;  %v11662_v21 = vpop.f32.mrf.mxu1  ;;  %v9360_v43 = vsel %vm12732_vm4, %v10854_v6, %v9359_v13  ;;  %v9219_v13 = vld [vmem:[#allocation2 + $0xc0] sm:$0xe]  ;;  %v9383_v6 = vrot.slane %v9224_v47, 5 }
 0x3b9   : > { %16852 = vst [vmem:[#allocation18_spill] sm:$0xff] %v16255_v36  ;;  %v11775_v57 = vadd.f32 %v11774_v50, %v11773_v15  ;;  %v11663_v39 = vadd.f32 %v11662_v21, %v11661_v18  ;;  %12105 = vmatmul.mubr.bf16.gmra.mxu1 %v10867_v5  ;;  %v10869_v18 = vcombine.low %v9353_v49, %v9356_v7  ;;  %v9223_v50 = vld [vmem:[#allocation2 + $0xd0] sm:$0xf]  ;;  %v9216_v21 = vld [vmem:[#allocation2 + $0xb4] sm:$0xe] }
 0x3ba   : > { %v11904_v27 = vpop.f32.mrf.mxu0  ;;  %v11792_v63 = vpop.f32.mrf.mxu1  ;;  %12108 = vmatprep.mubr.bf16.mxu1 %v10868_v19  ;;  %v10855_v17 = vrot.slane %v9216_v21, 9  ;;  %v9377_v16 = vsel %vm12732_vm4, %v9375_v25, %v9376_v52  ;;  %v16855_v25 = vld [vmem:[#allocation26_spill] sm:$0xff]  ;;  %v16856_v52 = vld [vmem:[#allocation13_spill] sm:$0xff] }
 0x3bb   : > { %v16257_v55 = vadd.f32 %v11775_v57, %v11663_v39  ;;  %v10870_v57 = vcombine.low %v9360_v43, %v9363_v30  ;;  %v9369_v39 = vrot.slane %v9218_v11, 5 }
 0x3bc   : > { %v11905_v20 = vpop.f32.mrf.mxu0  ;;  %v11793_v34 = vpop.f32.mrf.mxu1  ;;  %v9367_v59 = vsel %vm12732_vm4, %v10855_v17, %v9366_v62 }
 0x3bd   : > { %16853 = vst [vmem:[#allocation35_spill] sm:$0xff] %v16257_v55  ;;  %v16260_v38 = vadd.f32 %v11905_v20, %v11904_v27  ;;  %v11794_v28 = vadd.f32 %v11793_v34, %v11792_v63  ;;  %v9380_v27 = vrot.slane %v9223_v50, 5  ;;  %v9222_v63 = vld [vmem:[#allocation2 + $0xcc] sm:$0xe]  ;;  %v9370_v24 = vsel %vm12732_vm4, %v9368_v40, %v9369_v39 }
 0x3be   : > { %v11907_v4 = vpop.f32.mrf.mxu0  ;;  %v11795_v15 = vpop.f32.mrf.mxu1  ;;  %v10856_v34 = vrot.slane %v9219_v13, 9  ;;  %v10871_v54 = vcombine.low %v9367_v59, %v9370_v24 }
 0x3bf   : > { %v16270_v60 = vadd.f32 %v11794_v28, %v7014_v58  ;;  %v10857_v28 = vrot.slane %v9222_v63, 9 }
 0x3c0   : > { %v11908_v41 = vpop.f32.mrf.mxu0  ;;  %v11796_v48 = vpop.f32.mrf.mxu1  ;;  %v9374_v49 = vsel %vm12732_vm4, %v10856_v34, %v9373_v0  ;;  %v16857_v34 = vld [vmem:[#allocation14_spill] sm:$0xff] }
 0x3c1   : > { %v16274_v5 = vadd.f32 %v11908_v41, %v11907_v4  ;;  %v11797_v19 = vadd.f32 %v11796_v48, %v11795_v15  ;;  %12109 = vmatmul.mubr.bf16.gmra.mxu1 %v10869_v18  ;;  %v9382_v4 = vrot.slane %v9380_v27, 4  ;;  %v10872_v18 = vcombine.low %v9374_v49, %v9377_v16  ;;  %v16854_v48 = vld [vmem:[#allocation12_spill] sm:$0xff] }
 0x3c2   : > { %v16277_v22 = vpop.f32.mrf.mxu0  ;;  %v11798_v9 = vpop.f32.mrf.mxu1  ;;  %12112 = vmatprep.mubr.bf16.mxu1 %v10870_v57  ;;  %v9381_v50 = vsel %vm12732_vm4, %v10857_v28, %v9380_v27  ;;  %v16858_v49 = vld [vmem:[#allocation16_spill] sm:$0xff] }
 0x3c3   : > { %v16279_v33 = vadd.f32 %v11797_v19, %v7015_v32 }
 0x3c4   : > { %v16281_v2 = vpop.f32.mrf.mxu0  ;;  %v11799_v61 = vpop.f32.mrf.mxu1 }
 0x3c5   : > { %v11800_v20 = vadd.f32 %v11799_v61, %v11798_v9 }
 0x3c6   : > { %v16285_v58 = vpop.f32.mrf.mxu0  ;;  %v11801_v7 = vpop.f32.mrf.mxu1 }
 0x3c7   : > { %v16292_v30 = vadd.f32 %v11800_v20, %v15751_v56  ;;  %v9384_v56 = vsel %vm12732_vm4, %v9382_v4, %v9383_v6 }
 0x3c8   : > { %v16294_v15 = vpop.f32.mrf.mxu0  ;;  %v11802_v41 = vpop.f32.mrf.mxu1  ;;  %v10873_v45 = vcombine.low %v9381_v50, %v9384_v56 }
 0x3c9   : > { %v11803_v62 = vadd.f32 %v11802_v41, %v11801_v7  ;;  %12113 = vmatmul.mubr.bf16.gmra.mxu1 %v10871_v54 }
 0x3ca   : > { %v11916_v43 = vpop.f32.mrf.mxu0  ;;  %v11804_v11 = vpop.f32.mrf.mxu1  ;;  %12116 = vmatprep.mubr.bf16.mxu1 %v10872_v18 }
 0x3cb   : > { %v16303_v32 = vadd.f32 %v11803_v62, %v16854_v48  ;;  %v16859_v48 = vld [vmem:[#allocation15_spill] sm:$0xff] }
 0x3cc   : > { %v11917_v57 = vpop.f32.mrf.mxu0  ;;  %v11805_v21 = vpop.f32.mrf.mxu1 }
 0x3cd   : > { %v11806_v40 = vadd.f32 %v11805_v21, %v11804_v11 }
 0x3ce   : > { %v16305_v0 = vpop.f32.mrf.mxu0  ;;  %v11807_v19 = vpop.f32.mrf.mxu1 }
 0x3cf   : > { %v8139_v9 = vadd.f32 %v11806_v40, %v16855_v25 }
 0x3d0   : > { %v16308_v39 = vpop.f32.mrf.mxu0  ;;  %v11808_v13 = vpop.f32.mrf.mxu1 }
 0x3d1   : > { %v11809_v17 = vadd.f32 %v11808_v13, %v11807_v19  ;;  %12117 = vmatmul.mubr.bf16.gmra.mxu1 %v10873_v45  ;;  %v16340_v45 = vadd.f32 %v16260_v38, %v16270_v60  ;;  %v16354_v38 = vadd.f32 %v16274_v5, %v16279_v33 }
 0x3d2   : > { %v16310_v27 = vpop.f32.mrf.mxu0  ;;  %v11810_v46 = vpop.f32.mrf.mxu1 }
 0x3d3   : > { %v16313_v63 = vadd.f32 %v11809_v17, %v16856_v52  ;;  %v16860_v17 = vld [vmem:[#allocation31_spill] sm:$0xff] }
 0x3d4   : > { %v16315_v47 = vpop.f32.mrf.mxu0  ;;  %v11811_v61 = vpop.f32.mrf.mxu1 }
 0x3d5   : > { %v11812_v24 = vadd.f32 %v11811_v61, %v11810_v46 }
 0x3d6   : > { %v16317_v20 = vpop.f32.mrf.mxu0  ;;  %v11813_v59 = vpop.f32.mrf.mxu1 }
 0x3d7   : > { %v16320_v16 = vadd.f32 %v11812_v24, %v16857_v34  ;;  %v11918_v34 = vadd.f32 %v11917_v57, %v11916_v43 }
 0x3d8   : > { %v16322_v7 = vpop.f32.mrf.mxu0  ;;  %v11814_v28 = vpop.f32.mrf.mxu1 }
 0x3d9   : > { %v11815_v4 = vadd.f32 %v11814_v28, %v11813_v59 }
 0x3da   : > { %v16324_v6 = vpop.f32.mrf.mxu0  ;;  %v11816_v54 = vpop.f32.mrf.mxu1 }
 0x3db   : > { %v16327_v41 = vadd.f32 %v11815_v4, %v16858_v49  ;;  %v16861_v4 = vld [vmem:[#allocation32_spill] sm:$0xff] }
 0x3dc   : > { %v16329_v18 = vpop.f32.mrf.mxu0  ;;  %v11817_v62 = vpop.f32.mrf.mxu1 }
 0x3dd   : > { %v11818_v11 = vadd.f32 %v11817_v62, %v11816_v54  ;;  %v16356_v62 = vadd.f32 %v11918_v34, %v8139_v9  ;;  %v16865_v9 = vld [vmem:[#allocation17_spill] sm:$0xff] }
 0x3de   : > { %v16331_v50 = vpop.f32.mrf.mxu0  ;;  %v11819_v56 = vpop.f32.mrf.mxu1 }
 0x3df   : > { %v16334_v21 = vadd.f32 %v11818_v11, %v16859_v48 }
 0x3e0   : > { %v16336_v40 = vpop.f32.mrf.mxu0  ;;  %v11820_v19 = vpop.f32.mrf.mxu1 }
 0x3e1   : > { %v11821_v25 = vadd.f32 %v11820_v19, %v11819_v56  ;;  %v16862_v56 = vld [vmem:[#allocation33_spill] sm:$0xff] }
 0x3e2   : > { %v11822_v13 = vpop.f32.mrf.mxu1  ;;  %v16345_v52 = vpop.f32.mrf.mxu0 }
 0x3e3   : > { %v16343_v46 = vadd.f32 %v11821_v25, %v16860_v17  ;;  %v16863_v17 = vld [vmem:[#allocation34_spill] sm:$0xff] }
 0x3e4   : > { %v11823_v61 = vpop.f32.mrf.mxu1  ;;  %v16347_v28 = vpop.f32.mrf.mxu0 }
 0x3e5   : > { %v11824_v24 = vadd.f32 %v11823_v61, %v11822_v13 }
 0x3e6   : > { %v11825_v59 = vpop.f32.mrf.mxu1  ;;  %v16358_v11 = vpop.f32.mrf.mxu0 }
 0x3e7   : > { %v16350_v54 = vadd.f32 %v11824_v24, %v16861_v4 }
 0x3e8   : > { %v11826_v60 = vpop.f32.mrf.mxu1  ;;  %v16363_v43 = vpop.f32.mrf.mxu0 }
 0x3e9   : > { %v11827_v49 = vadd.f32 %v11826_v60, %v11825_v59 }
 0x3ea   : > { %v16368_v5 = vpop.f32.mrf.mxu0 }
 0x3eb   : > { %v16361_v48 = vadd.f32 %v11827_v49, %v16862_v56 }
 0x3ec   : > { %v16373_v34 = vpop.f32.mrf.mxu0 }
 0x3ed   : > { %v11828_v19 = vpop.f32.mrf.mxu1 }
 0x3ee   : > { %v16375_v56 = vpop.f32.mrf.mxu0 }
 0x3ef   : > { %v11829_v57 = vpop.f32.mrf.mxu1  ;;  %16867 = vst [vmem:[#allocation19_spill] sm:$0xff] %v16375_v56 }
 0x3f0   : > { %v11830_v25 = vadd.f32 %v11829_v57, %v11828_v19 }
 0x3f1   : > { %v11831_v13 = vpop.f32.mrf.mxu1 }
 0x3f2   : > { %v16366_v61 = vadd.f32 %v11830_v25, %v16863_v17  ;;  %v16380_v17 = vpop.f32.mrf.mxu0 }
 0x3f3   : > { %v11832_v33 = vpop.f32.mrf.mxu1  ;;  %16868 = vst [vmem:[#allocation10_spill] sm:$0xff] %v16380_v17 }
 0x3f4   : > { %16864 = vst [vmem:[#allocation36_spill] sm:$0xff] %v16366_v61  ;;  %v11833_v24 = vadd.f32 %v11832_v33, %v11831_v13 }
 0x3f6   : > { %v16371_v59 = vadd.f32 %v11833_v24, %v16865_v9  ;;  %v16385_v24 = vpop.f32.mrf.mxu0 }
 0x3f7   : > { %v11834_v4 = vpop.f32.mrf.mxu1 }
 0x3f8   : > { %16866 = vst [vmem:[#allocation20_spill] sm:$0xff] %v16371_v59 }
 0x3f9   : > { %v11835_v60 = vpop.f32.mrf.mxu1 }
 0x3fa   : > { %v11836_v49 = vadd.f32 %v11835_v60, %v11834_v4  ;;  %v16387_v4 = vpop.f32.mrf.mxu0 }
 0x3fb   : > { %v11837_v55 = vpop.f32.mrf.mxu1 }
 0x3fc   : > { %v16378_v19 = vadd.f32 %v11836_v49, %v16096_v26  ;;  %v16392_v56 = vpop.f32.mrf.mxu0 }
 0x3fd   : > { %v11838_v57 = vpop.f32.mrf.mxu1 }
 0x3fe   : > { %v11839_v25 = vadd.f32 %v11838_v57, %v11837_v55  ;;  %v16397_v57 = vpop.f32.mrf.mxu0 }
 0x400   : > { %v16383_v13 = vadd.f32 %v11839_v25, %v16116_v8 }
 0x402   : > { %16869 = vst [vmem:[#allocation24_spill] sm:$0xff] %v16383_v13  ;;  %v11840_v33 = vpop.f32.mrf.mxu1 }
 0x404   : > { %v11841_v9 = vpop.f32.mrf.mxu1 }
 0x405   : > { %v11842_v36 = vadd.f32 %v11841_v9, %v11840_v33  ;;  %v16402_v9 = vpop.f32.mrf.mxu0 }
 0x406   : > { %v11843_v59 = vpop.f32.mrf.mxu1 }
 0x407   : > { %v16390_v60 = vadd.f32 %v11842_v36, %v16139_v51 }
 0x408   : > { %v11844_v26 = vpop.f32.mrf.mxu1 }
 0x409   : > { %16870 = vst [vmem:[#allocation21_spill] sm:$0xff] %v16390_v60  ;;  %v11845_v49 = vadd.f32 %v11844_v26, %v11843_v59  ;;  %v16407_v26 = vpop.f32.mrf.mxu0 }
 0x40b   : > { %v16395_v55 = vadd.f32 %v11845_v49, %v16141_v35  ;;  %v16409_v49 = vpop.f32.mrf.mxu0 }
 0x40c   : > { %16874 = vst [vmem:[#allocation38_spill] sm:$0xff] %v16409_v49 }
 0x40d   : > { %16871 = vst [vmem:[#allocation22_spill] sm:$0xff] %v16395_v55  ;;  %v11846_v8 = vpop.f32.mrf.mxu1 }
 0x40f   : > { %v11847_v25 = vpop.f32.mrf.mxu1 }
 0x410   : > { %v11848_v13 = vadd.f32 %v11847_v25, %v11846_v8  ;;  %v16411_v8 = vpop.f32.mrf.mxu0 }
 0x411   : > { %v11849_v17 = vpop.f32.mrf.mxu1  ;;  %16875 = vst [vmem:[#allocation37_spill] sm:$0xff] %v16411_v8 }
 0x412   : > { %v16400_v33 = vadd.f32 %v11848_v13, %v16165_v44 }
 0x413   : > { %v11850_v51 = vpop.f32.mrf.mxu1 }
 0x414   : > { %16872 = vst [vmem:[#allocation23_spill] sm:$0xff] %v16400_v33  ;;  %v11851_v36 = vadd.f32 %v11850_v51, %v11849_v17  ;;  %v16416_v33 = vpop.f32.mrf.mxu0 }
 0x416   : > { %v16405_v59 = vadd.f32 %v11851_v36, %v16167_v10  ;;  %v16421_v51 = vpop.f32.mrf.mxu0 }
 0x418   : > { %16873 = vst [vmem:[#allocation25_spill] sm:$0xff] %v16405_v59 }
 0x419   : > { %v11852_v35 = vpop.f32.mrf.mxu1 }
 0x41b   : > { %v11853_v55 = vpop.f32.mrf.mxu1 }
 0x41c   : > { %v11854_v60 = vadd.f32 %v11853_v55, %v11852_v35  ;;  %v16423_v55 = vpop.f32.mrf.mxu0 }
 0x41d   : > { %v11855_v61 = vpop.f32.mrf.mxu1 }
 0x41e   : > { %v16414_v44 = vadd.f32 %v11854_v60, %v16186_v42 }
 0x41f   : > { %v11856_v13 = vpop.f32.mrf.mxu1 }
 0x420   : > { %16876 = vst [vmem:[#allocation43_spill] sm:$0xff] %v16414_v44  ;;  %v11857_v25 = vadd.f32 %v11856_v13, %v11855_v61  ;;  %v16428_v44 = vpop.f32.mrf.mxu0 }
 0x422   : > { %v16419_v10 = vadd.f32 %v11857_v25, %v16188_v12  ;;  %v16433_v13 = vpop.f32.mrf.mxu0 }
 0x423   : > { %16880 = vst [vmem:[#allocation39_spill] sm:$0xff] %v16433_v13 }
 0x424   : > { %16877 = vst [vmem:[#allocation45_spill] sm:$0xff] %v16419_v10 }
 0x425   : > { %v11858_v17 = vpop.f32.mrf.mxu1 }
 0x427   : > { %v11859_v36 = vpop.f32.mrf.mxu1 }
 0x428   : > { %v11860_v59 = vadd.f32 %v11859_v36, %v11858_v17  ;;  %v16435_v17 = vpop.f32.mrf.mxu0 }
 0x429   : > { %v11861_v49 = vpop.f32.mrf.mxu1 }
 0x42a   : > { %v16426_v35 = vadd.f32 %v11860_v59, %v16203_v37 }
 0x42b   : > { %v11862_v42 = vpop.f32.mrf.mxu1 }
 0x42c   : > { %16878 = vst [vmem:[#allocation46_spill] sm:$0xff] %v16426_v35  ;;  %v11863_v60 = vadd.f32 %v11862_v42, %v11861_v49  ;;  %v16440_v35 = vpop.f32.mrf.mxu0 }
 0x42e   : > { %v16431_v61 = vadd.f32 %v11863_v60, %v16205_v3  ;;  %v16445_v42 = vpop.f32.mrf.mxu0 }
 0x42f   : > { %16883 = vst [vmem:[#allocation41_spill] sm:$0xff] %v16445_v42 }
 0x430   : > { %16879 = vst [vmem:[#allocation47_spill] sm:$0xff] %v16431_v61 }
 0x431   : > { %v11864_v12 = vpop.f32.mrf.mxu1 }
 0x433   : > { %v11865_v25 = vpop.f32.mrf.mxu1 }
 0x434   : > { %v11866_v10 = vadd.f32 %v11865_v25, %v11864_v12  ;;  %v16447_v12 = vpop.f32.mrf.mxu0 }
 0x435   : > { %v11867_v8 = vpop.f32.mrf.mxu1 }
 0x436   : > { %v16438_v36 = vadd.f32 %v11866_v10, %v16218_v53 }
 0x437   : > { %v11868_v37 = vpop.f32.mrf.mxu1 }
 0x438   : > { %16881 = vst [vmem:[#allocation40_spill] sm:$0xff] %v16438_v36  ;;  %v11869_v59 = vadd.f32 %v11868_v37, %v11867_v8  ;;  %v16452_v36 = vpop.f32.mrf.mxu0 }
 0x43a   : > { %v16443_v49 = vadd.f32 %v11869_v59, %v16222_v29  ;;  %v16457_v37 = vpop.f32.mrf.mxu0 }
 0x43c   : > { %16882 = vst [vmem:[#allocation42_spill] sm:$0xff] %v16443_v49 }
 0x43d   : > { %v11870_v3 = vpop.f32.mrf.mxu1 }
 0x43f   : > { %v11871_v60 = vpop.f32.mrf.mxu1 }
 0x440   : > { %v11872_v61 = vadd.f32 %v11871_v60, %v11870_v3  ;;  %v16459_v3 = vpop.f32.mrf.mxu0 }
 0x441   : > { %v11873_v13 = vpop.f32.mrf.mxu1 }
 0x442   : > { %v16450_v25 = vadd.f32 %v11872_v61, %v16232_v23 }
 0x443   : > { %v11874_v53 = vpop.f32.mrf.mxu1 }
 0x444   : > { %16884 = vst [vmem:[#allocation51_spill] sm:$0xff] %v16450_v25  ;;  %v11875_v10 = vadd.f32 %v11874_v53, %v11873_v13  ;;  %v16466_v13 = vpop.f32.mrf.mxu0 }
 0x446   : > { %v16455_v8 = vadd.f32 %v11875_v10, %v16234_v14 }
 0x448   : > { %16885 = vst [vmem:[#allocation44_spill] sm:$0xff] %v16455_v8 }
 0x449   : > { %v11876_v29 = vpop.f32.mrf.mxu1 }
 0x44b   : > { %v11877_v59 = vpop.f32.mrf.mxu1 }
 0x44c   : > { %v11878_v49 = vadd.f32 %v11877_v59, %v11876_v29  ;;  %v11912_v29 = vadd.f32 %v16281_v2, %v16277_v22  ;;  %v16477_v59 = vpop.f32.mrf.mxu0 }
 0x44d   : > { %v11879_v42 = vpop.f32.mrf.mxu1 }
 0x44e   : > { %v16462_v60 = vadd.f32 %v11878_v49, %v16240_v1  ;;  %v9115_v49 = vadd.f32 %v11912_v29, %v16292_v30  ;;  %v11924_v29 = vadd.f32 %v16315_v47, %v16310_v27 }
 0x44f   : > { %v11880_v23 = vpop.f32.mrf.mxu1 }
 0x450   : > { %16886 = vst [vmem:[#allocation48_spill] sm:$0xff] %v16462_v60  ;;  %v11881_v61 = vadd.f32 %v11880_v23, %v11879_v42  ;;  %v11915_v23 = vadd.f32 %v16294_v15, %v16285_v58 }
 0x451   : > { %v16464_v25 = vpop.f32.mrf.mxu1 }
 0x452   : > { %v16469_v14 = vadd.f32 %v11881_v61, %v16245_v31  ;;  %v16484_v31 = vpop.f32.mrf.mxu0  ;;  %v9116_v60 = vadd.f32 %v11915_v23, %v16303_v32  ;;  %v9119_v32 = vadd.f32 %v11924_v29, %v16320_v16  ;;  %v11927_v23 = vadd.f32 %v16322_v7, %v16317_v20 }
 0x453   : > { %v16471_v53 = vpop.f32.mrf.mxu1  ;;  %v11936_v20 = vadd.f32 %v16347_v28, %v16345_v52 }
 0x454   : > { %16887 = vst [vmem:[#allocation50_spill] sm:$0xff] %v16469_v14  ;;  %v16489_v14 = vld [vmem:[%s16702_s4] ss:$0 sm:$0xff]  ;;  %v16496_v8 = vpop.f32.mrf.mxu0 }
 0x455   : > { %v16473_v10 = vpop.f32.mrf.mxu1 }
 0x456   : > { %16888 = vst [vmem:[#allocation49_spill] sm:$0xff] %v16473_v10  ;;  %v16507_v47 = vpop.f32.mrf.mxu0 }
 0x457   : > { %v16479_v1 = vpop.f32.mrf.mxu1 }
 0x458   : > { %16889 = vst [vmem:[#allocation52_spill] sm:$0xff] %v16479_v1 }
 0x459   : > { %v12090_v42 = vpop.f32.mrf.mxu1 }
 0x45a   : > { %v9708_v61 = vadd.f32 %v12090_v42, %v9115_v49 }
 0x45b   : > { %v9547_v22 = vpop.f32.mrf.mxu1 }
 0x45c   : > { %v9706_v2 = vadd.f32 %v9547_v22, %v16340_v45  ;;  %v9811_v58 = vadd.f32 %v16489_v14, %v9708_v61 }
 0x45d   : > { %v12091_v30 = vpop.f32.mrf.mxu1 }
 0x45e   : > { %v9709_v15 = vadd.f32 %v12091_v30, %v9116_v60  ;;  %v9809_v42 = vadd.f32 %v16489_v14, %v9706_v2  ;;  %v9843_v22 = vmax.f32 %v9811_v58, 0.0  ;;  %v11921_v2 = vadd.f32 %v16308_v39, %v16305_v0  ;;  %v16516_v58 = vpop.f32.mrf.mxu0 }
 0x45f   : > { %v9550_v49 = vpop.f32.mrf.mxu1 }
 0x460   : > { %v9812_v1 = vadd.f32 %v16489_v14, %v9709_v15  ;;  %v9707_v45 = vadd.f32 %v9550_v49, %v16354_v38  ;;  %v9120_v15 = vadd.f32 %v11927_v23, %v16327_v41  ;;  %v9841_v38 = vmax.f32 %v9809_v42, 0.0 }
 0x461   : > { %v12094_v27 = vpop.f32.mrf.mxu1 }
 0x462   : > { %v9844_v61 = vmax.f32 %v9812_v1, 0.0  ;;  %v9810_v60 = vadd.f32 %v16489_v14, %v9707_v45  ;;  %v9712_v30 = vadd.f32 %v12094_v27, %v9119_v32  ;;  %v9118_v1 = vadd.f32 %v11921_v2, %v16313_v63  ;;  %v16532_v63 = vpop.f32.mrf.mxu0 }
 0x463   : > { %v9563_v10 = vpop.f32.mrf.mxu1  ;;  %v9123_v45 = vadd.f32 %v11936_v20, %v16350_v54  ;;  %v11939_v32 = vadd.f32 %v16363_v43, %v16358_v11 }
 0x464   : > { %v10993_v49 = vpack.c.bf16 %v9844_v61, %v9843_v22  ;;  %v9842_v16 = vmax.f32 %v9810_v60, 0.0  ;;  %v9710_v29 = vadd.f32 %v9563_v10, %v16356_v62  ;;  %v9815_v39 = vadd.f32 %v16489_v14, %v9712_v30 }
 0x465   : > { %v12095_v7 = vpop.f32.mrf.mxu1  ;;  %v11930_v62 = vadd.f32 %v16329_v18, %v16324_v6  ;;  %v11933_v60 = vadd.f32 %v16336_v40, %v16331_v50  ;;  %v9124_v54 = vadd.f32 %v11939_v32, %v16361_v48  ;;  %v11942_v40 = vadd.f32 %v16373_v34, %v16368_v5 }
 0x466   : > { %11065 = vst [vmem:[%s16518_s15 + $0x8] sm:$0xff] %v10993_v49   ;;  %v10988_v0 = vpack.c.bf16 %v9842_v16, %v9841_v38  ;;  %v9713_v41 = vadd.f32 %v12095_v7, %v9120_v15  ;;  %v9813_v52 = vadd.f32 %v16489_v14, %v9710_v29  ;;  %v9847_v22 = vmax.f32 %v9815_v39, 0.0  ;;  %v16540_v49 = vpop.f32.mrf.mxu0 }
 0x467   : > { %v9566_v10 = vpop.f32.mrf.mxu1  ;;  %v9121_v27 = vadd.f32 %v11930_v62, %v16334_v21  ;;  %v11948_v21 = vadd.f32 %v16387_v4, %v16385_v24  ;;  %v9122_v50 = vadd.f32 %v11933_v60, %v16343_v46  ;;  %v11951_v39 = vadd.f32 %v16397_v57, %v16392_v56 }
 0x468   : > { %10989 = vst [vmem:[%s16518_s15] sm:$0xff] %v10988_v0   ;;  %v9816_v28 = vadd.f32 %v16489_v14, %v9713_v41  ;;  %v9711_v42 = vadd.f32 %v9566_v10, %v9118_v1  ;;  %v9845_v2 = vmax.f32 %v9813_v52, 0.0  ;;  %v16890_v1 = vld [vmem:[#allocation36_spill] sm:$0xff]  ;;  %v16554_v10 = vpop.f32.mrf.mxu0  ;;  %v11960_v60 = vadd.f32 %v16421_v51, %v16416_v33 }
 0x469   : > { %v12098_v23 = vpop.f32.mrf.mxu1  ;;  %v9127_v4 = vadd.f32 %v11948_v21, %v16378_v19  ;;  %v9125_v62 = vadd.f32 %v11942_v40, %v16890_v1  ;;  %v11963_v33 = vadd.f32 %v16428_v44, %v16423_v55  ;;  %v16899_v1 = vld [vmem:[#allocation25_spill] sm:$0xff] }
 0x46a   : > { %v9848_v6 = vmax.f32 %v9816_v28, 0.0  ;;  %v9814_v18 = vadd.f32 %v16489_v14, %v9711_v42  ;;  %v9716_v61 = vadd.f32 %v12098_v23, %v9123_v45  ;;  %v16891_v28 = vld [vmem:[#allocation19_spill] sm:$0xff]  ;;  %v16892_v42 = vld [vmem:[#allocation10_spill] sm:$0xff]  ;;  %v16893_v23 = vld [vmem:[#allocation24_spill] sm:$0xff] }
 0x46b   : > { %v9579_v30 = vpop.f32.mrf.mxu1  ;;  %v11945_v45 = vadd.f32 %v16892_v42, %v16891_v28  ;;  %v9128_v19 = vadd.f32 %v11951_v39, %v16893_v23  ;;  %v11972_v42 = vadd.f32 %v16452_v36, %v16447_v12  ;;  %v11975_v12 = vadd.f32 %v16459_v3, %v16457_v37 }
 0x46c   : > { %v11003_v11 = vpack.c.bf16 %v9848_v6, %v9847_v22  ;;  %v9846_v43 = vmax.f32 %v9814_v18, 0.0  ;;  %v9714_v15 = vadd.f32 %v9579_v30, %v9121_v27  ;;  %v9819_v29 = vadd.f32 %v16489_v14, %v9716_v61  ;;  %v16894_v18 = vld [vmem:[#allocation20_spill] sm:$0xff]  ;;  %v16563_v30 = vpop.f32.mrf.mxu0 }
 0x46d   : > { %v12099_v38 = vpop.f32.mrf.mxu1  ;;  %v9126_v61 = vadd.f32 %v11945_v45, %v16894_v18 }
 0x46e   : > { %11067 = vst [vmem:[%s16518_s15 + $0x18] sm:$0xff] %v11003_v11   ;;  %v10998_v16 = vpack.c.bf16 %v9846_v43, %v9845_v2  ;;  %v9717_v20 = vadd.f32 %v12099_v38, %v9124_v54  ;;  %v9817_v7 = vadd.f32 %v16489_v14, %v9714_v15  ;;  %v9851_v46 = vmax.f32 %v9819_v29, 0.0  ;;  %v16895_v29 = vld [vmem:[#allocation23_spill] sm:$0xff] }
 0x46f   : > { %v9582_v48 = vpop.f32.mrf.mxu1  ;;  %v11954_v43 = vadd.f32 %v16407_v26, %v16402_v9 }
 0x470   : > { %11066 = vst [vmem:[%s16518_s15 + $0x10] sm:$0xff] %v10998_v16   ;;  %v9820_v0 = vadd.f32 %v16489_v14, %v9717_v20  ;;  %v9715_v24 = vadd.f32 %v9582_v48, %v9122_v50  ;;  %v9849_v27 = vmax.f32 %v9817_v7, 0.0  ;;  %v9131_v20 = vadd.f32 %v11960_v60, %v16895_v29  ;;  %v16896_v50 = vld [vmem:[#allocation21_spill] sm:$0xff]  ;;  %v16576_v48 = vpop.f32.mrf.mxu0  ;;  %v16902_v60 = vld [vmem:[#allocation46_spill] sm:$0xff] }
 0x471   : > { %v12102_v41 = vpop.f32.mrf.mxu1  ;;  %v9129_v40 = vadd.f32 %v11954_v43, %v16896_v50  ;;  %v9135_v36 = vadd.f32 %v11972_v42, %v16902_v60 }
 0x472   : > { %v9852_v5 = vmax.f32 %v9820_v0, 0.0  ;;  %v9818_v34 = vadd.f32 %v16489_v14, %v9715_v24  ;;  %v9720_v52 = vadd.f32 %v12102_v41, %v9127_v4  ;;  %v16897_v24 = vld [vmem:[#allocation38_spill] sm:$0xff]  ;;  %v16898_v4 = vld [vmem:[#allocation37_spill] sm:$0xff]  ;;  %v16585_v45 = vpop.f32.mrf.mxu0 }
 0x473   : > { %v9595_v32 = vpop.f32.mrf.mxu1  ;;  %v11957_v39 = vadd.f32 %v16898_v4, %v16897_v24 }
 0x474   : > { %v11013_v56 = vpack.c.bf16 %v9852_v5, %v9851_v46  ;;  %v9850_v57 = vmax.f32 %v9818_v34, 0.0  ;;  %v9718_v22 = vadd.f32 %v9595_v32, %v9125_v62  ;;  %v9823_v2 = vadd.f32 %v16489_v14, %v9720_v52  ;;  %v16900_v52 = vld [vmem:[#allocation22_spill] sm:$0xff] }
 0x475   : > { %v12103_v6 = vpop.f32.mrf.mxu1  ;;  %v9132_v62 = vadd.f32 %v11963_v33, %v16899_v1  ;;  %v9130_v28 = vadd.f32 %v11957_v39, %v16900_v52  ;;  %v11978_v39 = vadd.f32 %v16477_v59, %v16466_v13  ;;  %v16908_v59 = vld [vmem:[#allocation40_spill] sm:$0xff] }
 0x476   : > { %11069 = vst [vmem:[%s16518_s15 + $0x28] sm:$0xff] %v11013_v56   ;;  %v11008_v54 = vpack.c.bf16 %v9850_v57, %v9849_v27  ;;  %v9721_v11 = vadd.f32 %v12103_v6, %v9128_v19  ;;  %v9821_v21 = vadd.f32 %v16489_v14, %v9718_v22  ;;  %v9855_v7 = vmax.f32 %v9823_v2, 0.0  ;;  %v16901_v27 = vld [vmem:[#allocation39_spill] sm:$0xff]  ;;  %v11994_v22 = vpop.f32.mrf.mxu0 }
 0x477   : > { %v9598_v15 = vpop.f32.mrf.mxu1  ;;  %v11966_v56 = vadd.f32 %v16435_v17, %v16901_v27  ;;  %v16903_v2 = vld [vmem:[#allocation43_spill] sm:$0xff]  ;;  %v9137_v52 = vadd.f32 %v11978_v39, %v16908_v59  ;;  %v16910_v27 = vld [vmem:[#allocation49_spill] sm:$0xff] }
 0x478   : > { %11068 = vst [vmem:[%s16518_s15 + $0x20] sm:$0xff] %v11008_v54   ;;  %v9824_v38 = vadd.f32 %v16489_v14, %v9721_v11  ;;  %v9719_v16 = vadd.f32 %v9598_v15, %v9126_v61  ;;  %v9853_v46 = vmax.f32 %v9821_v21, 0.0 }
 0x479   : > { %v12106_v51 = vpop.f32.mrf.mxu1  ;;  %v9133_v11 = vadd.f32 %v11966_v56, %v16903_v2  ;;  %v16911_v56 = vld [vmem:[#allocation52_spill] sm:$0xff] }
 0x47a   : > { %v9856_v9 = vmax.f32 %v9824_v38, 0.0  ;;  %v9822_v26 = vadd.f32 %v16489_v14, %v9719_v16  ;;  %v9724_v0 = vadd.f32 %v12106_v51, %v9131_v20  ;;  %v16904_v38 = vld [vmem:[#allocation41_spill] sm:$0xff]  ;;  %v16905_v20 = vld [vmem:[#allocation47_spill] sm:$0xff]  ;;  %v11995_v51 = vpop.f32.mrf.mxu0 }
 0x47b   : > { %v9611_v41 = vpop.f32.mrf.mxu1  ;;  %v11969_v16 = vadd.f32 %v16904_v38, %v16440_v35  ;;  %v9136_v33 = vadd.f32 %v11975_v12, %v16905_v20 }
 0x47c   : > { %v11023_v44 = vpack.c.bf16 %v9856_v9, %v9855_v7  ;;  %v9854_v55 = vmax.f32 %v9822_v26, 0.0  ;;  %v9722_v5 = vadd.f32 %v9611_v41, %v9129_v40  ;;  %v9827_v23 = vadd.f32 %v16489_v14, %v9724_v0  ;;  %v16906_v9 = vld [vmem:[#allocation45_spill] sm:$0xff] }
 0x47d   : > { %v12107_v34 = vpop.f32.mrf.mxu1  ;;  %v9134_v26 = vadd.f32 %v11969_v16, %v16906_v9  ;;  %v11984_v0 = vadd.f32 %v16516_v58, %v16507_v47  ;;  %v11884_v41 = vadd.f32 %v16471_v53, %v16464_v25  ;;  %v16907_v47 = vld [vmem:[#allocation51_spill] sm:$0xff] }
 0x47e   : > { %11071 = vst [vmem:[%s16518_s15 + $0x38] sm:$0xff] %v11023_v44   ;;  %v11018_v32 = vpack.c.bf16 %v9854_v55, %v9853_v46  ;;  %v9725_v19 = vadd.f32 %v12107_v34, %v9132_v62  ;;  %v9825_v6 = vadd.f32 %v16489_v14, %v9722_v5  ;;  %v9859_v43 = vmax.f32 %v9827_v23, 0.0  ;;  %v11997_v62 = vpop.f32.mrf.mxu0 }
 0x47f   : > { %v9614_v57 = vpop.f32.mrf.mxu1  ;;  %v9139_v58 = vadd.f32 %v11984_v0, %v16907_v47  ;;  %v11981_v5 = vadd.f32 %v16496_v8, %v16484_v31  ;;  %v11987_v34 = vadd.f32 %v16540_v49, %v16532_v63  ;;  %v16912_v8 = vld [vmem:[#allocation44_spill] sm:$0xff] }
 0x480   : > { %11070 = vst [vmem:[%s16518_s15 + $0x30] sm:$0xff] %v11018_v32   ;;  %v9828_v18 = vadd.f32 %v16489_v14, %v9725_v19  ;;  %v9723_v61 = vadd.f32 %v9614_v57, %v9130_v28  ;;  %v9857_v50 = vmax.f32 %v9825_v6, 0.0  ;;  %v16909_v32 = vld [vmem:[#allocation18_spill] sm:$0xff]  ;;  %v11996_v19 = vadd.f32 %v11995_v51, %v11994_v22  ;;  %v11998_v63 = vpop.f32.mrf.mxu0 }
 0x481   : > { %v12110_v54 = vpop.f32.mrf.mxu1  ;;  %v8165_v23 = vadd.f32 %v11884_v41, %v16909_v32  ;;  %v11887_v57 = vadd.f32 %v16911_v56, %v16910_v27  ;;  %v9140_v31 = vadd.f32 %v11987_v34, %v16912_v8 }
 0x482   : > { %v9860_v15 = vmax.f32 %v9828_v18, 0.0  ;;  %v9826_v17 = vadd.f32 %v16489_v14, %v9723_v61  ;;  %v9728_v21 = vadd.f32 %v12110_v54, %v9135_v36 }
 0x483   : > { %v9627_v29 = vpop.f32.mrf.mxu1 }
 0x484   : > { %v11033_v40 = vpack.c.bf16 %v9860_v15, %v9859_v43  ;;  %v9858_v37 = vmax.f32 %v9826_v17, 0.0  ;;  %v9726_v3 = vadd.f32 %v9627_v29, %v9133_v11  ;;  %v9831_v4 = vadd.f32 %v16489_v14, %v9728_v21  ;;  %v16913_v11 = vld [vmem:[#allocation42_spill] sm:$0xff]  ;;  %v16914_v15 = vld [vmem:[#allocation35_spill] sm:$0xff] }
 0x485   : > { %v12111_v7 = vpop.f32.mrf.mxu1  ;;  %v9138_v22 = vadd.f32 %v11981_v5, %v16913_v11  ;;  %v11990_v43 = vadd.f32 %v16563_v30, %v16554_v10  ;;  %v8166_v17 = vadd.f32 %v11887_v57, %v16914_v15  ;;  %v11999_v21 = vadd.f32 %v11998_v63, %v11997_v62 }
 0x486   : > { %11073 = vst [vmem:[%s16518_s15 + $0x48] sm:$0xff] %v11033_v40   ;;  %v11028_v24 = vpack.c.bf16 %v9858_v37, %v9857_v50  ;;  %v9729_v35 = vadd.f32 %v12111_v7, %v9136_v33  ;;  %v9829_v46 = vadd.f32 %v16489_v14, %v9726_v3  ;;  %v9863_v25 = vmax.f32 %v9831_v4, 0.0  ;;  %v16915_v50 = vld [vmem:[#allocation48_spill] sm:$0xff] }
 0x487   : > { %v9630_v1 = vpop.f32.mrf.mxu1  ;;  %v9143_v33 = vadd.f32 %v11996_v19, %v8165_v23  ;;  %v9141_v40 = vadd.f32 %v11990_v43, %v16915_v50  ;;  %v11993_v30 = vadd.f32 %v16585_v45, %v16576_v48 }
 0x488   : > { %11072 = vst [vmem:[%s16518_s15 + $0x40] sm:$0xff] %v11028_v24   ;;  %v9832_v44 = vadd.f32 %v16489_v14, %v9729_v35  ;;  %v9727_v55 = vadd.f32 %v9630_v1, %v9134_v26  ;;  %v9861_v49 = vmax.f32 %v9829_v46, 0.0  ;;  %v9144_v26 = vadd.f32 %v11999_v21, %v8166_v17  ;;  %v16916_v46 = vld [vmem:[#allocation50_spill] sm:$0xff] }
 0x489   : > { %v12114_v13 = vpop.f32.mrf.mxu1 }
 0x48a   : > { %v9864_v53 = vmax.f32 %v9832_v44, 0.0  ;;  %v9830_v28 = vadd.f32 %v16489_v14, %v9727_v55  ;;  %v9732_v42 = vadd.f32 %v12114_v13, %v9139_v58  ;;  %v9142_v44 = vadd.f32 %v11993_v30, %v16916_v46 }
 0x48b   : > { %v9643_v6 = vpop.f32.mrf.mxu1 }
 0x48c   : > { %v11043_v18 = vpack.c.bf16 %v9864_v53, %v9863_v25  ;;  %v9862_v61 = vmax.f32 %v9830_v28, 0.0  ;;  %v9730_v60 = vadd.f32 %v9643_v6, %v9137_v52  ;;  %v9835_v54 = vadd.f32 %v16489_v14, %v9732_v42 }
 0x48d   : > { %v12115_v36 = vpop.f32.mrf.mxu1 }
 0x48e   : > { %11075 = vst [vmem:[%s16518_s15 + $0x58] sm:$0xff] %v11043_v18   ;;  %v11038_v12 = vpack.c.bf16 %v9862_v61, %v9861_v49  ;;  %v9733_v2 = vadd.f32 %v12115_v36, %v9140_v31  ;;  %v9833_v16 = vadd.f32 %v16489_v14, %v9730_v60  ;;  %v9867_v37 = vmax.f32 %v9835_v54, 0.0 }
 0x48f   : > { %v9646_v38 = vpop.f32.mrf.mxu1 }
 0x490   : > { %11074 = vst [vmem:[%s16518_s15 + $0x50] sm:$0xff] %v11038_v12   ;;  %v9836_v29 = vadd.f32 %v16489_v14, %v9733_v2  ;;  %v9731_v20 = vadd.f32 %v9646_v38, %v9138_v22  ;;  %v9865_v0 = vmax.f32 %v9833_v16, 0.0 }
 0x491   : > { %v12118_v51 = vpop.f32.mrf.mxu1 }
 0x492   : > { %v9868_v3 = vmax.f32 %v9836_v29, 0.0  ;;  %v9834_v7 = vadd.f32 %v16489_v14, %v9731_v20  ;;  %v9736_v10 = vadd.f32 %v12118_v51, %v9143_v33 }
 0x493   : > { %v9659_v9 = vpop.f32.mrf.mxu1 }
 0x494   : > { %v11053_v24 = vpack.c.bf16 %v9868_v3, %v9867_v37  ;;  %v9866_v4 = vmax.f32 %v9834_v7, 0.0  ;;  %v9734_v35 = vadd.f32 %v9659_v9, %v9141_v40  ;;  %v9839_v1 = vadd.f32 %v16489_v14, %v9736_v10 }
 0x495   : > { %v12119_v39 = vpop.f32.mrf.mxu1 }
 0x496   : > { %11077 = vst [vmem:[%s16518_s15 + $0x68] sm:$0xff] %v11053_v24   ;;  %v11048_v41 = vpack.c.bf16 %v9866_v4, %v9865_v0  ;;  %v9737_v62 = vadd.f32 %v12119_v39, %v9144_v26  ;;  %v9837_v48 = vadd.f32 %v16489_v14, %v9734_v35  ;;  %v9871_v58 = vmax.f32 %v9839_v1, 0.0 }
 0x497   : > { %v9662_v55 = vpop.f32.mrf.mxu1 }
 0x498   : > { %11076 = vst [vmem:[%s16518_s15 + $0x60] sm:$0xff] %v11048_v41   ;;  %v9840_v45 = vadd.f32 %v16489_v14, %v9737_v62  ;;  %v9735_v47 = vadd.f32 %v9662_v55, %v9142_v44  ;;  %v9869_v13 = vmax.f32 %v9837_v48, 0.0 }
 0x49a   : > { %v9872_v5 = vmax.f32 %v9840_v45, 0.0  ;;  %v9838_v34 = vadd.f32 %v16489_v14, %v9735_v47 }
 0x49c   : > { %v11063_v59 = vpack.c.bf16 %v9872_v5, %v9871_v58  ;;  %v9870_v52 = vmax.f32 %v9838_v34, 0.0 }
 0x49e   : > { %11079 = vst [vmem:[%s16518_s15 + $0x78] sm:$0xff] %v11063_v59   ;;  %v11058_v25 = vpack.c.bf16 %v9870_v52, %v9869_v13 }
 0x4a0   : > { %11078 = vst [vmem:[%s16518_s15 + $0x70] sm:$0xff] %v11058_v25  }
 0x4a1   : > { %12457 = shalt.err (!%p12454_p0)
}
 0x4a2   : > { %s12458_s8 = scalar_lea.hbm %s16650_s26, 2048  ;;  %s12462_s11 = scalar_lea.hbm %s16703_s5, 4096 }
 0x4a3   : > { %p12459_p1 = scmp.ne.s32.totalorder %s16650_s26, %s12458_s8  ;;  %p12463_p4 = scmp.lt.s32.totalorder %s16650_s26, %s16703_s5 }
 0x4a4   : > { %p12464_p7 = scmp.lt.s32.totalorder %s12462_s11, %s12458_s8 }
 0x4a5   : > { %p12460_p2 = pnand %p12459_p1, %p12585_p5 }
 0x4a6   : > { %p12465_p6 = por %p12464_p7, %p12463_p4 }
 0x4a7   : > { %p12461_p3 = pneg %p12460_p2 }
 0x4a9   : > { %p12466_p8 = pnand %p12465_p6, %p12461_p3 }
 0x4ab   : > { %12469 = shalt.err (!%p12466_p8)
}
 0x4ac   : > { %s12515_s15 = smov 64   ;;  %s12516_s16 = smov 4  }
 0x4ad   : > { %12125 = dma.vmem_to_hbm [thread:$0]  (%p12585_p5), %s16652_s17, 2048, %s16650_s26, %s16658_s30, %s12515_s15, %s12515_s15, %s12516_s16  }
 0x4ae PF: > { %p12137_p9 = scmp.ge.s32.totalorder %s12508_s21, 2  ;;  %s10062_s23 = sand.u32 1, %s12496_s18  }
 0x4af   : > { %p16917_p10 = scmp.ne.s32.totalorder %s16711_s29, 0  ;;  %s10063_s25 = scalar_lea.sflag [#allocation6], %s10062_s23 }
 0x4b1   : > { %p12132_p11 = pnand %p12137_p9, %p16917_p10 }
 0x4b3   : > { %p12133_p12 = pneg %p12132_p11 }
 0x4b5   : > { %12491 = dma.done.wait (%p12133_p12), %s10063_s25, 2048  }
 0x4b6   : > { %12493 = vsyncadd (%p12133_p12), %s10063_s25, 4294965248  ;;  %p16_p13 = scmp.ge.s32.totalorder %s12572_s24, 4   ;;  %s16918_s18 = smov %s12500_s19 }
 0x4b7   : > { %s16919_s19 = smov %s12504_s20  ;;  %s16920_s20 = smov %s12583_s27 }
 0x4b8   : > { %s16921_s21 = smov %s12572_s24  ;;  %18 = sbr.rel (!%p16_p13) target bundleno = 4 (0x4), region = 85 }
 0x4bd   :  { %10068 = vsyncpa [#allocation5], 1 }
 0x4be   :  { %10070 = vsyncpa [#allocation5 + $0x1], 1 }
 0x4bf   :  { %10071 = vsyncpa [#allocation6], 1 }
 0x4c0   :  { %10073 = vsyncpa [#allocation6 + $0x1], 1 }

</bundles_post_ra>
